<compile_context>
chip_gen: v5e
topology: v5e:2x2
jax: 0.10.0
libtpu: 0.0.40
codegen_flags: <defaults>
</compile_context>

<pallas_src>
import numpy as np
import jax
import jax.numpy as jnp
from jax.experimental import pallas as pl
from jax.experimental.pallas import tpu as pltpu


# ----------------------------- configuration --------------------------------
B = 2                      # batch
NUM_IMAGES = 2             # camera images
IMG = 16                   # image spatial size (H = W)
PATCH = 4                  # patch size -> 16 patches
N_PATCH = (IMG // PATCH) ** 2
SEQ = N_PATCH + 1          # +1 CLS token -> 17
SEQ_PAD = 24               # padded to a multiple of 8 sublanes
EMB = 32                   # embedding dim (scaled-down stand-in for 768)
DEPTH = 2                  # transformer blocks (scaled-down stand-in for 12)
HEADS = 2
HEAD_DIM = EMB // HEADS
MLP_DIM = 4 * EMB
SPEED_DIM = 1
SPEED_LATENT = 16          # scaled-down stand-in for 128
HIDDEN = 32                # scaled-down stand-in for 256
NUM_BRANCH = 6
FEAT = EMB + SPEED_LATENT  # 48
NB = NUM_IMAGES * B        # sequences processed together in the kernel
PF = PATCH * PATCH * 3     # 48 patch features


# ----------------------- packed weight-slab layouts --------------------------
def _build_layout(entries):
    lay, off = {}, 0
    for name, rows, cols in entries:
        lay[name] = (off, rows, cols)
        off += ((rows + 7) // 8) * 8        # every block 8-row (sublane) aligned
    return lay, off


def _wa_entries():                           # narrow slab (width 32)
    e = [("pe_w", PF, EMB), ("posfull", NB * SEQ_PAD, EMB),
         ("norm_g", 1, EMB), ("norm_b", 1, EMB)]
    for d in range(DEPTH):
        e += [(f"ln1_g{d}", 1, EMB), (f"ln1_b{d}", 1, EMB)]
        for h in range(HEADS):
            e += [(f"qw{d}_{h}", EMB, HEAD_DIM), (f"kw{d}_{h}", EMB, HEAD_DIM),
                  (f"vw{d}_{h}", EMB, HEAD_DIM),
                  (f"qb{d}_{h}", 1, HEAD_DIM), (f"kb{d}_{h}", 1, HEAD_DIM),
                  (f"vb{d}_{h}", 1, HEAD_DIM),
                  (f"pw{d}_{h}", HEAD_DIM, EMB)]
        e += [(f"proj_b{d}", 1, EMB), (f"ln2_g{d}", 1, EMB), (f"ln2_b{d}", 1, EMB),
              (f"fc2_w{d}", MLP_DIM, EMB), (f"fc2_b{d}", 1, EMB)]
    e += [("si_w1", SPEED_DIM, HIDDEN), ("si_b1", 1, HIDDEN),
          ("si_w2", HIDDEN, SPEED_LATENT), ("si_b2", 1, SPEED_LATENT),
          ("so_w1", FEAT, HIDDEN), ("so_b1", 1, HIDDEN),
          ("so_w2", HIDDEN, HIDDEN), ("so_b2", 1, HIDDEN),
          ("so_w3", 1, HIDDEN), ("so_b3", 1, 1),
          ("br_w3", NUM_BRANCH * HIDDEN, 3 * NUM_BRANCH),
          ("br_b3", 1, 3 * NUM_BRANCH)]
    return e


def _wb_entries():                           # wide slab (width 192)
    e = []
    for d in range(DEPTH):
        e += [(f"fc1_w{d}", EMB, MLP_DIM), (f"fc1_b{d}", 1, MLP_DIM)]
    e += [("br_w1", FEAT, NUM_BRANCH * HIDDEN), ("br_b1", 1, NUM_BRANCH * HIDDEN),
          ("br_w2", NUM_BRANCH * HIDDEN, NUM_BRANCH * HIDDEN),
          ("br_b2", 1, NUM_BRANCH * HIDDEN)]
    return e


WA_WIDTH = max(EMB, HIDDEN, 3 * NUM_BRANCH)      # 32
WB_WIDTH = max(MLP_DIM, NUM_BRANCH * HIDDEN)     # 192
WA_LAYOUT, WA_ROWS = _build_layout(_wa_entries())
WB_LAYOUT, WB_ROWS = _build_layout(_wb_entries())


# ------------------------------ kernel helpers -------------------------------
def _layer_norm(x, g, b, eps=1e-6):
    # eps=1e-6 matches the MAE ViT (timm) LayerNorm convention.
    mu = jnp.mean(x, axis=-1, keepdims=True)
    var = jnp.mean((x - mu) ** 2, axis=-1, keepdims=True)
    return (x - mu) * jax.lax.rsqrt(var + eps) * g + b


# ------------------------------ fused kernel ---------------------------------
def _fused_kernel(patch_ref, sc_ref, wa_ref, wb_ref, out_ref):
    f32 = jnp.float32

    def ga(name):                         # slice out of the narrow slab
        off, r, c = WA_LAYOUT[name]
        return wa_ref[off:off + r, 0:c]

    def gb(name):                         # slice out of the wide slab
        off, r, c = WB_LAYOUT[name]
        return wb_ref[off:off + r, 0:c]

    # ------------------------------ encoder ----------------------------------
    # Patch embed (ImageNet mean/std folded into pe_w).  pe bias + positional
    # embeds + CLS token are pre-baked in `posfull`, and the CLS / padding rows
    # of patch_ref are zero, so one matmul + add assembles the token stream.
    tok = jnp.dot(patch_ref[...], ga("pe_w"), preferred_element_type=f32)
    x = tok + ga("posfull")                                   # (NB*SEQ_PAD, EMB)
    # NOTE: mask_ratio=0 random shuffle is a no-op for the CLS output -> omitted.

    # Key mask: padded tokens (cols SEQ..SEQ_PAD-1) are never attended to.
    kmask = jnp.where(
        jax.lax.broadcasted_iota(jnp.int32, (1, SEQ_PAD), 1) < SEQ,
        0.0, -1e30).astype(f32)

    scale = HEAD_DIM ** -0.5
    for d in range(DEPTH):                                    # unrolled, tiny
        # --- multi-head self-attention (pre-LN), per-head pre-split weights ---
        h_ln = _layer_norm(x, ga(f"ln1_g{d}"), ga(f"ln1_b{d}"))
        attn = None
        for h in range(HEADS):
            q = (jnp.dot(h_ln, ga(f"qw{d}_{h}"), preferred_element_type=f32)
                 + ga(f"qb{d}_{h}")) * scale
            k = (jnp.dot(h_ln, ga(f"kw{d}_{h}"), preferred_element_type=f32)
                 + ga(f"kb{d}_{h}"))
            v = (jnp.dot(h_ln, ga(f"vw{d}_{h}"), preferred_element_type=f32)
                 + ga(f"vb{d}_{h}"))
            o_rows = []
            for bi in range(NB):                  # SEQ_PAD=24 -> 8-aligned rows
                r0 = bi * SEQ_PAD
                qs = q[r0:r0 + SEQ_PAD, :]
                ks = k[r0:r0 + SEQ_PAD, :]
                vs = v[r0:r0 + SEQ_PAD, :]
                logits = jax.lax.dot_general(
                    qs, ks, (((1,), (1,)), ((), ())),
                    preferred_element_type=f32) + kmask
                logits = logits - jnp.max(logits, axis=-1, keepdims=True)
                p = jnp.exp(logits)
                p = p * pl.reciprocal(jnp.sum(p, axis=-1, keepdims=True),
                                      approx=True)
                o_rows.append(jnp.dot(p, vs, preferred_element_type=f32))
            o = jnp.concatenate(o_rows, axis=0)               # (NB*SEQ_PAD, HD)
            contrib = jnp.dot(o, ga(f"pw{d}_{h}"), preferred_element_type=f32)
            attn = contrib if attn is None else attn + contrib
        x = x + attn + ga(f"proj_b{d}")

        # --- MLP ---
        h2 = _layer_norm(x, ga(f"ln2_g{d}"), ga(f"ln2_b{d}"))
        m = jnp.dot(h2, gb(f"fc1_w{d}"), preferred_element_type=f32) \
            + gb(f"fc1_b{d}")
        # TODO(synk): jax.nn.gelu is tanh-approx; PyTorch nn.GELU default is exact erf.
        m = jax.nn.gelu(m)
        x = x + jnp.dot(m, ga(f"fc2_w{d}"), preferred_element_type=f32) \
            + ga(f"fc2_b{d}")

    # Final LayerNorm on the CLS rows, summed over camera images
    # (the `embedding += emb` loop of the module; LN is row-wise so slicing
    # the CLS rows first is exact).
    emb = None
    for img in range(NUM_IMAGES):
        rows = [x[(img * B + bi) * SEQ_PAD:(img * B + bi) * SEQ_PAD + 1, :]
                for bi in range(B)]
        cls_i = _layer_norm(jnp.concatenate(rows, axis=0),
                            ga("norm_g"), ga("norm_b"))        # (B, EMB)
        emb = cls_i if emb is None else emb + cls_i

    # -------------------------------- head -----------------------------------
    speed = sc_ref[:, 0:1]                                     # (B, 1)
    cmd = sc_ref[:, 1:2]                                       # (B, 1)

    # speed_in: Linear(1->H) done as a broadcast multiply (no K=1 MXU push).
    hs = jnp.maximum(speed * ga("si_w1") + ga("si_b1"), 0.0)
    slat = jnp.dot(hs, ga("si_w2"), preferred_element_type=f32) + ga("si_b2")
    feat = jnp.concatenate([emb, slat], axis=1)                # (B, FEAT)
    # TODO(synk): bn_head (BatchNorm1d) path skipped -- module default bn=False.

    # 6 command branches as 3 lane-dense matmuls (layer 1 concatenated to
    # 6*HIDDEN lanes, layers 2/3 block-diagonal) + sigmoid.
    b1 = jnp.maximum(jnp.dot(feat, gb("br_w1"), preferred_element_type=f32)
                     + gb("br_b1"), 0.0)
    b2 = jnp.maximum(jnp.dot(b1, gb("br_w2"), preferred_element_type=f32)
                     + gb("br_b2"), 0.0)
    br = jax.nn.sigmoid(jnp.dot(b2, ga("br_w3"), preferred_element_type=f32)
                        + ga("br_b3"))                         # (B, 18)

    # One-hot command gate: branch i is active when command == i + 1.
    idx = (jax.lax.broadcasted_iota(jnp.int32, (1, NUM_BRANCH), 1) + 1
           ).astype(f32)
    onehot = (cmd == idx).astype(f32)                          # (B, NUM_BRANCH)
    ctrl = br[:, 0:3] * onehot[:, 0:1]
    for i in range(1, NUM_BRANCH):
        ctrl = ctrl + br[:, 3 * i:3 * i + 3] * onehot[:, i:i + 1]

    # speed_out: Linear -> ReLU -> Linear -> ReLU -> Linear (N=1 as row reduce).
    s1 = jnp.maximum(jnp.dot(feat, ga("so_w1"), preferred_element_type=f32)
                     + ga("so_b1"), 0.0)
    s2 = jnp.maximum(jnp.dot(s1, ga("so_w2"), preferred_element_type=f32)
                     + ga("so_b2"), 0.0)
    spd = jnp.sum(s2 * ga("so_w3"), axis=-1, keepdims=True) + ga("so_b3")

    # Single merged output store: [steer, throttle, brake | speed].
    out_ref[...] = jnp.concatenate([ctrl, spd], axis=1)        # (B, 4)


# ---------------------------- pallas_call wrapper -----------------------------
def _resident(shape):
    nd = len(shape)
    return pl.BlockSpec(shape, lambda i, _nd=nd: (0,) * _nd)


def cilrs_mae_forward(params, input_images, speed, command):
    imgs = jnp.stack(input_images, axis=0)                     # (NI, B, 3, H, W)
    ni, batch = imgs.shape[0], imgs.shape[1]
    assert ni == NUM_IMAGES and batch == B
    hp = IMG // PATCH
    # NCHW -> patch rows with channel-major (c, dy, dx) features (the ordering
    # folded into pe_w at init).  CLS slot + sequence padding are zero rows so
    # the kernel needs no in-kernel token concatenation.
    p = imgs.reshape(ni * batch, 3, hp, PATCH, hp, PATCH)
    p = p.transpose(0, 2, 4, 1, 3, 5)                          # (nb, py, px, c, dy, dx)
    p = p.reshape(ni * batch, N_PATCH, PF)
    p = jnp.pad(p, ((0, 0), (1, SEQ_PAD - 1 - N_PATCH), (0, 0)))
    patches = p.reshape(ni * batch * SEQ_PAD, PF)              # (NB*SEQ_PAD, PF)

    if speed.ndim == 1:
        speed = speed[:, None]
    if command.ndim == 1:
        command = command[:, None]
    sc = jnp.concatenate([speed, command], axis=1).astype(jnp.float32)  # (B, 2)

    out = pl.pallas_call(
        _fused_kernel,
        grid=(1,),
        out_shape=jax.ShapeDtypeStruct((batch, 4), jnp.float32),
        in_specs=[_resident(patches.shape), _resident(sc.shape),
                  _resident(params["wa"].shape), _resident(params["wb"].shape)],
        out_specs=_resident((batch, 4)),
        compiler_params=pltpu.CompilerParams(
            dimension_semantics=("arbitrary",)),
    )(patches, sc, params["wa"], params["wb"])
    return out[:, 0:3], out[:, 3:4]


# ------------------------------ parameter init --------------------------------
def init_params(key):
    keys = jax.random.split(key, 256)
    kit = iter(keys)

    def rnd(shape, scale=0.02):
        return np.asarray(scale * jax.random.normal(next(kit), shape),
                          dtype=np.float32)

    wa = np.zeros((WA_ROWS, WA_WIDTH), np.float32)
    wb = np.zeros((WB_ROWS, WB_WIDTH), np.float32)

    def put_a(name, arr):
        off, r, c = WA_LAYOUT[name]
        assert arr.shape == (r, c), (name, arr.shape, (r, c))
        wa[off:off + r, :c] = arr

    def put_b(name, arr):
        off, r, c = WB_LAYOUT[name]
        assert arr.shape == (r, c), (name, arr.shape, (r, c))
        wb[off:off + r, :c] = arr

    # Patch embed with ImageNet normalization folded in; feature order (c,dy,dx):
    #   ((x - m)/s) @ W + b == x @ (W/s) + (b - (m/s) @ W)
    pe_w_raw = rnd((PF, EMB))
    pe_b_raw = np.zeros((EMB,), np.float32)
    mean = np.repeat(np.array([0.485, 0.456, 0.406], np.float32), PATCH * PATCH)
    std = np.repeat(np.array([0.229, 0.224, 0.225], np.float32), PATCH * PATCH)
    put_a("pe_w", pe_w_raw / std[:, None])
    fold_b = pe_b_raw - (mean / std) @ pe_w_raw                 # (EMB,)

    # CLS token + positional embeddings (+ folded pe bias) pre-baked per token
    # slot; tiled over the NB sequences so the kernel adds it in one op.
    cls_token = rnd((1, EMB))
    pos_embed = rnd((SEQ, EMB))
    posfull = np.zeros((SEQ_PAD, EMB), np.float32)
    posfull[0] = cls_token[0] + pos_embed[0]
    posfull[1:1 + N_PATCH] = pos_embed[1:] + fold_b[None, :]
    put_a("posfull", np.tile(posfull, (NB, 1)))

    put_a("norm_g", np.ones((1, EMB), np.float32))
    put_a("norm_b", np.zeros((1, EMB), np.float32))

    for d in range(DEPTH):
        put_a(f"ln1_g{d}", np.ones((1, EMB), np.float32))
        put_a(f"ln1_b{d}", np.zeros((1, EMB), np.float32))
        for h in range(HEADS):                 # q/k/v and out-proj pre-split per head
            put_a(f"qw{d}_{h}", rnd((EMB, HEAD_DIM)))
            put_a(f"kw{d}_{h}", rnd((EMB, HEAD_DIM)))
            put_a(f"vw{d}_{h}", rnd((EMB, HEAD_DIM)))
            put_a(f"qb{d}_{h}", np.zeros((1, HEAD_DIM), np.float32))
            put_a(f"kb{d}_{h}", np.zeros((1, HEAD_DIM), np.float32))
            put_a(f"vb{d}_{h}", np.zeros((1, HEAD_DIM), np.float32))
            put_a(f"pw{d}_{h}", rnd((HEAD_DIM, EMB)))
        put_a(f"proj_b{d}", np.zeros((1, EMB), np.float32))
        put_a(f"ln2_g{d}", np.ones((1, EMB), np.float32))
        put_a(f"ln2_b{d}", np.zeros((1, EMB), np.float32))
        put_b(f"fc1_w{d}", rnd((EMB, MLP_DIM)))
        put_b(f"fc1_b{d}", np.zeros((1, MLP_DIM), np.float32))
        put_a(f"fc2_w{d}", rnd((MLP_DIM, EMB)))
        put_a(f"fc2_b{d}", np.zeros((1, EMB), np.float32))

    # speed_in MLP
    put_a("si_w1", rnd((SPEED_DIM, HIDDEN)))
    put_a("si_b1", np.zeros((1, HIDDEN), np.float32))
    put_a("si_w2", rnd((HIDDEN, SPEED_LATENT)))
    put_a("si_b2", np.zeros((1, SPEED_LATENT), np.float32))

    # 6 command branches: layer 1 concatenated along output columns,
    # layers 2/3 block-diagonal (numerically identical to per-branch MLPs).
    w1s = [rnd((FEAT, HIDDEN)) for _ in range(NUM_BRANCH)]
    w2s = [rnd((HIDDEN, HIDDEN)) for _ in range(NUM_BRANCH)]
    w3s = [rnd((HIDDEN, 3)) for _ in range(NUM_BRANCH)]
    put_b("br_w1", np.concatenate(w1s, axis=1))
    put_b("br_b1", np.zeros((1, NUM_BRANCH * HIDDEN), np.float32))
    br_w2 = np.zeros((NUM_BRANCH * HIDDEN, NUM_BRANCH * HIDDEN), np.float32)
    br_w3 = np.zeros((NUM_BRANCH * HIDDEN, NUM_BRANCH * 3), np.float32)
    for i in range(NUM_BRANCH):
        br_w2[i * HIDDEN:(i + 1) * HIDDEN, i * HIDDEN:(i + 1) * HIDDEN] = w2s[i]
        br_w3[i * HIDDEN:(i + 1) * HIDDEN, i * 3:(i + 1) * 3] = w3s[i]
    put_b("br_w2", br_w2)
    put_b("br_b2", np.zeros((1, NUM_BRANCH * HIDDEN), np.float32))
    put_a("br_w3", br_w3)
    put_a("br_b3", np.zeros((1, NUM_BRANCH * 3), np.float32))

    # speed_out MLP (last Linear stored transposed as a row for the lane reduce)
    put_a("so_w1", rnd((FEAT, HIDDEN)))
    put_a("so_b1", np.zeros((1, HIDDEN), np.float32))
    put_a("so_w2", rnd((HIDDEN, HIDDEN)))
    put_a("so_b2", np.zeros((1, HIDDEN), np.float32))
    put_a("so_w3", rnd((HIDDEN, SPEED_DIM)).T)
    put_a("so_b3", np.zeros((1, 1), np.float32))

    return {"wa": jnp.asarray(wa), "wb": jnp.asarray(wb)}


# ------------------------------------ main -------------------------------------
if __name__ == "__main__":
    key = jax.random.PRNGKey(0)
    kp, k1, k2, ks = jax.random.split(key, 4)

    params = init_params(kp)

    img0 = jax.random.uniform(k1, (B, 3, IMG, IMG), jnp.float32)   # NCHW, like PyTorch
    img1 = jax.random.uniform(k2, (B, 3, IMG, IMG), jnp.float32)
    input_images = (img0, img1)
    speed = jax.random.uniform(ks, (B,), jnp.float32) * 10.0
    command = jnp.array([3.0, 1.0], jnp.float32)                   # values in 1..6

    fwd = jax.jit(cilrs_mae_forward)
    control_pred, speed_pred = fwd(params, input_images, speed, command)
    jax.block_until_ready((control_pred, speed_pred))

    assert control_pred.shape == (B, 3)
    assert speed_pred.shape == (B, SPEED_DIM)
    print("KERNEL_OK")
</pallas_src>

<mosaic_0001>
module attributes {stable_mosaic.version = 11 : i64} {
  func.func @_fused_kernel(%arg0: i32, %arg1: memref<96x48xf32, #tpu.memory_space<vmem>>, %arg2: memref<2x2xf32, #tpu.memory_space<vmem>>, %arg3: memref<1424x32xf32, #tpu.memory_space<vmem>>, %arg4: memref<336x192xf32, #tpu.memory_space<vmem>>, %arg5: memref<2x4xf32, #tpu.memory_space<vmem>>) attributes {dimension_semantics = [#tpu.dimension_semantics<arbitrary>], iteration_bounds = array<i64: 1>, scalar_prefetch = 0 : i64, scratch_operands = 0 : i64, tpu.core_type = #tpu.core_type<tc>, window_params = [{pipeline_mode = #tpu.pipeline_mode<synchronous>, transform_indices = @transform_0, window_bounds = array<i64: 96, 48>}, {pipeline_mode = #tpu.pipeline_mode<synchronous>, transform_indices = @transform_1, window_bounds = array<i64: 2, 2>}, {pipeline_mode = #tpu.pipeline_mode<synchronous>, transform_indices = @transform_2, window_bounds = array<i64: 1424, 32>}, {pipeline_mode = #tpu.pipeline_mode<synchronous>, transform_indices = @transform_3, window_bounds = array<i64: 336, 192>}, {pipeline_mode = #tpu.pipeline_mode<synchronous>, transform_indices = @transform_4, window_bounds = array<i64: 2, 4>}]} {
    %c0 = arith.constant 0 : index
    %c0_0 = arith.constant 0 : index
    %0 = vector.load %arg1[%c0, %c0_0] : memref<96x48xf32, #tpu.memory_space<vmem>>, vector<96x48xf32>
    %c0_1 = arith.constant 0 : index
    %c0_2 = arith.constant 0 : index
    %1 = vector.load %arg3[%c0_1, %c0_2] : memref<1424x32xf32, #tpu.memory_space<vmem>>, vector<48x32xf32>
    %cst = arith.constant dense<0.000000e+00> : vector<96x32xf32>
    %2 = tpu.matmul %0, %1, %cst {dimension_numbers = #tpu.dot_dimension_numbers<[1], [0], [0], [1], [0, 0, 1, 1], [], []>} : vector<96x48xf32>, vector<48x32xf32>, vector<96x32xf32> -> vector<96x32xf32>
    %c48 = arith.constant 48 : index
    %c0_3 = arith.constant 0 : index
    %3 = vector.load %arg3[%c48, %c0_3] : memref<1424x32xf32, #tpu.memory_space<vmem>>, vector<96x32xf32>
    %4 = arith.addf %2, %3 : vector<96x32xf32>
    %5 = tpu.iota {dimensions = array<i32: 1>} : vector<1x24xi32>
    %c17_i32 = arith.constant 17 : i32
    %6 = vector.broadcast %c17_i32 : i32 to vector<1x24xi32>
    %7 = arith.cmpi slt, %5, %6 : vector<1x24xi32>
    %cst_4 = arith.constant 0.000000e+00 : f32
    %cst_5 = arith.constant -1.000000e+30 : f32
    %8 = vector.broadcast %cst_4 : f32 to vector<1x24xf32>
    %9 = vector.broadcast %cst_5 : f32 to vector<1x24xf32>
    %10 = arith.select %7, %8, %9 : vector<1x24xi1>, vector<1x24xf32>
    %c160 = arith.constant 160 : index
    %c0_6 = arith.constant 0 : index
    %11 = vector.load %arg3[%c160, %c0_6] : memref<1424x32xf32, #tpu.memory_space<vmem>>, vector<1x32xf32>
    %c168 = arith.constant 168 : index
    %c0_7 = arith.constant 0 : index
    %12 = vector.load %arg3[%c168, %c0_7] : memref<1424x32xf32, #tpu.memory_space<vmem>>, vector<1x32xf32>
    %cst_8 = arith.constant dense<0.000000e+00> : vector<96xf32>
    %13 = vector.multi_reduction <add>, %4, %cst_8 [1] : vector<96x32xf32> to vector<96xf32>
    %14 = vector.shape_cast %13 : vector<96xf32> to vector<96x1xf32>
    %cst_9 = arith.constant 3.200000e+01 : f32
    %15 = vector.broadcast %cst_9 : f32 to vector<96x1xf32>
    %16 = arith.divf %14, %15 : vector<96x1xf32>
    %17 = vector.broadcast %16 : vector<96x1xf32> to vector<96x32xf32>
    %18 = arith.subf %4, %17 : vector<96x32xf32>
    %19 = arith.mulf %18, %18 : vector<96x32xf32>
    %cst_10 = arith.constant dense<0.000000e+00> : vector<96xf32>
    %20 = vector.multi_reduction <add>, %19, %cst_10 [1] : vector<96x32xf32> to vector<96xf32>
    %21 = vector.shape_cast %20 : vector<96xf32> to vector<96x1xf32>
    %cst_11 = arith.constant 3.200000e+01 : f32
    %22 = vector.broadcast %cst_11 : f32 to vector<96x1xf32>
    %23 = arith.divf %21, %22 : vector<96x1xf32>
    %24 = vector.broadcast %16 : vector<96x1xf32> to vector<96x32xf32>
    %25 = arith.subf %4, %24 : vector<96x32xf32>
    %cst_12 = arith.constant 9.99999997E-7 : f32
    %26 = vector.broadcast %cst_12 : f32 to vector<96x1xf32>
    %27 = arith.addf %23, %26 : vector<96x1xf32>
    %28 = math.rsqrt %27 : vector<96x1xf32>
    %29 = vector.broadcast %28 : vector<96x1xf32> to vector<96x32xf32>
    %30 = arith.mulf %25, %29 : vector<96x32xf32>
    %31 = vector.broadcast %11 : vector<1x32xf32> to vector<96x32xf32>
    %32 = arith.mulf %30, %31 : vector<96x32xf32>
    %33 = vector.broadcast %12 : vector<1x32xf32> to vector<96x32xf32>
    %34 = arith.addf %32, %33 : vector<96x32xf32>
    %c176 = arith.constant 176 : index
    %c0_13 = arith.constant 0 : index
    %35 = vector.load %arg3[%c176, %c0_13] : memref<1424x32xf32, #tpu.memory_space<vmem>>, vector<32x16xf32>
    %cst_14 = arith.constant dense<0.000000e+00> : vector<96x16xf32>
    %36 = tpu.matmul %34, %35, %cst_14 {dimension_numbers = #tpu.dot_dimension_numbers<[1], [0], [0], [1], [0, 0, 1, 1], [], []>} : vector<96x32xf32>, vector<32x16xf32>, vector<96x16xf32> -> vector<96x16xf32>
    %c272 = arith.constant 272 : index
    %c0_15 = arith.constant 0 : index
    %37 = vector.load %arg3[%c272, %c0_15] : memref<1424x32xf32, #tpu.memory_space<vmem>>, vector<1x16xf32>
    %38 = vector.broadcast %37 : vector<1x16xf32> to vector<96x16xf32>
    %39 = arith.addf %36, %38 : vector<96x16xf32>
    %cst_16 = arith.constant 2.500000e-01 : f32
    %40 = vector.broadcast %cst_16 : f32 to vector<96x16xf32>
    %41 = arith.mulf %39, %40 : vector<96x16xf32>
    %c208 = arith.constant 208 : index
    %c0_17 = arith.constant 0 : index
    %42 = vector.load %arg3[%c208, %c0_17] : memref<1424x32xf32, #tpu.memory_space<vmem>>, vector<32x16xf32>
    %cst_18 = arith.constant dense<0.000000e+00> : vector<96x16xf32>
    %43 = tpu.matmul %34, %42, %cst_18 {dimension_numbers = #tpu.dot_dimension_numbers<[1], [0], [0], [1], [0, 0, 1, 1], [], []>} : vector<96x32xf32>, vector<32x16xf32>, vector<96x16xf32> -> vector<96x16xf32>
    %c280 = arith.constant 280 : index
    %c0_19 = arith.constant 0 : index
    %44 = vector.load %arg3[%c280, %c0_19] : memref<1424x32xf32, #tpu.memory_space<vmem>>, vector<1x16xf32>
    %45 = vector.broadcast %44 : vector<1x16xf32> to vector<96x16xf32>
    %46 = arith.addf %43, %45 : vector<96x16xf32>
    %c240 = arith.constant 240 : index
    %c0_20 = arith.constant 0 : index
    %47 = vector.load %arg3[%c240, %c0_20] : memref<1424x32xf32, #tpu.memory_space<vmem>>, vector<32x16xf32>
    %cst_21 = arith.constant dense<0.000000e+00> : vector<96x16xf32>
    %48 = tpu.matmul %34, %47, %cst_21 {dimension_numbers = #tpu.dot_dimension_numbers<[1], [0], [0], [1], [0, 0, 1, 1], [], []>} : vector<96x32xf32>, vector<32x16xf32>, vector<96x16xf32> -> vector<96x16xf32>
    %c288 = arith.constant 288 : index
    %c0_22 = arith.constant 0 : index
    %49 = vector.load %arg3[%c288, %c0_22] : memref<1424x32xf32, #tpu.memory_space<vmem>>, vector<1x16xf32>
    %50 = vector.broadcast %49 : vector<1x16xf32> to vector<96x16xf32>
    %51 = arith.addf %48, %50 : vector<96x16xf32>
    %52 = vector.extract_strided_slice %41 {offsets = [0, 0], sizes = [24, 16], strides = [1, 1]} : vector<96x16xf32> to vector<24x16xf32>
    %53 = vector.extract_strided_slice %46 {offsets = [0, 0], sizes = [24, 16], strides = [1, 1]} : vector<96x16xf32> to vector<24x16xf32>
    %54 = vector.extract_strided_slice %51 {offsets = [0, 0], sizes = [24, 16], strides = [1, 1]} : vector<96x16xf32> to vector<24x16xf32>
    %cst_23 = arith.constant dense<0.000000e+00> : vector<24x24xf32>
    %55 = tpu.matmul %52, %53, %cst_23 {dimension_numbers = #tpu.dot_dimension_numbers<[1], [1], [0], [0], [0, 0, 1, 0], [], []>} : vector<24x16xf32>, vector<24x16xf32>, vector<24x24xf32> -> vector<24x24xf32>
    %56 = vector.broadcast %10 : vector<1x24xf32> to vector<24x24xf32>
    %57 = arith.addf %55, %56 : vector<24x24xf32>
    %cst_24 = arith.constant dense<0xFF800000> : vector<24xf32>
    %58 = vector.multi_reduction <maximumf>, %57, %cst_24 [1] : vector<24x24xf32> to vector<24xf32>
    %59 = vector.shape_cast %58 : vector<24xf32> to vector<24x1xf32>
    %60 = vector.broadcast %59 : vector<24x1xf32> to vector<24x24xf32>
    %61 = arith.subf %57, %60 : vector<24x24xf32>
    %62 = math.exp %61 : vector<24x24xf32>
    %cst_25 = arith.constant dense<0.000000e+00> : vector<24xf32>
    %63 = vector.multi_reduction <add>, %62, %cst_25 [1] : vector<24x24xf32> to vector<24xf32>
    %64 = vector.shape_cast %63 : vector<24xf32> to vector<24x1xf32>
    %65 = tpu.reciprocal %64 {approx = true} : vector<24x1xf32> -> vector<24x1xf32>
    %66 = vector.broadcast %65 : vector<24x1xf32> to vector<24x24xf32>
    %67 = arith.mulf %62, %66 : vector<24x24xf32>
    %cst_26 = arith.constant dense<0.000000e+00> : vector<24x16xf32>
    %68 = tpu.matmul %67, %54, %cst_26 {dimension_numbers = #tpu.dot_dimension_numbers<[1], [0], [0], [1], [0, 0, 1, 1], [], []>} : vector<24x24xf32>, vector<24x16xf32>, vector<24x16xf32> -> vector<24x16xf32>
    %69 = vector.extract_strided_slice %41 {offsets = [24, 0], sizes = [24, 16], strides = [1, 1]} : vector<96x16xf32> to vector<24x16xf32>
    %70 = vector.extract_strided_slice %46 {offsets = [24, 0], sizes = [24, 16], strides = [1, 1]} : vector<96x16xf32> to vector<24x16xf32>
    %71 = vector.extract_strided_slice %51 {offsets = [24, 0], sizes = [24, 16], strides = [1, 1]} : vector<96x16xf32> to vector<24x16xf32>
    %cst_27 = arith.constant dense<0.000000e+00> : vector<24x24xf32>
    %72 = tpu.matmul %69, %70, %cst_27 {dimension_numbers = #tpu.dot_dimension_numbers<[1], [1], [0], [0], [0, 0, 1, 0], [], []>} : vector<24x16xf32>, vector<24x16xf32>, vector<24x24xf32> -> vector<24x24xf32>
    %73 = vector.broadcast %10 : vector<1x24xf32> to vector<24x24xf32>
    %74 = arith.addf %72, %73 : vector<24x24xf32>
    %cst_28 = arith.constant dense<0xFF800000> : vector<24xf32>
    %75 = vector.multi_reduction <maximumf>, %74, %cst_28 [1] : vector<24x24xf32> to vector<24xf32>
    %76 = vector.shape_cast %75 : vector<24xf32> to vector<24x1xf32>
    %77 = vector.broadcast %76 : vector<24x1xf32> to vector<24x24xf32>
    %78 = arith.subf %74, %77 : vector<24x24xf32>
    %79 = math.exp %78 : vector<24x24xf32>
    %cst_29 = arith.constant dense<0.000000e+00> : vector<24xf32>
    %80 = vector.multi_reduction <add>, %79, %cst_29 [1] : vector<24x24xf32> to vector<24xf32>
    %81 = vector.shape_cast %80 : vector<24xf32> to vector<24x1xf32>
    %82 = tpu.reciprocal %81 {approx = true} : vector<24x1xf32> -> vector<24x1xf32>
    %83 = vector.broadcast %82 : vector<24x1xf32> to vector<24x24xf32>
    %84 = arith.mulf %79, %83 : vector<24x24xf32>
    %cst_30 = arith.constant dense<0.000000e+00> : vector<24x16xf32>
    %85 = tpu.matmul %84, %71, %cst_30 {dimension_numbers = #tpu.dot_dimension_numbers<[1], [0], [0], [1], [0, 0, 1, 1], [], []>} : vector<24x24xf32>, vector<24x16xf32>, vector<24x16xf32> -> vector<24x16xf32>
    %86 = vector.extract_strided_slice %41 {offsets = [48, 0], sizes = [24, 16], strides = [1, 1]} : vector<96x16xf32> to vector<24x16xf32>
    %87 = vector.extract_strided_slice %46 {offsets = [48, 0], sizes = [24, 16], strides = [1, 1]} : vector<96x16xf32> to vector<24x16xf32>
    %88 = vector.extract_strided_slice %51 {offsets = [48, 0], sizes = [24, 16], strides = [1, 1]} : vector<96x16xf32> to vector<24x16xf32>
    %cst_31 = arith.constant dense<0.000000e+00> : vector<24x24xf32>
    %89 = tpu.matmul %86, %87, %cst_31 {dimension_numbers = #tpu.dot_dimension_numbers<[1], [1], [0], [0], [0, 0, 1, 0], [], []>} : vector<24x16xf32>, vector<24x16xf32>, vector<24x24xf32> -> vector<24x24xf32>
    %90 = vector.broadcast %10 : vector<1x24xf32> to vector<24x24xf32>
    %91 = arith.addf %89, %90 : vector<24x24xf32>
    %cst_32 = arith.constant dense<0xFF800000> : vector<24xf32>
    %92 = vector.multi_reduction <maximumf>, %91, %cst_32 [1] : vector<24x24xf32> to vector<24xf32>
    %93 = vector.shape_cast %92 : vector<24xf32> to vector<24x1xf32>
    %94 = vector.broadcast %93 : vector<24x1xf32> to vector<24x24xf32>
    %95 = arith.subf %91, %94 : vector<24x24xf32>
    %96 = math.exp %95 : vector<24x24xf32>
    %cst_33 = arith.constant dense<0.000000e+00> : vector<24xf32>
    %97 = vector.multi_reduction <add>, %96, %cst_33 [1] : vector<24x24xf32> to vector<24xf32>
    %98 = vector.shape_cast %97 : vector<24xf32> to vector<24x1xf32>
    %99 = tpu.reciprocal %98 {approx = true} : vector<24x1xf32> -> vector<24x1xf32>
    %100 = vector.broadcast %99 : vector<24x1xf32> to vector<24x24xf32>
    %101 = arith.mulf %96, %100 : vector<24x24xf32>
    %cst_34 = arith.constant dense<0.000000e+00> : vector<24x16xf32>
    %102 = tpu.matmul %101, %88, %cst_34 {dimension_numbers = #tpu.dot_dimension_numbers<[1], [0], [0], [1], [0, 0, 1, 1], [], []>} : vector<24x24xf32>, vector<24x16xf32>, vector<24x16xf32> -> vector<24x16xf32>
    %103 = vector.extract_strided_slice %41 {offsets = [72, 0], sizes = [24, 16], strides = [1, 1]} : vector<96x16xf32> to vector<24x16xf32>
    %104 = vector.extract_strided_slice %46 {offsets = [72, 0], sizes = [24, 16], strides = [1, 1]} : vector<96x16xf32> to vector<24x16xf32>
    %105 = vector.extract_strided_slice %51 {offsets = [72, 0], sizes = [24, 16], strides = [1, 1]} : vector<96x16xf32> to vector<24x16xf32>
    %cst_35 = arith.constant dense<0.000000e+00> : vector<24x24xf32>
    %106 = tpu.matmul %103, %104, %cst_35 {dimension_numbers = #tpu.dot_dimension_numbers<[1], [1], [0], [0], [0, 0, 1, 0], [], []>} : vector<24x16xf32>, vector<24x16xf32>, vector<24x24xf32> -> vector<24x24xf32>
    %107 = vector.broadcast %10 : vector<1x24xf32> to vector<24x24xf32>
    %108 = arith.addf %106, %107 : vector<24x24xf32>
    %cst_36 = arith.constant dense<0xFF800000> : vector<24xf32>
    %109 = vector.multi_reduction <maximumf>, %108, %cst_36 [1] : vector<24x24xf32> to vector<24xf32>
    %110 = vector.shape_cast %109 : vector<24xf32> to vector<24x1xf32>
    %111 = vector.broadcast %110 : vector<24x1xf32> to vector<24x24xf32>
    %112 = arith.subf %108, %111 : vector<24x24xf32>
    %113 = math.exp %112 : vector<24x24xf32>
    %cst_37 = arith.constant dense<0.000000e+00> : vector<24xf32>
    %114 = vector.multi_reduction <add>, %113, %cst_37 [1] : vector<24x24xf32> to vector<24xf32>
    %115 = vector.shape_cast %114 : vector<24xf32> to vector<24x1xf32>
    %116 = tpu.reciprocal %115 {approx = true} : vector<24x1xf32> -> vector<24x1xf32>
    %117 = vector.broadcast %116 : vector<24x1xf32> to vector<24x24xf32>
    %118 = arith.mulf %113, %117 : vector<24x24xf32>
    %cst_38 = arith.constant dense<0.000000e+00> : vector<24x16xf32>
    %119 = tpu.matmul %118, %105, %cst_38 {dimension_numbers = #tpu.dot_dimension_numbers<[1], [0], [0], [1], [0, 0, 1, 1], [], []>} : vector<24x24xf32>, vector<24x16xf32>, vector<24x16xf32> -> vector<24x16xf32>
    %120 = tpu.concatenate %68, %85, %102, %119 in 0 : vector<24x16xf32>, vector<24x16xf32>, vector<24x16xf32>, vector<24x16xf32> -> vector<96x16xf32>
    %c296 = arith.constant 296 : index
    %c0_39 = arith.constant 0 : index
    %121 = vector.load %arg3[%c296, %c0_39] : memref<1424x32xf32, #tpu.memory_space<vmem>>, vector<16x32xf32>
    %cst_40 = arith.constant dense<0.000000e+00> : vector<96x32xf32>
    %122 = tpu.matmul %120, %121, %cst_40 {dimension_numbers = #tpu.dot_dimension_numbers<[1], [0], [0], [1], [0, 0, 1, 1], [], []>} : vector<96x16xf32>, vector<16x32xf32>, vector<96x32xf32> -> vector<96x32xf32>
    %c312 = arith.constant 312 : index
    %c0_41 = arith.constant 0 : index
    %123 = vector.load %arg3[%c312, %c0_41] : memref<1424x32xf32, #tpu.memory_space<vmem>>, vector<32x16xf32>
    %cst_42 = arith.constant dense<0.000000e+00> : vector<96x16xf32>
    %124 = tpu.matmul %34, %123, %cst_42 {dimension_numbers = #tpu.dot_dimension_numbers<[1], [0], [0], [1], [0, 0, 1, 1], [], []>} : vector<96x32xf32>, vector<32x16xf32>, vector<96x16xf32> -> vector<96x16xf32>
    %c408 = arith.constant 408 : index
    %c0_43 = arith.constant 0 : index
    %125 = vector.load %arg3[%c408, %c0_43] : memref<1424x32xf32, #tpu.memory_space<vmem>>, vector<1x16xf32>
    %126 = vector.broadcast %125 : vector<1x16xf32> to vector<96x16xf32>
    %127 = arith.addf %124, %126 : vector<96x16xf32>
    %cst_44 = arith.constant 2.500000e-01 : f32
    %128 = vector.broadcast %cst_44 : f32 to vector<96x16xf32>
    %129 = arith.mulf %127, %128 : vector<96x16xf32>
    %c344 = arith.constant 344 : index
    %c0_45 = arith.constant 0 : index
    %130 = vector.load %arg3[%c344, %c0_45] : memref<1424x32xf32, #tpu.memory_space<vmem>>, vector<32x16xf32>
    %cst_46 = arith.constant dense<0.000000e+00> : vector<96x16xf32>
    %131 = tpu.matmul %34, %130, %cst_46 {dimension_numbers = #tpu.dot_dimension_numbers<[1], [0], [0], [1], [0, 0, 1, 1], [], []>} : vector<96x32xf32>, vector<32x16xf32>, vector<96x16xf32> -> vector<96x16xf32>
    %c416 = arith.constant 416 : index
    %c0_47 = arith.constant 0 : index
    %132 = vector.load %arg3[%c416, %c0_47] : memref<1424x32xf32, #tpu.memory_space<vmem>>, vector<1x16xf32>
    %133 = vector.broadcast %132 : vector<1x16xf32> to vector<96x16xf32>
    %134 = arith.addf %131, %133 : vector<96x16xf32>
    %c376 = arith.constant 376 : index
    %c0_48 = arith.constant 0 : index
    %135 = vector.load %arg3[%c376, %c0_48] : memref<1424x32xf32, #tpu.memory_space<vmem>>, vector<32x16xf32>
    %cst_49 = arith.constant dense<0.000000e+00> : vector<96x16xf32>
    %136 = tpu.matmul %34, %135, %cst_49 {dimension_numbers = #tpu.dot_dimension_numbers<[1], [0], [0], [1], [0, 0, 1, 1], [], []>} : vector<96x32xf32>, vector<32x16xf32>, vector<96x16xf32> -> vector<96x16xf32>
    %c424 = arith.constant 424 : index
    %c0_50 = arith.constant 0 : index
    %137 = vector.load %arg3[%c424, %c0_50] : memref<1424x32xf32, #tpu.memory_space<vmem>>, vector<1x16xf32>
    %138 = vector.broadcast %137 : vector<1x16xf32> to vector<96x16xf32>
    %139 = arith.addf %136, %138 : vector<96x16xf32>
    %140 = vector.extract_strided_slice %129 {offsets = [0, 0], sizes = [24, 16], strides = [1, 1]} : vector<96x16xf32> to vector<24x16xf32>
    %141 = vector.extract_strided_slice %134 {offsets = [0, 0], sizes = [24, 16], strides = [1, 1]} : vector<96x16xf32> to vector<24x16xf32>
    %142 = vector.extract_strided_slice %139 {offsets = [0, 0], sizes = [24, 16], strides = [1, 1]} : vector<96x16xf32> to vector<24x16xf32>
    %cst_51 = arith.constant dense<0.000000e+00> : vector<24x24xf32>
    %143 = tpu.matmul %140, %141, %cst_51 {dimension_numbers = #tpu.dot_dimension_numbers<[1], [1], [0], [0], [0, 0, 1, 0], [], []>} : vector<24x16xf32>, vector<24x16xf32>, vector<24x24xf32> -> vector<24x24xf32>
    %144 = vector.broadcast %10 : vector<1x24xf32> to vector<24x24xf32>
    %145 = arith.addf %143, %144 : vector<24x24xf32>
    %cst_52 = arith.constant dense<0xFF800000> : vector<24xf32>
    %146 = vector.multi_reduction <maximumf>, %145, %cst_52 [1] : vector<24x24xf32> to vector<24xf32>
    %147 = vector.shape_cast %146 : vector<24xf32> to vector<24x1xf32>
    %148 = vector.broadcast %147 : vector<24x1xf32> to vector<24x24xf32>
    %149 = arith.subf %145, %148 : vector<24x24xf32>
    %150 = math.exp %149 : vector<24x24xf32>
    %cst_53 = arith.constant dense<0.000000e+00> : vector<24xf32>
    %151 = vector.multi_reduction <add>, %150, %cst_53 [1] : vector<24x24xf32> to vector<24xf32>
    %152 = vector.shape_cast %151 : vector<24xf32> to vector<24x1xf32>
    %153 = tpu.reciprocal %152 {approx = true} : vector<24x1xf32> -> vector<24x1xf32>
    %154 = vector.broadcast %153 : vector<24x1xf32> to vector<24x24xf32>
    %155 = arith.mulf %150, %154 : vector<24x24xf32>
    %cst_54 = arith.constant dense<0.000000e+00> : vector<24x16xf32>
    %156 = tpu.matmul %155, %142, %cst_54 {dimension_numbers = #tpu.dot_dimension_numbers<[1], [0], [0], [1], [0, 0, 1, 1], [], []>} : vector<24x24xf32>, vector<24x16xf32>, vector<24x16xf32> -> vector<24x16xf32>
    %157 = vector.extract_strided_slice %129 {offsets = [24, 0], sizes = [24, 16], strides = [1, 1]} : vector<96x16xf32> to vector<24x16xf32>
    %158 = vector.extract_strided_slice %134 {offsets = [24, 0], sizes = [24, 16], strides = [1, 1]} : vector<96x16xf32> to vector<24x16xf32>
    %159 = vector.extract_strided_slice %139 {offsets = [24, 0], sizes = [24, 16], strides = [1, 1]} : vector<96x16xf32> to vector<24x16xf32>
    %cst_55 = arith.constant dense<0.000000e+00> : vector<24x24xf32>
    %160 = tpu.matmul %157, %158, %cst_55 {dimension_numbers = #tpu.dot_dimension_numbers<[1], [1], [0], [0], [0, 0, 1, 0], [], []>} : vector<24x16xf32>, vector<24x16xf32>, vector<24x24xf32> -> vector<24x24xf32>
    %161 = vector.broadcast %10 : vector<1x24xf32> to vector<24x24xf32>
    %162 = arith.addf %160, %161 : vector<24x24xf32>
    %cst_56 = arith.constant dense<0xFF800000> : vector<24xf32>
    %163 = vector.multi_reduction <maximumf>, %162, %cst_56 [1] : vector<24x24xf32> to vector<24xf32>
    %164 = vector.shape_cast %163 : vector<24xf32> to vector<24x1xf32>
    %165 = vector.broadcast %164 : vector<24x1xf32> to vector<24x24xf32>
    %166 = arith.subf %162, %165 : vector<24x24xf32>
    %167 = math.exp %166 : vector<24x24xf32>
    %cst_57 = arith.constant dense<0.000000e+00> : vector<24xf32>
    %168 = vector.multi_reduction <add>, %167, %cst_57 [1] : vector<24x24xf32> to vector<24xf32>
    %169 = vector.shape_cast %168 : vector<24xf32> to vector<24x1xf32>
    %170 = tpu.reciprocal %169 {approx = true} : vector<24x1xf32> -> vector<24x1xf32>
    %171 = vector.broadcast %170 : vector<24x1xf32> to vector<24x24xf32>
    %172 = arith.mulf %167, %171 : vector<24x24xf32>
    %cst_58 = arith.constant dense<0.000000e+00> : vector<24x16xf32>
    %173 = tpu.matmul %172, %159, %cst_58 {dimension_numbers = #tpu.dot_dimension_numbers<[1], [0], [0], [1], [0, 0, 1, 1], [], []>} : vector<24x24xf32>, vector<24x16xf32>, vector<24x16xf32> -> vector<24x16xf32>
    %174 = vector.extract_strided_slice %129 {offsets = [48, 0], sizes = [24, 16], strides = [1, 1]} : vector<96x16xf32> to vector<24x16xf32>
    %175 = vector.extract_strided_slice %134 {offsets = [48, 0], sizes = [24, 16], strides = [1, 1]} : vector<96x16xf32> to vector<24x16xf32>
    %176 = vector.extract_strided_slice %139 {offsets = [48, 0], sizes = [24, 16], strides = [1, 1]} : vector<96x16xf32> to vector<24x16xf32>
    %cst_59 = arith.constant dense<0.000000e+00> : vector<24x24xf32>
    %177 = tpu.matmul %174, %175, %cst_59 {dimension_numbers = #tpu.dot_dimension_numbers<[1], [1], [0], [0], [0, 0, 1, 0], [], []>} : vector<24x16xf32>, vector<24x16xf32>, vector<24x24xf32> -> vector<24x24xf32>
    %178 = vector.broadcast %10 : vector<1x24xf32> to vector<24x24xf32>
    %179 = arith.addf %177, %178 : vector<24x24xf32>
    %cst_60 = arith.constant dense<0xFF800000> : vector<24xf32>
    %180 = vector.multi_reduction <maximumf>, %179, %cst_60 [1] : vector<24x24xf32> to vector<24xf32>
    %181 = vector.shape_cast %180 : vector<24xf32> to vector<24x1xf32>
    %182 = vector.broadcast %181 : vector<24x1xf32> to vector<24x24xf32>
    %183 = arith.subf %179, %182 : vector<24x24xf32>
    %184 = math.exp %183 : vector<24x24xf32>
    %cst_61 = arith.constant dense<0.000000e+00> : vector<24xf32>
    %185 = vector.multi_reduction <add>, %184, %cst_61 [1] : vector<24x24xf32> to vector<24xf32>
    %186 = vector.shape_cast %185 : vector<24xf32> to vector<24x1xf32>
    %187 = tpu.reciprocal %186 {approx = true} : vector<24x1xf32> -> vector<24x1xf32>
    %188 = vector.broadcast %187 : vector<24x1xf32> to vector<24x24xf32>
    %189 = arith.mulf %184, %188 : vector<24x24xf32>
    %cst_62 = arith.constant dense<0.000000e+00> : vector<24x16xf32>
    %190 = tpu.matmul %189, %176, %cst_62 {dimension_numbers = #tpu.dot_dimension_numbers<[1], [0], [0], [1], [0, 0, 1, 1], [], []>} : vector<24x24xf32>, vector<24x16xf32>, vector<24x16xf32> -> vector<24x16xf32>
    %191 = vector.extract_strided_slice %129 {offsets = [72, 0], sizes = [24, 16], strides = [1, 1]} : vector<96x16xf32> to vector<24x16xf32>
    %192 = vector.extract_strided_slice %134 {offsets = [72, 0], sizes = [24, 16], strides = [1, 1]} : vector<96x16xf32> to vector<24x16xf32>
    %193 = vector.extract_strided_slice %139 {offsets = [72, 0], sizes = [24, 16], strides = [1, 1]} : vector<96x16xf32> to vector<24x16xf32>
    %cst_63 = arith.constant dense<0.000000e+00> : vector<24x24xf32>
    %194 = tpu.matmul %191, %192, %cst_63 {dimension_numbers = #tpu.dot_dimension_numbers<[1], [1], [0], [0], [0, 0, 1, 0], [], []>} : vector<24x16xf32>, vector<24x16xf32>, vector<24x24xf32> -> vector<24x24xf32>
    %195 = vector.broadcast %10 : vector<1x24xf32> to vector<24x24xf32>
    %196 = arith.addf %194, %195 : vector<24x24xf32>
    %cst_64 = arith.constant dense<0xFF800000> : vector<24xf32>
    %197 = vector.multi_reduction <maximumf>, %196, %cst_64 [1] : vector<24x24xf32> to vector<24xf32>
    %198 = vector.shape_cast %197 : vector<24xf32> to vector<24x1xf32>
    %199 = vector.broadcast %198 : vector<24x1xf32> to vector<24x24xf32>
    %200 = arith.subf %196, %199 : vector<24x24xf32>
    %201 = math.exp %200 : vector<24x24xf32>
    %cst_65 = arith.constant dense<0.000000e+00> : vector<24xf32>
    %202 = vector.multi_reduction <add>, %201, %cst_65 [1] : vector<24x24xf32> to vector<24xf32>
    %203 = vector.shape_cast %202 : vector<24xf32> to vector<24x1xf32>
    %204 = tpu.reciprocal %203 {approx = true} : vector<24x1xf32> -> vector<24x1xf32>
    %205 = vector.broadcast %204 : vector<24x1xf32> to vector<24x24xf32>
    %206 = arith.mulf %201, %205 : vector<24x24xf32>
    %cst_66 = arith.constant dense<0.000000e+00> : vector<24x16xf32>
    %207 = tpu.matmul %206, %193, %cst_66 {dimension_numbers = #tpu.dot_dimension_numbers<[1], [0], [0], [1], [0, 0, 1, 1], [], []>} : vector<24x24xf32>, vector<24x16xf32>, vector<24x16xf32> -> vector<24x16xf32>
    %208 = tpu.concatenate %156, %173, %190, %207 in 0 : vector<24x16xf32>, vector<24x16xf32>, vector<24x16xf32>, vector<24x16xf32> -> vector<96x16xf32>
    %c432 = arith.constant 432 : index
    %c0_67 = arith.constant 0 : index
    %209 = vector.load %arg3[%c432, %c0_67] : memref<1424x32xf32, #tpu.memory_space<vmem>>, vector<16x32xf32>
    %cst_68 = arith.constant dense<0.000000e+00> : vector<96x32xf32>
    %210 = tpu.matmul %208, %209, %cst_68 {dimension_numbers = #tpu.dot_dimension_numbers<[1], [0], [0], [1], [0, 0, 1, 1], [], []>} : vector<96x16xf32>, vector<16x32xf32>, vector<96x32xf32> -> vector<96x32xf32>
    %211 = arith.addf %122, %210 : vector<96x32xf32>
    %212 = arith.addf %4, %211 : vector<96x32xf32>
    %c448 = arith.constant 448 : index
    %c0_69 = arith.constant 0 : index
    %213 = vector.load %arg3[%c448, %c0_69] : memref<1424x32xf32, #tpu.memory_space<vmem>>, vector<1x32xf32>
    %214 = vector.broadcast %213 : vector<1x32xf32> to vector<96x32xf32>
    %215 = arith.addf %212, %214 : vector<96x32xf32>
    %c456 = arith.constant 456 : index
    %c0_70 = arith.constant 0 : index
    %216 = vector.load %arg3[%c456, %c0_70] : memref<1424x32xf32, #tpu.memory_space<vmem>>, vector<1x32xf32>
    %c464 = arith.constant 464 : index
    %c0_71 = arith.constant 0 : index
    %217 = vector.load %arg3[%c464, %c0_71] : memref<1424x32xf32, #tpu.memory_space<vmem>>, vector<1x32xf32>
    %cst_72 = arith.constant dense<0.000000e+00> : vector<96xf32>
    %218 = vector.multi_reduction <add>, %215, %cst_72 [1] : vector<96x32xf32> to vector<96xf32>
    %219 = vector.shape_cast %218 : vector<96xf32> to vector<96x1xf32>
    %cst_73 = arith.constant 3.200000e+01 : f32
    %220 = vector.broadcast %cst_73 : f32 to vector<96x1xf32>
    %221 = arith.divf %219, %220 : vector<96x1xf32>
    %222 = vector.broadcast %221 : vector<96x1xf32> to vector<96x32xf32>
    %223 = arith.subf %215, %222 : vector<96x32xf32>
    %224 = arith.mulf %223, %223 : vector<96x32xf32>
    %cst_74 = arith.constant dense<0.000000e+00> : vector<96xf32>
    %225 = vector.multi_reduction <add>, %224, %cst_74 [1] : vector<96x32xf32> to vector<96xf32>
    %226 = vector.shape_cast %225 : vector<96xf32> to vector<96x1xf32>
    %cst_75 = arith.constant 3.200000e+01 : f32
    %227 = vector.broadcast %cst_75 : f32 to vector<96x1xf32>
    %228 = arith.divf %226, %227 : vector<96x1xf32>
    %229 = vector.broadcast %221 : vector<96x1xf32> to vector<96x32xf32>
    %230 = arith.subf %215, %229 : vector<96x32xf32>
    %cst_76 = arith.constant 9.99999997E-7 : f32
    %231 = vector.broadcast %cst_76 : f32 to vector<96x1xf32>
    %232 = arith.addf %228, %231 : vector<96x1xf32>
    %233 = math.rsqrt %232 : vector<96x1xf32>
    %234 = vector.broadcast %233 : vector<96x1xf32> to vector<96x32xf32>
    %235 = arith.mulf %230, %234 : vector<96x32xf32>
    %236 = vector.broadcast %216 : vector<1x32xf32> to vector<96x32xf32>
    %237 = arith.mulf %235, %236 : vector<96x32xf32>
    %238 = vector.broadcast %217 : vector<1x32xf32> to vector<96x32xf32>
    %239 = arith.addf %237, %238 : vector<96x32xf32>
    %c0_77 = arith.constant 0 : index
    %c0_78 = arith.constant 0 : index
    %240 = vector.load %arg4[%c0_77, %c0_78] : memref<336x192xf32, #tpu.memory_space<vmem>>, vector<32x128xf32>
    %cst_79 = arith.constant dense<0.000000e+00> : vector<96x128xf32>
    %241 = tpu.matmul %239, %240, %cst_79 {dimension_numbers = #tpu.dot_dimension_numbers<[1], [0], [0], [1], [0, 0, 1, 1], [], []>} : vector<96x32xf32>, vector<32x128xf32>, vector<96x128xf32> -> vector<96x128xf32>
    %c32 = arith.constant 32 : index
    %c0_80 = arith.constant 0 : index
    %242 = vector.load %arg4[%c32, %c0_80] : memref<336x192xf32, #tpu.memory_space<vmem>>, vector<1x128xf32>
    %243 = vector.broadcast %242 : vector<1x128xf32> to vector<96x128xf32>
    %244 = arith.addf %241, %243 : vector<96x128xf32>
    %245 = arith.mulf %244, %244 : vector<96x128xf32>
    %246 = arith.mulf %244, %245 : vector<96x128xf32>
    %cst_81 = arith.constant 4.471500e-02 : f32
    %247 = vector.broadcast %cst_81 : f32 to vector<96x128xf32>
    %248 = arith.mulf %247, %246 : vector<96x128xf32>
    %249 = arith.addf %244, %248 : vector<96x128xf32>
    %cst_82 = arith.constant 0.797884583 : f32
    %250 = vector.broadcast %cst_82 : f32 to vector<96x128xf32>
    %251 = arith.mulf %250, %249 : vector<96x128xf32>
    %252 = math.tanh %251 : vector<96x128xf32>
    %cst_83 = arith.constant 1.000000e+00 : f32
    %253 = vector.broadcast %cst_83 : f32 to vector<96x128xf32>
    %254 = arith.addf %253, %252 : vector<96x128xf32>
    %cst_84 = arith.constant 5.000000e-01 : f32
    %255 = vector.broadcast %cst_84 : f32 to vector<96x128xf32>
    %256 = arith.mulf %255, %254 : vector<96x128xf32>
    %257 = arith.mulf %244, %256 : vector<96x128xf32>
    %c472 = arith.constant 472 : index
    %c0_85 = arith.constant 0 : index
    %258 = vector.load %arg3[%c472, %c0_85] : memref<1424x32xf32, #tpu.memory_space<vmem>>, vector<128x32xf32>
    %cst_86 = arith.constant dense<0.000000e+00> : vector<96x32xf32>
    %259 = tpu.matmul %257, %258, %cst_86 {dimension_numbers = #tpu.dot_dimension_numbers<[1], [0], [0], [1], [0, 0, 1, 1], [], []>} : vector<96x128xf32>, vector<128x32xf32>, vector<96x32xf32> -> vector<96x32xf32>
    %260 = arith.addf %215, %259 : vector<96x32xf32>
    %c600 = arith.constant 600 : index
    %c0_87 = arith.constant 0 : index
    %261 = vector.load %arg3[%c600, %c0_87] : memref<1424x32xf32, #tpu.memory_space<vmem>>, vector<1x32xf32>
    %262 = vector.broadcast %261 : vector<1x32xf32> to vector<96x32xf32>
    %263 = arith.addf %260, %262 : vector<96x32xf32>
    %c608 = arith.constant 608 : index
    %c0_88 = arith.constant 0 : index
    %264 = vector.load %arg3[%c608, %c0_88] : memref<1424x32xf32, #tpu.memory_space<vmem>>, vector<1x32xf32>
    %c616 = arith.constant 616 : index
    %c0_89 = arith.constant 0 : index
    %265 = vector.load %arg3[%c616, %c0_89] : memref<1424x32xf32, #tpu.memory_space<vmem>>, vector<1x32xf32>
    %cst_90 = arith.constant dense<0.000000e+00> : vector<96xf32>
    %266 = vector.multi_reduction <add>, %263, %cst_90 [1] : vector<96x32xf32> to vector<96xf32>
    %267 = vector.shape_cast %266 : vector<96xf32> to vector<96x1xf32>
    %cst_91 = arith.constant 3.200000e+01 : f32
    %268 = vector.broadcast %cst_91 : f32 to vector<96x1xf32>
    %269 = arith.divf %267, %268 : vector<96x1xf32>
    %270 = vector.broadcast %269 : vector<96x1xf32> to vector<96x32xf32>
    %271 = arith.subf %263, %270 : vector<96x32xf32>
    %272 = arith.mulf %271, %271 : vector<96x32xf32>
    %cst_92 = arith.constant dense<0.000000e+00> : vector<96xf32>
    %273 = vector.multi_reduction <add>, %272, %cst_92 [1] : vector<96x32xf32> to vector<96xf32>
    %274 = vector.shape_cast %273 : vector<96xf32> to vector<96x1xf32>
    %cst_93 = arith.constant 3.200000e+01 : f32
    %275 = vector.broadcast %cst_93 : f32 to vector<96x1xf32>
    %276 = arith.divf %274, %275 : vector<96x1xf32>
    %277 = vector.broadcast %269 : vector<96x1xf32> to vector<96x32xf32>
    %278 = arith.subf %263, %277 : vector<96x32xf32>
    %cst_94 = arith.constant 9.99999997E-7 : f32
    %279 = vector.broadcast %cst_94 : f32 to vector<96x1xf32>
    %280 = arith.addf %276, %279 : vector<96x1xf32>
    %281 = math.rsqrt %280 : vector<96x1xf32>
    %282 = vector.broadcast %281 : vector<96x1xf32> to vector<96x32xf32>
    %283 = arith.mulf %278, %282 : vector<96x32xf32>
    %284 = vector.broadcast %264 : vector<1x32xf32> to vector<96x32xf32>
    %285 = arith.mulf %283, %284 : vector<96x32xf32>
    %286 = vector.broadcast %265 : vector<1x32xf32> to vector<96x32xf32>
    %287 = arith.addf %285, %286 : vector<96x32xf32>
    %c624 = arith.constant 624 : index
    %c0_95 = arith.constant 0 : index
    %288 = vector.load %arg3[%c624, %c0_95] : memref<1424x32xf32, #tpu.memory_space<vmem>>, vector<32x16xf32>
    %cst_96 = arith.constant dense<0.000000e+00> : vector<96x16xf32>
    %289 = tpu.matmul %287, %288, %cst_96 {dimension_numbers = #tpu.dot_dimension_numbers<[1], [0], [0], [1], [0, 0, 1, 1], [], []>} : vector<96x32xf32>, vector<32x16xf32>, vector<96x16xf32> -> vector<96x16xf32>
    %c720 = arith.constant 720 : index
    %c0_97 = arith.constant 0 : index
    %290 = vector.load %arg3[%c720, %c0_97] : memref<1424x32xf32, #tpu.memory_space<vmem>>, vector<1x16xf32>
    %291 = vector.broadcast %290 : vector<1x16xf32> to vector<96x16xf32>
    %292 = arith.addf %289, %291 : vector<96x16xf32>
    %cst_98 = arith.constant 2.500000e-01 : f32
    %293 = vector.broadcast %cst_98 : f32 to vector<96x16xf32>
    %294 = arith.mulf %292, %293 : vector<96x16xf32>
    %c656 = arith.constant 656 : index
    %c0_99 = arith.constant 0 : index
    %295 = vector.load %arg3[%c656, %c0_99] : memref<1424x32xf32, #tpu.memory_space<vmem>>, vector<32x16xf32>
    %cst_100 = arith.constant dense<0.000000e+00> : vector<96x16xf32>
    %296 = tpu.matmul %287, %295, %cst_100 {dimension_numbers = #tpu.dot_dimension_numbers<[1], [0], [0], [1], [0, 0, 1, 1], [], []>} : vector<96x32xf32>, vector<32x16xf32>, vector<96x16xf32> -> vector<96x16xf32>
    %c728 = arith.constant 728 : index
    %c0_101 = arith.constant 0 : index
    %297 = vector.load %arg3[%c728, %c0_101] : memref<1424x32xf32, #tpu.memory_space<vmem>>, vector<1x16xf32>
    %298 = vector.broadcast %297 : vector<1x16xf32> to vector<96x16xf32>
    %299 = arith.addf %296, %298 : vector<96x16xf32>
    %c688 = arith.constant 688 : index
    %c0_102 = arith.constant 0 : index
    %300 = vector.load %arg3[%c688, %c0_102] : memref<1424x32xf32, #tpu.memory_space<vmem>>, vector<32x16xf32>
    %cst_103 = arith.constant dense<0.000000e+00> : vector<96x16xf32>
    %301 = tpu.matmul %287, %300, %cst_103 {dimension_numbers = #tpu.dot_dimension_numbers<[1], [0], [0], [1], [0, 0, 1, 1], [], []>} : vector<96x32xf32>, vector<32x16xf32>, vector<96x16xf32> -> vector<96x16xf32>
    %c736 = arith.constant 736 : index
    %c0_104 = arith.constant 0 : index
    %302 = vector.load %arg3[%c736, %c0_104] : memref<1424x32xf32, #tpu.memory_space<vmem>>, vector<1x16xf32>
    %303 = vector.broadcast %302 : vector<1x16xf32> to vector<96x16xf32>
    %304 = arith.addf %301, %303 : vector<96x16xf32>
    %305 = vector.extract_strided_slice %294 {offsets = [0, 0], sizes = [24, 16], strides = [1, 1]} : vector<96x16xf32> to vector<24x16xf32>
    %306 = vector.extract_strided_slice %299 {offsets = [0, 0], sizes = [24, 16], strides = [1, 1]} : vector<96x16xf32> to vector<24x16xf32>
    %307 = vector.extract_strided_slice %304 {offsets = [0, 0], sizes = [24, 16], strides = [1, 1]} : vector<96x16xf32> to vector<24x16xf32>
    %cst_105 = arith.constant dense<0.000000e+00> : vector<24x24xf32>
    %308 = tpu.matmul %305, %306, %cst_105 {dimension_numbers = #tpu.dot_dimension_numbers<[1], [1], [0], [0], [0, 0, 1, 0], [], []>} : vector<24x16xf32>, vector<24x16xf32>, vector<24x24xf32> -> vector<24x24xf32>
    %309 = vector.broadcast %10 : vector<1x24xf32> to vector<24x24xf32>
    %310 = arith.addf %308, %309 : vector<24x24xf32>
    %cst_106 = arith.constant dense<0xFF800000> : vector<24xf32>
    %311 = vector.multi_reduction <maximumf>, %310, %cst_106 [1] : vector<24x24xf32> to vector<24xf32>
    %312 = vector.shape_cast %311 : vector<24xf32> to vector<24x1xf32>
    %313 = vector.broadcast %312 : vector<24x1xf32> to vector<24x24xf32>
    %314 = arith.subf %310, %313 : vector<24x24xf32>
    %315 = math.exp %314 : vector<24x24xf32>
    %cst_107 = arith.constant dense<0.000000e+00> : vector<24xf32>
    %316 = vector.multi_reduction <add>, %315, %cst_107 [1] : vector<24x24xf32> to vector<24xf32>
    %317 = vector.shape_cast %316 : vector<24xf32> to vector<24x1xf32>
    %318 = tpu.reciprocal %317 {approx = true} : vector<24x1xf32> -> vector<24x1xf32>
    %319 = vector.broadcast %318 : vector<24x1xf32> to vector<24x24xf32>
    %320 = arith.mulf %315, %319 : vector<24x24xf32>
    %cst_108 = arith.constant dense<0.000000e+00> : vector<24x16xf32>
    %321 = tpu.matmul %320, %307, %cst_108 {dimension_numbers = #tpu.dot_dimension_numbers<[1], [0], [0], [1], [0, 0, 1, 1], [], []>} : vector<24x24xf32>, vector<24x16xf32>, vector<24x16xf32> -> vector<24x16xf32>
    %322 = vector.extract_strided_slice %294 {offsets = [24, 0], sizes = [24, 16], strides = [1, 1]} : vector<96x16xf32> to vector<24x16xf32>
    %323 = vector.extract_strided_slice %299 {offsets = [24, 0], sizes = [24, 16], strides = [1, 1]} : vector<96x16xf32> to vector<24x16xf32>
    %324 = vector.extract_strided_slice %304 {offsets = [24, 0], sizes = [24, 16], strides = [1, 1]} : vector<96x16xf32> to vector<24x16xf32>
    %cst_109 = arith.constant dense<0.000000e+00> : vector<24x24xf32>
    %325 = tpu.matmul %322, %323, %cst_109 {dimension_numbers = #tpu.dot_dimension_numbers<[1], [1], [0], [0], [0, 0, 1, 0], [], []>} : vector<24x16xf32>, vector<24x16xf32>, vector<24x24xf32> -> vector<24x24xf32>
    %326 = vector.broadcast %10 : vector<1x24xf32> to vector<24x24xf32>
    %327 = arith.addf %325, %326 : vector<24x24xf32>
    %cst_110 = arith.constant dense<0xFF800000> : vector<24xf32>
    %328 = vector.multi_reduction <maximumf>, %327, %cst_110 [1] : vector<24x24xf32> to vector<24xf32>
    %329 = vector.shape_cast %328 : vector<24xf32> to vector<24x1xf32>
    %330 = vector.broadcast %329 : vector<24x1xf32> to vector<24x24xf32>
    %331 = arith.subf %327, %330 : vector<24x24xf32>
    %332 = math.exp %331 : vector<24x24xf32>
    %cst_111 = arith.constant dense<0.000000e+00> : vector<24xf32>
    %333 = vector.multi_reduction <add>, %332, %cst_111 [1] : vector<24x24xf32> to vector<24xf32>
    %334 = vector.shape_cast %333 : vector<24xf32> to vector<24x1xf32>
    %335 = tpu.reciprocal %334 {approx = true} : vector<24x1xf32> -> vector<24x1xf32>
    %336 = vector.broadcast %335 : vector<24x1xf32> to vector<24x24xf32>
    %337 = arith.mulf %332, %336 : vector<24x24xf32>
    %cst_112 = arith.constant dense<0.000000e+00> : vector<24x16xf32>
    %338 = tpu.matmul %337, %324, %cst_112 {dimension_numbers = #tpu.dot_dimension_numbers<[1], [0], [0], [1], [0, 0, 1, 1], [], []>} : vector<24x24xf32>, vector<24x16xf32>, vector<24x16xf32> -> vector<24x16xf32>
    %339 = vector.extract_strided_slice %294 {offsets = [48, 0], sizes = [24, 16], strides = [1, 1]} : vector<96x16xf32> to vector<24x16xf32>
    %340 = vector.extract_strided_slice %299 {offsets = [48, 0], sizes = [24, 16], strides = [1, 1]} : vector<96x16xf32> to vector<24x16xf32>
    %341 = vector.extract_strided_slice %304 {offsets = [48, 0], sizes = [24, 16], strides = [1, 1]} : vector<96x16xf32> to vector<24x16xf32>
    %cst_113 = arith.constant dense<0.000000e+00> : vector<24x24xf32>
    %342 = tpu.matmul %339, %340, %cst_113 {dimension_numbers = #tpu.dot_dimension_numbers<[1], [1], [0], [0], [0, 0, 1, 0], [], []>} : vector<24x16xf32>, vector<24x16xf32>, vector<24x24xf32> -> vector<24x24xf32>
    %343 = vector.broadcast %10 : vector<1x24xf32> to vector<24x24xf32>
    %344 = arith.addf %342, %343 : vector<24x24xf32>
    %cst_114 = arith.constant dense<0xFF800000> : vector<24xf32>
    %345 = vector.multi_reduction <maximumf>, %344, %cst_114 [1] : vector<24x24xf32> to vector<24xf32>
    %346 = vector.shape_cast %345 : vector<24xf32> to vector<24x1xf32>
    %347 = vector.broadcast %346 : vector<24x1xf32> to vector<24x24xf32>
    %348 = arith.subf %344, %347 : vector<24x24xf32>
    %349 = math.exp %348 : vector<24x24xf32>
    %cst_115 = arith.constant dense<0.000000e+00> : vector<24xf32>
    %350 = vector.multi_reduction <add>, %349, %cst_115 [1] : vector<24x24xf32> to vector<24xf32>
    %351 = vector.shape_cast %350 : vector<24xf32> to vector<24x1xf32>
    %352 = tpu.reciprocal %351 {approx = true} : vector<24x1xf32> -> vector<24x1xf32>
    %353 = vector.broadcast %352 : vector<24x1xf32> to vector<24x24xf32>
    %354 = arith.mulf %349, %353 : vector<24x24xf32>
    %cst_116 = arith.constant dense<0.000000e+00> : vector<24x16xf32>
    %355 = tpu.matmul %354, %341, %cst_116 {dimension_numbers = #tpu.dot_dimension_numbers<[1], [0], [0], [1], [0, 0, 1, 1], [], []>} : vector<24x24xf32>, vector<24x16xf32>, vector<24x16xf32> -> vector<24x16xf32>
    %356 = vector.extract_strided_slice %294 {offsets = [72, 0], sizes = [24, 16], strides = [1, 1]} : vector<96x16xf32> to vector<24x16xf32>
    %357 = vector.extract_strided_slice %299 {offsets = [72, 0], sizes = [24, 16], strides = [1, 1]} : vector<96x16xf32> to vector<24x16xf32>
    %358 = vector.extract_strided_slice %304 {offsets = [72, 0], sizes = [24, 16], strides = [1, 1]} : vector<96x16xf32> to vector<24x16xf32>
    %cst_117 = arith.constant dense<0.000000e+00> : vector<24x24xf32>
    %359 = tpu.matmul %356, %357, %cst_117 {dimension_numbers = #tpu.dot_dimension_numbers<[1], [1], [0], [0], [0, 0, 1, 0], [], []>} : vector<24x16xf32>, vector<24x16xf32>, vector<24x24xf32> -> vector<24x24xf32>
    %360 = vector.broadcast %10 : vector<1x24xf32> to vector<24x24xf32>
    %361 = arith.addf %359, %360 : vector<24x24xf32>
    %cst_118 = arith.constant dense<0xFF800000> : vector<24xf32>
    %362 = vector.multi_reduction <maximumf>, %361, %cst_118 [1] : vector<24x24xf32> to vector<24xf32>
    %363 = vector.shape_cast %362 : vector<24xf32> to vector<24x1xf32>
    %364 = vector.broadcast %363 : vector<24x1xf32> to vector<24x24xf32>
    %365 = arith.subf %361, %364 : vector<24x24xf32>
    %366 = math.exp %365 : vector<24x24xf32>
    %cst_119 = arith.constant dense<0.000000e+00> : vector<24xf32>
    %367 = vector.multi_reduction <add>, %366, %cst_119 [1] : vector<24x24xf32> to vector<24xf32>
    %368 = vector.shape_cast %367 : vector<24xf32> to vector<24x1xf32>
    %369 = tpu.reciprocal %368 {approx = true} : vector<24x1xf32> -> vector<24x1xf32>
    %370 = vector.broadcast %369 : vector<24x1xf32> to vector<24x24xf32>
    %371 = arith.mulf %366, %370 : vector<24x24xf32>
    %cst_120 = arith.constant dense<0.000000e+00> : vector<24x16xf32>
    %372 = tpu.matmul %371, %358, %cst_120 {dimension_numbers = #tpu.dot_dimension_numbers<[1], [0], [0], [1], [0, 0, 1, 1], [], []>} : vector<24x24xf32>, vector<24x16xf32>, vector<24x16xf32> -> vector<24x16xf32>
    %373 = tpu.concatenate %321, %338, %355, %372 in 0 : vector<24x16xf32>, vector<24x16xf32>, vector<24x16xf32>, vector<24x16xf32> -> vector<96x16xf32>
    %c744 = arith.constant 744 : index
    %c0_121 = arith.constant 0 : index
    %374 = vector.load %arg3[%c744, %c0_121] : memref<1424x32xf32, #tpu.memory_space<vmem>>, vector<16x32xf32>
    %cst_122 = arith.constant dense<0.000000e+00> : vector<96x32xf32>
    %375 = tpu.matmul %373, %374, %cst_122 {dimension_numbers = #tpu.dot_dimension_numbers<[1], [0], [0], [1], [0, 0, 1, 1], [], []>} : vector<96x16xf32>, vector<16x32xf32>, vector<96x32xf32> -> vector<96x32xf32>
    %c760 = arith.constant 760 : index
    %c0_123 = arith.constant 0 : index
    %376 = vector.load %arg3[%c760, %c0_123] : memref<1424x32xf32, #tpu.memory_space<vmem>>, vector<32x16xf32>
    %cst_124 = arith.constant dense<0.000000e+00> : vector<96x16xf32>
    %377 = tpu.matmul %287, %376, %cst_124 {dimension_numbers = #tpu.dot_dimension_numbers<[1], [0], [0], [1], [0, 0, 1, 1], [], []>} : vector<96x32xf32>, vector<32x16xf32>, vector<96x16xf32> -> vector<96x16xf32>
    %c856 = arith.constant 856 : index
    %c0_125 = arith.constant 0 : index
    %378 = vector.load %arg3[%c856, %c0_125] : memref<1424x32xf32, #tpu.memory_space<vmem>>, vector<1x16xf32>
    %379 = vector.broadcast %378 : vector<1x16xf32> to vector<96x16xf32>
    %380 = arith.addf %377, %379 : vector<96x16xf32>
    %cst_126 = arith.constant 2.500000e-01 : f32
    %381 = vector.broadcast %cst_126 : f32 to vector<96x16xf32>
    %382 = arith.mulf %380, %381 : vector<96x16xf32>
    %c792 = arith.constant 792 : index
    %c0_127 = arith.constant 0 : index
    %383 = vector.load %arg3[%c792, %c0_127] : memref<1424x32xf32, #tpu.memory_space<vmem>>, vector<32x16xf32>
    %cst_128 = arith.constant dense<0.000000e+00> : vector<96x16xf32>
    %384 = tpu.matmul %287, %383, %cst_128 {dimension_numbers = #tpu.dot_dimension_numbers<[1], [0], [0], [1], [0, 0, 1, 1], [], []>} : vector<96x32xf32>, vector<32x16xf32>, vector<96x16xf32> -> vector<96x16xf32>
    %c864 = arith.constant 864 : index
    %c0_129 = arith.constant 0 : index
    %385 = vector.load %arg3[%c864, %c0_129] : memref<1424x32xf32, #tpu.memory_space<vmem>>, vector<1x16xf32>
    %386 = vector.broadcast %385 : vector<1x16xf32> to vector<96x16xf32>
    %387 = arith.addf %384, %386 : vector<96x16xf32>
    %c824 = arith.constant 824 : index
    %c0_130 = arith.constant 0 : index
    %388 = vector.load %arg3[%c824, %c0_130] : memref<1424x32xf32, #tpu.memory_space<vmem>>, vector<32x16xf32>
    %cst_131 = arith.constant dense<0.000000e+00> : vector<96x16xf32>
    %389 = tpu.matmul %287, %388, %cst_131 {dimension_numbers = #tpu.dot_dimension_numbers<[1], [0], [0], [1], [0, 0, 1, 1], [], []>} : vector<96x32xf32>, vector<32x16xf32>, vector<96x16xf32> -> vector<96x16xf32>
    %c872 = arith.constant 872 : index
    %c0_132 = arith.constant 0 : index
    %390 = vector.load %arg3[%c872, %c0_132] : memref<1424x32xf32, #tpu.memory_space<vmem>>, vector<1x16xf32>
    %391 = vector.broadcast %390 : vector<1x16xf32> to vector<96x16xf32>
    %392 = arith.addf %389, %391 : vector<96x16xf32>
    %393 = vector.extract_strided_slice %382 {offsets = [0, 0], sizes = [24, 16], strides = [1, 1]} : vector<96x16xf32> to vector<24x16xf32>
    %394 = vector.extract_strided_slice %387 {offsets = [0, 0], sizes = [24, 16], strides = [1, 1]} : vector<96x16xf32> to vector<24x16xf32>
    %395 = vector.extract_strided_slice %392 {offsets = [0, 0], sizes = [24, 16], strides = [1, 1]} : vector<96x16xf32> to vector<24x16xf32>
    %cst_133 = arith.constant dense<0.000000e+00> : vector<24x24xf32>
    %396 = tpu.matmul %393, %394, %cst_133 {dimension_numbers = #tpu.dot_dimension_numbers<[1], [1], [0], [0], [0, 0, 1, 0], [], []>} : vector<24x16xf32>, vector<24x16xf32>, vector<24x24xf32> -> vector<24x24xf32>
    %397 = vector.broadcast %10 : vector<1x24xf32> to vector<24x24xf32>
    %398 = arith.addf %396, %397 : vector<24x24xf32>
    %cst_134 = arith.constant dense<0xFF800000> : vector<24xf32>
    %399 = vector.multi_reduction <maximumf>, %398, %cst_134 [1] : vector<24x24xf32> to vector<24xf32>
    %400 = vector.shape_cast %399 : vector<24xf32> to vector<24x1xf32>
    %401 = vector.broadcast %400 : vector<24x1xf32> to vector<24x24xf32>
    %402 = arith.subf %398, %401 : vector<24x24xf32>
    %403 = math.exp %402 : vector<24x24xf32>
    %cst_135 = arith.constant dense<0.000000e+00> : vector<24xf32>
    %404 = vector.multi_reduction <add>, %403, %cst_135 [1] : vector<24x24xf32> to vector<24xf32>
    %405 = vector.shape_cast %404 : vector<24xf32> to vector<24x1xf32>
    %406 = tpu.reciprocal %405 {approx = true} : vector<24x1xf32> -> vector<24x1xf32>
    %407 = vector.broadcast %406 : vector<24x1xf32> to vector<24x24xf32>
    %408 = arith.mulf %403, %407 : vector<24x24xf32>
    %cst_136 = arith.constant dense<0.000000e+00> : vector<24x16xf32>
    %409 = tpu.matmul %408, %395, %cst_136 {dimension_numbers = #tpu.dot_dimension_numbers<[1], [0], [0], [1], [0, 0, 1, 1], [], []>} : vector<24x24xf32>, vector<24x16xf32>, vector<24x16xf32> -> vector<24x16xf32>
    %410 = vector.extract_strided_slice %382 {offsets = [24, 0], sizes = [24, 16], strides = [1, 1]} : vector<96x16xf32> to vector<24x16xf32>
    %411 = vector.extract_strided_slice %387 {offsets = [24, 0], sizes = [24, 16], strides = [1, 1]} : vector<96x16xf32> to vector<24x16xf32>
    %412 = vector.extract_strided_slice %392 {offsets = [24, 0], sizes = [24, 16], strides = [1, 1]} : vector<96x16xf32> to vector<24x16xf32>
    %cst_137 = arith.constant dense<0.000000e+00> : vector<24x24xf32>
    %413 = tpu.matmul %410, %411, %cst_137 {dimension_numbers = #tpu.dot_dimension_numbers<[1], [1], [0], [0], [0, 0, 1, 0], [], []>} : vector<24x16xf32>, vector<24x16xf32>, vector<24x24xf32> -> vector<24x24xf32>
    %414 = vector.broadcast %10 : vector<1x24xf32> to vector<24x24xf32>
    %415 = arith.addf %413, %414 : vector<24x24xf32>
    %cst_138 = arith.constant dense<0xFF800000> : vector<24xf32>
    %416 = vector.multi_reduction <maximumf>, %415, %cst_138 [1] : vector<24x24xf32> to vector<24xf32>
    %417 = vector.shape_cast %416 : vector<24xf32> to vector<24x1xf32>
    %418 = vector.broadcast %417 : vector<24x1xf32> to vector<24x24xf32>
    %419 = arith.subf %415, %418 : vector<24x24xf32>
    %420 = math.exp %419 : vector<24x24xf32>
    %cst_139 = arith.constant dense<0.000000e+00> : vector<24xf32>
    %421 = vector.multi_reduction <add>, %420, %cst_139 [1] : vector<24x24xf32> to vector<24xf32>
    %422 = vector.shape_cast %421 : vector<24xf32> to vector<24x1xf32>
    %423 = tpu.reciprocal %422 {approx = true} : vector<24x1xf32> -> vector<24x1xf32>
    %424 = vector.broadcast %423 : vector<24x1xf32> to vector<24x24xf32>
    %425 = arith.mulf %420, %424 : vector<24x24xf32>
    %cst_140 = arith.constant dense<0.000000e+00> : vector<24x16xf32>
    %426 = tpu.matmul %425, %412, %cst_140 {dimension_numbers = #tpu.dot_dimension_numbers<[1], [0], [0], [1], [0, 0, 1, 1], [], []>} : vector<24x24xf32>, vector<24x16xf32>, vector<24x16xf32> -> vector<24x16xf32>
    %427 = vector.extract_strided_slice %382 {offsets = [48, 0], sizes = [24, 16], strides = [1, 1]} : vector<96x16xf32> to vector<24x16xf32>
    %428 = vector.extract_strided_slice %387 {offsets = [48, 0], sizes = [24, 16], strides = [1, 1]} : vector<96x16xf32> to vector<24x16xf32>
    %429 = vector.extract_strided_slice %392 {offsets = [48, 0], sizes = [24, 16], strides = [1, 1]} : vector<96x16xf32> to vector<24x16xf32>
    %cst_141 = arith.constant dense<0.000000e+00> : vector<24x24xf32>
    %430 = tpu.matmul %427, %428, %cst_141 {dimension_numbers = #tpu.dot_dimension_numbers<[1], [1], [0], [0], [0, 0, 1, 0], [], []>} : vector<24x16xf32>, vector<24x16xf32>, vector<24x24xf32> -> vector<24x24xf32>
    %431 = vector.broadcast %10 : vector<1x24xf32> to vector<24x24xf32>
    %432 = arith.addf %430, %431 : vector<24x24xf32>
    %cst_142 = arith.constant dense<0xFF800000> : vector<24xf32>
    %433 = vector.multi_reduction <maximumf>, %432, %cst_142 [1] : vector<24x24xf32> to vector<24xf32>
    %434 = vector.shape_cast %433 : vector<24xf32> to vector<24x1xf32>
    %435 = vector.broadcast %434 : vector<24x1xf32> to vector<24x24xf32>
    %436 = arith.subf %432, %435 : vector<24x24xf32>
    %437 = math.exp %436 : vector<24x24xf32>
    %cst_143 = arith.constant dense<0.000000e+00> : vector<24xf32>
    %438 = vector.multi_reduction <add>, %437, %cst_143 [1] : vector<24x24xf32> to vector<24xf32>
    %439 = vector.shape_cast %438 : vector<24xf32> to vector<24x1xf32>
    %440 = tpu.reciprocal %439 {approx = true} : vector<24x1xf32> -> vector<24x1xf32>
    %441 = vector.broadcast %440 : vector<24x1xf32> to vector<24x24xf32>
    %442 = arith.mulf %437, %441 : vector<24x24xf32>
    %cst_144 = arith.constant dense<0.000000e+00> : vector<24x16xf32>
    %443 = tpu.matmul %442, %429, %cst_144 {dimension_numbers = #tpu.dot_dimension_numbers<[1], [0], [0], [1], [0, 0, 1, 1], [], []>} : vector<24x24xf32>, vector<24x16xf32>, vector<24x16xf32> -> vector<24x16xf32>
    %444 = vector.extract_strided_slice %382 {offsets = [72, 0], sizes = [24, 16], strides = [1, 1]} : vector<96x16xf32> to vector<24x16xf32>
    %445 = vector.extract_strided_slice %387 {offsets = [72, 0], sizes = [24, 16], strides = [1, 1]} : vector<96x16xf32> to vector<24x16xf32>
    %446 = vector.extract_strided_slice %392 {offsets = [72, 0], sizes = [24, 16], strides = [1, 1]} : vector<96x16xf32> to vector<24x16xf32>
    %cst_145 = arith.constant dense<0.000000e+00> : vector<24x24xf32>
    %447 = tpu.matmul %444, %445, %cst_145 {dimension_numbers = #tpu.dot_dimension_numbers<[1], [1], [0], [0], [0, 0, 1, 0], [], []>} : vector<24x16xf32>, vector<24x16xf32>, vector<24x24xf32> -> vector<24x24xf32>
    %448 = vector.broadcast %10 : vector<1x24xf32> to vector<24x24xf32>
    %449 = arith.addf %447, %448 : vector<24x24xf32>
    %cst_146 = arith.constant dense<0xFF800000> : vector<24xf32>
    %450 = vector.multi_reduction <maximumf>, %449, %cst_146 [1] : vector<24x24xf32> to vector<24xf32>
    %451 = vector.shape_cast %450 : vector<24xf32> to vector<24x1xf32>
    %452 = vector.broadcast %451 : vector<24x1xf32> to vector<24x24xf32>
    %453 = arith.subf %449, %452 : vector<24x24xf32>
    %454 = math.exp %453 : vector<24x24xf32>
    %cst_147 = arith.constant dense<0.000000e+00> : vector<24xf32>
    %455 = vector.multi_reduction <add>, %454, %cst_147 [1] : vector<24x24xf32> to vector<24xf32>
    %456 = vector.shape_cast %455 : vector<24xf32> to vector<24x1xf32>
    %457 = tpu.reciprocal %456 {approx = true} : vector<24x1xf32> -> vector<24x1xf32>
    %458 = vector.broadcast %457 : vector<24x1xf32> to vector<24x24xf32>
    %459 = arith.mulf %454, %458 : vector<24x24xf32>
    %cst_148 = arith.constant dense<0.000000e+00> : vector<24x16xf32>
    %460 = tpu.matmul %459, %446, %cst_148 {dimension_numbers = #tpu.dot_dimension_numbers<[1], [0], [0], [1], [0, 0, 1, 1], [], []>} : vector<24x24xf32>, vector<24x16xf32>, vector<24x16xf32> -> vector<24x16xf32>
    %461 = tpu.concatenate %409, %426, %443, %460 in 0 : vector<24x16xf32>, vector<24x16xf32>, vector<24x16xf32>, vector<24x16xf32> -> vector<96x16xf32>
    %c880 = arith.constant 880 : index
    %c0_149 = arith.constant 0 : index
    %462 = vector.load %arg3[%c880, %c0_149] : memref<1424x32xf32, #tpu.memory_space<vmem>>, vector<16x32xf32>
    %cst_150 = arith.constant dense<0.000000e+00> : vector<96x32xf32>
    %463 = tpu.matmul %461, %462, %cst_150 {dimension_numbers = #tpu.dot_dimension_numbers<[1], [0], [0], [1], [0, 0, 1, 1], [], []>} : vector<96x16xf32>, vector<16x32xf32>, vector<96x32xf32> -> vector<96x32xf32>
    %464 = arith.addf %375, %463 : vector<96x32xf32>
    %465 = arith.addf %263, %464 : vector<96x32xf32>
    %c896 = arith.constant 896 : index
    %c0_151 = arith.constant 0 : index
    %466 = vector.load %arg3[%c896, %c0_151] : memref<1424x32xf32, #tpu.memory_space<vmem>>, vector<1x32xf32>
    %467 = vector.broadcast %466 : vector<1x32xf32> to vector<96x32xf32>
    %468 = arith.addf %465, %467 : vector<96x32xf32>
    %c904 = arith.constant 904 : index
    %c0_152 = arith.constant 0 : index
    %469 = vector.load %arg3[%c904, %c0_152] : memref<1424x32xf32, #tpu.memory_space<vmem>>, vector<1x32xf32>
    %c912 = arith.constant 912 : index
    %c0_153 = arith.constant 0 : index
    %470 = vector.load %arg3[%c912, %c0_153] : memref<1424x32xf32, #tpu.memory_space<vmem>>, vector<1x32xf32>
    %cst_154 = arith.constant dense<0.000000e+00> : vector<96xf32>
    %471 = vector.multi_reduction <add>, %468, %cst_154 [1] : vector<96x32xf32> to vector<96xf32>
    %472 = vector.shape_cast %471 : vector<96xf32> to vector<96x1xf32>
    %cst_155 = arith.constant 3.200000e+01 : f32
    %473 = vector.broadcast %cst_155 : f32 to vector<96x1xf32>
    %474 = arith.divf %472, %473 : vector<96x1xf32>
    %475 = vector.broadcast %474 : vector<96x1xf32> to vector<96x32xf32>
    %476 = arith.subf %468, %475 : vector<96x32xf32>
    %477 = arith.mulf %476, %476 : vector<96x32xf32>
    %cst_156 = arith.constant dense<0.000000e+00> : vector<96xf32>
    %478 = vector.multi_reduction <add>, %477, %cst_156 [1] : vector<96x32xf32> to vector<96xf32>
    %479 = vector.shape_cast %478 : vector<96xf32> to vector<96x1xf32>
    %cst_157 = arith.constant 3.200000e+01 : f32
    %480 = vector.broadcast %cst_157 : f32 to vector<96x1xf32>
    %481 = arith.divf %479, %480 : vector<96x1xf32>
    %482 = vector.broadcast %474 : vector<96x1xf32> to vector<96x32xf32>
    %483 = arith.subf %468, %482 : vector<96x32xf32>
    %cst_158 = arith.constant 9.99999997E-7 : f32
    %484 = vector.broadcast %cst_158 : f32 to vector<96x1xf32>
    %485 = arith.addf %481, %484 : vector<96x1xf32>
    %486 = math.rsqrt %485 : vector<96x1xf32>
    %487 = vector.broadcast %486 : vector<96x1xf32> to vector<96x32xf32>
    %488 = arith.mulf %483, %487 : vector<96x32xf32>
    %489 = vector.broadcast %469 : vector<1x32xf32> to vector<96x32xf32>
    %490 = arith.mulf %488, %489 : vector<96x32xf32>
    %491 = vector.broadcast %470 : vector<1x32xf32> to vector<96x32xf32>
    %492 = arith.addf %490, %491 : vector<96x32xf32>
    %c40 = arith.constant 40 : index
    %c0_159 = arith.constant 0 : index
    %493 = vector.load %arg4[%c40, %c0_159] : memref<336x192xf32, #tpu.memory_space<vmem>>, vector<32x128xf32>
    %cst_160 = arith.constant dense<0.000000e+00> : vector<96x128xf32>
    %494 = tpu.matmul %492, %493, %cst_160 {dimension_numbers = #tpu.dot_dimension_numbers<[1], [0], [0], [1], [0, 0, 1, 1], [], []>} : vector<96x32xf32>, vector<32x128xf32>, vector<96x128xf32> -> vector<96x128xf32>
    %c72 = arith.constant 72 : index
    %c0_161 = arith.constant 0 : index
    %495 = vector.load %arg4[%c72, %c0_161] : memref<336x192xf32, #tpu.memory_space<vmem>>, vector<1x128xf32>
    %496 = vector.broadcast %495 : vector<1x128xf32> to vector<96x128xf32>
    %497 = arith.addf %494, %496 : vector<96x128xf32>
    %498 = arith.mulf %497, %497 : vector<96x128xf32>
    %499 = arith.mulf %497, %498 : vector<96x128xf32>
    %cst_162 = arith.constant 4.471500e-02 : f32
    %500 = vector.broadcast %cst_162 : f32 to vector<96x128xf32>
    %501 = arith.mulf %500, %499 : vector<96x128xf32>
    %502 = arith.addf %497, %501 : vector<96x128xf32>
    %cst_163 = arith.constant 0.797884583 : f32
    %503 = vector.broadcast %cst_163 : f32 to vector<96x128xf32>
    %504 = arith.mulf %503, %502 : vector<96x128xf32>
    %505 = math.tanh %504 : vector<96x128xf32>
    %cst_164 = arith.constant 1.000000e+00 : f32
    %506 = vector.broadcast %cst_164 : f32 to vector<96x128xf32>
    %507 = arith.addf %506, %505 : vector<96x128xf32>
    %cst_165 = arith.constant 5.000000e-01 : f32
    %508 = vector.broadcast %cst_165 : f32 to vector<96x128xf32>
    %509 = arith.mulf %508, %507 : vector<96x128xf32>
    %510 = arith.mulf %497, %509 : vector<96x128xf32>
    %c920 = arith.constant 920 : index
    %c0_166 = arith.constant 0 : index
    %511 = vector.load %arg3[%c920, %c0_166] : memref<1424x32xf32, #tpu.memory_space<vmem>>, vector<128x32xf32>
    %cst_167 = arith.constant dense<0.000000e+00> : vector<96x32xf32>
    %512 = tpu.matmul %510, %511, %cst_167 {dimension_numbers = #tpu.dot_dimension_numbers<[1], [0], [0], [1], [0, 0, 1, 1], [], []>} : vector<96x128xf32>, vector<128x32xf32>, vector<96x32xf32> -> vector<96x32xf32>
    %513 = arith.addf %468, %512 : vector<96x32xf32>
    %c1048 = arith.constant 1048 : index
    %c0_168 = arith.constant 0 : index
    %514 = vector.load %arg3[%c1048, %c0_168] : memref<1424x32xf32, #tpu.memory_space<vmem>>, vector<1x32xf32>
    %515 = vector.broadcast %514 : vector<1x32xf32> to vector<96x32xf32>
    %516 = arith.addf %513, %515 : vector<96x32xf32>
    %517 = vector.extract_strided_slice %516 {offsets = [0, 0], sizes = [1, 32], strides = [1, 1]} : vector<96x32xf32> to vector<1x32xf32>
    %518 = vector.extract_strided_slice %516 {offsets = [24, 0], sizes = [1, 32], strides = [1, 1]} : vector<96x32xf32> to vector<1x32xf32>
    %519 = tpu.concatenate %517, %518 in 0 : vector<1x32xf32>, vector<1x32xf32> -> vector<2x32xf32>
    %c144 = arith.constant 144 : index
    %c0_169 = arith.constant 0 : index
    %520 = vector.load %arg3[%c144, %c0_169] : memref<1424x32xf32, #tpu.memory_space<vmem>>, vector<1x32xf32>
    %c152 = arith.constant 152 : index
    %c0_170 = arith.constant 0 : index
    %521 = vector.load %arg3[%c152, %c0_170] : memref<1424x32xf32, #tpu.memory_space<vmem>>, vector<1x32xf32>
    %cst_171 = arith.constant dense<0.000000e+00> : vector<2xf32>
    %522 = vector.multi_reduction <add>, %519, %cst_171 [1] : vector<2x32xf32> to vector<2xf32>
    %523 = vector.shape_cast %522 : vector<2xf32> to vector<2x1xf32>
    %cst_172 = arith.constant 3.200000e+01 : f32
    %524 = vector.broadcast %cst_172 : f32 to vector<2x1xf32>
    %525 = arith.divf %523, %524 : vector<2x1xf32>
    %526 = vector.broadcast %525 : vector<2x1xf32> to vector<2x32xf32>
    %527 = arith.subf %519, %526 : vector<2x32xf32>
    %528 = arith.mulf %527, %527 : vector<2x32xf32>
    %cst_173 = arith.constant dense<0.000000e+00> : vector<2xf32>
    %529 = vector.multi_reduction <add>, %528, %cst_173 [1] : vector<2x32xf32> to vector<2xf32>
    %530 = vector.shape_cast %529 : vector<2xf32> to vector<2x1xf32>
    %cst_174 = arith.constant 3.200000e+01 : f32
    %531 = vector.broadcast %cst_174 : f32 to vector<2x1xf32>
    %532 = arith.divf %530, %531 : vector<2x1xf32>
    %533 = vector.broadcast %525 : vector<2x1xf32> to vector<2x32xf32>
    %534 = arith.subf %519, %533 : vector<2x32xf32>
    %cst_175 = arith.constant 9.99999997E-7 : f32
    %535 = vector.broadcast %cst_175 : f32 to vector<2x1xf32>
    %536 = arith.addf %532, %535 : vector<2x1xf32>
    %537 = math.rsqrt %536 : vector<2x1xf32>
    %538 = vector.broadcast %537 : vector<2x1xf32> to vector<2x32xf32>
    %539 = arith.mulf %534, %538 : vector<2x32xf32>
    %540 = vector.broadcast %520 : vector<1x32xf32> to vector<2x32xf32>
    %541 = arith.mulf %539, %540 : vector<2x32xf32>
    %542 = vector.broadcast %521 : vector<1x32xf32> to vector<2x32xf32>
    %543 = arith.addf %541, %542 : vector<2x32xf32>
    %544 = vector.extract_strided_slice %516 {offsets = [48, 0], sizes = [1, 32], strides = [1, 1]} : vector<96x32xf32> to vector<1x32xf32>
    %545 = vector.extract_strided_slice %516 {offsets = [72, 0], sizes = [1, 32], strides = [1, 1]} : vector<96x32xf32> to vector<1x32xf32>
    %546 = tpu.concatenate %544, %545 in 0 : vector<1x32xf32>, vector<1x32xf32> -> vector<2x32xf32>
    %c144_176 = arith.constant 144 : index
    %c0_177 = arith.constant 0 : index
    %547 = vector.load %arg3[%c144_176, %c0_177] : memref<1424x32xf32, #tpu.memory_space<vmem>>, vector<1x32xf32>
    %c152_178 = arith.constant 152 : index
    %c0_179 = arith.constant 0 : index
    %548 = vector.load %arg3[%c152_178, %c0_179] : memref<1424x32xf32, #tpu.memory_space<vmem>>, vector<1x32xf32>
    %cst_180 = arith.constant dense<0.000000e+00> : vector<2xf32>
    %549 = vector.multi_reduction <add>, %546, %cst_180 [1] : vector<2x32xf32> to vector<2xf32>
    %550 = vector.shape_cast %549 : vector<2xf32> to vector<2x1xf32>
    %cst_181 = arith.constant 3.200000e+01 : f32
    %551 = vector.broadcast %cst_181 : f32 to vector<2x1xf32>
    %552 = arith.divf %550, %551 : vector<2x1xf32>
    %553 = vector.broadcast %552 : vector<2x1xf32> to vector<2x32xf32>
    %554 = arith.subf %546, %553 : vector<2x32xf32>
    %555 = arith.mulf %554, %554 : vector<2x32xf32>
    %cst_182 = arith.constant dense<0.000000e+00> : vector<2xf32>
    %556 = vector.multi_reduction <add>, %555, %cst_182 [1] : vector<2x32xf32> to vector<2xf32>
    %557 = vector.shape_cast %556 : vector<2xf32> to vector<2x1xf32>
    %cst_183 = arith.constant 3.200000e+01 : f32
    %558 = vector.broadcast %cst_183 : f32 to vector<2x1xf32>
    %559 = arith.divf %557, %558 : vector<2x1xf32>
    %560 = vector.broadcast %552 : vector<2x1xf32> to vector<2x32xf32>
    %561 = arith.subf %546, %560 : vector<2x32xf32>
    %cst_184 = arith.constant 9.99999997E-7 : f32
    %562 = vector.broadcast %cst_184 : f32 to vector<2x1xf32>
    %563 = arith.addf %559, %562 : vector<2x1xf32>
    %564 = math.rsqrt %563 : vector<2x1xf32>
    %565 = vector.broadcast %564 : vector<2x1xf32> to vector<2x32xf32>
    %566 = arith.mulf %561, %565 : vector<2x32xf32>
    %567 = vector.broadcast %547 : vector<1x32xf32> to vector<2x32xf32>
    %568 = arith.mulf %566, %567 : vector<2x32xf32>
    %569 = vector.broadcast %548 : vector<1x32xf32> to vector<2x32xf32>
    %570 = arith.addf %568, %569 : vector<2x32xf32>
    %571 = arith.addf %543, %570 : vector<2x32xf32>
    %c0_185 = arith.constant 0 : index
    %c0_186 = arith.constant 0 : index
    %572 = vector.load %arg2[%c0_185, %c0_186] : memref<2x2xf32, #tpu.memory_space<vmem>>, vector<2x1xf32>
    %c0_187 = arith.constant 0 : index
    %c1 = arith.constant 1 : index
    %573 = vector.load %arg2[%c0_187, %c1] : memref<2x2xf32, #tpu.memory_space<vmem>>, vector<2x1xf32>
    %c1056 = arith.constant 1056 : index
    %c0_188 = arith.constant 0 : index
    %574 = vector.load %arg3[%c1056, %c0_188] : memref<1424x32xf32, #tpu.memory_space<vmem>>, vector<1x32xf32>
    %575 = vector.broadcast %572 : vector<2x1xf32> to vector<2x32xf32>
    %576 = vector.broadcast %574 : vector<1x32xf32> to vector<2x32xf32>
    %577 = arith.mulf %575, %576 : vector<2x32xf32>
    %c1064 = arith.constant 1064 : index
    %c0_189 = arith.constant 0 : index
    %578 = vector.load %arg3[%c1064, %c0_189] : memref<1424x32xf32, #tpu.memory_space<vmem>>, vector<1x32xf32>
    %579 = vector.broadcast %578 : vector<1x32xf32> to vector<2x32xf32>
    %580 = arith.addf %577, %579 : vector<2x32xf32>
    %cst_190 = arith.constant 0.000000e+00 : f32
    %581 = vector.broadcast %cst_190 : f32 to vector<2x32xf32>
    %582 = arith.maximumf %580, %581 : vector<2x32xf32>
    %c1072 = arith.constant 1072 : index
    %c0_191 = arith.constant 0 : index
    %583 = vector.load %arg3[%c1072, %c0_191] : memref<1424x32xf32, #tpu.memory_space<vmem>>, vector<32x16xf32>
    %cst_192 = arith.constant dense<0.000000e+00> : vector<2x16xf32>
    %584 = tpu.matmul %582, %583, %cst_192 {dimension_numbers = #tpu.dot_dimension_numbers<[1], [0], [0], [1], [0, 0, 1, 1], [], []>} : vector<2x32xf32>, vector<32x16xf32>, vector<2x16xf32> -> vector<2x16xf32>
    %c1104 = arith.constant 1104 : index
    %c0_193 = arith.constant 0 : index
    %585 = vector.load %arg3[%c1104, %c0_193] : memref<1424x32xf32, #tpu.memory_space<vmem>>, vector<1x16xf32>
    %586 = vector.broadcast %585 : vector<1x16xf32> to vector<2x16xf32>
    %587 = arith.addf %584, %586 : vector<2x16xf32>
    %588 = tpu.concatenate %571, %587 in 1 : vector<2x32xf32>, vector<2x16xf32> -> vector<2x48xf32>
    %c80 = arith.constant 80 : index
    %c0_194 = arith.constant 0 : index
    %589 = vector.load %arg4[%c80, %c0_194] : memref<336x192xf32, #tpu.memory_space<vmem>>, vector<48x192xf32>
    %cst_195 = arith.constant dense<0.000000e+00> : vector<2x192xf32>
    %590 = tpu.matmul %588, %589, %cst_195 {dimension_numbers = #tpu.dot_dimension_numbers<[1], [0], [0], [1], [0, 0, 1, 1], [], []>} : vector<2x48xf32>, vector<48x192xf32>, vector<2x192xf32> -> vector<2x192xf32>
    %c128 = arith.constant 128 : index
    %c0_196 = arith.constant 0 : index
    %591 = vector.load %arg4[%c128, %c0_196] : memref<336x192xf32, #tpu.memory_space<vmem>>, vector<1x192xf32>
    %592 = vector.broadcast %591 : vector<1x192xf32> to vector<2x192xf32>
    %593 = arith.addf %590, %592 : vector<2x192xf32>
    %cst_197 = arith.constant 0.000000e+00 : f32
    %594 = vector.broadcast %cst_197 : f32 to vector<2x192xf32>
    %595 = arith.maximumf %593, %594 : vector<2x192xf32>
    %c136 = arith.constant 136 : index
    %c0_198 = arith.constant 0 : index
    %596 = vector.load %arg4[%c136, %c0_198] : memref<336x192xf32, #tpu.memory_space<vmem>>, vector<192x192xf32>
    %cst_199 = arith.constant dense<0.000000e+00> : vector<2x192xf32>
    %597 = tpu.matmul %595, %596, %cst_199 {dimension_numbers = #tpu.dot_dimension_numbers<[1], [0], [0], [1], [0, 0, 1, 1], [], []>} : vector<2x192xf32>, vector<192x192xf32>, vector<2x192xf32> -> vector<2x192xf32>
    %c328 = arith.constant 328 : index
    %c0_200 = arith.constant 0 : index
    %598 = vector.load %arg4[%c328, %c0_200] : memref<336x192xf32, #tpu.memory_space<vmem>>, vector<1x192xf32>
    %599 = vector.broadcast %598 : vector<1x192xf32> to vector<2x192xf32>
    %600 = arith.addf %597, %599 : vector<2x192xf32>
    %cst_201 = arith.constant 0.000000e+00 : f32
    %601 = vector.broadcast %cst_201 : f32 to vector<2x192xf32>
    %602 = arith.maximumf %600, %601 : vector<2x192xf32>
    %c1224 = arith.constant 1224 : index
    %c0_202 = arith.constant 0 : index
    %603 = vector.load %arg3[%c1224, %c0_202] : memref<1424x32xf32, #tpu.memory_space<vmem>>, vector<192x18xf32>
    %cst_203 = arith.constant dense<0.000000e+00> : vector<2x18xf32>
    %604 = tpu.matmul %602, %603, %cst_203 {dimension_numbers = #tpu.dot_dimension_numbers<[1], [0], [0], [1], [0, 0, 1, 1], [], []>} : vector<2x192xf32>, vector<192x18xf32>, vector<2x18xf32> -> vector<2x18xf32>
    %c1416 = arith.constant 1416 : index
    %c0_204 = arith.constant 0 : index
    %605 = vector.load %arg3[%c1416, %c0_204] : memref<1424x32xf32, #tpu.memory_space<vmem>>, vector<1x18xf32>
    %606 = vector.broadcast %605 : vector<1x18xf32> to vector<2x18xf32>
    %607 = arith.addf %604, %606 : vector<2x18xf32>
    %608 = arith.negf %607 : vector<2x18xf32>
    %609 = math.exp %608 : vector<2x18xf32>
    %cst_205 = arith.constant 1.000000e+00 : f32
    %610 = vector.broadcast %cst_205 : f32 to vector<2x18xf32>
    %611 = arith.addf %610, %609 : vector<2x18xf32>
    %612 = arith.divf %610, %611 : vector<2x18xf32>
    %613 = tpu.iota {dimensions = array<i32: 1>} : vector<1x6xi32>
    %c1_i32 = arith.constant 1 : i32
    %614 = vector.broadcast %c1_i32 : i32 to vector<1x6xi32>
    %615 = arith.addi %613, %614 : vector<1x6xi32>
    %616 = arith.sitofp %615 : vector<1x6xi32> to vector<1x6xf32>
    %617 = vector.broadcast %573 : vector<2x1xf32> to vector<2x6xf32>
    %618 = vector.broadcast %616 : vector<1x6xf32> to vector<2x6xf32>
    %619 = arith.cmpf oeq, %617, %618 : vector<2x6xf32>
    %620 = arith.extui %619 : vector<2x6xi1> to vector<2x6xi32>
    %621 = arith.sitofp %620 : vector<2x6xi32> to vector<2x6xf32>
    %622 = vector.extract_strided_slice %612 {offsets = [0, 0], sizes = [2, 3], strides = [1, 1]} : vector<2x18xf32> to vector<2x3xf32>
    %623 = vector.extract_strided_slice %621 {offsets = [0, 0], sizes = [2, 1], strides = [1, 1]} : vector<2x6xf32> to vector<2x1xf32>
    %624 = vector.broadcast %623 : vector<2x1xf32> to vector<2x3xf32>
    %625 = arith.mulf %622, %624 : vector<2x3xf32>
    %626 = vector.extract_strided_slice %612 {offsets = [0, 3], sizes = [2, 3], strides = [1, 1]} : vector<2x18xf32> to vector<2x3xf32>
    %627 = vector.extract_strided_slice %621 {offsets = [0, 1], sizes = [2, 1], strides = [1, 1]} : vector<2x6xf32> to vector<2x1xf32>
    %628 = vector.broadcast %627 : vector<2x1xf32> to vector<2x3xf32>
    %629 = arith.mulf %626, %628 : vector<2x3xf32>
    %630 = arith.addf %625, %629 : vector<2x3xf32>
    %631 = vector.extract_strided_slice %612 {offsets = [0, 6], sizes = [2, 3], strides = [1, 1]} : vector<2x18xf32> to vector<2x3xf32>
    %632 = vector.extract_strided_slice %621 {offsets = [0, 2], sizes = [2, 1], strides = [1, 1]} : vector<2x6xf32> to vector<2x1xf32>
    %633 = vector.broadcast %632 : vector<2x1xf32> to vector<2x3xf32>
    %634 = arith.mulf %631, %633 : vector<2x3xf32>
    %635 = arith.addf %630, %634 : vector<2x3xf32>
    %636 = vector.extract_strided_slice %612 {offsets = [0, 9], sizes = [2, 3], strides = [1, 1]} : vector<2x18xf32> to vector<2x3xf32>
    %637 = vector.extract_strided_slice %621 {offsets = [0, 3], sizes = [2, 1], strides = [1, 1]} : vector<2x6xf32> to vector<2x1xf32>
    %638 = vector.broadcast %637 : vector<2x1xf32> to vector<2x3xf32>
    %639 = arith.mulf %636, %638 : vector<2x3xf32>
    %640 = arith.addf %635, %639 : vector<2x3xf32>
    %641 = vector.extract_strided_slice %612 {offsets = [0, 12], sizes = [2, 3], strides = [1, 1]} : vector<2x18xf32> to vector<2x3xf32>
    %642 = vector.extract_strided_slice %621 {offsets = [0, 4], sizes = [2, 1], strides = [1, 1]} : vector<2x6xf32> to vector<2x1xf32>
    %643 = vector.broadcast %642 : vector<2x1xf32> to vector<2x3xf32>
    %644 = arith.mulf %641, %643 : vector<2x3xf32>
    %645 = arith.addf %640, %644 : vector<2x3xf32>
    %646 = vector.extract_strided_slice %612 {offsets = [0, 15], sizes = [2, 3], strides = [1, 1]} : vector<2x18xf32> to vector<2x3xf32>
    %647 = vector.extract_strided_slice %621 {offsets = [0, 5], sizes = [2, 1], strides = [1, 1]} : vector<2x6xf32> to vector<2x1xf32>
    %648 = vector.broadcast %647 : vector<2x1xf32> to vector<2x3xf32>
    %649 = arith.mulf %646, %648 : vector<2x3xf32>
    %650 = arith.addf %645, %649 : vector<2x3xf32>
    %c1112 = arith.constant 1112 : index
    %c0_206 = arith.constant 0 : index
    %651 = vector.load %arg3[%c1112, %c0_206] : memref<1424x32xf32, #tpu.memory_space<vmem>>, vector<48x32xf32>
    %cst_207 = arith.constant dense<0.000000e+00> : vector<2x32xf32>
    %652 = tpu.matmul %588, %651, %cst_207 {dimension_numbers = #tpu.dot_dimension_numbers<[1], [0], [0], [1], [0, 0, 1, 1], [], []>} : vector<2x48xf32>, vector<48x32xf32>, vector<2x32xf32> -> vector<2x32xf32>
    %c1160 = arith.constant 1160 : index
    %c0_208 = arith.constant 0 : index
    %653 = vector.load %arg3[%c1160, %c0_208] : memref<1424x32xf32, #tpu.memory_space<vmem>>, vector<1x32xf32>
    %654 = vector.broadcast %653 : vector<1x32xf32> to vector<2x32xf32>
    %655 = arith.addf %652, %654 : vector<2x32xf32>
    %cst_209 = arith.constant 0.000000e+00 : f32
    %656 = vector.broadcast %cst_209 : f32 to vector<2x32xf32>
    %657 = arith.maximumf %655, %656 : vector<2x32xf32>
    %c1168 = arith.constant 1168 : index
    %c0_210 = arith.constant 0 : index
    %658 = vector.load %arg3[%c1168, %c0_210] : memref<1424x32xf32, #tpu.memory_space<vmem>>, vector<32x32xf32>
    %cst_211 = arith.constant dense<0.000000e+00> : vector<2x32xf32>
    %659 = tpu.matmul %657, %658, %cst_211 {dimension_numbers = #tpu.dot_dimension_numbers<[1], [0], [0], [1], [0, 0, 1, 1], [], []>} : vector<2x32xf32>, vector<32x32xf32>, vector<2x32xf32> -> vector<2x32xf32>
    %c1200 = arith.constant 1200 : index
    %c0_212 = arith.constant 0 : index
    %660 = vector.load %arg3[%c1200, %c0_212] : memref<1424x32xf32, #tpu.memory_space<vmem>>, vector<1x32xf32>
    %661 = vector.broadcast %660 : vector<1x32xf32> to vector<2x32xf32>
    %662 = arith.addf %659, %661 : vector<2x32xf32>
    %cst_213 = arith.constant 0.000000e+00 : f32
    %663 = vector.broadcast %cst_213 : f32 to vector<2x32xf32>
    %664 = arith.maximumf %662, %663 : vector<2x32xf32>
    %c1208 = arith.constant 1208 : index
    %c0_214 = arith.constant 0 : index
    %665 = vector.load %arg3[%c1208, %c0_214] : memref<1424x32xf32, #tpu.memory_space<vmem>>, vector<1x32xf32>
    %666 = vector.broadcast %665 : vector<1x32xf32> to vector<2x32xf32>
    %667 = arith.mulf %664, %666 : vector<2x32xf32>
    %cst_215 = arith.constant dense<0.000000e+00> : vector<2xf32>
    %668 = vector.multi_reduction <add>, %667, %cst_215 [1] : vector<2x32xf32> to vector<2xf32>
    %669 = vector.shape_cast %668 : vector<2xf32> to vector<2x1xf32>
    %c1216 = arith.constant 1216 : index
    %c0_216 = arith.constant 0 : index
    %670 = vector.load %arg3[%c1216, %c0_216] : memref<1424x32xf32, #tpu.memory_space<vmem>>, vector<1x1xf32>
    %671 = vector.broadcast %670 : vector<1x1xf32> to vector<2x1xf32>
    %672 = arith.addf %669, %671 : vector<2x1xf32>
    %673 = tpu.concatenate %650, %672 in 1 : vector<2x3xf32>, vector<2x1xf32> -> vector<2x4xf32>
    %c0_217 = arith.constant 0 : index
    %c0_218 = arith.constant 0 : index
    %674 = vector.load %arg5[%c0_217, %c0_218] : memref<2x4xf32, #tpu.memory_space<vmem>>, vector<2x4xf32>
    tpu.vector_store %arg5[%c0_217, %c0_218], %673 {strides = array<i32>} : memref<2x4xf32, #tpu.memory_space<vmem>>, vector<2x4xf32>,
    return
  }
  func.func @transform_0(%arg0: i32) -> (i32, i32) {
    %c0_i32 = arith.constant 0 : i32
    %c0_i32_0 = arith.constant 0 : i32
    %c0_i32_1 = arith.constant 0 : i32
    return %c0_i32, %c0_i32_0 : i32, i32
  }
  func.func @transform_1(%arg0: i32) -> (i32, i32) {
    %c0_i32 = arith.constant 0 : i32
    %c0_i32_0 = arith.constant 0 : i32
    %c0_i32_1 = arith.constant 0 : i32
    return %c0_i32, %c0_i32_0 : i32, i32
  }
  func.func @transform_2(%arg0: i32) -> (i32, i32) {
    %c0_i32 = arith.constant 0 : i32
    %c0_i32_0 = arith.constant 0 : i32
    %c0_i32_1 = arith.constant 0 : i32
    return %c0_i32, %c0_i32_0 : i32, i32
  }
  func.func @transform_3(%arg0: i32) -> (i32, i32) {
    %c0_i32 = arith.constant 0 : i32
    %c0_i32_0 = arith.constant 0 : i32
    %c0_i32_1 = arith.constant 0 : i32
    return %c0_i32, %c0_i32_0 : i32, i32
  }
  func.func @transform_4(%arg0: i32) -> (i32, i32) {
    %c0_i32 = arith.constant 0 : i32
    %c0_i32_0 = arith.constant 0 : i32
    %c0_i32_1 = arith.constant 0 : i32
    return %c0_i32, %c0_i32_0 : i32, i32
  }
}

</mosaic_0001>

<bundles_post_ra>
// kernel: cilrs_mae_forward.1
= control target key start
LH: loop header
LB: loop body
LE: loop exit
PB: predicated region body
PF: predicated region fallthrough
CT: control target
= control target key end

     0   :  { %vm47_vm0 = vcmask 392192   ;;  %vm143_vm1 = vcmask 261120   ;;  %v6268_v51 = vmov 32.0   ;;  %s6271_s13 = smov 32   ;;  %s6279_s25 = smov 122   ;;  %s9283_s2 = inlined_call_operand.vmem [shape: f32[1424,32], index: 2, kind: input, shape index: {}]   ;;  %s9284_s0 = inlined_call_operand.vmem [shape: f32[96,48], index: 0, kind: input, shape index: {}]   ;;  %s9285_s3 = inlined_call_operand.vmem [shape: f32[336,192], index: 3, kind: input, shape index: {}]   ;;  %s9286_s1 = inlined_call_operand.vmem [shape: f32[2,2], index: 1, kind: input, shape index: {}]   ;;  %s9287_s4 = inlined_call_operand.vmem [shape: f32[2,4], index: 4, kind: output, shape index: {}]  }
   0x1   :  { %v34_v0 = vld [vmem:[%s9283_s2 + $0x28] sm:$0xff]  ;;  %v33_v1 = vld [vmem:[%s9283_s2 + $0x20] sm:$0xff]  ;;  %v32_v2 = vld [vmem:[%s9283_s2 + $0x18] sm:$0xff]  ;;  %5919 = vrcp.f32 %v6268_v51  ;;  %s6280_s26 = smov 119   ;;  %s6281_s27 = smov 116  }
   0x2   :  { %94 = vmatpush.msra.mxu0 %v34_v0  ;;  %v31_v3 = vld [vmem:[%s9283_s2 + $0x10] sm:$0xff]  ;;  %v30_v4 = vld [vmem:[%s9283_s2 + $0x8] sm:$0xff]  ;;  %v29_v5 = vld [vmem:[%s9283_s2] sm:$0xff]  ;;  %s6282_s28 = smov 113   ;;  %s6283_s30 = smov 3  }
   0x3   :  { %v17_v6 = vld [vmem:[%s9284_s0] sm:$0xff]  ;;  %v18_v7 = vld [vmem:[%s9284_s0 + $0x8] sm:$0xff]  ;;  %v19_v8 = vld [vmem:[%s9284_s0 + $0x10] sm:$0xff] }
   0x4   :  { %95 = vmatpush.msra.mxu0 %v33_v1  ;;  %v20_v9 = vld [vmem:[%s9284_s0 + $0x18] sm:$0xff]  ;;  %v21_v10 = vld [vmem:[%s9284_s0 + $0x20] sm:$0xff]  ;;  %v22_v11 = vld [vmem:[%s9284_s0 + $0x28] sm:$0xff] }
   0x5   :  { %v23_v12 = vld [vmem:[%s9284_s0 + $0x30] sm:$0xff]  ;;  %v24_v13 = vld [vmem:[%s9284_s0 + $0x38] sm:$0xff]  ;;  %v25_v14 = vld [vmem:[%s9284_s0 + $0x40] sm:$0xff] }
   0x6   :  { %96 = vmatpush.msra.mxu0 %v32_v2  ;;  %v26_v15 = vld [vmem:[%s9284_s0 + $0x48] sm:$0xff]  ;;  %v27_v16 = vld [vmem:[%s9284_s0 + $0x50] sm:$0xff]  ;;  %v28_v17 = vld [vmem:[%s9284_s0 + $0x58] sm:$0xff] }
   0x7   :  { %v36_v19 = vld [vmem:[%s9283_s2 + $0x38] sm:$0xff]  ;;  %v37_v23 = vld [vmem:[%s9283_s2 + $0x40] sm:$0xff]  ;;  %v38_v27 = vld [vmem:[%s9283_s2 + $0x48] sm:$0xff]  ;;  %v5920_v52 = vpop.eup %5919 }
   0x8   :  { %97 = vmatpush.msra.mxu0 %v31_v3  ;;  %v39_v31 = vld [vmem:[%s9283_s2 + $0x50] sm:$0xff]  ;;  %v40_v35 = vld [vmem:[%s9283_s2 + $0x58] sm:$0xff]  ;;  %v46_v44 = vld [vmem:[%s9283_s2 + $0x88] sm:$0xff]  ;;  %v181_v53 = vmul.f32 32.0, %v5920_v52  ;;  %vm185_vm2 = vweird.f32 %v5920_v52 }
   0x9   :  { %v35_v48 = vld [vmem:[%s9283_s2 + $0x30] sm:$0xff] }
   0xa   :  { %98 = vmatpush.msra.mxu0 %v30_v4  ;;  %v182_v54 = vsub.f32 1.0, %v181_v53  ;;  %v43_v63 = vld [vmem:[%s9283_s2 + $0x70] sm:$0xff]  ;;  %v444_v53 = vld [vmem:[%s9283_s2 + $0xc8] sm:$0xff] }
   0xb   :  { %5857 = vmatpush.msra.mxu2 %v444_v53  ;;  %495 = vmatpush.msra.mxu1 %v444_v53 }
   0xc   :  { %99 = vmatpush.msra.mxu0 %v29_v5  ;;  %v183_v55 = vmul.f32 %v5920_v52, %v182_v54  ;;  %v443_v54 = vld [vmem:[%s9283_s2 + $0xc0] sm:$0xff] }
   0xd   :  { %5473 = vmatmul.msk.f32.vlgmr.msra.gmra.mxu0 %vm47_vm0, %v17_v6  ;;  %5858 = vmatpush.msra.mxu2 %v443_v54 }
   0xe   :  { %v184_v56 = vadd.f32 %v5920_v52, %v183_v55  ;;  %496 = vmatpush.msra.mxu1 %v443_v54  ;;  %v442_v55 = vld [vmem:[%s9283_s2 + $0xb8] sm:$0xff] }
   0xf   :  { %5859 = vmatpush.msra.mxu2 %v442_v55 }
  0x10   :  { %v6428_v57 = vsel %vm185_vm2, %v5920_v52, %v184_v56  ;;  %497 = vmatpush.msra.mxu1 %v442_v55 }
  0x15   :  { %5474 = vmatmul.msk.f32.gmra.mxu0 %vm47_vm0, %v18_v7 }
  0x1d   :  { %5475 = vmatmul.msk.f32.gmra.mxu0 %vm47_vm0, %v19_v8 }
  0x25   :  { %5476 = vmatmul.msk.f32.gmra.mxu0 %vm47_vm0, %v20_v9 }
  0x2d   :  { %5477 = vmatmul.msk.f32.gmra.mxu0 %vm47_vm0, %v21_v10 }
  0x35   :  { %5478 = vmatmul.msk.f32.gmra.mxu0 %vm47_vm0, %v22_v11 }
  0x3d   :  { %5479 = vmatmul.msk.f32.gmra.mxu0 %vm47_vm0, %v23_v12 }
  0x45   :  { %5480 = vmatmul.msk.f32.gmra.mxu0 %vm47_vm0, %v24_v13 }
  0x4d   :  { %5481 = vmatmul.msk.f32.gmra.mxu0 %vm47_vm0, %v25_v14  ;;  %v41_v14 = vld [vmem:[%s9283_s2 + $0x60] sm:$0xff] }
  0x55   :  { %5482 = vmatmul.msk.f32.gmra.mxu0 %vm47_vm0, %v26_v15 }
  0x5d   :  { %5483 = vmatmul.msk.f32.gmra.mxu0 %vm47_vm0, %v27_v16 }
  0x65   :  { %5484 = vmatmul.msk.f32.gmra.mxu0 %vm47_vm0, %v28_v17 }
  0x8a   :  { %v101_v18 = vpop.f32.mrf.mxu0 }
  0x8b   :  { %v6424_v49 = vadd.f32 %v101_v18, %v35_v48 }
  0x8d   :  { %v144_v50 = vsel %vm143_vm1, %v6424_v49, 0.0 }
  0x92   :  { %v104_v20 = vpop.f32.mrf.mxu0 }
  0x93   :  { %v6378_v21 = vadd.f32 %v104_v20, %v36_v19 }
  0x95   :  { %v147_v22 = vsel %vm143_vm1, %v6378_v21, 0.0 }
  0x96   :  { %148 = vadd.xlane.f32.xlu1 %v147_v22 }
  0x9a   :  { %v107_v24 = vpop.f32.mrf.mxu0 }
  0x9b   :  { %v6385_v25 = vadd.f32 %v107_v24, %v37_v23 }
  0x9d   :  { %v150_v26 = vsel %vm143_vm1, %v6385_v25, 0.0 }
  0x9e   :  { %151 = vadd.xlane.f32.xlu1 %v150_v26  ;;  %v42_v26 = vld [vmem:[%s9283_s2 + $0x68] sm:$0xff] }
  0xa2   :  { %v110_v28 = vpop.f32.mrf.mxu0 }
  0xa3   :  { %v6392_v29 = vadd.f32 %v110_v28, %v38_v27 }
  0xa5   :  { %v153_v30 = vsel %vm143_vm1, %v6392_v29, 0.0 }
  0xa6   :  { %154 = vadd.xlane.f32.xlu2 %v153_v30 }
  0xaa   :  { %v113_v32 = vpop.f32.mrf.mxu0 }
  0xab   :  { %v6399_v33 = vadd.f32 %v113_v32, %v39_v31 }
  0xad   :  { %v156_v34 = vsel %vm143_vm1, %v6399_v33, 0.0 }
  0xae   :  { %157 = vadd.xlane.f32.xlu2 %v156_v34 }
  0xb2   :  { %v116_v36 = vpop.f32.mrf.mxu0 }
  0xb3   :  { %v6406_v37 = vadd.f32 %v116_v36, %v40_v35 }
  0xb5   :  { %v159_v38 = vsel %vm143_vm1, %v6406_v37, 0.0 }
  0xb6   :  { %160 = vadd.xlane.f32.xlu1 %v159_v38 }
  0xba   :  { %v119_v39 = vpop.f32.mrf.mxu0 }
  0xbb   :  { %v6462_v17 = vadd.f32 %v119_v39, %v41_v14 }
  0xbd   :  { %v162_v23 = vsel %vm143_vm1, %v6462_v17, 0.0 }
  0xc2   :  { %v122_v40 = vpop.f32.mrf.mxu0 }
  0xc3   :  { %v6479_v28 = vadd.f32 %v122_v40, %v42_v26 }
  0xc5   :  { %v165_v38 = vsel %vm143_vm1, %v6479_v28, 0.0 }
  0xca   :  { %v125_v41 = vpop.f32.mrf.mxu0 }
  0xcb   :  { %v6440_v0 = vadd.f32 %v125_v41, %v43_v63 }
  0xcd   :  { %v168_v1 = vsel %vm143_vm1, %v6440_v0, 0.0 }
  0xd2   :  { %v6410_v42 = vpop.f32.mrf.mxu0 }
  0xda   :  { %v6412_v43 = vpop.f32.mrf.mxu0 }
  0xe2   :  { %v134_v45 = vpop.f32.mrf.mxu0 }
  0xe3   :  { %v6417_v46 = vadd.f32 %v134_v45, %v46_v44 }
  0xe5   :  { %v177_v47 = vsel %vm143_vm1, %v6417_v46, 0.0 }
  0xe6   :  { %178 = vadd.xlane.f32.xlu0 %v177_v47 }
  0xee   :  { %145 = vadd.xlane.f32.xlu0 %v144_v50 }
 0x109   :  { %v149_v58 = vpop.xlane.xlu1 %148 }
 0x10a   :  { %v188_v59 = vmul.f32 %v6428_v57, %v149_v58  ;;  %v441_v58 = vld [vmem:[%s9283_s2 + $0xb0] sm:$0xff] }
 0x10b   :  { %5860 = vmatpush.msra.mxu2 %v441_v58  ;;  %498 = vmatpush.msra.mxu1 %v441_v58 }
 0x10c   :  { %v6432_v60 = vsub.f32 %v6378_v21, %v188_v59  ;;  %v551_v59 = vld [vmem:[%s9283_s2 + $0xe8] sm:$0xff] }
 0x10d   :  { %566 = vmatpush.msrb.mxu2 %v551_v59  ;;  %v6583_v59 = vld [vmem:[%s9283_s2 + $0xa0] ss:$0 sm:$0xff] }
 0x10e   :  { %v212_v61 = vmul.f32 %v6432_v60, %v6432_v60 }
 0x110   :  { %v226_v62 = vsel %vm143_vm1, %v212_v61, 0.0  ;;  %v610_v61 = vld [vmem:[%s9283_s2 + $0x108] sm:$0xff] }
 0x111   :  { %227 = vadd.xlane.f32.xlu1 %v226_v62  ;;  %v152_v2 = vpop.xlane.xlu1 %151  ;;  %625 = vmatpush.msra.mxu3 %v610_v61 }
 0x112   :  { %v189_v18 = vmul.f32 %v6428_v57, %v152_v2  ;;  %v609_v2 = vld [vmem:[%s9283_s2 + $0x100] sm:$0xff] }
 0x113   :  { %626 = vmatpush.msra.mxu3 %v609_v2 }
 0x114   :  { %v6471_v22 = vsub.f32 %v6385_v25, %v189_v18 }
 0x116   :  { %v213_v32 = vmul.f32 %v6471_v22, %v6471_v22 }
 0x118   :  { %v229_v36 = vsel %vm143_vm1, %v213_v32, 0.0 }
 0x119   :  { %169 = vadd.xlane.f32.xlu1 %v168_v1  ;;  %v155_v12 = vpop.xlane.xlu2 %154  ;;  %v550_v1 = vld [vmem:[%s9283_s2 + $0xe0] sm:$0xff] }
 0x11a   :  { %v190_v30 = vmul.f32 %v6428_v57, %v155_v12  ;;  %567 = vmatpush.msrb.mxu2 %v550_v1 }
 0x11c   :  { %v6486_v34 = vsub.f32 %v6392_v29, %v190_v30 }
 0x11e   :  { %v214_v40 = vmul.f32 %v6486_v34, %v6486_v34 }
 0x120   :  { %v232_v44 = vsel %vm143_vm1, %v214_v40, 0.0 }
 0x121   :  { %v158_v27 = vpop.xlane.xlu2 %157 }
 0x122   :  { %v191_v31 = vmul.f32 %v6428_v57, %v158_v27 }
 0x124   :  { %v6489_v35 = vsub.f32 %v6399_v33, %v191_v31  ;;  %v44_v31 = vld [vmem:[%s9283_s2 + $0x78] sm:$0xff] }
 0x126   :  { %v215_v39 = vmul.f32 %v6489_v35, %v6489_v35 }
 0x128   :  { %v235_v41 = vsel %vm143_vm1, %v215_v39, 0.0 }
 0x129   :  { %v161_v3 = vpop.xlane.xlu1 %160 }
 0x12a   :  { %v192_v4 = vmul.f32 %v6428_v57, %v161_v3 }
 0x12c   :  { %v6446_v5 = vsub.f32 %v6406_v37, %v192_v4  ;;  %v549_v4 = vld [vmem:[%s9283_s2 + $0xd8] sm:$0xff] }
 0x12d   :  { %568 = vmatpush.msrb.mxu2 %v549_v4 }
 0x12e   :  { %v216_v6 = vmul.f32 %v6446_v5, %v6446_v5 }
 0x130   :  { %v238_v7 = vsel %vm143_vm1, %v216_v6, 0.0  ;;  %v608_v6 = vld [vmem:[%s9283_s2 + $0xf8] sm:$0xff] }
 0x131   :  { %239 = vadd.xlane.f32.xlu1 %v238_v7  ;;  %627 = vmatpush.msra.mxu3 %v608_v6 }
 0x159   :  { %v179_v8 = vpop.xlane.xlu0 %178 }
 0x15a   :  { %v198_v9 = vmul.f32 %v6428_v57, %v179_v8  ;;  %v548_v8 = vld [vmem:[%s9283_s2 + $0xd0] sm:$0xff] }
 0x15b   :  { %569 = vmatpush.msrb.mxu2 %v548_v8  ;;  %v6592_v8 = vld [vmem:[%s9283_s2 + $0xa8] ss:$0 sm:$0xff] }
 0x15c   :  { %v6453_v10 = vsub.f32 %v6417_v46, %v198_v9  ;;  %v607_v9 = vld [vmem:[%s9283_s2 + $0xf0] sm:$0xff] }
 0x15d   :  { %628 = vmatpush.msra.mxu3 %v607_v9 }
 0x15e   :  { %v222_v11 = vmul.f32 %v6453_v10, %v6453_v10 }
 0x160   :  { %v256_v13 = vsel %vm143_vm1, %v222_v11, 0.0 }
 0x161   :  { %257 = vadd.xlane.f32.xlu0 %v256_v13  ;;  %v146_v15 = vpop.xlane.xlu0 %145 }
 0x162   :  { %v187_v16 = vmul.f32 %v6428_v57, %v146_v15 }
 0x164   :  { %v6466_v19 = vsub.f32 %v6424_v49, %v187_v16 }
 0x166   :  { %v211_v20 = vmul.f32 %v6466_v19, %v6466_v19 }
 0x168   :  { %v223_v24 = vsel %vm143_vm1, %v211_v20, 0.0 }
 0x169   :  { %163 = vadd.xlane.f32.xlu0 %v162_v23  ;;  %224 = vadd.xlane.f32.xlu2 %v223_v24 }
 0x171   :  { %230 = vadd.xlane.f32.xlu0 %v229_v36  ;;  %166 = vadd.xlane.f32.xlu2 %v165_v38 }
 0x179   :  { %236 = vadd.xlane.f32.xlu0 %v235_v41  ;;  %233 = vadd.xlane.f32.xlu2 %v232_v44 }
 0x184   :  { %v228_v45 = vpop.xlane.xlu1 %227 }
 0x185   :  { %v260_v56 = vmul.f32 %v228_v45, %v6428_v57 }
 0x187   :  { %v6526_v62 = vadd.f32 1e-06, %v260_v56 }
 0x189   :  { %5921 = vrsqrt.f32 %v6526_v62  ;;  %vm299_vm10 = vweird.f32 %v6526_v62 }
 0x18c   :  { %v170_v47 = vpop.xlane.xlu1 %169 }
 0x18d   :  { %v195_v48 = vmul.f32 %v6428_v57, %v170_v47  ;;  %v6567_v47 = vadd.f32 %v6410_v42, %v44_v31  ;;  %v45_v42 = vld [vmem:[%s9283_s2 + $0x80] sm:$0xff] }
 0x18f   :  { %v6502_v50 = vsub.f32 %v6440_v0, %v195_v48  ;;  %v6548_v13 = vpop.eup %5921  ;;  %v171_v2 = vsel %vm143_vm1, %v6567_v47, 0.0 }
 0x190   :  { %v294_v23 = vmul.f32 %v6548_v13, %v6526_v62  ;;  %vm300_vm6 = vweird.f32 %v6548_v13 }
 0x191   :  { %v219_v51 = vmul.f32 %v6502_v50, %v6502_v50  ;;  %vm301_vm11 = vmor %vm299_vm10, %vm300_vm6 }
 0x192   :  { %v295_v32 = vmul.f32 %v6548_v13, %v294_v23 }
 0x193   :  { %v247_v52 = vsel %vm143_vm1, %v219_v51, 0.0 }
 0x194   :  { %248 = vadd.xlane.f32.xlu1 %v247_v52  ;;  %v296_v52 = vmul.f32 0.5, %v295_v32 }
 0x1a4   :  { %v240_v61 = vpop.xlane.xlu1 %239 }
 0x1d4   :  { %v258_v63 = vpop.xlane.xlu0 %257 }
 0x1d5   :  { %v270_v3 = vmul.f32 %v258_v63, %v6428_v57 }
 0x1d7   :  { %v282_v7 = vadd.f32 1e-06, %v270_v3  ;;  %v297_v3 = vsub.f32 1.5, %v296_v52 }
 0x1d9   :  { %5923 = vrsqrt.f32 %v282_v7  ;;  %vm399_vm4 = vweird.f32 %v282_v7 }
 0x1dc   :  { %v225_v11 = vpop.xlane.xlu2 %224  ;;  %v164_v12 = vpop.xlane.xlu0 %163 }
 0x1dd   :  { %v259_v14 = vmul.f32 %v225_v11, %v6428_v57  ;;  %v193_v15 = vmul.f32 %v6428_v57, %v164_v12  ;;  %v6598_v12 = vadd.f32 %v6412_v43, %v45_v42 }
 0x1df   :  { %v5924_v16 = vpop.eup %5923  ;;  %v271_v18 = vadd.f32 1e-06, %v259_v14  ;;  %v6553_v20 = vsub.f32 %v6462_v17, %v193_v15 }
 0x1e0   :  { %v394_v24 = vmul.f32 %v5924_v16, %v282_v7  ;;  %vm400_vm3 = vweird.f32 %v5924_v16 }
 0x1e1   :  { %5925 = vrsqrt.f32 %v271_v18  ;;  %v217_v26 = vmul.f32 %v6553_v20, %v6553_v20  ;;  %vm401_vm5 = vmor %vm399_vm4, %vm400_vm3  ;;  %vm289_vm8 = vweird.f32 %v271_v18 }
 0x1e2   :  { %v395_v27 = vmul.f32 %v5924_v16, %v394_v24 }
 0x1e3   :  { %v241_v30 = vsel %vm143_vm1, %v217_v26, 0.0 }
 0x1e4   :  { %v396_v36 = vmul.f32 0.5, %v395_v27  ;;  %v167_v38 = vpop.xlane.xlu2 %166  ;;  %242 = vadd.xlane.f32.xlu2 %v241_v30  ;;  %v231_v39 = vpop.xlane.xlu0 %230  ;;  %v298_v27 = vmul.f32 %v6548_v13, %v297_v3 }
 0x1e5   :  { %v194_v40 = vmul.f32 %v6428_v57, %v167_v38  ;;  %v261_v41 = vmul.f32 %v231_v39, %v6428_v57  ;;  %v174_v38 = vsel %vm143_vm1, %v6598_v12, 0.0 }
 0x1e6   :  { %v397_v44 = vsub.f32 1.5, %v396_v36  ;;  %v302_v39 = vsel %vm301_vm11, %v6548_v13, %v298_v27 }
 0x1e7   :  { %v5926_v45 = vpop.eup %5925  ;;  %v6570_v48 = vsub.f32 %v6479_v28, %v194_v40  ;;  %v6572_v51 = vadd.f32 1e-06, %v261_v41 }
 0x1e8   :  { %v398_v53 = vmul.f32 %v5924_v16, %v397_v44  ;;  %v284_v54 = vmul.f32 %v5926_v45, %v271_v18  ;;  %vm290_vm7 = vweird.f32 %v5926_v45 }
 0x1e9   :  { %5927 = vrsqrt.f32 %v6572_v51  ;;  %v218_v55 = vmul.f32 %v6570_v48, %v6570_v48  ;;  %vm291_vm9 = vmor %vm289_vm8, %vm290_vm7  ;;  %vm309_vm13 = vweird.f32 %v6572_v51 }
 0x1ea   :  { %v402_v56 = vsel %vm401_vm5, %v5924_v16, %v398_v53  ;;  %v285_v58 = vmul.f32 %v5926_v45, %v284_v54  ;;  %v264_v16 = vmul.f32 %v240_v61, %v6428_v57 }
 0x1eb   :  { %v414_v63 = vmul.f32 %v402_v56, %v6453_v10  ;;  %v244_v1 = vsel %vm143_vm1, %v218_v55, 0.0 }
 0x1ec   :  { %v286_v4 = vmul.f32 0.5, %v285_v58  ;;  %245 = vadd.xlane.f32.xlu0 %v244_v1  ;;  %v234_v6 = vpop.xlane.xlu2 %233  ;;  %172 = vadd.xlane.f32.xlu2 %v171_v2  ;;  %v237_v7 = vpop.xlane.xlu0 %236  ;;  %v6615_v36 = vadd.f32 1e-06, %v264_v16 }
 0x1ed   :  { %v427_v9 = vmul.f32 %v6583_v59, %v414_v63  ;;  %v262_v10 = vmul.f32 %v234_v6, %v6428_v57  ;;  %v263_v11 = vmul.f32 %v237_v7, %v6428_v57 }
 0x1ee   :  { %v287_v14 = vsub.f32 1.5, %v286_v4  ;;  %vm339_vm8 = vweird.f32 %v6615_v36 }
 0x1ef   :  { %v5928_v15 = vpop.eup %5927  ;;  %v6603_v23 = vadd.f32 %v6592_v8, %v427_v9  ;;  %v274_v24 = vadd.f32 1e-06, %v262_v10  ;;  %v6605_v26 = vadd.f32 1e-06, %v263_v11 }
 0x1f0   :  { %v288_v30 = vmul.f32 %v5926_v45, %v287_v14  ;;  %v304_v43 = vmul.f32 %v5928_v15, %v6572_v51  ;;  %vm310_vm12 = vweird.f32 %v5928_v15 }
 0x1f1   :  { %5929 = vrsqrt.f32 %v274_v24  ;;  %5496 = vmatmul.msk.f32.vlgmr.msra.gmra.mxu2 %vm143_vm1, %v6603_v23  ;;  %vm311_vm14 = vmor %vm309_vm13, %vm310_vm12  ;;  %vm319_vm2 = vweird.f32 %v274_v24  ;;  %vm329_vm5 = vweird.f32 %v6605_v26 }
 0x1f2   :  { %v292_v31 = vsel %vm291_vm9, %v5926_v45, %v288_v30  ;;  %v305_v32 = vmul.f32 %v5928_v15, %v304_v43  ;;  %5931 = vrsqrt.f32 %v6605_v26  ;;  %v404_v45 = vmul.f32 %v302_v39, %v6432_v60 }
 0x1f3   :  { %v403_v18 = vmul.f32 %v292_v31, %v6466_v19  ;;  %5933 = vrsqrt.f32 %v6615_v36 }
 0x1f4   :  { %v306_v40 = vmul.f32 0.5, %v305_v32  ;;  %175 = vadd.xlane.f32.xlu0 %v174_v38  ;;  %v417_v13 = vmul.f32 %v6583_v59, %v404_v45 }
 0x1f5   :  { %v416_v62 = vmul.f32 %v6583_v59, %v403_v18 }
 0x1f6   :  { %v307_v41 = vsub.f32 1.5, %v306_v40  ;;  %v6637_v1 = vadd.f32 %v6592_v8, %v417_v13 }
 0x1f7   :  { %v5930_v44 = vpop.eup %5929  ;;  %v6625_v52 = vadd.f32 %v6592_v8, %v416_v62 }
 0x1f8   :  { %v5932_v53 = vpop.eup %5931  ;;  %v308_v19 = vmul.f32 %v5928_v15, %v307_v41  ;;  %v314_v54 = vmul.f32 %v5930_v44, %v274_v24  ;;  %vm320_vm15 = vweird.f32 %v5930_v44 }
 0x1f9   :  { %v324_v55 = vmul.f32 %v5932_v53, %v6605_v26  ;;  %5485 = vmatmul.msk.f32.vlgmr.msra.gmra.mxu1 %vm143_vm1, %v6625_v52  ;;  %5497 = vmatmul.msk.f32.vlgmr.msrb.gmra.mxu2 %vm143_vm1, %v6625_v52  ;;  %v5934_v61 = vpop.eup %5933  ;;  %vm321_vm3 = vmor %vm319_vm2, %vm320_vm15  ;;  %vm330_vm4 = vweird.f32 %v5932_v53 }
 0x1fa   :  { %v315_v60 = vmul.f32 %v5930_v44, %v314_v54  ;;  %5509 = vmatmul.msk.f32.vlgmr.msra.gmra.mxu3 %vm143_vm1, %v6625_v52  ;;  %v312_v56 = vsel %vm311_vm14, %v5928_v15, %v308_v19  ;;  %v334_v3 = vmul.f32 %v5934_v61, %v6615_v36  ;;  %vm331_vm6 = vmor %vm329_vm5, %vm330_vm4  ;;  %vm340_vm7 = vweird.f32 %v5934_v61 }
 0x1fb   :  { %v325_v42 = vmul.f32 %v5932_v53, %v324_v55  ;;  %v405_v2 = vmul.f32 %v312_v56, %v6471_v22  ;;  %vm341_vm9 = vmor %vm339_vm8, %vm340_vm7  ;;  %vm666_vm5 = vcmask 130048  }
 0x1fc   :  { %v316_v58 = vmul.f32 0.5, %v315_v60  ;;  %v335_v7 = vmul.f32 %v5934_v61, %v334_v3 }
 0x1fd   :  { %v326_v4 = vmul.f32 0.5, %v325_v42  ;;  %v418_v6 = vmul.f32 %v6583_v59, %v405_v2 }
 0x1fe   :  { %v317_v63 = vsub.f32 1.5, %v316_v58  ;;  %v336_v14 = vmul.f32 0.5, %v335_v7 }
 0x1ff   :  { %v327_v9 = vsub.f32 1.5, %v326_v4  ;;  %v6649_v10 = vadd.f32 %v6592_v8, %v418_v6 }
 0x200   :  { %v318_v51 = vmul.f32 %v5930_v44, %v317_v63  ;;  %v337_v24 = vsub.f32 1.5, %v336_v14 }
 0x201   :  { %5486 = vmatmul.msk.f32.gmra.mxu1 %vm143_vm1, %v6637_v1  ;;  %5498 = vmatmul.msk.f32.gmra.mxu2 %vm143_vm1, %v6637_v1  ;;  %v328_v15 = vmul.f32 %v5932_v53, %v327_v9 }
 0x202   :  { %5510 = vmatmul.msk.f32.gmra.mxu3 %vm143_vm1, %v6637_v1  ;;  %v322_v22 = vsel %vm321_vm3, %v5930_v44, %v318_v51  ;;  %v338_v43 = vmul.f32 %v5934_v61, %v337_v24 }
 0x203   :  { %v406_v11 = vmul.f32 %v322_v22, %v6486_v34  ;;  %v332_v27 = vsel %vm331_vm6, %v5932_v53, %v328_v15 }
 0x204   :  { %v407_v30 = vmul.f32 %v332_v27, %v6489_v35  ;;  %v342_v31 = vsel %vm341_vm9, %v5934_v61, %v338_v43 }
 0x205   :  { %v419_v16 = vmul.f32 %v6583_v59, %v406_v11  ;;  %v408_v32 = vmul.f32 %v342_v31, %v6446_v5 }
 0x206   :  { %v420_v26 = vmul.f32 %v6583_v59, %v407_v30 }
 0x207   :  { %v6661_v34 = vadd.f32 %v6592_v8, %v419_v16  ;;  %v421_v36 = vmul.f32 %v6583_v59, %v408_v32  ;;  %v249_v5 = vpop.xlane.xlu1 %248 }
 0x208   :  { %v6674_v35 = vadd.f32 %v6592_v8, %v420_v26  ;;  %v267_v38 = vmul.f32 %v249_v5, %v6428_v57 }
 0x209   :  { %5487 = vmatmul.msk.f32.gmra.mxu1 %vm143_vm1, %v6649_v10  ;;  %5499 = vmatmul.msk.f32.gmra.mxu2 %vm143_vm1, %v6649_v10  ;;  %v6684_v18 = vadd.f32 %v6592_v8, %v421_v36 }
 0x20a   :  { %5511 = vmatmul.msk.f32.gmra.mxu3 %vm143_vm1, %v6649_v10  ;;  %v279_v39 = vadd.f32 1e-06, %v267_v38 }
 0x20c   :  { %5935 = vrsqrt.f32 %v279_v39  ;;  %vm369_vm3 = vweird.f32 %v279_v39 }
 0x211   :  { %5488 = vmatmul.msk.f32.gmra.mxu1 %vm143_vm1, %v6661_v34  ;;  %5500 = vmatmul.msk.f32.gmra.mxu2 %vm143_vm1, %v6661_v34 }
 0x212   :  { %5512 = vmatmul.msk.f32.gmra.mxu3 %vm143_vm1, %v6661_v34  ;;  %v5936_v53 = vpop.eup %5935 }
 0x213   :  { %v364_v56 = vmul.f32 %v5936_v53, %v279_v39  ;;  %vm370_vm14 = vweird.f32 %v5936_v53 }
 0x214   :  { %vm371_vm4 = vmor %vm369_vm3, %vm370_vm14 }
 0x215   :  { %v365_v2 = vmul.f32 %v5936_v53, %v364_v56  ;;  %v6752_v56 = vld [vmem:[%s9283_s2 + $0x120] ss:$0 sm:$0xff] }
 0x217   :  { %v366_v9 = vmul.f32 0.5, %v365_v2 }
 0x219   :  { %5489 = vmatmul.msk.f32.gmra.mxu1 %vm143_vm1, %v6674_v35  ;;  %5501 = vmatmul.msk.f32.gmra.mxu2 %vm143_vm1, %v6674_v35  ;;  %v367_v43 = vsub.f32 1.5, %v366_v9 }
 0x21a   :  { %5513 = vmatmul.msk.f32.gmra.mxu3 %vm143_vm1, %v6674_v35 }
 0x21b   :  { %v368_v5 = vmul.f32 %v5936_v53, %v367_v43 }
 0x221   :  { %5490 = vmatmul.msk.f32.gmra.mxu1 %vm143_vm1, %v6684_v18  ;;  %5502 = vmatmul.msk.f32.gmra.mxu2 %vm143_vm1, %v6684_v18 }
 0x222   :  { %5514 = vmatmul.msk.f32.gmra.mxu3 %vm143_vm1, %v6684_v18 }
 0x257   :  { %v243_v40 = vpop.xlane.xlu2 %242 }
 0x258   :  { %v265_v62 = vmul.f32 %v243_v40, %v6428_v57 }
 0x25a   :  { %v277_v41 = vadd.f32 1e-06, %v265_v62 }
 0x25c   :  { %5937 = vrsqrt.f32 %v277_v41  ;;  %vm349_vm11 = vweird.f32 %v277_v41 }
 0x25f   :  { %v173_v44 = vpop.xlane.xlu2 %172  ;;  %v246_v45 = vpop.xlane.xlu0 %245 }
 0x260   :  { %v196_v19 = vmul.f32 %v6428_v57, %v173_v44  ;;  %v266_v54 = vmul.f32 %v246_v45, %v6428_v57 }
 0x262   :  { %v5938_v55 = vpop.eup %5937  ;;  %v6697_v60 = vsub.f32 %v6567_v47, %v196_v19  ;;  %v278_v13 = vadd.f32 1e-06, %v266_v54 }
 0x263   :  { %v344_v58 = vmul.f32 %v5938_v55, %v277_v41  ;;  %vm350_vm10 = vweird.f32 %v5938_v55  ;;  %v372_v41 = vsel %vm371_vm4, %v5936_v53, %v368_v5 }
 0x264   :  { %5939 = vrsqrt.f32 %v278_v13  ;;  %v220_v42 = vmul.f32 %v6697_v60, %v6697_v60  ;;  %vm351_vm12 = vmor %vm349_vm11, %vm350_vm10  ;;  %vm359_vm15 = vweird.f32 %v278_v13  ;;  %v411_v45 = vmul.f32 %v372_v41, %v6502_v50 }
 0x265   :  { %v345_v61 = vmul.f32 %v5938_v55, %v344_v58 }
 0x266   :  { %v250_v63 = vsel %vm143_vm1, %v220_v42, 0.0 }
 0x267   :  { %v346_v3 = vmul.f32 0.5, %v345_v61  ;;  %251 = vadd.xlane.f32.xlu1 %v250_v63  ;;  %v176_v51 = vpop.xlane.xlu0 %175 }
 0x268   :  { %v197_v4 = vmul.f32 %v6428_v57, %v176_v51 }
 0x269   :  { %v347_v6 = vsub.f32 1.5, %v346_v3 }
 0x26a   :  { %v5940_v7 = vpop.eup %5939  ;;  %v6704_v22 = vsub.f32 %v6598_v12, %v197_v4 }
 0x26b   :  { %v348_v11 = vmul.f32 %v5938_v55, %v347_v6  ;;  %v354_v14 = vmul.f32 %v5940_v7, %v278_v13  ;;  %vm360_vm13 = vweird.f32 %v5940_v7  ;;  %v6747_v13 = vld [vmem:[%s9283_s2 + $0x118] ss:$0 sm:$0xff] }
 0x26c   :  { %v221_v15 = vmul.f32 %v6704_v22, %v6704_v22  ;;  %vm361_vm2 = vmor %vm359_vm15, %vm360_vm13  ;;  %vm711_vm13 = vcmask 195584  }
 0x26d   :  { %v352_v16 = vsel %vm351_vm12, %v5938_v55, %v348_v11  ;;  %v355_v24 = vmul.f32 %v5940_v7, %v354_v14 }
 0x26e   :  { %v409_v27 = vmul.f32 %v352_v16, %v6553_v20  ;;  %v253_v30 = vsel %vm143_vm1, %v221_v15, 0.0 }
 0x26f   :  { %v356_v26 = vmul.f32 0.5, %v355_v24  ;;  %254 = vadd.xlane.f32.xlu2 %v253_v30 }
 0x270   :  { %v422_v31 = vmul.f32 %v6583_v59, %v409_v27 }
 0x271   :  { %v357_v32 = vsub.f32 1.5, %v356_v26 }
 0x272   :  { %v6712_v36 = vadd.f32 %v6592_v8, %v422_v31 }
 0x273   :  { %v358_v38 = vmul.f32 %v5940_v7, %v357_v32 }
 0x274   :  { %5491 = vmatmul.msk.f32.gmra.mxu1 %vm143_vm1, %v6712_v36  ;;  %v6716_v20 = vpop.f32.mrf.mxu2  ;;  %5503 = vmatmul.msk.f32.gmra.mxu2 %vm143_vm1, %v6712_v36 }
 0x275   :  { %v362_v40 = vsel %vm361_vm2, %v5940_v7, %v358_v38  ;;  %5515 = vmatmul.msk.f32.gmra.mxu3 %vm143_vm1, %v6712_v36 }
 0x276   :  { %v410_v62 = vmul.f32 %v362_v40, %v6570_v48  ;;  %v424_v48 = vmul.f32 %v6583_v59, %v411_v45  ;;  %v500_v31 = vpop.f32.mrf.mxu1 }
 0x278   :  { %v423_v44 = vmul.f32 %v6583_v59, %v410_v62  ;;  %v6736_v53 = vadd.f32 %v6592_v8, %v424_v48 }
 0x27a   :  { %v6726_v19 = vadd.f32 %v6592_v8, %v423_v44 }
 0x27c   :  { %5492 = vmatmul.msk.f32.gmra.mxu1 %vm143_vm1, %v6726_v19  ;;  %v571_v54 = vpop.f32.mrf.mxu2  ;;  %5504 = vmatmul.msk.f32.gmra.mxu2 %vm143_vm1, %v6726_v19 }
 0x27d   :  { %v630_v39 = vpop.f32.mrf.mxu3  ;;  %5516 = vmatmul.msk.f32.gmra.mxu3 %vm143_vm1, %v6726_v19  ;;  %v572_v6 = vadd.f32 %v6747_v13, %v571_v54 }
 0x27e   :  { %v631_v51 = vadd.f32 %v6752_v56, %v630_v39  ;;  %v503_v40 = vpop.f32.mrf.mxu1 }
 0x284   :  { %5493 = vmatmul.msk.f32.gmra.mxu1 %vm143_vm1, %v6736_v53  ;;  %v574_v50 = vpop.f32.mrf.mxu2  ;;  %5505 = vmatmul.msk.f32.gmra.mxu2 %vm143_vm1, %v6736_v53 }
 0x285   :  { %v633_v55 = vpop.f32.mrf.mxu3  ;;  %5517 = vmatmul.msk.f32.gmra.mxu3 %vm143_vm1, %v6736_v53  ;;  %v575_v3 = vadd.f32 %v6747_v13, %v574_v50 }
 0x286   :  { %v634_v2 = vadd.f32 %v6752_v56, %v633_v55  ;;  %v506_v50 = vpop.f32.mrf.mxu1 }
 0x28c   :  { %v577_v58 = vpop.f32.mrf.mxu2 }
 0x28d   :  { %v578_v42 = vadd.f32 %v6747_v13, %v577_v58  ;;  %v636_v61 = vpop.f32.mrf.mxu3 }
 0x28e   :  { %v637_v63 = vadd.f32 %v6752_v56, %v636_v61 }
 0x28f   :  { %5521 = vmatpush.xpose.msk.msrb.mxu1 %vm666_vm5, %v578_v42 }
 0x290   :  { %767 = vmatpush.msra.mxu2 %v637_v63 }
 0x292   :  { %768 = vmatpush.msra.mxu2 %v634_v2 }
 0x293   :  { %5522 = vmatpush.xpose.msk.msrb.mxu1 %vm666_vm5, %v575_v3 }
 0x294   :  { %769 = vmatpush.msra.mxu2 %v631_v51  ;;  %v580_v4 = vpop.f32.mrf.mxu2 }
 0x295   :  { %v639_v7 = vpop.f32.mrf.mxu3  ;;  %v581_v26 = vadd.f32 %v6747_v13, %v580_v4 }
 0x296   :  { %v640_v43 = vadd.f32 %v6752_v56, %v639_v7 }
 0x297   :  { %5523 = vmatpush.xpose.msk.msrb.mxu1 %vm666_vm5, %v572_v6 }
 0x29c   :  { %v583_v9 = vpop.f32.mrf.mxu2 }
 0x29d   :  { %v642_v11 = vpop.f32.mrf.mxu3  ;;  %v584_v30 = vadd.f32 %v6747_v13, %v583_v9  ;;  %v509_v9 = vpop.f32.mrf.mxu1 }
 0x29e   :  { %v643_v27 = vadd.f32 %v6752_v56, %v642_v11 }
 0x2a4   :  { %v586_v14 = vpop.f32.mrf.mxu2 }
 0x2a5   :  { %v587_v15 = vadd.f32 %v6747_v13, %v586_v14  ;;  %v645_v16 = vpop.f32.mrf.mxu3 }
 0x2a6   :  { %v646_v24 = vadd.f32 %v6752_v56, %v645_v16 }
 0x2a7   :  { %5530 = vmatpush.xpose.msk.msrb.mxu3 %vm666_vm5, %v587_v15 }
 0x2a8   :  { %879 = vmatpush.msrb.mxu0 %v646_v24 }
 0x2aa   :  { %880 = vmatpush.msrb.mxu0 %v643_v27 }
 0x2ab   :  { %5531 = vmatpush.xpose.msk.msrb.mxu3 %vm666_vm5, %v584_v30  ;;  %v6793_v30 = vld [vmem:[%s9283_s2 + $0x110] ss:$0 sm:$0xff] }
 0x2ac   :  { %881 = vmatpush.msrb.mxu0 %v640_v43 }
 0x2af   :  { %5532 = vmatpush.xpose.msk.msrb.mxu3 %vm666_vm5, %v581_v26  ;;  %v512_v26 = vpop.f32.mrf.mxu1 }
 0x2da   :  { %v252_v32 = vpop.xlane.xlu1 %251 }
 0x2db   :  { %v268_v5 = vmul.f32 %v252_v32, %v6428_v57 }
 0x2dd   :  { %v280_v38 = vadd.f32 1e-06, %v268_v5 }
 0x2df   :  { %5941 = vrsqrt.f32 %v280_v38  ;;  %vm379_vm7 = vweird.f32 %v280_v38 }
 0x2e2   :  { %v255_v62 = vpop.xlane.xlu2 %254 }
 0x2e3   :  { %v269_v41 = vmul.f32 %v255_v62, %v6428_v57  ;;  %v504_v62 = vadd.f32 %v6793_v30, %v503_v40 }
 0x2e5   :  { %v5942_v44 = vpop.eup %5941  ;;  %v281_v45 = vadd.f32 1e-06, %v269_v41 }
 0x2e6   :  { %v374_v54 = vmul.f32 %v5942_v44, %v280_v38  ;;  %vm380_vm6 = vweird.f32 %v5942_v44 }
 0x2e7   :  { %5943 = vrsqrt.f32 %v281_v45  ;;  %vm381_vm8 = vmor %vm379_vm7, %vm380_vm6  ;;  %vm389_vm10 = vweird.f32 %v281_v45 }
 0x2e8   :  { %v375_v39 = vmul.f32 %v5942_v44, %v374_v54 }
 0x2ea   :  { %v376_v48 = vmul.f32 0.5, %v375_v39  ;;  %v537_v39 = vmul.f32 0.25, %v504_v62 }
 0x2ec   :  { %v377_v55 = vsub.f32 1.5, %v376_v48 }
 0x2ed   :  { %v5944_v58 = vpop.eup %5943 }
 0x2ee   :  { %v378_v42 = vmul.f32 %v5942_v44, %v377_v55  ;;  %v384_v61 = vmul.f32 %v5944_v58, %v281_v45  ;;  %vm390_vm9 = vweird.f32 %v5944_v58 }
 0x2ef   :  { %vm391_vm11 = vmor %vm389_vm10, %vm390_vm9 }
 0x2f0   :  { %v382_v63 = vsel %vm381_vm8, %v5942_v44, %v378_v42  ;;  %v385_v2 = vmul.f32 %v5944_v58, %v384_v61  ;;  %v510_v44 = vadd.f32 %v6793_v30, %v509_v9  ;;  %v507_v42 = vadd.f32 %v6793_v30, %v506_v50  ;;  %v1118_v50 = vld [vmem:[%s9283_s2 + $0x138] sm:$0xff] }
 0x2f1   :  { %v412_v3 = vmul.f32 %v382_v63, %v6697_v60  ;;  %v513_v61 = vadd.f32 %v6793_v30, %v512_v26 }
 0x2f2   :  { %v386_v51 = vmul.f32 0.5, %v385_v2  ;;  %v539_v55 = vmul.f32 0.25, %v510_v44  ;;  %v1120_v2 = vld [vmem:[%s9283_s2 + $0x148] sm:$0xff] }
 0x2f3   :  { %v425_v4 = vmul.f32 %v6583_v59, %v412_v3  ;;  %v538_v3 = vmul.f32 0.25, %v507_v42 }
 0x2f4   :  { %v387_v6 = vsub.f32 1.5, %v386_v51  ;;  %v1119_v51 = vld [vmem:[%s9283_s2 + $0x140] sm:$0xff] }
 0x2f5   :  { %v6777_v7 = vadd.f32 %v6592_v8, %v425_v4  ;;  %v540_v4 = vmul.f32 0.25, %v513_v61 }
 0x2f6   :  { %v388_v11 = vmul.f32 %v5944_v58, %v387_v6 }
 0x2f7   :  { %5494 = vmatmul.msk.f32.gmra.mxu1 %vm143_vm1, %v6777_v7  ;;  %v589_v14 = vpop.f32.mrf.mxu2  ;;  %5506 = vmatmul.msk.f32.gmra.mxu2 %vm143_vm1, %v6777_v7 }
 0x2f8   :  { %v392_v60 = vsel %vm391_vm11, %v5944_v58, %v388_v11  ;;  %v648_v15 = vpop.f32.mrf.mxu3  ;;  %5518 = vmatmul.msk.f32.gmra.mxu3 %vm143_vm1, %v6777_v7  ;;  %v590_v40 = vadd.f32 %v6747_v13, %v589_v14  ;;  %v1121_v58 = vld [vmem:[%s9283_s2 + $0x150] sm:$0xff] }
 0x2f9   :  { %v413_v16 = vmul.f32 %v392_v60, %v6704_v22  ;;  %v649_v48 = vadd.f32 %v6752_v56, %v648_v15 }
 0x2fb   :  { %v426_v24 = vmul.f32 %v6583_v59, %v413_v16  ;;  %v501_v59 = vadd.f32 %v6793_v30, %v500_v31  ;;  %v515_v31 = vpop.f32.mrf.mxu1 }
 0x2fc   :  { %v516_v9 = vadd.f32 %v6793_v30, %v515_v31 }
 0x2fd   :  { %v6788_v27 = vadd.f32 %v6592_v8, %v426_v24  ;;  %v536_v8 = vmul.f32 0.25, %v501_v59  ;;  %v137_v59 = vlaneseq }
 0x2fe   :  { %v541_v60 = vmul.f32 0.25, %v516_v9 }
 0x2ff   :  { %5495 = vmatmul.msk.f32.gmra.mxu1 %vm143_vm1, %v6788_v27  ;;  %v592_v43 = vpop.f32.mrf.mxu2  ;;  %5507 = vmatmul.msk.f32.gmra.mxu2 %vm143_vm1, %v6788_v27 }
 0x300   :  { %v651_v32 = vpop.f32.mrf.mxu3  ;;  %5519 = vmatmul.msk.f32.gmra.mxu3 %vm143_vm1, %v6788_v27  ;;  %v593_v54 = vadd.f32 %v6747_v13, %v592_v43 }
 0x301   :  { %v652_v45 = vadd.f32 %v6752_v56, %v651_v32 }
 0x303   :  { %v518_v63 = vpop.f32.mrf.mxu1 }
 0x304   :  { %v519_v6 = vadd.f32 %v6793_v30, %v518_v63 }
 0x306   :  { %v542_v14 = vmul.f32 0.25, %v519_v6  ;;  %v1251_v6 = vld [vmem:[%s9283_s2 + $0x190] sm:$0xff] }
 0x307   :  { %v595_v22 = vpop.f32.mrf.mxu2  ;;  %5508 = vmatmul.msk.f32.gmra.mxu2 %vm143_vm1, %v6603_v23  ;;  %5524 = vmatmul.msk.f32.vlgmr.msrb.gmra.mxu1 %vm666_vm5, %v536_v8 }
 0x308   :  { %v596_v5 = vadd.f32 %v6747_v13, %v595_v22  ;;  %v654_v38 = vpop.f32.mrf.mxu3  ;;  %5520 = vmatmul.msk.f32.gmra.mxu3 %vm143_vm1, %v6603_v23 }
 0x309   :  { %v655_v41 = vadd.f32 %v6752_v56, %v654_v38 }
 0x30a   :  { %5539 = vmatpush.xpose.msk.msra.mxu1 %vm666_vm5, %v596_v5  ;;  %v6862_v5 = vand.u32 127, %v137_v59  ;;  %v534_v59 = vadd.f32 %v6793_v30, %v6716_v20 }
 0x30b   :  { %991 = vmatpush.msrb.mxu2 %v655_v41  ;;  %v521_v11 = vpop.f32.mrf.mxu1  ;;  %v6269_v41 = vmov -1e+30  }
 0x30c   :  { %v522_v15 = vadd.f32 %v6793_v30, %v521_v11  ;;  %vm139_vm12 = vcmp.lt.s32.totalorder %v6862_v5, 17 }
 0x30d   :  { %992 = vmatpush.msrb.mxu2 %v652_v45  ;;  %v6867_v44 = vsel %vm139_vm12, 0.0, %v6269_v41 }
 0x30e   :  { %5540 = vmatpush.xpose.msk.msra.mxu1 %vm666_vm5, %v593_v54  ;;  %v543_v16 = vmul.f32 0.25, %v522_v15 }
 0x30f   :  { %993 = vmatpush.msrb.mxu2 %v649_v48  ;;  %5525 = vmatmul.msk.f32.gmra.mxu1 %vm666_vm5, %v537_v39 }
 0x310   :  { %5533 = vmatmul.msk.f32.vlgmr.msrb.gmra.mxu3 %vm666_vm5, %v539_v55 }
 0x312   :  { %5541 = vmatpush.xpose.msk.msra.mxu1 %vm666_vm5, %v590_v40 }
 0x313   :  { %v524_v24 = vpop.f32.mrf.mxu1 }
 0x314   :  { %v525_v43 = vadd.f32 %v6793_v30, %v524_v24 }
 0x316   :  { %1136 = vmatpush.msrb.mxu1 %v1121_v58  ;;  %v544_v26 = vmul.f32 0.25, %v525_v43 }
 0x317   :  { %5526 = vmatmul.msk.f32.gmra.mxu1 %vm666_vm5, %v538_v3 }
 0x318   :  { %1137 = vmatpush.msrb.mxu1 %v1120_v2  ;;  %5534 = vmatmul.msk.f32.gmra.mxu3 %vm666_vm5, %v540_v4 }
 0x31a   :  { %1138 = vmatpush.msrb.mxu1 %v1119_v51 }
 0x31c   :  { %1139 = vmatpush.msrb.mxu1 %v1118_v50 }
 0x31f   :  { %5542 = vmatmul.msk.f32.vlgmr.msra.gmra.mxu1 %vm666_vm5, %v542_v14 }
 0x320   :  { %5535 = vmatmul.msk.f32.gmra.mxu3 %vm666_vm5, %v541_v60 }
 0x327   :  { %5543 = vmatmul.msk.f32.gmra.mxu1 %vm666_vm5, %v543_v16  ;;  %v1248_v16 = vld [vmem:[%s9283_s2 + $0x178] sm:$0xff] }
 0x32f   :  { %5544 = vmatmul.msk.f32.gmra.mxu1 %vm666_vm5, %v544_v26 }
 0x337   :  { %5557 = vmatmul.msk.f32.vlgmr.msrb.gmra.mxu1 %vm143_vm1, %v6625_v52 }
 0x33f   :  { %5558 = vmatmul.msk.f32.gmra.mxu1 %vm143_vm1, %v6637_v1 }
 0x347   :  { %5559 = vmatmul.msk.f32.gmra.mxu1 %vm143_vm1, %v6649_v10 }
 0x34f   :  { %5560 = vmatmul.msk.f32.gmra.mxu1 %vm143_vm1, %v6661_v34 }
 0x357   :  { %5561 = vmatmul.msk.f32.gmra.mxu1 %vm143_vm1, %v6674_v35 }
 0x35f   :  { %5562 = vmatmul.msk.f32.gmra.mxu1 %vm143_vm1, %v6684_v18 }
 0x367   :  { %5563 = vmatmul.msk.f32.gmra.mxu1 %vm143_vm1, %v6712_v36 }
 0x36f   :  { %5564 = vmatmul.msk.f32.gmra.mxu1 %vm143_vm1, %v6726_v19 }
 0x374   :  { %v527_v32 = vpop.f32.mrf.mxu1 }
 0x375   :  { %v528_v4 = vadd.f32 %v6793_v30, %v527_v32 }
 0x377   :  { %5565 = vmatmul.msk.f32.gmra.mxu1 %vm143_vm1, %v6736_v53  ;;  %v545_v14 = vmul.f32 0.25, %v528_v4 }
 0x37a   :  { %v598_v8 = vpop.f32.mrf.mxu2 }
 0x37b   :  { %v657_v22 = vpop.f32.mrf.mxu3  ;;  %v599_v50 = vadd.f32 %v6747_v13, %v598_v8 }
 0x37c   :  { %v530_v38 = vpop.f32.mrf.mxu1  ;;  %v658_v51 = vadd.f32 %v6752_v56, %v657_v22 }
 0x37d   :  { %v531_v15 = vadd.f32 %v6793_v30, %v530_v38  ;;  %v547_v38 = vmul.f32 0.25, %v534_v59 }
 0x37f   :  { %5566 = vmatmul.msk.f32.gmra.mxu1 %vm143_vm1, %v6777_v7  ;;  %v546_v26 = vmul.f32 0.25, %v531_v15 }
 0x382   :  { %v601_v62 = vpop.f32.mrf.mxu2 }
 0x383   :  { %v660_v31 = vpop.f32.mrf.mxu3  ;;  %v602_v2 = vadd.f32 %v6747_v13, %v601_v62 }
 0x384   :  { %v702_v45 = vpop.f32.mrf.mxu1  ;;  %v661_v63 = vadd.f32 %v6752_v56, %v660_v31 }
 0x385   :  { %v6870_v54 = vadd.f32 %v702_v45, %v6867_v44 }
 0x387   :  { %5567 = vmatmul.msk.f32.gmra.mxu1 %vm143_vm1, %v6788_v27  ;;  %v712_v39 = vsel %vm711_vm13, %v6870_v54, -inf }
 0x388   :  { %713 = vmax.xlane.f32.xlu0 %v712_v39 }
 0x38a   :  { %v604_v48 = vpop.f32.mrf.mxu2 }
 0x38b   :  { %v605_v55 = vadd.f32 %v6747_v13, %v604_v48  ;;  %v663_v40 = vpop.f32.mrf.mxu3  ;;  %v1249_v13 = vld [vmem:[%s9283_s2 + $0x180] sm:$0xff] }
 0x38c   :  { %v664_v58 = vadd.f32 %v6752_v56, %v663_v40  ;;  %v705_v42 = vpop.f32.mrf.mxu1  ;;  %v1250_v56 = vld [vmem:[%s9283_s2 + $0x188] sm:$0xff] }
 0x38d   :  { %v6879_v61 = vadd.f32 %v705_v42, %v6867_v44  ;;  %5548 = vmatpush.xpose.msk.msra.mxu3 %vm666_vm5, %v605_v55 }
 0x38e   :  { %1103 = vmatpush.msra.mxu0 %v664_v58 }
 0x38f   :  { %5568 = vmatmul.msk.f32.gmra.mxu1 %vm143_vm1, %v6603_v23  ;;  %v715_v3 = vsel %vm711_vm13, %v6879_v61, -inf }
 0x390   :  { %1104 = vmatpush.msra.mxu0 %v661_v63  ;;  %716 = vmax.xlane.f32.xlu1 %v715_v3 }
 0x391   :  { %5549 = vmatpush.xpose.msk.msra.mxu3 %vm666_vm5, %v602_v2 }
 0x392   :  { %1105 = vmatpush.msra.mxu0 %v658_v51 }
 0x393   :  { %v815_v63 = vpop.f32.mrf.mxu3 }
 0x394   :  { %v708_v9 = vpop.f32.mrf.mxu1 }
 0x395   :  { %v709_v11 = vadd.f32 %v708_v9, %v6867_v44  ;;  %5550 = vmatpush.xpose.msk.msra.mxu3 %vm666_vm5, %v599_v50 }
 0x397   :  { %v718_v60 = vsel %vm711_vm13, %v709_v11, -inf }
 0x398   :  { %5551 = vmatmul.msk.f32.vlgmr.msra.gmra.mxu3 %vm666_vm5, %v545_v14  ;;  %719 = vmax.xlane.f32.xlu2 %v718_v60 }
 0x399   :  { %1266 = vmatpush.msrb.mxu3 %v1251_v6 }
 0x39b   :  { %1267 = vmatpush.msrb.mxu3 %v1250_v56  ;;  %v818_v4 = vpop.f32.mrf.mxu3 }
 0x39c   :  { %v927_v24 = vpop.f32.mrf.mxu1 }
 0x39d   :  { %1268 = vmatpush.msrb.mxu3 %v1249_v13  ;;  %v928_v43 = vadd.f32 %v927_v24, %v6867_v44 }
 0x39f   :  { %1269 = vmatpush.msrb.mxu3 %v1248_v16  ;;  %v936_v32 = vsel %vm711_vm13, %v928_v43, -inf }
 0x3a0   :  { %937 = vmax.xlane.f32.xlu0 %v936_v32  ;;  %5552 = vmatmul.msk.f32.gmra.mxu3 %vm666_vm5, %v546_v26 }
 0x3a3   :  { %v821_v60 = vpop.f32.mrf.mxu3 }
 0x3a4   :  { %v930_v8 = vpop.f32.mrf.mxu1 }
 0x3a5   :  { %v931_v22 = vadd.f32 %v930_v8, %v6867_v44 }
 0x3a7   :  { %v939_v62 = vsel %vm711_vm13, %v931_v22, -inf }
 0x3a8   :  { %940 = vmax.xlane.f32.xlu1 %v939_v62  ;;  %5553 = vmatmul.msk.f32.gmra.mxu3 %vm666_vm5, %v547_v38 }
 0x3ac   :  { %v933_v41 = vpop.f32.mrf.mxu1 }
 0x3ad   :  { %v934_v31 = vadd.f32 %v933_v41, %v6867_v44  ;;  %v6971_v41 = vadd.f32 %v818_v4, %v6867_v44 }
 0x3af   :  { %v942_v45 = vsel %vm711_vm13, %v934_v31, -inf }
 0x3b0   :  { %943 = vmax.xlane.f32.xlu2 %v942_v45  ;;  %5581 = vmatmul.msk.f32.vlgmr.msrb.gmra.mxu3 %vm143_vm1, %v6625_v52 }
 0x3b8   :  { %5582 = vmatmul.msk.f32.gmra.mxu3 %vm143_vm1, %v6637_v1 }
 0x3c0   :  { %5583 = vmatmul.msk.f32.gmra.mxu3 %vm143_vm1, %v6649_v10 }
 0x3c8   :  { %5584 = vmatmul.msk.f32.gmra.mxu3 %vm143_vm1, %v6661_v34 }
 0x3d0   :  { %5585 = vmatmul.msk.f32.gmra.mxu3 %vm143_vm1, %v6674_v35 }
 0x3d8   :  { %5586 = vmatmul.msk.f32.gmra.mxu3 %vm143_vm1, %v6684_v18 }
 0x3e0   :  { %5587 = vmatmul.msk.f32.gmra.mxu3 %vm143_vm1, %v6712_v36 }
 0x3e8   :  { %5588 = vmatmul.msk.f32.gmra.mxu3 %vm143_vm1, %v6726_v19 }
 0x3f0   :  { %5589 = vmatmul.msk.f32.gmra.mxu3 %vm143_vm1, %v6736_v53 }
 0x3f8   :  { %5590 = vmatmul.msk.f32.gmra.mxu3 %vm143_vm1, %v6777_v7 }
 0x3fb   :  { %v714_v20 = vpop.xlane.xlu0 %713 }
 0x3fc   :  { %v721_v30 = vsub.f32 %v6870_v54, %v714_v20 }
 0x3fe   :  { %v724_v39 = vmul.f32 1.442695, %v721_v30 }
 0x400   :  { %5945 = vpow2.f32 %v724_v39  ;;  %5591 = vmatmul.msk.f32.gmra.mxu3 %vm143_vm1, %v6788_v27  ;;  %v827_v39 = vsel %vm711_vm13, %v6971_v41, -inf }
 0x403   :  { %v717_v48 = vpop.xlane.xlu1 %716 }
 0x404   :  { %v722_v55 = vsub.f32 %v6879_v61, %v717_v48 }
 0x406   :  { %v6943_v40 = vpop.eup %5945  ;;  %v726_v58 = vmul.f32 1.442695, %v722_v55  ;;  %v6985_v55 = vadd.f32 %v821_v60, %v6867_v44 }
 0x407   :  { %v730_v42 = vsel %vm711_vm13, %v6943_v40, 0.0 }
 0x408   :  { %5947 = vpow2.f32 %v726_v58  ;;  %731 = vadd.xlane.f32.xlu0 %v730_v42  ;;  %5592 = vmatmul.msk.f32.gmra.mxu3 %vm143_vm1, %v6603_v23  ;;  %v830_v42 = vsel %vm711_vm13, %v6985_v55, -inf }
 0x40b   :  { %v720_v54 = vpop.xlane.xlu2 %719 }
 0x40c   :  { %v723_v2 = vsub.f32 %v709_v11, %v720_v54 }
 0x40e   :  { %v6949_v3 = vpop.eup %5947  ;;  %v728_v51 = vmul.f32 1.442695, %v723_v2 }
 0x40f   :  { %v733_v61 = vsel %vm711_vm13, %v6949_v3, 0.0 }
 0x410   :  { %5949 = vpow2.f32 %v728_v51  ;;  %734 = vadd.xlane.f32.xlu1 %v733_v61 }
 0x413   :  { %v938_v50 = vpop.xlane.xlu0 %937 }
 0x414   :  { %v945_v6 = vsub.f32 %v928_v43, %v938_v50  ;;  %v6962_v43 = vadd.f32 %v815_v63, %v6867_v44 }
 0x416   :  { %v6953_v9 = vpop.eup %5949  ;;  %v948_v14 = vmul.f32 1.442695, %v945_v6  ;;  %v824_v62 = vsel %vm711_vm13, %v6962_v43, -inf }
 0x417   :  { %v736_v56 = vsel %vm711_vm13, %v6953_v9, 0.0 }
 0x418   :  { %5951 = vpow2.f32 %v948_v14  ;;  %737 = vadd.xlane.f32.xlu2 %v736_v56 }
 0x41b   :  { %v941_v11 = vpop.xlane.xlu1 %940  ;;  %v1039_v32 = vpop.f32.mrf.mxu3 }
 0x41c   :  { %v946_v13 = vsub.f32 %v931_v22, %v941_v11  ;;  %v6974_v45 = vadd.f32 %v1039_v32, %v6867_v44  ;;  %v1191_v32 = vld [vmem:[%s9283_s2 + $0x168] sm:$0xff] }
 0x41e   :  { %v6957_v15 = vpop.eup %5951  ;;  %v950_v16 = vmul.f32 1.442695, %v946_v13  ;;  %v1048_v48 = vsel %vm711_vm13, %v6974_v45, -inf }
 0x41f   :  { %v954_v24 = vsel %vm711_vm13, %v6957_v15, 0.0 }
 0x420   :  { %5953 = vpow2.f32 %v950_v16  ;;  %955 = vadd.xlane.f32.xlu0 %v954_v24  ;;  %v1192_v24 = vld [vmem:[%s9283_s2 + $0x170] sm:$0xff] }
 0x423   :  { %v944_v26 = vpop.xlane.xlu2 %943 }
 0x424   :  { %v947_v59 = vsub.f32 %v934_v31, %v944_v26  ;;  %v1042_v31 = vpop.f32.mrf.mxu3 }
 0x425   :  { %v6988_v58 = vadd.f32 %v1042_v31, %v6867_v44 }
 0x426   :  { %v6964_v8 = vpop.eup %5953  ;;  %v952_v38 = vmul.f32 1.442695, %v947_v59  ;;  %v1190_v59 = vld [vmem:[%s9283_s2 + $0x160] sm:$0xff] }
 0x427   :  { %v957_v22 = vsel %vm711_vm13, %v6964_v8, 0.0  ;;  %v1051_v63 = vsel %vm711_vm13, %v6988_v58, -inf }
 0x428   :  { %5955 = vpow2.f32 %v952_v38  ;;  %958 = vadd.xlane.f32.xlu1 %v957_v22  ;;  %825 = vmax.xlane.f32.xlu0 %v824_v62 }
 0x42c   :  { %v1045_v54 = vpop.f32.mrf.mxu3 }
 0x42d   :  { %v6995_v2 = vadd.f32 %v1045_v54, %v6867_v44  ;;  %v7032_v54 = vld [vmem:[%s9283_s2 + $0x1a8] ss:$0 sm:$0xff] }
 0x42e   :  { %v6976_v20 = vpop.eup %5955 }
 0x42f   :  { %v960_v30 = vsel %vm711_vm13, %v6976_v20, 0.0  ;;  %v1054_v51 = vsel %vm711_vm13, %v6995_v2, -inf }
 0x430   :  { %961 = vadd.xlane.f32.xlu2 %v960_v30  ;;  %828 = vmax.xlane.f32.xlu1 %v827_v39 }
 0x431   :  { %1049 = vmax.xlane.f32.xlu0 %v1048_v48 }
 0x434   :  { %v6999_v61 = vpop.f32.mrf.mxu3 }
 0x438   :  { %831 = vmax.xlane.f32.xlu2 %v830_v42  ;;  %1052 = vmax.xlane.f32.xlu1 %v1051_v63 }
 0x43c   :  { %v7001_v4 = vpop.f32.mrf.mxu3 }
 0x440   :  { %1055 = vmax.xlane.f32.xlu2 %v1054_v51 }
 0x444   :  { %v7003_v50 = vpop.f32.mrf.mxu3 }
 0x44c   :  { %v7005_v6 = vpop.f32.mrf.mxu3 }
 0x454   :  { %v7007_v14 = vpop.f32.mrf.mxu3 }
 0x45c   :  { %v7009_v56 = vpop.f32.mrf.mxu3 }
 0x464   :  { %v1289_v26 = vpop.f32.mrf.mxu3 }
 0x46c   :  { %v1292_v31 = vpop.f32.mrf.mxu3 }
 0x474   :  { %v1295_v42 = vpop.f32.mrf.mxu3 }
 0x47b   :  { %v732_v11 = vpop.xlane.xlu0 %731 }
 0x47c   :  { %5957 = vrcp.f32 %v732_v11 }
 0x482   :  { %v5958_v60 = vpop.eup %5957 }
 0x483   :  { %v742_v13 = vmul.f32 %v5958_v60, %v6943_v40  ;;  %v735_v16 = vpop.xlane.xlu1 %734  ;;  %v1189_v40 = vld [vmem:[%s9283_s2 + $0x158] sm:$0xff]  ;;  %v1296_v60 = vadd.f32 %v7032_v54, %v1295_v42 }
 0x484   :  { %5959 = vrcp.f32 %v735_v16 }
 0x485   :  { %5527 = vmatmul.msk.f32.vlgmr.msra.gmra.mxu2 %vm711_vm13, %v742_v13 }
 0x486   :  { %1207 = vmatpush.msra.mxu2 %v1192_v24  ;;  %v1290_v24 = vadd.f32 %v7032_v54, %v1289_v26 }
 0x488   :  { %1208 = vmatpush.msra.mxu2 %v1191_v32 }
 0x48a   :  { %v5960_v38 = vpop.eup %5959  ;;  %1209 = vmatpush.msra.mxu2 %v1190_v59 }
 0x48b   :  { %v738_v22 = vpop.xlane.xlu2 %737  ;;  %v743_v62 = vmul.f32 %v5960_v38, %v6949_v3 }
 0x48c   :  { %5961 = vrcp.f32 %v738_v22  ;;  %1210 = vmatpush.msra.mxu2 %v1189_v40 }
 0x48d   :  { %5528 = vmatmul.msk.f32.gmra.mxu2 %vm711_vm13, %v743_v62 }
 0x492   :  { %v5962_v30 = vpop.eup %5961 }
 0x493   :  { %v956_v39 = vpop.xlane.xlu0 %955  ;;  %v744_v48 = vmul.f32 %v5962_v30, %v6953_v9  ;;  %v1293_v9 = vadd.f32 %v7032_v54, %v1292_v31 }
 0x494   :  { %5963 = vrcp.f32 %v956_v39 }
 0x495   :  { %5529 = vmatmul.msk.f32.gmra.mxu2 %vm711_vm13, %v744_v48 }
 0x49a   :  { %v5964_v63 = vpop.eup %5963 }
 0x49b   :  { %v966_v3 = vmul.f32 %v5964_v63, %v6957_v15  ;;  %v959_v51 = vpop.xlane.xlu1 %958  ;;  %v826_v11 = vpop.xlane.xlu0 %825 }
 0x49c   :  { %5965 = vrcp.f32 %v959_v51  ;;  %v833_v13 = vsub.f32 %v6962_v43, %v826_v11 }
 0x49d   :  { %5545 = vmatmul.msk.f32.vlgmr.msrb.gmra.mxu2 %vm711_vm13, %v966_v3 }
 0x49e   :  { %v836_v16 = vmul.f32 1.442695, %v833_v13  ;;  %1630 = vmatpush.msrb.mxu2 %v1296_v60 }
 0x4a0   :  { %5967 = vpow2.f32 %v836_v16  ;;  %1631 = vmatpush.msrb.mxu2 %v1293_v9 }
 0x4a2   :  { %v5966_v32 = vpop.eup %5965  ;;  %1632 = vmatpush.msrb.mxu2 %v1290_v24 }
 0x4a3   :  { %v962_v15 = vpop.xlane.xlu2 %961  ;;  %v829_v59 = vpop.xlane.xlu1 %828  ;;  %v967_v40 = vmul.f32 %v5966_v32, %v6964_v8 }
 0x4a4   :  { %5969 = vrcp.f32 %v962_v15  ;;  %v834_v38 = vsub.f32 %v6971_v41, %v829_v59  ;;  %v1050_v43 = vpop.xlane.xlu0 %1049 }
 0x4a5   :  { %v1057_v22 = vsub.f32 %v6974_v45, %v1050_v43  ;;  %5546 = vmatmul.msk.f32.gmra.mxu2 %vm711_vm13, %v967_v40 }
 0x4a6   :  { %v5968_v62 = vpop.eup %5967  ;;  %v838_v31 = vmul.f32 1.442695, %v834_v38 }
 0x4a7   :  { %v1060_v30 = vmul.f32 1.442695, %v1057_v22  ;;  %v842_v26 = vsel %vm711_vm13, %v5968_v62, 0.0  ;;  %v1141_v22 = vpop.f32.mrf.mxu1 }
 0x4a8   :  { %5971 = vpow2.f32 %v838_v31  ;;  %843 = vadd.xlane.f32.xlu0 %v842_v26 }
 0x4a9   :  { %5973 = vpow2.f32 %v1060_v30 }
 0x4aa   :  { %v5970_v39 = vpop.eup %5969 }
 0x4ab   :  { %v832_v48 = vpop.xlane.xlu2 %831  ;;  %v1053_v42 = vpop.xlane.xlu1 %1052  ;;  %v968_v8 = vmul.f32 %v5970_v39, %v6976_v20 }
 0x4ac   :  { %v835_v41 = vsub.f32 %v6985_v55, %v832_v48  ;;  %v1058_v63 = vsub.f32 %v6988_v58, %v1053_v42 }
 0x4ad   :  { %5547 = vmatmul.msk.f32.gmra.mxu2 %vm711_vm13, %v968_v8 }
 0x4ae   :  { %v5972_v45 = vpop.eup %5971  ;;  %v840_v3 = vmul.f32 1.442695, %v835_v41  ;;  %v1062_v51 = vmul.f32 1.442695, %v1058_v63  ;;  %v7099_v63 = vld [vmem:[%s9283_s2 + $0x1a0] ss:$0 sm:$0xff] }
 0x4af   :  { %v5974_v11 = vpop.eup %5973  ;;  %v845_v60 = vsel %vm711_vm13, %v5972_v45, 0.0  ;;  %v1144_v8 = vpop.f32.mrf.mxu1 }
 0x4b0   :  { %5975 = vpow2.f32 %v840_v3  ;;  %v1066_v13 = vsel %vm711_vm13, %v5974_v11, 0.0  ;;  %846 = vadd.xlane.f32.xlu1 %v845_v60 }
 0x4b1   :  { %5977 = vpow2.f32 %v1062_v51  ;;  %1067 = vadd.xlane.f32.xlu0 %v1066_v13  ;;  %v7106_v13 = vld [vmem:[%s9283_s2 + $0x198] ss:$0 sm:$0xff] }
 0x4b3   :  { %v1056_v9 = vpop.xlane.xlu2 %1055 }
 0x4b4   :  { %v1059_v20 = vsub.f32 %v6995_v2, %v1056_v9 }
 0x4b5   :  { %5569 = vmatmul.msk.f32.vlgmr.msra.gmra.mxu2 %vm143_vm1, %v6625_v52 }
 0x4b6   :  { %v5976_v55 = vpop.eup %5975  ;;  %v1064_v58 = vmul.f32 1.442695, %v1059_v20  ;;  %v1142_v20 = vadd.f32 %v7106_v13, %v1141_v22 }
 0x4b7   :  { %v5978_v16 = vpop.eup %5977  ;;  %v848_v24 = vsel %vm711_vm13, %v5976_v55, 0.0 }
 0x4b8   :  { %5979 = vpow2.f32 %v1064_v58  ;;  %849 = vadd.xlane.f32.xlu2 %v848_v24  ;;  %v1069_v32 = vsel %vm711_vm13, %v5978_v16, 0.0  ;;  %v1177_v24 = vmul.f32 0.25, %v1142_v20 }
 0x4b9   :  { %1070 = vadd.xlane.f32.xlu1 %v1069_v32 }
 0x4bd   :  { %5570 = vmatmul.msk.f32.gmra.mxu2 %vm143_vm1, %v6637_v1 }
 0x4be   :  { %v5980_v15 = vpop.eup %5979 }
 0x4bf   :  { %v1072_v59 = vsel %vm711_vm13, %v5980_v15, 0.0 }
 0x4c0   :  { %1073 = vadd.xlane.f32.xlu2 %v1072_v59  ;;  %v1272_v59 = vadd.f32 %v7032_v54, %v6999_v61 }
 0x4c5   :  { %5571 = vmatmul.msk.f32.gmra.mxu2 %vm143_vm1, %v6649_v10 }
 0x4cd   :  { %5572 = vmatmul.msk.f32.gmra.mxu2 %vm143_vm1, %v6661_v34 }
 0x4d5   :  { %5573 = vmatmul.msk.f32.gmra.mxu2 %vm143_vm1, %v6674_v35 }
 0x4dd   :  { %5574 = vmatmul.msk.f32.gmra.mxu2 %vm143_vm1, %v6684_v18 }
 0x4e5   :  { %5575 = vmatmul.msk.f32.gmra.mxu2 %vm143_vm1, %v6712_v36 }
 0x4ed   :  { %5576 = vmatmul.msk.f32.gmra.mxu2 %vm143_vm1, %v6726_v19 }
 0x4f5   :  { %5577 = vmatmul.msk.f32.gmra.mxu2 %vm143_vm1, %v6736_v53 }
 0x4fd   :  { %5578 = vmatmul.msk.f32.gmra.mxu2 %vm143_vm1, %v6777_v7 }
 0x505   :  { %5579 = vmatmul.msk.f32.gmra.mxu2 %vm143_vm1, %v6788_v27 }
 0x508   :  { %v7077_v52 = vpop.f32.mrf.mxu2 }
 0x50d   :  { %5580 = vmatmul.msk.f32.gmra.mxu2 %vm143_vm1, %v6603_v23 }
 0x510   :  { %v7081_v1 = vpop.f32.mrf.mxu2 }
 0x518   :  { %v7083_v10 = vpop.f32.mrf.mxu2 }
 0x51b   :  { %v844_v34 = vpop.xlane.xlu0 %843 }
 0x51c   :  { %5981 = vrcp.f32 %v844_v34  ;;  %v1145_v34 = vadd.f32 %v7106_v13, %v1144_v8 }
 0x520   :  { %v7085_v35 = vpop.f32.mrf.mxu2 }
 0x522   :  { %v5982_v18 = vpop.eup %5981 }
 0x523   :  { %v847_v36 = vpop.xlane.xlu1 %846  ;;  %v854_v19 = vmul.f32 %v5982_v18, %v5968_v62 }
 0x524   :  { %5983 = vrcp.f32 %v847_v36  ;;  %v1068_v23 = vpop.xlane.xlu0 %1067 }
 0x525   :  { %5536 = vmatmul.msk.f32.vlgmr.msrb.gmra.mxu0 %vm711_vm13, %v854_v19 }
 0x528   :  { %v7088_v53 = vpop.f32.mrf.mxu2 }
 0x52a   :  { %v5984_v7 = vpop.eup %5983 }
 0x52b   :  { %v850_v27 = vpop.xlane.xlu2 %849  ;;  %v855_v2 = vmul.f32 %v5984_v7, %v5972_v45 }
 0x52c   :  { %5985 = vrcp.f32 %v850_v27  ;;  %v1071_v62 = vpop.xlane.xlu1 %1070 }
 0x52d   :  { %5537 = vmatmul.msk.f32.gmra.mxu0 %vm711_vm13, %v855_v2  ;;  %5987 = vrcp.f32 %v1068_v23 }
 0x52e   :  { %5989 = vrcp.f32 %v1071_v62 }
 0x530   :  { %v7091_v40 = vpop.f32.mrf.mxu2 }
 0x532   :  { %v5986_v38 = vpop.eup %5985 }
 0x533   :  { %v856_v43 = vmul.f32 %v5986_v38, %v5976_v55  ;;  %v5988_v31 = vpop.eup %5987  ;;  %v1074_v39 = vpop.xlane.xlu2 %1073 }
 0x534   :  { %v1078_v26 = vmul.f32 %v5988_v31, %v5974_v11  ;;  %v5990_v48 = vpop.eup %5989  ;;  %5991 = vrcp.f32 %v1074_v39  ;;  %v1147_v11 = vpop.f32.mrf.mxu1 }
 0x535   :  { %5538 = vmatmul.msk.f32.gmra.mxu0 %vm711_vm13, %v856_v43  ;;  %v1079_v41 = vmul.f32 %v5990_v48, %v5978_v16  ;;  %v1278_v16 = vadd.f32 %v7032_v54, %v7003_v50  ;;  %v1178_v50 = vmul.f32 0.25, %v1145_v34  ;;  %v1148_v19 = vadd.f32 %v7106_v13, %v1147_v11 }
 0x537   :  { %v1179_v27 = vmul.f32 0.25, %v1148_v19 }
 0x538   :  { %v1212_v30 = vpop.f32.mrf.mxu2 }
 0x539   :  { %v1213_v58 = vadd.f32 %v7099_v63, %v1212_v30 }
 0x53a   :  { %v5992_v45 = vpop.eup %5991 }
 0x53b   :  { %v1080_v60 = vmul.f32 %v5992_v45, %v5980_v15  ;;  %v1275_v15 = vadd.f32 %v7032_v54, %v7001_v4 }
 0x53c   :  { %v7116_v32 = vpop.f32.mrf.mxu1 }
 0x53d   :  { %5554 = vmatmul.msk.f32.vlgmr.msra.gmra.mxu0 %vm711_vm13, %v1078_v26 }
 0x540   :  { %v1215_v42 = vpop.f32.mrf.mxu2 }
 0x541   :  { %v1216_v9 = vadd.f32 %v7099_v63, %v1215_v42 }
 0x544   :  { %v7125_v36 = vpop.f32.mrf.mxu1 }
 0x545   :  { %5555 = vmatmul.msk.f32.gmra.mxu0 %vm711_vm13, %v1079_v41 }
 0x548   :  { %v1218_v3 = vpop.f32.mrf.mxu2 }
 0x549   :  { %v1219_v51 = vadd.f32 %v7099_v63, %v1218_v3 }
 0x54b   :  { %5593 = vmatpush.xpose.msk.msrb.mxu0 %vm666_vm5, %v1219_v51 }
 0x54c   :  { %v7133_v23 = vpop.f32.mrf.mxu1 }
 0x54d   :  { %5556 = vmatmul.msk.f32.gmra.mxu0 %vm711_vm13, %v1080_v60 }
 0x54f   :  { %5594 = vmatpush.xpose.msk.msrb.mxu0 %vm666_vm5, %v1216_v9 }
 0x550   :  { %v1221_v55 = vpop.f32.mrf.mxu2 }
 0x551   :  { %v1222_v38 = vadd.f32 %v7099_v63, %v1221_v55 }
 0x553   :  { %5595 = vmatpush.xpose.msk.msrb.mxu0 %vm666_vm5, %v1213_v58 }
 0x554   :  { %v1159_v22 = vpop.f32.mrf.mxu1 }
 0x555   :  { %v1160_v39 = vadd.f32 %v7106_v13, %v1159_v22 }
 0x556   :  { %5596 = vmatmul.msk.f32.vlgmr.msrb.gmra.mxu0 %vm666_vm5, %v1177_v24 }
 0x557   :  { %1406 = vmatpush.msra.mxu0 %v1278_v16  ;;  %v1183_v8 = vmul.f32 0.25, %v1160_v39 }
 0x558   :  { %v1224_v18 = vpop.f32.mrf.mxu2 }
 0x559   :  { %1407 = vmatpush.msra.mxu0 %v1275_v15  ;;  %v1225_v61 = vadd.f32 %v7099_v63, %v1224_v18 }
 0x55b   :  { %1408 = vmatpush.msra.mxu0 %v1272_v59 }
 0x55c   :  { %v1162_v30 = vpop.f32.mrf.mxu1 }
 0x55d   :  { %v1163_v45 = vadd.f32 %v7106_v13, %v1162_v30 }
 0x55e   :  { %5597 = vmatmul.msk.f32.gmra.mxu0 %vm666_vm5, %v1178_v50 }
 0x55f   :  { %v1184_v51 = vmul.f32 0.25, %v1163_v45 }
 0x560   :  { %v1227_v7 = vpop.f32.mrf.mxu2 }
 0x561   :  { %v1228_v4 = vadd.f32 %v7099_v63, %v1227_v7 }
 0x563   :  { %5602 = vmatpush.xpose.msk.msrb.mxu0 %vm666_vm5, %v1228_v4 }
 0x564   :  { %v1165_v41 = vpop.f32.mrf.mxu1 }
 0x565   :  { %v1166_v11 = vadd.f32 %v7106_v13, %v1165_v41 }
 0x566   :  { %5598 = vmatmul.msk.f32.gmra.mxu0 %vm666_vm5, %v1179_v27 }
 0x567   :  { %5603 = vmatpush.xpose.msk.msrb.mxu0 %vm666_vm5, %v1225_v61  ;;  %v1185_v55 = vmul.f32 0.25, %v1166_v11 }
 0x568   :  { %v1230_v2 = vpop.f32.mrf.mxu2 }
 0x569   :  { %v1231_v42 = vadd.f32 %v7099_v63, %v1230_v2 }
 0x56b   :  { %5604 = vmatpush.xpose.msk.msrb.mxu0 %vm666_vm5, %v1222_v38 }
 0x56c   :  { %v1168_v9 = vpop.f32.mrf.mxu1 }
 0x56d   :  { %v1169_v16 = vadd.f32 %v7106_v13, %v1168_v9 }
 0x56f   :  { %v1186_v59 = vmul.f32 0.25, %v1169_v16 }
 0x570   :  { %v1233_v43 = vpop.f32.mrf.mxu2 }
 0x571   :  { %v1234_v26 = vadd.f32 %v7099_v63, %v1233_v43 }
 0x574   :  { %v1171_v15 = vpop.f32.mrf.mxu1 }
 0x575   :  { %v1172_v34 = vadd.f32 %v7106_v13, %v1171_v15 }
 0x577   :  { %v1187_v50 = vmul.f32 0.25, %v1172_v34 }
 0x578   :  { %v1236_v62 = vpop.f32.mrf.mxu2 }
 0x579   :  { %v1237_v31 = vadd.f32 %v7099_v63, %v1236_v62 }
 0x57b   :  { %5611 = vmatpush.xpose.msk.msra.mxu1 %vm666_vm5, %v1237_v31 }
 0x57c   :  { %v1174_v19 = vpop.f32.mrf.mxu1 }
 0x57d   :  { %v1175_v7 = vadd.f32 %v7106_v13, %v1174_v19 }
 0x57f   :  { %5612 = vmatpush.xpose.msk.msra.mxu1 %vm666_vm5, %v1234_v26  ;;  %v1188_v27 = vmul.f32 0.25, %v1175_v7 }
 0x580   :  { %v1239_v48 = vpop.f32.mrf.mxu2 }
 0x581   :  { %v1240_v24 = vadd.f32 %v7099_v63, %v1239_v48 }
 0x583   :  { %5613 = vmatpush.xpose.msk.msra.mxu1 %vm666_vm5, %v1231_v42 }
 0x586   :  { %5614 = vmatmul.msk.f32.vlgmr.msra.gmra.mxu1 %vm666_vm5, %v1183_v8 }
 0x588   :  { %v1242_v3 = vpop.f32.mrf.mxu2 }
 0x589   :  { %v1243_v58 = vadd.f32 %v7099_v63, %v1242_v3 }
 0x58e   :  { %5615 = vmatmul.msk.f32.gmra.mxu1 %vm666_vm5, %v1184_v51 }
 0x590   :  { %v1245_v60 = vpop.f32.mrf.mxu2 }
 0x591   :  { %v1246_v20 = vadd.f32 %v7099_v63, %v1245_v60 }
 0x593   :  { %5620 = vmatpush.xpose.msk.msra.mxu3 %vm666_vm5, %v1246_v20 }
 0x596   :  { %5616 = vmatmul.msk.f32.gmra.mxu1 %vm666_vm5, %v1185_v55 }
 0x597   :  { %5621 = vmatpush.xpose.msk.msra.mxu3 %vm666_vm5, %v1243_v58 }
 0x59b   :  { %5622 = vmatpush.xpose.msk.msra.mxu3 %vm666_vm5, %v1240_v24 }
 0x59e   :  { %5623 = vmatmul.msk.f32.vlgmr.msra.gmra.mxu3 %vm666_vm5, %v1186_v59 }
 0x5a2   :  { %v7158_v18 = vpop.f32.mrf.mxu0 }
 0x5a6   :  { %5624 = vmatmul.msk.f32.gmra.mxu3 %vm666_vm5, %v1187_v50 }
 0x5aa   :  { %v7162_v4 = vpop.f32.mrf.mxu0 }
 0x5ae   :  { %5625 = vmatmul.msk.f32.gmra.mxu3 %vm666_vm5, %v1188_v27 }
 0x5b2   :  { %v7165_v63 = vpop.f32.mrf.mxu0 }
 0x5ba   :  { %v7167_v61 = vpop.f32.mrf.mxu0 }
 0x5c2   :  { %v7169_v2 = vpop.f32.mrf.mxu0 }
 0x5ca   :  { %v7171_v38 = vpop.f32.mrf.mxu0 }
 0x5d3   :  { %v1342_v43 = vpop.f32.mrf.mxu0 }
 0x5d4   :  { %v1343_v22 = vadd.f32 %v1342_v43, %v6867_v44 }
 0x5d6   :  { %v1351_v62 = vsel %vm711_vm13, %v1343_v22, -inf }
 0x5d7   :  { %1352 = vmax.xlane.f32.xlu0 %v1351_v62  ;;  %v1287_v62 = vadd.f32 %v7032_v54, %v7009_v56  ;;  %v1756_v56 = vld [vmem:[%s9283_s2 + $0x1b8] sm:$0xff] }
 0x5d8   :  { %1807 = vmatpush.msrb.mxu1 %v1756_v56 }
 0x5db   :  { %v1345_v31 = vpop.f32.mrf.mxu0 }
 0x5dc   :  { %v1346_v30 = vadd.f32 %v1345_v31, %v6867_v44  ;;  %v1298_v31 = vpop.f32.mrf.mxu3 }
 0x5de   :  { %v1354_v26 = vsel %vm711_vm13, %v1346_v30, -inf }
 0x5df   :  { %1355 = vmax.xlane.f32.xlu1 %v1354_v26  ;;  %v1281_v26 = vadd.f32 %v7032_v54, %v7005_v6  ;;  %v1151_v6 = vadd.f32 %v7106_v13, %v7116_v32  ;;  %v1157_v32 = vadd.f32 %v7106_v13, %v7133_v23 }
 0x5e3   :  { %v1348_v39 = vpop.f32.mrf.mxu0 }
 0x5e4   :  { %v1349_v48 = vadd.f32 %v1348_v39, %v6867_v44 }
 0x5e6   :  { %v1357_v42 = vsel %vm711_vm13, %v1349_v48, -inf }
 0x5e7   :  { %1358 = vmax.xlane.f32.xlu2 %v1357_v42 }
 0x603   :  { %v1566_v15 = vpop.f32.mrf.mxu1 }
 0x604   :  { %v7182_v59 = vadd.f32 %v1566_v15, %v6867_v44 }
 0x606   :  { %v1575_v19 = vsel %vm711_vm13, %v7182_v59, -inf }
 0x60b   :  { %v1569_v23 = vpop.f32.mrf.mxu1 }
 0x64a   :  { %v1353_v8 = vpop.xlane.xlu0 %1352 }
 0x64b   :  { %v1360_v41 = vsub.f32 %v1343_v22, %v1353_v8  ;;  %v1301_v8 = vpop.f32.mrf.mxu3 }
 0x64d   :  { %v1363_v45 = vmul.f32 1.442695, %v1360_v41 }
 0x64f   :  { %5993 = vpow2.f32 %v1363_v45 }
 0x652   :  { %v1356_v3 = vpop.xlane.xlu1 %1355 }
 0x653   :  { %v1361_v51 = vsub.f32 %v1346_v30, %v1356_v3  ;;  %v1284_v30 = vadd.f32 %v7032_v54, %v7007_v14  ;;  %v1304_v45 = vpop.f32.mrf.mxu3  ;;  %v1180_v3 = vmul.f32 0.25, %v1151_v6 }
 0x655   :  { %v5994_v11 = vpop.eup %5993  ;;  %v1365_v60 = vmul.f32 1.442695, %v1361_v51  ;;  %v1305_v51 = vadd.f32 %v7032_v54, %v1304_v45 }
 0x656   :  { %v1369_v9 = vsel %vm711_vm13, %v5994_v11, 0.0 }
 0x657   :  { %5995 = vpow2.f32 %v1365_v60  ;;  %1370 = vadd.xlane.f32.xlu0 %v1369_v9  ;;  %v1154_v60 = vadd.f32 %v7106_v13, %v7125_v36  ;;  %v1299_v9 = vadd.f32 %v7032_v54, %v1298_v31 }
 0x65a   :  { %v1359_v20 = vpop.xlane.xlu2 %1358 }
 0x65b   :  { %v1362_v55 = vsub.f32 %v1349_v48, %v1359_v20  ;;  %v1181_v20 = vmul.f32 0.25, %v1154_v60 }
 0x65d   :  { %v5996_v58 = vpop.eup %5995  ;;  %v1367_v16 = vmul.f32 1.442695, %v1362_v55  ;;  %v1182_v55 = vmul.f32 0.25, %v1157_v32 }
 0x65e   :  { %v1372_v24 = vsel %vm711_vm13, %v5996_v58, 0.0 }
 0x65f   :  { %5997 = vpow2.f32 %v1367_v16  ;;  %1373 = vadd.xlane.f32.xlu1 %v1372_v24 }
 0x665   :  { %v5998_v34 = vpop.eup %5997 }
 0x666   :  { %v1375_v50 = vsel %vm711_vm13, %v5998_v34, 0.0 }
 0x667   :  { %1376 = vadd.xlane.f32.xlu2 %v1375_v50  ;;  %1576 = vmax.xlane.f32.xlu1 %v1575_v19 }
 0x6ca   :  { %v1371_v7 = vpop.xlane.xlu0 %1370 }
 0x6cb   :  { %5999 = vrcp.f32 %v1371_v7 }
 0x6d1   :  { %v6000_v27 = vpop.eup %5999 }
 0x6d2   :  { %v1381_v43 = vmul.f32 %v6000_v27, %v5994_v11  ;;  %v1374_v22 = vpop.xlane.xlu1 %1373  ;;  %v1302_v11 = vadd.f32 %v7032_v54, %v1301_v8 }
 0x6d3   :  { %6001 = vrcp.f32 %v1374_v22 }
 0x6d4   :  { %5599 = vmatmul.msk.f32.vlgmr.msra.gmra.mxu0 %vm711_vm13, %v1381_v43 }
 0x6d5   :  { %1518 = vmatpush.msra.mxu0 %v1287_v62  ;;  %v1572_v62 = vpop.f32.mrf.mxu1 }
 0x6d7   :  { %1519 = vmatpush.msra.mxu0 %v1284_v30  ;;  %v1573_v30 = vadd.f32 %v1572_v62, %v6867_v44 }
 0x6d9   :  { %v6002_v39 = vpop.eup %6001  ;;  %1520 = vmatpush.msra.mxu0 %v1281_v26 }
 0x6da   :  { %v1377_v48 = vpop.xlane.xlu2 %1376  ;;  %v1382_v42 = vmul.f32 %v6002_v39, %v5996_v58  ;;  %v1755_v58 = vld [vmem:[%s9283_s2 + $0x1b0] sm:$0xff]  ;;  %v1577_v50 = vpop.xlane.xlu1 %1576 }
 0x6db   :  { %6003 = vrcp.f32 %v1377_v48  ;;  %1808 = vmatpush.msrb.mxu1 %v1755_v58  ;;  %v1584_v27 = vsub.f32 %v7182_v59, %v1577_v50 }
 0x6dc   :  { %5600 = vmatmul.msk.f32.gmra.mxu0 %vm711_vm13, %v1382_v42  ;;  %v1581_v42 = vsel %vm711_vm13, %v1573_v30, -inf }
 0x6dd   :  { %v1587_v31 = vmul.f32 1.442695, %v1584_v27 }
 0x6df   :  { %6005 = vpow2.f32 %v1587_v31 }
 0x6e1   :  { %v6004_v41 = vpop.eup %6003 }
 0x6e2   :  { %v1383_v14 = vmul.f32 %v6004_v41, %v5998_v34  ;;  %v1570_v34 = vadd.f32 %v1569_v23, %v6867_v44 }
 0x6e4   :  { %5601 = vmatmul.msk.f32.gmra.mxu0 %vm711_vm13, %v1383_v14  ;;  %v1578_v22 = vsel %vm711_vm13, %v1570_v34, -inf }
 0x6e5   :  { %v6006_v59 = vpop.eup %6005 }
 0x6e6   :  { %v1593_v56 = vsel %vm711_vm13, %v6006_v59, 0.0 }
 0x6ec   :  { %5605 = vmatmul.msk.f32.vlgmr.msrb.gmra.mxu0 %vm666_vm5, %v1180_v3 }
 0x6ed   :  { %1742 = vmatpush.msrb.mxu0 %v1305_v51 }
 0x6ef   :  { %1743 = vmatpush.msrb.mxu0 %v1302_v11  ;;  %v1678_v11 = vpop.f32.mrf.mxu3 }
 0x6f1   :  { %1744 = vmatpush.msrb.mxu0 %v1299_v9 }
 0x6f4   :  { %5606 = vmatmul.msk.f32.gmra.mxu0 %vm666_vm5, %v1181_v20 }
 0x6fc   :  { %5607 = vmatmul.msk.f32.gmra.mxu0 %vm666_vm5, %v1182_v55 }
 0x751   :  { %v1410_v16 = vpop.f32.mrf.mxu0 }
 0x752   :  { %5629 = vmatmul.msk.f32.vlgmr.msrb.gmra.mxu1 %vm666_vm5, %v1410_v16 }
 0x759   :  { %v1413_v54 = vpop.f32.mrf.mxu0 }
 0x75a   :  { %5630 = vmatmul.msk.f32.gmra.mxu1 %vm666_vm5, %v1413_v54 }
 0x761   :  { %v1416_v36 = vpop.f32.mrf.mxu0 }
 0x762   :  { %5631 = vmatmul.msk.f32.gmra.mxu1 %vm666_vm5, %v1416_v36 }
 0x769   :  { %v1454_v24 = vpop.f32.mrf.mxu0 }
 0x76a   :  { %v1455_v13 = vadd.f32 %v1454_v24, %v6867_v44 }
 0x76c   :  { %v1463_v15 = vsel %vm711_vm13, %v1455_v13, -inf }
 0x76d   :  { %1464 = vmax.xlane.f32.xlu0 %v1463_v15  ;;  %v1681_v15 = vpop.f32.mrf.mxu3 }
 0x771   :  { %v1457_v19 = vpop.f32.mrf.mxu0 }
 0x772   :  { %v1458_v7 = vadd.f32 %v1457_v19, %v6867_v44 }
 0x774   :  { %v1466_v43 = vsel %vm711_vm13, %v1458_v7, -inf }
 0x775   :  { %1467 = vmax.xlane.f32.xlu2 %v1466_v43  ;;  %1579 = vmax.xlane.f32.xlu0 %v1578_v22 }
 0x779   :  { %v1460_v26 = vpop.f32.mrf.mxu0 }
 0x77a   :  { %v1461_v39 = vadd.f32 %v1460_v26, %v6867_v44 }
 0x77c   :  { %v1469_v48 = vsel %vm711_vm13, %v1461_v39, -inf }
 0x77d   :  { %1470 = vmax.xlane.f32.xlu1 %v1469_v48  ;;  %1582 = vmax.xlane.f32.xlu2 %v1581_v42 }
 0x785   :  { %1594 = vadd.xlane.f32.xlu1 %v1593_v56 }
 0x7e0   :  { %v1465_v8 = vpop.xlane.xlu0 %1464 }
 0x7e1   :  { %v1472_v41 = vsub.f32 %v1455_v13, %v1465_v8 }
 0x7e3   :  { %v1475_v14 = vmul.f32 1.442695, %v1472_v41  ;;  %v1117_v41 = vld [vmem:[%s9283_s2 + $0x130] sm:$0xff] }
 0x7e4   :  { %1896 = vmatpush.msra.mxu2 %v1117_v41  ;;  %v7288_v41 = vld [vmem:[%s9283_s2 + $0x1c0] ss:$0 sm:$0xff] }
 0x7e5   :  { %6007 = vpow2.f32 %v1475_v14  ;;  %v1116_v14 = vld [vmem:[%s9283_s2 + $0x128] sm:$0xff] }
 0x7e6   :  { %1897 = vmatpush.msra.mxu2 %v1116_v14 }
 0x7e8   :  { %v1468_v6 = vpop.xlane.xlu2 %1467  ;;  %v1580_v45 = vpop.xlane.xlu0 %1579 }
 0x7e9   :  { %v1473_v3 = vsub.f32 %v1458_v7, %v1468_v6  ;;  %v1585_v51 = vsub.f32 %v1570_v34, %v1580_v45  ;;  %v1679_v7 = vadd.f32 %v1678_v11, %v6867_v44 }
 0x7eb   :  { %v6008_v60 = vpop.eup %6007  ;;  %v1477_v9 = vmul.f32 1.442695, %v1473_v3  ;;  %v1589_v20 = vmul.f32 1.442695, %v1585_v51  ;;  %v1687_v31 = vsel %vm711_vm13, %v1679_v7, -inf }
 0x7ec   :  { %v1481_v32 = vsel %vm711_vm13, %v6008_v60, 0.0 }
 0x7ed   :  { %6009 = vpow2.f32 %v1477_v9  ;;  %1482 = vadd.xlane.f32.xlu0 %v1481_v32 }
 0x7ee   :  { %6011 = vpow2.f32 %v1589_v20 }
 0x7f0   :  { %v1471_v55 = vpop.xlane.xlu1 %1470  ;;  %v1583_v58 = vpop.xlane.xlu2 %1582 }
 0x7f1   :  { %v1474_v16 = vsub.f32 %v1461_v39, %v1471_v55  ;;  %v1586_v54 = vsub.f32 %v1573_v30, %v1583_v58  ;;  %v1684_v30 = vpop.f32.mrf.mxu3  ;;  %v1682_v39 = vadd.f32 %v1681_v15, %v6867_v44 }
 0x7f2   :  { %v1685_v42 = vadd.f32 %v1684_v30, %v6867_v44 }
 0x7f3   :  { %v6010_v36 = vpop.eup %6009  ;;  %v1479_v24 = vmul.f32 1.442695, %v1474_v16  ;;  %v1591_v13 = vmul.f32 1.442695, %v1586_v54  ;;  %v1690_v56 = vsel %vm711_vm13, %v1682_v39, -inf }
 0x7f4   :  { %v6012_v23 = vpop.eup %6011  ;;  %v1484_v34 = vsel %vm711_vm13, %v6010_v36, 0.0  ;;  %v1693_v8 = vsel %vm711_vm13, %v1685_v42, -inf }
 0x7f5   :  { %6013 = vpow2.f32 %v1479_v24  ;;  %1485 = vadd.xlane.f32.xlu2 %v1484_v34  ;;  %v1596_v50 = vsel %vm711_vm13, %v6012_v23, 0.0 }
 0x7f6   :  { %6015 = vpow2.f32 %v1591_v13  ;;  %1597 = vadd.xlane.f32.xlu0 %v1596_v50 }
 0x7f8   :  { %v1595_v19 = vpop.xlane.xlu1 %1594 }
 0x7f9   :  { %6017 = vrcp.f32 %v1595_v19 }
 0x7fb   :  { %v6014_v27 = vpop.eup %6013 }
 0x7fc   :  { %v6016_v43 = vpop.eup %6015  ;;  %v1487_v22 = vsel %vm711_vm13, %v6014_v27, 0.0 }
 0x7fd   :  { %1488 = vadd.xlane.f32.xlu1 %v1487_v22  ;;  %v1599_v62 = vsel %vm711_vm13, %v6016_v43, 0.0 }
 0x7fe   :  { %1600 = vadd.xlane.f32.xlu2 %v1599_v62  ;;  %1688 = vmax.xlane.f32.xlu0 %v1687_v31 }
 0x7ff   :  { %v6018_v26 = vpop.eup %6017 }
 0x800   :  { %v1605_v48 = vmul.f32 %v6018_v26, %v6006_v59 }
 0x802   :  { %5617 = vmatmul.msk.f32.vlgmr.msrb.gmra.mxu2 %vm711_vm13, %v1605_v48  ;;  %v1810_v48 = vpop.f32.mrf.mxu1 }
 0x805   :  { %1691 = vmax.xlane.f32.xlu1 %v1690_v56 }
 0x806   :  { %1694 = vmax.xlane.f32.xlu2 %v1693_v8 }
 0x860   :  { %v1483_v59 = vpop.xlane.xlu0 %1482 }
 0x861   :  { %6019 = vrcp.f32 %v1483_v59 }
 0x867   :  { %v6020_v6 = vpop.eup %6019 }
 0x868   :  { %v1493_v45 = vmul.f32 %v6020_v6, %v6008_v60  ;;  %v1486_v3 = vpop.xlane.xlu2 %1485 }
 0x869   :  { %6021 = vrcp.f32 %v1486_v3  ;;  %v1598_v51 = vpop.xlane.xlu0 %1597 }
 0x86a   :  { %6023 = vrcp.f32 %v1598_v51  ;;  %5608 = vmatmul.msk.f32.vlgmr.msra.gmra.mxu0 %vm711_vm13, %v1493_v45  ;;  %v1813_v45 = vpop.f32.mrf.mxu1 }
 0x86f   :  { %v6022_v11 = vpop.eup %6021 }
 0x870   :  { %v6024_v9 = vpop.eup %6023  ;;  %v1489_v20 = vpop.xlane.xlu1 %1488  ;;  %v1494_v32 = vmul.f32 %v6022_v11, %v6010_v36 }
 0x871   :  { %6025 = vrcp.f32 %v1489_v20  ;;  %v1601_v55 = vpop.xlane.xlu2 %1600  ;;  %v1689_v58 = vpop.xlane.xlu0 %1688  ;;  %v1606_v16 = vmul.f32 %v6024_v9, %v6012_v23 }
 0x872   :  { %6027 = vrcp.f32 %v1601_v55  ;;  %v1696_v54 = vsub.f32 %v1679_v7, %v1689_v58  ;;  %5609 = vmatmul.msk.f32.gmra.mxu0 %vm711_vm13, %v1494_v32  ;;  %v1816_v32 = vpop.f32.mrf.mxu1 }
 0x873   :  { %5618 = vmatmul.msk.f32.gmra.mxu2 %vm711_vm13, %v1606_v16 }
 0x874   :  { %v1699_v60 = vmul.f32 1.442695, %v1696_v54 }
 0x876   :  { %6029 = vpow2.f32 %v1699_v60 }
 0x877   :  { %v6026_v24 = vpop.eup %6025 }
 0x878   :  { %v6028_v13 = vpop.eup %6027  ;;  %v1692_v15 = vpop.xlane.xlu1 %1691  ;;  %v1495_v34 = vmul.f32 %v6026_v24, %v6014_v27 }
 0x879   :  { %v1697_v50 = vsub.f32 %v1682_v39, %v1692_v15  ;;  %v1695_v19 = vpop.xlane.xlu2 %1694  ;;  %v1607_v22 = vmul.f32 %v6028_v13, %v6016_v43 }
 0x87a   :  { %v1698_v36 = vsub.f32 %v1685_v42, %v1695_v19  ;;  %5610 = vmatmul.msk.f32.gmra.mxu0 %vm711_vm13, %v1495_v34 }
 0x87b   :  { %v1701_v62 = vmul.f32 1.442695, %v1697_v50  ;;  %5619 = vmatmul.msk.f32.gmra.mxu2 %vm711_vm13, %v1607_v22 }
 0x87c   :  { %v6030_v23 = vpop.eup %6029  ;;  %v1703_v7 = vmul.f32 1.442695, %v1698_v36 }
 0x87d   :  { %6031 = vpow2.f32 %v1701_v62  ;;  %v1705_v31 = vsel %vm711_vm13, %v6030_v23, 0.0 }
 0x87e   :  { %6033 = vpow2.f32 %v1703_v7  ;;  %1706 = vadd.xlane.f32.xlu0 %v1705_v31 }
 0x883   :  { %v6032_v30 = vpop.eup %6031  ;;  %5641 = vmatmul.msk.f32.vlgmr.msra.gmra.mxu2 %vm666_vm5, %v7077_v52 }
 0x884   :  { %v6034_v27 = vpop.eup %6033  ;;  %v1708_v43 = vsel %vm711_vm13, %v6032_v30, 0.0 }
 0x885   :  { %1709 = vadd.xlane.f32.xlu1 %v1708_v43  ;;  %v1711_v26 = vsel %vm711_vm13, %v6034_v27, 0.0 }
 0x886   :  { %1712 = vadd.xlane.f32.xlu2 %v1711_v26 }
 0x88b   :  { %5642 = vmatmul.msk.f32.gmra.mxu2 %vm666_vm5, %v7081_v1  ;;  %v1634_v1 = vpop.f32.mrf.mxu2 }
 0x893   :  { %5643 = vmatmul.msk.f32.gmra.mxu2 %vm666_vm5, %v7083_v10 }
 0x89b   :  { %5644 = vmatmul.msk.f32.gmra.mxu2 %vm666_vm5, %v7158_v18 }
 0x8a3   :  { %5645 = vmatmul.msk.f32.gmra.mxu2 %vm666_vm5, %v7162_v4 }
 0x8ab   :  { %5646 = vmatmul.msk.f32.gmra.mxu2 %vm666_vm5, %v7165_v63 }
 0x8b3   :  { %5647 = vmatmul.msk.f32.gmra.mxu2 %vm666_vm5, %v7085_v35 }
 0x8bb   :  { %5648 = vmatmul.msk.f32.gmra.mxu2 %vm666_vm5, %v7088_v53 }
 0x8c3   :  { %5649 = vmatmul.msk.f32.gmra.mxu2 %vm666_vm5, %v7091_v40 }
 0x8cb   :  { %5650 = vmatmul.msk.f32.gmra.mxu2 %vm666_vm5, %v7167_v61 }
 0x8d3   :  { %5651 = vmatmul.msk.f32.gmra.mxu2 %vm666_vm5, %v7169_v2 }
 0x8db   :  { %5652 = vmatmul.msk.f32.gmra.mxu2 %vm666_vm5, %v7171_v38 }
 0x8e7   :  { %v1522_v52 = vpop.f32.mrf.mxu0 }
 0x8e8   :  { %5632 = vmatmul.msk.f32.gmra.mxu1 %vm666_vm5, %v1522_v52 }
 0x8ef   :  { %v1525_v10 = vpop.f32.mrf.mxu0 }
 0x8f0   :  { %5633 = vmatmul.msk.f32.gmra.mxu1 %vm666_vm5, %v1525_v10 }
 0x8f1   :  { %v1707_v35 = vpop.xlane.xlu0 %1706 }
 0x8f2   :  { %6035 = vrcp.f32 %v1707_v35 }
 0x8f6   :  { %v1637_v53 = vpop.f32.mrf.mxu2 }
 0x8f7   :  { %v1528_v40 = vpop.f32.mrf.mxu0 }
 0x8f8   :  { %v6036_v18 = vpop.eup %6035  ;;  %v1710_v4 = vpop.xlane.xlu1 %1709  ;;  %5634 = vmatmul.msk.f32.gmra.mxu1 %vm666_vm5, %v1528_v40 }
 0x8f9   :  { %v1717_v63 = vmul.f32 %v6036_v18, %v6030_v23  ;;  %6037 = vrcp.f32 %v1710_v4  ;;  %v1713_v61 = vpop.xlane.xlu2 %1712 }
 0x8fa   :  { %6039 = vrcp.f32 %v1713_v61 }
 0x8fb   :  { %5626 = vmatmul.msk.f32.vlgmr.msrb.gmra.mxu0 %vm711_vm13, %v1717_v63 }
 0x8fe   :  { %v1640_v2 = vpop.f32.mrf.mxu2 }
 0x8ff   :  { %v6038_v38 = vpop.eup %6037 }
 0x900   :  { %5635 = vmatmul.msk.f32.gmra.mxu1 %vm666_vm5, %v1634_v1  ;;  %v1718_v39 = vmul.f32 %v6038_v38, %v6032_v30  ;;  %v6040_v42 = vpop.eup %6039 }
 0x901   :  { %v1719_v59 = vmul.f32 %v6040_v42, %v6034_v27 }
 0x903   :  { %5627 = vmatmul.msk.f32.gmra.mxu0 %vm711_vm13, %v1718_v39 }
 0x906   :  { %v1899_v56 = vpop.f32.mrf.mxu2 }
 0x907   :  { %v1900_v8 = vadd.f32 %v1899_v56, %v1810_v48 }
 0x908   :  { %5636 = vmatmul.msk.f32.gmra.mxu1 %vm666_vm5, %v1637_v53 }
 0x909   :  { %v1935_v14 = vadd.f32 %v1900_v8, %v6424_v49 }
 0x90b   :  { %5628 = vmatmul.msk.f32.gmra.mxu0 %vm711_vm13, %v1719_v59  ;;  %v7294_v6 = vadd.f32 %v7288_v41, %v1935_v14 }
 0x90d   :  { %v1963_v3 = vsel %vm143_vm1, %v7294_v6, 0.0 }
 0x90e   :  { %v1902_v51 = vpop.f32.mrf.mxu2  ;;  %1964 = vadd.xlane.f32.xlu0 %v1963_v3 }
 0x90f   :  { %v1903_v11 = vadd.f32 %v1902_v51, %v1813_v45 }
 0x910   :  { %5637 = vmatmul.msk.f32.gmra.mxu1 %vm666_vm5, %v1640_v2 }
 0x911   :  { %v1936_v9 = vadd.f32 %v1903_v11, %v6378_v21 }
 0x913   :  { %v7301_v20 = vadd.f32 %v7288_v41, %v1936_v9 }
 0x915   :  { %v1966_v49 = vsel %vm143_vm1, %v7301_v20, 0.0 }
 0x916   :  { %v1905_v55 = vpop.f32.mrf.mxu2  ;;  %1967 = vadd.xlane.f32.xlu1 %v1966_v49 }
 0x917   :  { %v1906_v58 = vadd.f32 %v1905_v55, %v1816_v32 }
 0x919   :  { %v1937_v16 = vadd.f32 %v1906_v58, %v6385_v25 }
 0x91b   :  { %v7307_v54 = vadd.f32 %v7288_v41, %v1937_v16 }
 0x91d   :  { %v1969_v60 = vsel %vm143_vm1, %v7307_v54, 0.0 }
 0x91e   :  { %1970 = vadd.xlane.f32.xlu2 %v1969_v60  ;;  %v1908_v24 = vpop.f32.mrf.mxu2 }
 0x926   :  { %v1911_v15 = vpop.f32.mrf.mxu2 }
 0x92e   :  { %v1914_v19 = vpop.f32.mrf.mxu2 }
 0x936   :  { %v1917_v30 = vpop.f32.mrf.mxu2 }
 0x93e   :  { %v1920_v2 = vpop.f32.mrf.mxu2 }
 0x946   :  { %v1923_v49 = vpop.f32.mrf.mxu2 }
 0x965   :  { %v1819_v21 = vpop.f32.mrf.mxu1 }
 0x966   :  { %v1909_v62 = vadd.f32 %v1908_v24, %v1819_v21  ;;  %v2256_v24 = vld [vmem:[%s9285_s3 + $0x30] sm:$0xff] }
 0x967   :  { %2306 = vmatpush.msrb.mxu3 %v2256_v24 }
 0x968   :  { %v1938_v27 = vadd.f32 %v1909_v62, %v6392_v29 }
 0x96a   :  { %v7327_v53 = vadd.f32 %v7288_v41, %v1938_v27 }
 0x96c   :  { %v1972_v61 = vsel %vm143_vm1, %v7327_v53, 0.0 }
 0x96d   :  { %v1822_v13 = vpop.f32.mrf.mxu1 }
 0x96e   :  { %v1912_v10 = vadd.f32 %v1911_v15, %v1822_v13  ;;  %v2254_v13 = vld [vmem:[%s9285_s3 + $0x10] sm:$0xff]  ;;  %v2253_v15 = vld [vmem:[%s9285_s3] sm:$0xff] }
 0x970   :  { %v1939_v4 = vadd.f32 %v1912_v10, %v6399_v33 }
 0x972   :  { %v7341_v33 = vadd.f32 %v7288_v41, %v1939_v4 }
 0x974   :  { %v1975_v51 = vsel %vm143_vm1, %v7341_v33, 0.0 }
 0x975   :  { %v1825_v50 = vpop.f32.mrf.mxu1 }
 0x976   :  { %v1915_v42 = vadd.f32 %v1914_v19, %v1825_v50 }
 0x978   :  { %v1746_v34 = vpop.f32.mrf.mxu0 }
 0x979   :  { %5638 = vmatmul.msk.f32.gmra.mxu1 %vm666_vm5, %v1746_v34 }
 0x97d   :  { %v1828_v7 = vpop.f32.mrf.mxu1 }
 0x97e   :  { %v1918_v40 = vadd.f32 %v1917_v30, %v1828_v7 }
 0x980   :  { %v1749_v22 = vpop.f32.mrf.mxu0  ;;  %v1941_v38 = vadd.f32 %v1918_v40, %v6462_v17  ;;  %v1940_v17 = vadd.f32 %v1915_v42, %v6406_v37 }
 0x981   :  { %5639 = vmatmul.msk.f32.gmra.mxu1 %vm666_vm5, %v1749_v22  ;;  %v1965_v25 = vpop.xlane.xlu0 %1964 }
 0x982   :  { %v1999_v36 = vmul.f32 %v1965_v25, %v6428_v57  ;;  %v7344_v14 = vadd.f32 %v7288_v41, %v1941_v38  ;;  %v7356_v55 = vadd.f32 %v7288_v41, %v1940_v17 }
 0x984   :  { %v7315_v23 = vsub.f32 %v7294_v6, %v1999_v36  ;;  %v1981_v9 = vsel %vm143_vm1, %v7344_v14, 0.0  ;;  %v1978_v58 = vsel %vm143_vm1, %v7356_v55, 0.0 }
 0x985   :  { %v1831_v18 = vpop.f32.mrf.mxu1 }
 0x986   :  { %v2023_v31 = vmul.f32 %v7315_v23, %v7315_v23  ;;  %v1921_v56 = vadd.f32 %v1920_v2, %v1831_v18 }
 0x988   :  { %v1752_v43 = vpop.f32.mrf.mxu0  ;;  %v2035_v26 = vsel %vm143_vm1, %v2023_v31, 0.0  ;;  %v1942_v45 = vadd.f32 %v1921_v56, %v6479_v28 }
 0x989   :  { %v1968_v52 = vpop.xlane.xlu1 %1967  ;;  %5640 = vmatmul.msk.f32.gmra.mxu1 %vm666_vm5, %v1752_v43  ;;  %2036 = vadd.xlane.f32.xlu0 %v2035_v26  ;;  %v1926_v26 = vpop.f32.mrf.mxu2 }
 0x98a   :  { %v2000_v1 = vmul.f32 %v1968_v52, %v6428_v57  ;;  %v7359_v37 = vadd.f32 %v7288_v41, %v1942_v45 }
 0x98c   :  { %v7324_v35 = vsub.f32 %v7301_v20, %v2000_v1  ;;  %v1984_v16 = vsel %vm143_vm1, %v7359_v37, 0.0 }
 0x98d   :  { %v1834_v11 = vpop.f32.mrf.mxu1 }
 0x98e   :  { %v2024_v29 = vmul.f32 %v7324_v35, %v7324_v35  ;;  %v1924_v32 = vadd.f32 %v1923_v49, %v1834_v11 }
 0x990   :  { %v2038_v63 = vsel %vm143_vm1, %v2024_v29, 0.0  ;;  %v1943_v28 = vadd.f32 %v1924_v32, %v6440_v0  ;;  %v2255_v0 = vld [vmem:[%s9285_s3 + $0x20] sm:$0xff] }
 0x991   :  { %v1971_v39 = vpop.xlane.xlu2 %1970  ;;  %2039 = vadd.xlane.f32.xlu1 %v2038_v63  ;;  %1973 = vadd.xlane.f32.xlu0 %v1972_v61 }
 0x992   :  { %v2001_v48 = vmul.f32 %v1971_v39, %v6428_v57  ;;  %v7367_v60 = vadd.f32 %v7288_v41, %v1943_v28  ;;  %2307 = vmatpush.msrb.mxu3 %v2255_v0  ;;  %v1929_v28 = vpop.f32.mrf.mxu2 }
 0x994   :  { %v7338_v8 = vsub.f32 %v7307_v54, %v2001_v48  ;;  %v1987_v21 = vsel %vm143_vm1, %v7367_v60, 0.0  ;;  %2308 = vmatpush.msrb.mxu3 %v2254_v13 }
 0x996   :  { %v2025_v59 = vmul.f32 %v7338_v8, %v7338_v8  ;;  %2309 = vmatpush.msrb.mxu3 %v2253_v15 }
 0x998   :  { %v2041_v3 = vsel %vm143_vm1, %v2025_v59, 0.0 }
 0x999   :  { %2042 = vadd.xlane.f32.xlu2 %v2041_v3  ;;  %1976 = vadd.xlane.f32.xlu1 %v1975_v51  ;;  %v7406_v3 = vld [vmem:[%s9283_s2 + $0x1c8] ss:$0 sm:$0xff] }
 0x99a   :  { %1982 = vadd.xlane.f32.xlu0 %v1981_v9 }
 0x9a1   :  { %1979 = vadd.xlane.f32.xlu2 %v1978_v58  ;;  %1985 = vadd.xlane.f32.xlu1 %v1984_v16  ;;  %v7416_v58 = vld [vmem:[%s9283_s2 + $0x1d0] ss:$0 sm:$0xff] }
 0x9a9   :  { %1988 = vadd.xlane.f32.xlu2 %v1987_v21 }
 0x9f6   :  { %v1837_v27 = vpop.f32.mrf.mxu1 }
 0x9f7   :  { %v1927_v48 = vadd.f32 %v1926_v26, %v1837_v27 }
 0x9f9   :  { %v1944_v24 = vadd.f32 %v1927_v48, %v6567_v47 }
 0x9fb   :  { %v7434_v26 = vadd.f32 %v7288_v41, %v1944_v24 }
 0x9fc   :  { %v2037_v34 = vpop.xlane.xlu0 %2036 }
 0x9fd   :  { %v2071_v50 = vmul.f32 %v2037_v34, %v6428_v57 }
 0x9fe   :  { %v1840_v9 = vpop.f32.mrf.mxu1 }
 0x9ff   :  { %v2083_v19 = vadd.f32 1e-06, %v2071_v50 }
 0xa01   :  { %6041 = vrsqrt.f32 %v2083_v19  ;;  %vm2101_vm15 = vweird.f32 %v2083_v19 }
 0xa04   :  { %v2040_v22 = vpop.xlane.xlu1 %2039  ;;  %v1974_v25 = vpop.xlane.xlu0 %1973 }
 0xa05   :  { %v2072_v36 = vmul.f32 %v2040_v22, %v6428_v57  ;;  %v2002_v62 = vmul.f32 %v1974_v25, %v6428_v57 }
 0xa07   :  { %v6042_v7 = vpop.eup %6041  ;;  %v2084_v31 = vadd.f32 1e-06, %v2072_v36  ;;  %v7387_v30 = vsub.f32 %v7327_v53, %v2002_v62  ;;  %v1930_v62 = vadd.f32 %v1929_v28, %v1840_v9 }
 0xa08   :  { %v2096_v43 = vmul.f32 %v6042_v7, %v2083_v19  ;;  %vm2102_vm14 = vweird.f32 %v6042_v7 }
 0xa09   :  { %6043 = vrsqrt.f32 %v2084_v31  ;;  %v2026_v52 = vmul.f32 %v7387_v30, %v7387_v30  ;;  %vm2103_vm2 = vmor %vm2101_vm15, %vm2102_vm14  ;;  %vm2111_vm4 = vweird.f32 %v2084_v31 }
 0xa0a   :  { %v2097_v1 = vmul.f32 %v6042_v7, %v2096_v43 }
 0xa0b   :  { %v2044_v10 = vsel %vm143_vm1, %v2026_v52, 0.0 }
 0xa0c   :  { %v2098_v40 = vmul.f32 0.5, %v2097_v1  ;;  %v2043_v29 = vpop.xlane.xlu2 %2042  ;;  %v1977_v18 = vpop.xlane.xlu1 %1976  ;;  %2045 = vadd.xlane.f32.xlu0 %v2044_v10 }
 0xa0d   :  { %v2073_v4 = vmul.f32 %v2043_v29, %v6428_v57  ;;  %v2003_v63 = vmul.f32 %v1977_v18, %v6428_v57  ;;  %v1983_v61 = vpop.xlane.xlu0 %1982  ;;  %v1945_v29 = vadd.f32 %v1930_v62, %v6598_v12  ;;  %v1932_v12 = vpop.f32.mrf.mxu2  ;;  %v2463_v62 = vld [vmem:[%s9283_s2 + $0x218] sm:$0xff] }
 0xa0e   :  { %v2099_v2 = vsub.f32 1.5, %v2098_v40  ;;  %v2005_v38 = vmul.f32 %v1983_v61, %v6428_v57 }
 0xa0f   :  { %v6044_v39 = vpop.eup %6043  ;;  %v7395_v42 = vadd.f32 1e-06, %v2073_v4  ;;  %v7398_v56 = vsub.f32 %v7341_v33, %v2003_v63  ;;  %v1843_v63 = vpop.f32.mrf.mxu1 }
 0xa10   :  { %v2100_v59 = vmul.f32 %v6042_v7, %v2099_v2  ;;  %v2106_v17 = vmul.f32 %v6044_v39, %v2084_v31  ;;  %v7401_v45 = vsub.f32 %v7344_v14, %v2005_v38  ;;  %vm2112_vm3 = vweird.f32 %v6044_v39 }
 0xa11   :  { %6045 = vrsqrt.f32 %v7395_v42  ;;  %v2027_v51 = vmul.f32 %v7398_v56, %v7398_v56  ;;  %vm2113_vm6 = vmor %vm2111_vm4, %vm2112_vm3  ;;  %v1990_v38 = vsel %vm143_vm1, %v7434_v26, 0.0  ;;  %vm2121_vm8 = vweird.f32 %v7395_v42 }
 0xa12   :  { %v2104_v11 = vsel %vm2103_vm2, %v6042_v7, %v2100_v59  ;;  %v2107_v49 = vmul.f32 %v6044_v39, %v2106_v17  ;;  %v2029_v32 = vmul.f32 %v7401_v45, %v7401_v45 }
 0xa13   :  { %v2215_v16 = vmul.f32 %v2104_v11, %v7315_v23  ;;  %v2047_v21 = vsel %vm143_vm1, %v2027_v51, 0.0  ;;  %v7454_v11 = vadd.f32 %v7288_v41, %v1945_v29 }
 0xa14   :  { %v2108_v0 = vmul.f32 0.5, %v2107_v49  ;;  %v1980_v13 = vpop.xlane.xlu2 %1979  ;;  %2048 = vadd.xlane.f32.xlu1 %v2047_v21  ;;  %v1986_v15 = vpop.xlane.xlu1 %1985  ;;  %v2053_v34 = vsel %vm143_vm1, %v2029_v32, 0.0 }
 0xa15   :  { %v2228_v50 = vmul.f32 %v7406_v3, %v2215_v16  ;;  %v2004_v19 = vmul.f32 %v1980_v13, %v6428_v57  ;;  %v2006_v22 = vmul.f32 %v1986_v15, %v6428_v57  ;;  %2054 = vadd.xlane.f32.xlu0 %v2053_v34  ;;  %v1993_v24 = vsel %vm143_vm1, %v7454_v11, 0.0  ;;  %v2469_v15 = vld [vmem:[%s9283_s2 + $0x248] sm:$0xff]  ;;  %v2467_v34 = vld [vmem:[%s9283_s2 + $0x238] sm:$0xff] }
 0xa16   :  { %v2109_v25 = vsub.f32 1.5, %v2108_v0 }
 0xa17   :  { %v6046_v23 = vpop.eup %6045  ;;  %v2241_v36 = vadd.f32 %v7416_v58, %v2228_v50  ;;  %v7427_v47 = vsub.f32 %v7356_v55, %v2004_v19  ;;  %v7430_v7 = vsub.f32 %v7359_v37, %v2006_v22  ;;  %v2466_v22 = vld [vmem:[%s9283_s2 + $0x230] sm:$0xff] }
 0xa18   :  { %v2110_v27 = vmul.f32 %v6044_v39, %v2109_v25  ;;  %v2116_v43 = vmul.f32 %v6046_v23, %v7395_v42  ;;  %vm2122_vm7 = vweird.f32 %v6046_v23 }
 0xa19   :  { %5653 = vmatmul.msk.f32.vlgmr.msrb.gmra.mxu3 %vm143_vm1, %v2241_v36  ;;  %v2030_v52 = vmul.f32 %v7430_v7, %v7430_v7  ;;  %v2028_v1 = vmul.f32 %v7427_v47, %v7427_v47  ;;  %vm2123_vm9 = vmor %vm2121_vm8, %vm2122_vm7  ;;  %v2464_v36 = vld [vmem:[%s9283_s2 + $0x220] sm:$0xff] }
 0xa1a   :  { %v2114_v10 = vsel %vm2113_vm6, %v6044_v39, %v2110_v27  ;;  %v2117_v40 = vmul.f32 %v6046_v23, %v2116_v43 }
 0xa1b   :  { %v2216_v31 = vmul.f32 %v2114_v10, %v7324_v35  ;;  %v2056_v18 = vsel %vm143_vm1, %v2030_v52, 0.0  ;;  %v2050_v4 = vsel %vm143_vm1, %v2028_v1, 0.0  ;;  %v1933_v35 = vadd.f32 %v1932_v12, %v1843_v63  ;;  %v2462_v1 = vld [vmem:[%s9283_s2 + $0x210] sm:$0xff]  ;;  %v2460_v63 = vld [vmem:[%s9283_s2 + $0x200] sm:$0xff] }
 0xa1c   :  { %v2118_v61 = vmul.f32 0.5, %v2117_v40  ;;  %2057 = vadd.xlane.f32.xlu1 %v2056_v18  ;;  %2051 = vadd.xlane.f32.xlu2 %v2050_v4  ;;  %v1989_v2 = vpop.xlane.xlu2 %1988 }
 0xa1d   :  { %v2007_v48 = vmul.f32 %v1989_v2, %v6428_v57  ;;  %1991 = vadd.xlane.f32.xlu0 %v1990_v38  ;;  %v2229_v39 = vmul.f32 %v7406_v3, %v2216_v31  ;;  %v1946_v28 = vadd.f32 %v1933_v35, %v6417_v46  ;;  %v2461_v31 = vld [vmem:[%s9283_s2 + $0x208] sm:$0xff]  ;;  %v2459_v2 = vld [vmem:[%s9283_s2 + $0x1f8] sm:$0xff] }
 0xa1e   :  { %v2119_v59 = vsub.f32 1.5, %v2118_v61 }
 0xa1f   :  { %v7450_v17 = vsub.f32 %v7367_v60, %v2007_v48  ;;  %v2242_v51 = vadd.f32 %v7416_v58, %v2229_v39  ;;  %v7468_v13 = vadd.f32 %v7288_v41, %v1946_v28  ;;  %v2468_v41 = vld [vmem:[%s9283_s2 + $0x240] sm:$0xff] }
 0xa20   :  { %v2120_v9 = vmul.f32 %v6046_v23, %v2119_v59 }
 0xa21   :  { %5654 = vmatmul.msk.f32.gmra.mxu3 %vm143_vm1, %v2242_v51  ;;  %v2031_v49 = vmul.f32 %v7450_v17, %v7450_v17  ;;  %v1996_v46 = vsel %vm143_vm1, %v7468_v13, 0.0  ;;  %v2458_v51 = vld [vmem:[%s9283_s2 + $0x1f0] sm:$0xff] }
 0xa22   :  { %v2124_v32 = vsel %vm2123_vm9, %v6046_v23, %v2120_v9  ;;  %v2465_v23 = vld [vmem:[%s9283_s2 + $0x228] sm:$0xff] }
 0xa23   :  { %v2217_v16 = vmul.f32 %v2124_v32, %v7338_v8  ;;  %v2059_v21 = vsel %vm143_vm1, %v2031_v49, 0.0  ;;  %v2470_v8 = vld [vmem:[%s9283_s2 + $0x250] sm:$0xff] }
 0xa24   :  { %2060 = vadd.xlane.f32.xlu2 %v2059_v21  ;;  %1994 = vadd.xlane.f32.xlu1 %v1993_v24  ;;  %v2457_v21 = vld [vmem:[%s9283_s2 + $0x1e8] sm:$0xff] }
 0xa25   :  { %v2230_v42 = vmul.f32 %v7406_v3, %v2217_v16  ;;  %2471 = vmatpush.msra.mxu0 %v2470_v8 }
 0xa27   :  { %v2243_v0 = vadd.f32 %v7416_v58, %v2230_v42  ;;  %2472 = vmatpush.msra.mxu0 %v2469_v15  ;;  %v2456_v15 = vld [vmem:[%s9283_s2 + $0x1e0] sm:$0xff] }
 0xa29   :  { %5655 = vmatmul.msk.f32.gmra.mxu3 %vm143_vm1, %v2243_v0  ;;  %2473 = vmatpush.msra.mxu0 %v2468_v41 }
 0xa2b   :  { %2474 = vmatpush.msra.mxu0 %v2467_v34 }
 0xa2c   :  { %1997 = vadd.xlane.f32.xlu2 %v1996_v46 }
 0xa2d   :  { %2475 = vmatpush.msra.mxu0 %v2466_v22 }
 0xa2f   :  { %2476 = vmatpush.msra.mxu0 %v2465_v23 }
 0xa31   :  { %2477 = vmatpush.msra.mxu0 %v2464_v36 }
 0xa33   :  { %2478 = vmatpush.msra.mxu0 %v2463_v62 }
 0xa35   :  { %2479 = vmatpush.msra.mxu0 %v2462_v1 }
 0xa37   :  { %2480 = vmatpush.msra.mxu0 %v2461_v31 }
 0xa39   :  { %2481 = vmatpush.msra.mxu0 %v2460_v63 }
 0xa3b   :  { %2482 = vmatpush.msra.mxu0 %v2459_v2 }
 0xa3d   :  { %2483 = vmatpush.msra.mxu0 %v2458_v51 }
 0xa3f   :  { %2484 = vmatpush.msra.mxu0 %v2457_v21 }
 0xa41   :  { %2485 = vmatpush.msra.mxu0 %v2456_v15 }
 0xa7f   :  { %v2046_v50 = vpop.xlane.xlu0 %2045 }
 0xa80   :  { %v2074_v19 = vmul.f32 %v2046_v50, %v6428_v57  ;;  %v2455_v50 = vld [vmem:[%s9283_s2 + $0x1d8] sm:$0xff] }
 0xa81   :  { %2486 = vmatpush.msra.mxu0 %v2455_v50 }
 0xa82   :  { %v2086_v25 = vadd.f32 1e-06, %v2074_v19 }
 0xa84   :  { %6047 = vrsqrt.f32 %v2086_v25  ;;  %vm2131_vm11 = vweird.f32 %v2086_v25 }
 0xa87   :  { %v2049_v27 = vpop.xlane.xlu1 %2048 }
 0xa88   :  { %v2075_v43 = vmul.f32 %v2049_v27, %v6428_v57  ;;  %v2055_v52 = vpop.xlane.xlu0 %2054 }
 0xa89   :  { %v2077_v10 = vmul.f32 %v2055_v52, %v6428_v57 }
 0xa8a   :  { %v6048_v40 = vpop.eup %6047  ;;  %v7503_v29 = vadd.f32 1e-06, %v2075_v43 }
 0xa8b   :  { %v2126_v18 = vmul.f32 %v6048_v40, %v2086_v25  ;;  %v7508_v4 = vadd.f32 1e-06, %v2077_v10  ;;  %vm2132_vm10 = vweird.f32 %v6048_v40 }
 0xa8c   :  { %6049 = vrsqrt.f32 %v7503_v29  ;;  %vm2133_vm12 = vmor %vm2131_vm11, %vm2132_vm10  ;;  %vm2141_vm15 = vweird.f32 %v7503_v29 }
 0xa8d   :  { %v2127_v61 = vmul.f32 %v6048_v40, %v2126_v18  ;;  %6051 = vrsqrt.f32 %v7508_v4  ;;  %v7566_v18 = vld [vmem:[%s9285_s3 + $0x40] ss:$0 sm:$0xff]  ;;  %vm2161_vm8 = vweird.f32 %v7508_v4 }
 0xa8f   :  { %v2128_v38 = vmul.f32 0.5, %v2127_v61  ;;  %v2058_v48 = vpop.xlane.xlu1 %2057  ;;  %v2052_v39 = vpop.xlane.xlu2 %2051 }
 0xa90   :  { %v2078_v12 = vmul.f32 %v2058_v48, %v6428_v57  ;;  %v2076_v59 = vmul.f32 %v2052_v39, %v6428_v57  ;;  %v1992_v35 = vpop.xlane.xlu0 %1991 }
 0xa91   :  { %v2129_v9 = vsub.f32 1.5, %v2128_v38  ;;  %v2008_v49 = vmul.f32 %v1992_v35, %v6428_v57 }
 0xa92   :  { %v6050_v32 = vpop.eup %6049  ;;  %v7524_v28 = vadd.f32 1e-06, %v2078_v12  ;;  %v7526_v16 = vadd.f32 1e-06, %v2076_v59 }
 0xa93   :  { %v7531_v24 = vpop.eup %6051  ;;  %v2130_v42 = vmul.f32 %v6048_v40, %v2129_v9  ;;  %v2136_v0 = vmul.f32 %v6050_v32, %v7503_v29  ;;  %v7535_v46 = vsub.f32 %v7434_v26, %v2008_v49  ;;  %vm2142_vm14 = vweird.f32 %v6050_v32 }
 0xa94   :  { %v2156_v8 = vmul.f32 %v7531_v24, %v7508_v4  ;;  %6053 = vrsqrt.f32 %v7524_v28  ;;  %vm2143_vm2 = vmor %vm2141_vm15, %vm2142_vm14  ;;  %vm2162_vm4 = vweird.f32 %v7531_v24  ;;  %vm2151_vm6 = vweird.f32 %v7526_v16 }
 0xa95   :  { %v2134_v41 = vsel %vm2133_vm12, %v6048_v40, %v2130_v42  ;;  %v2137_v34 = vmul.f32 %v6050_v32, %v2136_v0  ;;  %6055 = vrsqrt.f32 %v7526_v16  ;;  %v2032_v22 = vmul.f32 %v7535_v46, %v7535_v46  ;;  %vm2163_vm9 = vmor %vm2161_vm8, %vm2162_vm4 }
 0xa96   :  { %v2218_v19 = vmul.f32 %v2134_v41, %v7387_v30  ;;  %v2157_v23 = vmul.f32 %v7531_v24, %v2156_v8  ;;  %vm2171_vm11 = vweird.f32 %v7524_v28 }
 0xa97   :  { %v2138_v25 = vmul.f32 0.5, %v2137_v34  ;;  %v2061_v36 = vpop.xlane.xlu2 %2060  ;;  %v1995_v62 = vpop.xlane.xlu1 %1994  ;;  %v2062_v52 = vsel %vm143_vm1, %v2032_v22, 0.0 }
 0xa98   :  { %v2079_v27 = vmul.f32 %v2061_v36, %v6428_v57  ;;  %v2009_v43 = vmul.f32 %v1995_v62, %v6428_v57  ;;  %2063 = vadd.xlane.f32.xlu0 %v2062_v52  ;;  %v2231_v30 = vmul.f32 %v7406_v3, %v2218_v19  ;;  %v2158_v2 = vmul.f32 0.5, %v2157_v23 }
 0xa99   :  { %v2139_v1 = vsub.f32 1.5, %v2138_v25 }
 0xa9a   :  { %v7555_v10 = vpop.eup %6053  ;;  %v7558_v40 = vadd.f32 1e-06, %v2079_v27  ;;  %v7561_v31 = vsub.f32 %v7454_v11, %v2009_v43  ;;  %v2244_v48 = vadd.f32 %v7416_v58, %v2231_v30  ;;  %v2159_v49 = vsub.f32 1.5, %v2158_v2 }
 0xa9b   :  { %v6056_v63 = vpop.eup %6055  ;;  %v2140_v61 = vmul.f32 %v6050_v32, %v2139_v1  ;;  %v2166_v38 = vmul.f32 %v7555_v10, %v7524_v28  ;;  %vm2172_vm10 = vweird.f32 %v7555_v10 }
 0xa9c   :  { %v2146_v29 = vmul.f32 %v6056_v63, %v7526_v16  ;;  %6057 = vrsqrt.f32 %v7558_v40  ;;  %v2311_v39 = vpop.f32.mrf.mxu3  ;;  %5656 = vmatmul.msk.f32.gmra.mxu3 %vm143_vm1, %v2244_v48  ;;  %v2033_v9 = vmul.f32 %v7561_v31, %v7561_v31  ;;  %vm2152_vm3 = vweird.f32 %v6056_v63  ;;  %vm2173_vm12 = vmor %vm2171_vm11, %vm2172_vm10 }
 0xa9d   :  { %v2144_v12 = vsel %vm2143_vm2, %v6050_v32, %v2140_v61  ;;  %v7574_v59 = vadd.f32 %v2311_v39, %v7566_v18  ;;  %v2167_v21 = vmul.f32 %v7555_v10, %v2166_v38  ;;  %v2160_v25 = vmul.f32 %v7531_v24, %v2159_v49  ;;  %vm2153_vm7 = vmor %vm2151_vm6, %vm2152_vm3 }
 0xa9e   :  { %v2219_v35 = vmul.f32 %v2144_v12, %v7398_v56  ;;  %v2147_v51 = vmul.f32 %v6056_v63, %v2146_v29  ;;  %v2065_v32 = vsel %vm143_vm1, %v2033_v9, 0.0  ;;  %vm2181_vm15 = vweird.f32 %v7558_v40 }
 0xa9f   :  { %v2347_v42 = vmul.f32 %v7574_v59, %v7574_v59  ;;  %v1998_v0 = vpop.xlane.xlu2 %1997  ;;  %2066 = vadd.xlane.f32.xlu1 %v2065_v32  ;;  %v2168_v36 = vmul.f32 0.5, %v2167_v21  ;;  %v2164_v29 = vsel %vm2163_vm9, %v7531_v24, %v2160_v25 }
 0xaa0   :  { %v2148_v8 = vmul.f32 0.5, %v2147_v51  ;;  %v2010_v15 = vmul.f32 %v1998_v0, %v6428_v57  ;;  %v2232_v41 = vmul.f32 %v7406_v3, %v2219_v35 }
 0xaa1   :  { %v2359_v56 = vmul.f32 %v2347_v42, %v7574_v59  ;;  %v2169_v39 = vsub.f32 1.5, %v2168_v36 }
 0xaa2   :  { %v7587_v34 = vpop.eup %6057  ;;  %v2149_v50 = vsub.f32 1.5, %v2148_v8  ;;  %v7590_v19 = vsub.f32 %v7468_v13, %v2010_v15  ;;  %v2245_v22 = vadd.f32 %v7416_v58, %v2232_v41 }
 0xaa3   :  { %v2371_v23 = vmul.f32 0.044715, %v2359_v56  ;;  %v2176_v27 = vmul.f32 %v7587_v34, %v7558_v40  ;;  %v2170_v49 = vmul.f32 %v7555_v10, %v2169_v39  ;;  %vm2182_vm14 = vweird.f32 %v7587_v34 }
 0xaa4   :  { %v2150_v62 = vmul.f32 %v6056_v63, %v2149_v50  ;;  %v2314_v43 = vpop.f32.mrf.mxu3  ;;  %v2034_v52 = vmul.f32 %v7590_v19, %v7590_v19  ;;  %5657 = vmatmul.msk.f32.gmra.mxu3 %vm143_vm1, %v2245_v22  ;;  %vm2183_vm2 = vmor %vm2181_vm15, %vm2182_vm14 }
 0xaa5   :  { %v2383_v1 = vadd.f32 %v2371_v23, %v7574_v59  ;;  %v2315_v30 = vadd.f32 %v2314_v43, %v7566_v18  ;;  %v2177_v12 = vmul.f32 %v7587_v34, %v2176_v27  ;;  %v2174_v15 = vsel %vm2173_vm12, %v7555_v10, %v2170_v49 }
 0xaa6   :  { %v2154_v16 = vsel %vm2153_vm7, %v6056_v63, %v2150_v62  ;;  %v2068_v61 = vsel %vm143_vm1, %v2034_v52, 0.0  ;;  %v2221_v63 = vmul.f32 %v2164_v29, %v7401_v45  ;;  %v2222_v25 = vmul.f32 %v2174_v15, %v7430_v7 }
 0xaa7   :  { %v2220_v2 = vmul.f32 %v2154_v16, %v7427_v47  ;;  %v2395_v38 = vmul.f32 0.7978846, %v2383_v1  ;;  %v2348_v48 = vmul.f32 %v2315_v30, %v2315_v30  ;;  %2069 = vadd.xlane.f32.xlu2 %v2068_v61  ;;  %v2178_v47 = vmul.f32 0.5, %v2177_v12 }
 0xaa8   :  { %v2234_v45 = vmul.f32 %v7406_v3, %v2221_v63  ;;  %v2235_v43 = vmul.f32 %v7406_v3, %v2222_v25 }
 0xaa9   :  { %6059 = vtanh.f32 %v2395_v38  ;;  %v2360_v35 = vmul.f32 %v2348_v48, %v2315_v30  ;;  %v2233_v4 = vmul.f32 %v7406_v3, %v2220_v2  ;;  %v2179_v41 = vsub.f32 1.5, %v2178_v47 }
 0xaaa   :  { %v2247_v36 = vadd.f32 %v7416_v58, %v2234_v45 }
 0xaab   :  { %v2372_v51 = vmul.f32 0.044715, %v2360_v35  ;;  %v2246_v9 = vadd.f32 %v7416_v58, %v2233_v4  ;;  %v2180_v28 = vmul.f32 %v7587_v34, %v2179_v41 }
 0xaac   :  { %v2317_v21 = vpop.f32.mrf.mxu3 }
 0xaad   :  { %v2318_v24 = vadd.f32 %v2317_v21, %v7566_v18  ;;  %5658 = vmatmul.msk.f32.gmra.mxu3 %vm143_vm1, %v2246_v9  ;;  %v2384_v42 = vadd.f32 %v2372_v51, %v2315_v30  ;;  %v2184_v52 = vsel %vm2183_vm2, %v7587_v34, %v2180_v28 }
 0xaae   :  { %v2223_v61 = vmul.f32 %v2184_v52, %v7450_v17 }
 0xaaf   :  { %v6060_v0 = vpop.eup %6059  ;;  %v2349_v8 = vmul.f32 %v2318_v24, %v2318_v24  ;;  %v2396_v32 = vmul.f32 0.7978846, %v2384_v42 }
 0xab0   :  { %v2419_v56 = vadd.f32 1.0, %v6060_v0  ;;  %v2236_v38 = vmul.f32 %v7406_v3, %v2223_v61 }
 0xab1   :  { %v2361_v50 = vmul.f32 %v2349_v8, %v2318_v24  ;;  %6061 = vtanh.f32 %v2396_v32 }
 0xab2   :  { %v2431_v22 = vmul.f32 0.5, %v2419_v56  ;;  %v2249_v39 = vadd.f32 %v7416_v58, %v2236_v38 }
 0xab3   :  { %v2373_v23 = vmul.f32 0.044715, %v2361_v50 }
 0xab4   :  { %v2443_v62 = vmul.f32 %v2431_v22, %v7574_v59  ;;  %v2248_v59 = vadd.f32 %v7416_v58, %v2235_v43 }
 0xab5   :  { %5659 = vmatmul.msk.f32.gmra.mxu3 %vm143_vm1, %v2247_v36  ;;  %v2385_v27 = vadd.f32 %v2373_v23, %v2318_v24 }
 0xab6   :  { %2487 = vmatmul.f32.vlgmr.msra.gmra.mxu0 %v2443_v62 }
 0xab7   :  { %v6062_v10 = vpop.eup %6061  ;;  %v2397_v7 = vmul.f32 0.7978846, %v2385_v27 }
 0xab8   :  { %v2420_v1 = vadd.f32 1.0, %v6062_v10 }
 0xab9   :  { %6063 = vtanh.f32 %v2397_v7 }
 0xaba   :  { %v2432_v16 = vmul.f32 0.5, %v2420_v1 }
 0xabc   :  { %v2444_v2 = vmul.f32 %v2432_v16, %v2315_v30 }
 0xabd   :  { %5660 = vmatmul.msk.f32.gmra.mxu3 %vm143_vm1, %v2248_v59 }
 0xabe   :  { %2490 = vmatmul.f32.gmra.mxu0 %v2444_v2 }
 0xabf   :  { %v6064_v40 = vpop.eup %6063 }
 0xac0   :  { %v2421_v48 = vadd.f32 1.0, %v6064_v40 }
 0xac2   :  { %v2433_v29 = vmul.f32 0.5, %v2421_v48 }
 0xac4   :  { %v2445_v12 = vmul.f32 %v2433_v29, %v2318_v24 }
 0xac5   :  { %5661 = vmatmul.msk.f32.gmra.mxu3 %vm143_vm1, %v2249_v39 }
 0xac6   :  { %2493 = vmatmul.f32.gmra.mxu0 %v2445_v12 }
 0xb0b   :  { %v2064_v34 = vpop.xlane.xlu0 %2063 }
 0xb0c   :  { %v2080_v17 = vmul.f32 %v2064_v34, %v6428_v57 }
 0xb0e   :  { %v2092_v35 = vadd.f32 1e-06, %v2080_v17 }
 0xb10   :  { %6065 = vrsqrt.f32 %v2092_v35  ;;  %vm2191_vm4 = vweird.f32 %v2092_v35 }
 0xb12   :  { %v2067_v30 = vpop.xlane.xlu1 %2066 }
 0xb13   :  { %v2081_v4 = vmul.f32 %v2067_v30, %v6428_v57 }
 0xb15   :  { %v2093_v51 = vadd.f32 1e-06, %v2081_v4 }
 0xb16   :  { %v6066_v63 = vpop.eup %6065 }
 0xb17   :  { %v2186_v9 = vmul.f32 %v6066_v63, %v2092_v35  ;;  %6067 = vrsqrt.f32 %v2093_v51  ;;  %vm2192_vm3 = vweird.f32 %v6066_v63  ;;  %vm2201_vm8 = vweird.f32 %v2093_v51 }
 0xb18   :  { %vm2193_vm6 = vmor %vm2191_vm4, %vm2192_vm3 }
 0xb19   :  { %v2187_v49 = vmul.f32 %v6066_v63, %v2186_v9  ;;  %v7653_v9 = vld [vmem:[%s9283_s2 + $0x258] ss:$0 sm:$0xff] }
 0xb1a   :  { %v2070_v47 = vpop.xlane.xlu2 %2069 }
 0xb1b   :  { %v2082_v21 = vmul.f32 %v2070_v47, %v6428_v57  ;;  %v2188_v24 = vmul.f32 0.5, %v2187_v49 }
 0xb1d   :  { %v2094_v42 = vadd.f32 1e-06, %v2082_v21  ;;  %v2189_v0 = vsub.f32 1.5, %v2188_v24  ;;  %v6068_v8 = vpop.eup %6067 }
 0xb1e   :  { %v2196_v32 = vmul.f32 %v6068_v8, %v2093_v51  ;;  %vm2202_vm7 = vweird.f32 %v6068_v8 }
 0xb1f   :  { %6069 = vrsqrt.f32 %v2094_v42  ;;  %v2190_v45 = vmul.f32 %v6066_v63, %v2189_v0  ;;  %v2320_v15 = vpop.f32.mrf.mxu3  ;;  %vm2203_vm9 = vmor %vm2201_vm8, %vm2202_vm7  ;;  %vm2211_vm11 = vweird.f32 %v2094_v42 }
 0xb20   :  { %v2321_v41 = vadd.f32 %v2320_v15, %v7566_v18  ;;  %v2197_v50 = vmul.f32 %v6068_v8, %v2196_v32 }
 0xb21   :  { %v2194_v56 = vsel %vm2193_vm6, %v6066_v63, %v2190_v45 }
 0xb22   :  { %v2224_v22 = vmul.f32 %v2194_v56, %v7535_v46  ;;  %v2350_v25 = vmul.f32 %v2321_v41, %v2321_v41  ;;  %v2198_v23 = vmul.f32 0.5, %v2197_v50 }
 0xb24   :  { %v2362_v28 = vmul.f32 %v2350_v25, %v2321_v41  ;;  %v2237_v62 = vmul.f32 %v7406_v3, %v2224_v22  ;;  %v2199_v27 = vsub.f32 1.5, %v2198_v23 }
 0xb25   :  { %v6070_v36 = vpop.eup %6069 }
 0xb26   :  { %v2206_v10 = vmul.f32 %v6070_v36, %v2094_v42  ;;  %v2374_v43 = vmul.f32 0.044715, %v2362_v28  ;;  %v2250_v7 = vadd.f32 %v7416_v58, %v2237_v62  ;;  %v2200_v52 = vmul.f32 %v6068_v8, %v2199_v27 }
 0xb27   :  { %v2323_v16 = vpop.f32.mrf.mxu3  ;;  %vm2212_vm10 = vweird.f32 %v6070_v36 }
 0xb28   :  { %v2207_v1 = vmul.f32 %v6070_v36, %v2206_v10  ;;  %v2324_v61 = vadd.f32 %v2323_v16, %v7566_v18  ;;  %5662 = vmatmul.msk.f32.gmra.mxu3 %vm143_vm1, %v2250_v7  ;;  %v2386_v46 = vadd.f32 %v2374_v43, %v2321_v41  ;;  %v2204_v59 = vsel %vm2203_vm9, %v6068_v8, %v2200_v52  ;;  %vm2213_vm12 = vmor %vm2211_vm11, %vm2212_vm10 }
 0xb29   :  { %v2225_v40 = vmul.f32 %v2204_v59, %v7561_v31 }
 0xb2a   :  { %v2208_v2 = vmul.f32 0.5, %v2207_v1  ;;  %v2351_v38 = vmul.f32 %v2324_v61, %v2324_v61  ;;  %v2398_v48 = vmul.f32 0.7978846, %v2386_v46 }
 0xb2b   :  { %v2238_v12 = vmul.f32 %v7406_v3, %v2225_v40 }
 0xb2c   :  { %v2209_v29 = vsub.f32 1.5, %v2208_v2  ;;  %v2363_v39 = vmul.f32 %v2351_v38, %v2324_v61  ;;  %6071 = vtanh.f32 %v2398_v48 }
 0xb2d   :  { %v2251_v35 = vadd.f32 %v7416_v58, %v2238_v12 }
 0xb2e   :  { %v2210_v34 = vmul.f32 %v6070_v36, %v2209_v29  ;;  %v2375_v17 = vmul.f32 0.044715, %v2363_v39 }
 0xb30   :  { %v2214_v30 = vsel %vm2213_vm12, %v6070_v36, %v2210_v34  ;;  %v2326_v4 = vpop.f32.mrf.mxu3  ;;  %5663 = vmatmul.msk.f32.gmra.mxu3 %vm143_vm1, %v2251_v35  ;;  %v2387_v51 = vadd.f32 %v2375_v17, %v2324_v61 }
 0xb31   :  { %v2226_v63 = vmul.f32 %v2214_v30, %v7590_v19  ;;  %v2327_v31 = vadd.f32 %v2326_v4, %v7566_v18 }
 0xb32   :  { %v6072_v49 = vpop.eup %6071  ;;  %v2399_v42 = vmul.f32 0.7978846, %v2387_v51 }
 0xb33   :  { %v2352_v47 = vmul.f32 %v2327_v31, %v2327_v31  ;;  %v2488_v21 = vpop.f32.mrf.mxu0  ;;  %v2239_v24 = vmul.f32 %v7406_v3, %v2226_v63  ;;  %v2422_v8 = vadd.f32 1.0, %v6072_v49 }
 0xb34   :  { %v2524_v0 = vadd.f32 %v2488_v21, %v7294_v6  ;;  %6073 = vtanh.f32 %v2399_v42 }
 0xb35   :  { %v2364_v19 = vmul.f32 %v2352_v47, %v2327_v31  ;;  %v2252_v45 = vadd.f32 %v7416_v58, %v2239_v24  ;;  %v2434_v15 = vmul.f32 0.5, %v2422_v8 }
 0xb36   :  { %v7659_v32 = vadd.f32 %v7653_v9, %v2524_v0 }
 0xb37   :  { %v2376_v56 = vmul.f32 0.044715, %v2364_v19  ;;  %v2446_v22 = vmul.f32 %v2434_v15, %v2321_v41 }
 0xb38   :  { %v2329_v50 = vpop.f32.mrf.mxu3  ;;  %v2552_v25 = vsel %vm143_vm1, %v7659_v32, 0.0  ;;  %5664 = vmatmul.msk.f32.gmra.mxu3 %vm143_vm1, %v2252_v45 }
 0xb39   :  { %v2330_v3 = vadd.f32 %v2329_v50, %v7566_v18  ;;  %2553 = vadd.xlane.f32.xlu0 %v2552_v25  ;;  %v2388_v6 = vadd.f32 %v2376_v56, %v2327_v31  ;;  %2496 = vmatmul.f32.gmra.mxu0 %v2446_v22 }
 0xb3a   :  { %v6074_v23 = vpop.eup %6073 }
 0xb3b   :  { %v2353_v58 = vmul.f32 %v2330_v3, %v2330_v3  ;;  %v2491_v36 = vpop.f32.mrf.mxu0  ;;  %v2400_v28 = vmul.f32 0.7978846, %v2388_v6  ;;  %v2423_v27 = vadd.f32 1.0, %v6074_v23 }
 0xb3c   :  { %v2525_v62 = vadd.f32 %v2491_v36, %v7301_v20 }
 0xb3d   :  { %v2365_v10 = vmul.f32 %v2353_v58, %v2330_v3  ;;  %6075 = vtanh.f32 %v2400_v28  ;;  %v2435_v43 = vmul.f32 0.5, %v2423_v27 }
 0xb3e   :  { %v7667_v41 = vadd.f32 %v7653_v9, %v2525_v62 }
 0xb3f   :  { %v2377_v7 = vmul.f32 0.044715, %v2365_v10  ;;  %v2447_v16 = vmul.f32 %v2435_v43, %v2324_v61 }
 0xb40   :  { %v2332_v52 = vpop.f32.mrf.mxu3  ;;  %v2555_v1 = vsel %vm143_vm1, %v7667_v41, 0.0 }
 0xb41   :  { %v2333_v46 = vadd.f32 %v2332_v52, %v7566_v18  ;;  %2556 = vadd.xlane.f32.xlu1 %v2555_v1  ;;  %v2389_v59 = vadd.f32 %v2377_v7, %v2330_v3  ;;  %2499 = vmatmul.f32.gmra.mxu0 %v2447_v16 }
 0xb43   :  { %v6076_v2 = vpop.eup %6075  ;;  %v2354_v20 = vmul.f32 %v2333_v46, %v2333_v46  ;;  %v2494_v40 = vpop.f32.mrf.mxu0  ;;  %v2401_v38 = vmul.f32 0.7978846, %v2389_v59 }
 0xb44   :  { %v2526_v48 = vadd.f32 %v2494_v40, %v7307_v54  ;;  %v2424_v29 = vadd.f32 1.0, %v6076_v2 }
 0xb45   :  { %v2366_v39 = vmul.f32 %v2354_v20, %v2333_v46  ;;  %6077 = vtanh.f32 %v2401_v38 }
 0xb46   :  { %v7674_v12 = vadd.f32 %v7653_v9, %v2526_v48  ;;  %v2436_v34 = vmul.f32 0.5, %v2424_v29 }
 0xb47   :  { %v2378_v17 = vmul.f32 0.044715, %v2366_v39 }
 0xb48   :  { %v2335_v61 = vpop.f32.mrf.mxu3  ;;  %v2558_v35 = vsel %vm143_vm1, %v7674_v12, 0.0  ;;  %v2448_v30 = vmul.f32 %v2436_v34, %v2327_v31 }
 0xb49   :  { %v2336_v4 = vadd.f32 %v2335_v61, %v7566_v18  ;;  %2559 = vadd.xlane.f32.xlu2 %v2558_v35  ;;  %v2390_v63 = vadd.f32 %v2378_v17, %v2333_v46 }
 0xb4a   :  { %2502 = vmatmul.f32.gmra.mxu0 %v2448_v30 }
 0xb4b   :  { %v6078_v51 = vpop.eup %6077  ;;  %v2355_v54 = vmul.f32 %v2336_v4, %v2336_v4  ;;  %v2402_v49 = vmul.f32 0.7978846, %v2390_v63 }
 0xb4c   :  { %v2425_v47 = vadd.f32 1.0, %v6078_v51 }
 0xb4d   :  { %v2367_v21 = vmul.f32 %v2355_v54, %v2336_v4  ;;  %6079 = vtanh.f32 %v2402_v49 }
 0xb4e   :  { %v2437_v24 = vmul.f32 0.5, %v2425_v47 }
 0xb4f   :  { %v2379_v42 = vmul.f32 0.044715, %v2367_v21 }
 0xb50   :  { %v2449_v0 = vmul.f32 %v2437_v24, %v2330_v3 }
 0xb51   :  { %v2391_v8 = vadd.f32 %v2379_v42, %v2336_v4 }
 0xb52   :  { %2505 = vmatmul.f32.gmra.mxu0 %v2449_v0 }
 0xb53   :  { %v6080_v19 = vpop.eup %6079  ;;  %v2403_v45 = vmul.f32 0.7978846, %v2391_v8 }
 0xb54   :  { %v2426_v15 = vadd.f32 1.0, %v6080_v19 }
 0xb55   :  { %6081 = vtanh.f32 %v2403_v45 }
 0xb56   :  { %v2438_v31 = vmul.f32 0.5, %v2426_v15 }
 0xb58   :  { %v2450_v56 = vmul.f32 %v2438_v31, %v2333_v46 }
 0xb5a   :  { %2508 = vmatmul.f32.gmra.mxu0 %v2450_v56 }
 0xb5b   :  { %v6082_v50 = vpop.eup %6081 }
 0xb5c   :  { %v2427_v22 = vadd.f32 1.0, %v6082_v50 }
 0xb5e   :  { %v2439_v25 = vmul.f32 0.5, %v2427_v22 }
 0xb60   :  { %v2451_v6 = vmul.f32 %v2439_v25, %v2336_v4 }
 0xb62   :  { %2511 = vmatmul.f32.gmra.mxu0 %v2451_v6 }
 0xbab   :  { %v2338_v23 = vpop.f32.mrf.mxu3 }
 0xbac   :  { %v2554_v58 = vpop.xlane.xlu0 %2553  ;;  %v2339_v36 = vadd.f32 %v2338_v23, %v7566_v18 }
 0xbad   :  { %v2588_v3 = vmul.f32 %v2554_v58, %v6428_v57 }
 0xbae   :  { %v2356_v28 = vmul.f32 %v2339_v36, %v2339_v36 }
 0xbaf   :  { %v7682_v62 = vsub.f32 %v7659_v32, %v2588_v3 }
 0xbb0   :  { %v2368_v27 = vmul.f32 %v2356_v28, %v2339_v36 }
 0xbb1   :  { %v2612_v10 = vmul.f32 %v7682_v62, %v7682_v62 }
 0xbb2   :  { %v2380_v43 = vmul.f32 0.044715, %v2368_v27 }
 0xbb3   :  { %v2624_v7 = vsel %vm143_vm1, %v2612_v10, 0.0  ;;  %v2341_v52 = vpop.f32.mrf.mxu3 }
 0xbb4   :  { %v2557_v1 = vpop.xlane.xlu1 %2556  ;;  %2625 = vadd.xlane.f32.xlu0 %v2624_v7  ;;  %v2342_v16 = vadd.f32 %v2341_v52, %v7566_v18  ;;  %v2392_v59 = vadd.f32 %v2380_v43, %v2339_v36 }
 0xbb5   :  { %v2589_v46 = vmul.f32 %v2557_v1, %v6428_v57 }
 0xbb6   :  { %v2357_v2 = vmul.f32 %v2342_v16, %v2342_v16  ;;  %v2497_v40 = vpop.f32.mrf.mxu0  ;;  %v2404_v38 = vmul.f32 0.7978846, %v2392_v59 }
 0xbb7   :  { %v7690_v20 = vsub.f32 %v7667_v41, %v2589_v46  ;;  %v2527_v48 = vadd.f32 %v2497_v40, %v7327_v53 }
 0xbb8   :  { %v2369_v29 = vmul.f32 %v2357_v2, %v2342_v16  ;;  %6083 = vtanh.f32 %v2404_v38 }
 0xbb9   :  { %v2613_v39 = vmul.f32 %v7690_v20, %v7690_v20  ;;  %v7696_v34 = vadd.f32 %v7653_v9, %v2527_v48 }
 0xbba   :  { %v2381_v17 = vmul.f32 0.044715, %v2369_v29 }
 0xbbb   :  { %v2627_v61 = vsel %vm143_vm1, %v2613_v39, 0.0  ;;  %v2344_v35 = vpop.f32.mrf.mxu3  ;;  %v2561_v4 = vsel %vm143_vm1, %v7696_v34, 0.0 }
 0xbbc   :  { %2628 = vadd.xlane.f32.xlu1 %v2627_v61  ;;  %v2560_v30 = vpop.xlane.xlu2 %2559  ;;  %v2345_v63 = vadd.f32 %v2344_v35, %v7566_v18  ;;  %2562 = vadd.xlane.f32.xlu0 %v2561_v4  ;;  %v2393_v51 = vadd.f32 %v2381_v17, %v2342_v16  ;;  %v2845_v17 = vld [vmem:[%s9283_s2 + $0x288] sm:$0xff]  ;;  %v2951_v35 = vld [vmem:[%s9283_s2 + $0x2a0] sm:$0xff]  ;;  %v2843_v4 = vld [vmem:[%s9283_s2 + $0x278] sm:$0xff] }
 0xbbd   :  { %v2590_v53 = vmul.f32 %v2560_v30, %v6428_v57  ;;  %v3011_v61 = vld [vmem:[%s9283_s2 + $0x2c8] sm:$0xff]  ;;  %2896 = vmatpush.msra.mxu1 %v2845_v17  ;;  %v3010_v30 = vld [vmem:[%s9283_s2 + $0x2c0] sm:$0xff] }
 0xbbe   :  { %v6084_v54 = vpop.eup %6083  ;;  %v2358_v49 = vmul.f32 %v2345_v63, %v2345_v63  ;;  %v2500_v21 = vpop.f32.mrf.mxu0  ;;  %v2405_v24 = vmul.f32 0.7978846, %v2393_v51  ;;  %3026 = vmatpush.msra.mxu3 %v3011_v61  ;;  %v2842_v51 = vld [vmem:[%s9283_s2 + $0x270] sm:$0xff] }
 0xbbf   :  { %v7704_v47 = vsub.f32 %v7674_v12, %v2590_v53  ;;  %v2528_v42 = vadd.f32 %v2500_v21, %v7341_v33  ;;  %v2428_v0 = vadd.f32 1.0, %v6084_v54  ;;  %v3009_v53 = vld [vmem:[%s9283_s2 + $0x2b8] sm:$0xff]  ;;  %v2949_v54 = vld [vmem:[%s9283_s2 + $0x290] sm:$0xff] }
 0xbc0   :  { %v2370_v8 = vmul.f32 %v2358_v49, %v2345_v63  ;;  %6085 = vtanh.f32 %v2405_v24  ;;  %3027 = vmatpush.msra.mxu3 %v3010_v30  ;;  %v3008_v49 = vld [vmem:[%s9283_s2 + $0x2b0] sm:$0xff] }
 0xbc1   :  { %v2614_v19 = vmul.f32 %v7704_v47, %v7704_v47  ;;  %v7710_v18 = vadd.f32 %v7653_v9, %v2528_v42  ;;  %v2440_v45 = vmul.f32 0.5, %v2428_v0 }
 0xbc2   :  { %v2382_v15 = vmul.f32 0.044715, %v2370_v8  ;;  %3028 = vmatpush.msra.mxu3 %v3009_v53 }
 0xbc3   :  { %v2630_v31 = vsel %vm143_vm1, %v2614_v19, 0.0  ;;  %v2564_v56 = vsel %vm143_vm1, %v7710_v18, 0.0  ;;  %v2452_v50 = vmul.f32 %v2440_v45, %v2339_v36 }
 0xbc4   :  { %2631 = vadd.xlane.f32.xlu2 %v2630_v31  ;;  %2565 = vadd.xlane.f32.xlu1 %v2564_v56  ;;  %v2394_v33 = vadd.f32 %v2382_v15, %v2345_v63 }
 0xbc5   :  { %2514 = vmatmul.f32.gmra.mxu0 %v2452_v50  ;;  %3029 = vmatpush.msra.mxu3 %v3008_v49 }
 0xbc6   :  { %v6086_v22 = vpop.eup %6085  ;;  %v2406_v6 = vmul.f32 0.7978846, %v2394_v33 }
 0xbc7   :  { %v2503_v25 = vpop.f32.mrf.mxu0  ;;  %v2429_v58 = vadd.f32 1.0, %v6086_v22 }
 0xbc8   :  { %v2529_v23 = vadd.f32 %v2503_v25, %v7356_v55  ;;  %6087 = vtanh.f32 %v2406_v6 }
 0xbc9   :  { %v2441_v28 = vmul.f32 0.5, %v2429_v58 }
 0xbca   :  { %v7717_v3 = vadd.f32 %v7653_v9, %v2529_v23 }
 0xbcb   :  { %v2453_v10 = vmul.f32 %v2441_v28, %v2342_v16 }
 0xbcc   :  { %v2567_v27 = vsel %vm143_vm1, %v7717_v3, 0.0 }
 0xbcd   :  { %2568 = vadd.xlane.f32.xlu2 %v2567_v27  ;;  %2517 = vmatmul.f32.gmra.mxu0 %v2453_v10 }
 0xbce   :  { %v6088_v36 = vpop.eup %6087 }
 0xbcf   :  { %v2506_v43 = vpop.f32.mrf.mxu0  ;;  %v2430_v52 = vadd.f32 1.0, %v6088_v36 }
 0xbd0   :  { %v2530_v7 = vadd.f32 %v2506_v43, %v7344_v14 }
 0xbd1   :  { %v2442_v55 = vmul.f32 0.5, %v2430_v52 }
 0xbd2   :  { %v7723_v1 = vadd.f32 %v7653_v9, %v2530_v7 }
 0xbd3   :  { %v2454_v46 = vmul.f32 %v2442_v55, %v2345_v63  ;;  %v2950_v63 = vld [vmem:[%s9283_s2 + $0x298] sm:$0xff] }
 0xbd4   :  { %v2570_v59 = vsel %vm143_vm1, %v7723_v1, 0.0 }
 0xbd5   :  { %2571 = vadd.xlane.f32.xlu0 %v2570_v59  ;;  %2520 = vmatmul.f32.gmra.mxu0 %v2454_v46  ;;  %v7792_v46 = vld [vmem:[%s9283_s2 + $0x260] ss:$0 sm:$0xff] }
 0xbd7   :  { %v2509_v2 = vpop.f32.mrf.mxu0 }
 0xbd8   :  { %v2531_v16 = vadd.f32 %v2509_v2, %v7359_v37  ;;  %v2952_v37 = vld [vmem:[%s9283_s2 + $0x2a8] sm:$0xff] }
 0xbd9   :  { %2967 = vmatpush.msrb.mxu2 %v2952_v37 }
 0xbda   :  { %v7729_v40 = vadd.f32 %v7653_v9, %v2531_v16 }
 0xbdb   :  { %2968 = vmatpush.msrb.mxu2 %v2951_v35 }
 0xbdc   :  { %v2573_v14 = vsel %vm143_vm1, %v7729_v40, 0.0 }
 0xbdd   :  { %2574 = vadd.xlane.f32.xlu1 %v2573_v14  ;;  %2969 = vmatpush.msrb.mxu2 %v2950_v63  ;;  %v7799_v14 = vld [vmem:[%s9283_s2 + $0x268] ss:$0 sm:$0xff] }
 0xbdf   :  { %v2512_v38 = vpop.f32.mrf.mxu0  ;;  %2970 = vmatpush.msrb.mxu2 %v2949_v54 }
 0xbe0   :  { %v2532_v48 = vadd.f32 %v2512_v38, %v7367_v60  ;;  %v2844_v60 = vld [vmem:[%s9283_s2 + $0x280] sm:$0xff] }
 0xbe1   :  { %2897 = vmatpush.msra.mxu1 %v2844_v60 }
 0xbe2   :  { %v7735_v29 = vadd.f32 %v7653_v9, %v2532_v48 }
 0xbe3   :  { %2898 = vmatpush.msra.mxu1 %v2843_v4 }
 0xbe4   :  { %v2576_v39 = vsel %vm143_vm1, %v7735_v29, 0.0 }
 0xbe5   :  { %2577 = vadd.xlane.f32.xlu2 %v2576_v39  ;;  %2899 = vmatpush.msra.mxu1 %v2842_v51 }
 0xc27   :  { %v2626_v21 = vpop.xlane.xlu0 %2625 }
 0xc28   :  { %v2660_v24 = vmul.f32 %v2626_v21, %v6428_v57 }
 0xc2a   :  { %v2672_v42 = vadd.f32 1e-06, %v2660_v24 }
 0xc2c   :  { %6089 = vrsqrt.f32 %v2672_v42  ;;  %vm2690_vm15 = vweird.f32 %v2672_v42 }
 0xc2f   :  { %v2629_v0 = vpop.xlane.xlu1 %2628  ;;  %v2563_v19 = vpop.xlane.xlu0 %2562 }
 0xc30   :  { %v2661_v8 = vmul.f32 %v2629_v0, %v6428_v57  ;;  %v2591_v45 = vmul.f32 %v2563_v19, %v6428_v57 }
 0xc32   :  { %v6090_v15 = vpop.eup %6089  ;;  %v2673_v31 = vadd.f32 1e-06, %v2661_v8  ;;  %v7779_v50 = vsub.f32 %v7696_v34, %v2591_v45 }
 0xc33   :  { %v2685_v56 = vmul.f32 %v6090_v15, %v2672_v42  ;;  %vm2691_vm14 = vweird.f32 %v6090_v15 }
 0xc34   :  { %6091 = vrsqrt.f32 %v2673_v31  ;;  %v2615_v22 = vmul.f32 %v7779_v50, %v7779_v50  ;;  %vm2692_vm2 = vmor %vm2690_vm15, %vm2691_vm14  ;;  %vm2700_vm4 = vweird.f32 %v2673_v31 }
 0xc35   :  { %v2686_v33 = vmul.f32 %v6090_v15, %v2685_v56 }
 0xc36   :  { %v2633_v23 = vsel %vm143_vm1, %v2615_v22, 0.0 }
 0xc37   :  { %v2687_v25 = vmul.f32 0.5, %v2686_v33  ;;  %v2632_v6 = vpop.xlane.xlu2 %2631  ;;  %v2566_v28 = vpop.xlane.xlu1 %2565  ;;  %2634 = vadd.xlane.f32.xlu0 %v2633_v23 }
 0xc38   :  { %v2662_v58 = vmul.f32 %v2632_v6, %v6428_v57  ;;  %v2592_v10 = vmul.f32 %v2566_v28, %v6428_v57 }
 0xc39   :  { %v2688_v27 = vsub.f32 1.5, %v2687_v25 }
 0xc3a   :  { %v6092_v36 = vpop.eup %6091  ;;  %v2674_v43 = vadd.f32 1e-06, %v2662_v58  ;;  %v7787_v55 = vsub.f32 %v7710_v18, %v2592_v10 }
 0xc3b   :  { %v2689_v7 = vmul.f32 %v6090_v15, %v2688_v27  ;;  %v2695_v52 = vmul.f32 %v6092_v36, %v2673_v31  ;;  %vm2701_vm3 = vweird.f32 %v6092_v36 }
 0xc3c   :  { %6093 = vrsqrt.f32 %v2674_v43  ;;  %v2616_v16 = vmul.f32 %v7787_v55, %v7787_v55  ;;  %vm2702_vm6 = vmor %vm2700_vm4, %vm2701_vm3  ;;  %vm2710_vm8 = vweird.f32 %v2674_v43 }
 0xc3d   :  { %v2693_v59 = vsel %vm2692_vm2, %v6090_v15, %v2689_v7  ;;  %v2696_v2 = vmul.f32 %v6092_v36, %v2695_v52 }
 0xc3e   :  { %v2804_v38 = vmul.f32 %v2693_v59, %v7682_v62  ;;  %v2636_v39 = vsel %vm143_vm1, %v2616_v16, 0.0 }
 0xc3f   :  { %v2697_v48 = vmul.f32 0.5, %v2696_v2  ;;  %2637 = vadd.xlane.f32.xlu1 %v2636_v39 }
 0xc40   :  { %v2817_v37 = vmul.f32 %v7792_v46, %v2804_v38  ;;  %v2569_v17 = vpop.xlane.xlu2 %2568 }
 0xc41   :  { %v2698_v61 = vsub.f32 1.5, %v2697_v48  ;;  %v2593_v60 = vmul.f32 %v2569_v17, %v6428_v57 }
 0xc42   :  { %v6094_v35 = vpop.eup %6093  ;;  %v7806_v30 = vadd.f32 %v7799_v14, %v2817_v37  ;;  %v2515_v0 = vpop.f32.mrf.mxu0 }
 0xc43   :  { %v2699_v4 = vmul.f32 %v6092_v36, %v2698_v61  ;;  %v2705_v63 = vmul.f32 %v6094_v35, %v2674_v43  ;;  %v7809_v62 = vsub.f32 %v7717_v3, %v2593_v60  ;;  %vm2711_vm7 = vweird.f32 %v6094_v35 }
 0xc44   :  { %5665 = vmatmul.msk.f32.vlgmr.msra.gmra.mxu1 %vm143_vm1, %v7806_v30  ;;  %5677 = vmatmul.msk.f32.vlgmr.msrb.gmra.mxu2 %vm143_vm1, %v7806_v30  ;;  %vm2712_vm9 = vmor %vm2710_vm8, %vm2711_vm7  ;;  %v2533_v25 = vadd.f32 %v2515_v0, %v7434_v26 }
 0xc45   :  { %v2703_v53 = vsel %vm2702_vm6, %v6092_v36, %v2699_v4  ;;  %v2706_v51 = vmul.f32 %v6094_v35, %v2705_v63  ;;  %5689 = vmatmul.msk.f32.vlgmr.msra.gmra.mxu3 %vm143_vm1, %v7806_v30  ;;  %v2617_v54 = vmul.f32 %v7809_v62, %v7809_v62 }
 0xc46   :  { %v2805_v49 = vmul.f32 %v2703_v53, %v7690_v20  ;;  %v7846_v36 = vadd.f32 %v7653_v9, %v2533_v25 }
 0xc47   :  { %v2707_v21 = vmul.f32 0.5, %v2706_v51  ;;  %v2639_v24 = vsel %vm143_vm1, %v2617_v54, 0.0 }
 0xc48   :  { %v2818_v42 = vmul.f32 %v7792_v46, %v2805_v49  ;;  %2640 = vadd.xlane.f32.xlu2 %v2639_v24  ;;  %v2572_v8 = vpop.xlane.xlu0 %2571  ;;  %v2579_v52 = vsel %vm143_vm1, %v7846_v36, 0.0 }
 0xc49   :  { %v2708_v19 = vsub.f32 1.5, %v2707_v21  ;;  %v2594_v45 = vmul.f32 %v2572_v8, %v6428_v57 }
 0xc4a   :  { %v7824_v15 = vadd.f32 %v7799_v14, %v2818_v42  ;;  %v2518_v10 = vpop.f32.mrf.mxu0 }
 0xc4b   :  { %v2709_v31 = vmul.f32 %v6094_v35, %v2708_v19  ;;  %v7827_v56 = vsub.f32 %v7723_v1, %v2594_v45 }
 0xc4c   :  { %5666 = vmatmul.msk.f32.gmra.mxu1 %vm143_vm1, %v7824_v15  ;;  %5678 = vmatmul.msk.f32.gmra.mxu2 %vm143_vm1, %v7824_v15 }
 0xc4d   :  { %v2713_v20 = vsel %vm2712_vm9, %v6094_v35, %v2709_v31  ;;  %5690 = vmatmul.msk.f32.gmra.mxu3 %vm143_vm1, %v7824_v15  ;;  %v2618_v33 = vmul.f32 %v7827_v56, %v7827_v56 }
 0xc4e   :  { %v2806_v22 = vmul.f32 %v2713_v20, %v7704_v47  ;;  %v2534_v47 = vadd.f32 %v2518_v10, %v7454_v11 }
 0xc4f   :  { %v2642_v6 = vsel %vm143_vm1, %v2618_v33, 0.0 }
 0xc50   :  { %v2819_v23 = vmul.f32 %v7792_v46, %v2806_v22  ;;  %v2575_v58 = vpop.xlane.xlu1 %2574  ;;  %2643 = vadd.xlane.f32.xlu0 %v2642_v6  ;;  %v7865_v16 = vadd.f32 %v7653_v9, %v2534_v47 }
 0xc51   :  { %v2595_v28 = vmul.f32 %v2575_v58, %v6428_v57 }
 0xc52   :  { %v7843_v27 = vadd.f32 %v7799_v14, %v2819_v23  ;;  %v2521_v48 = vpop.f32.mrf.mxu0  ;;  %v2582_v17 = vsel %vm143_vm1, %v7865_v16, 0.0 }
 0xc53   :  { %v7849_v43 = vsub.f32 %v7729_v40, %v2595_v28  ;;  %v2535_v39 = vadd.f32 %v2521_v48, %v7468_v13 }
 0xc54   :  { %5667 = vmatmul.msk.f32.gmra.mxu1 %vm143_vm1, %v7843_v27  ;;  %5679 = vmatmul.msk.f32.gmra.mxu2 %vm143_vm1, %v7843_v27 }
 0xc55   :  { %5691 = vmatmul.msk.f32.gmra.mxu3 %vm143_vm1, %v7843_v27  ;;  %v2619_v26 = vmul.f32 %v7849_v43, %v7849_v43  ;;  %v7877_v61 = vadd.f32 %v7653_v9, %v2535_v39 }
 0xc57   :  { %v2645_v7 = vsel %vm143_vm1, %v2619_v26, 0.0  ;;  %v2585_v60 = vsel %vm143_vm1, %v7877_v61, 0.0 }
 0xc58   :  { %2646 = vadd.xlane.f32.xlu1 %v2645_v7  ;;  %v2578_v59 = vpop.xlane.xlu2 %2577  ;;  %2580 = vadd.xlane.f32.xlu0 %v2579_v52 }
 0xc59   :  { %v2596_v2 = vmul.f32 %v2578_v59, %v6428_v57 }
 0xc5b   :  { %v7868_v38 = vsub.f32 %v7735_v29, %v2596_v2 }
 0xc5d   :  { %v2620_v11 = vmul.f32 %v7868_v38, %v7868_v38 }
 0xc5f   :  { %v2648_v37 = vsel %vm143_vm1, %v2620_v11, 0.0 }
 0xc60   :  { %2649 = vadd.xlane.f32.xlu2 %v2648_v37  ;;  %2583 = vadd.xlane.f32.xlu1 %v2582_v17 }
 0xc68   :  { %2586 = vadd.xlane.f32.xlu2 %v2585_v60 }
 0xcaa   :  { %v2635_v35 = vpop.xlane.xlu0 %2634 }
 0xcab   :  { %v2663_v4 = vmul.f32 %v2635_v35, %v6428_v57 }
 0xcad   :  { %v2675_v63 = vadd.f32 1e-06, %v2663_v4 }
 0xcaf   :  { %6095 = vrsqrt.f32 %v2675_v63  ;;  %vm2720_vm11 = vweird.f32 %v2675_v63 }
 0xcb2   :  { %v2638_v13 = vpop.xlane.xlu1 %2637 }
 0xcb3   :  { %v2664_v53 = vmul.f32 %v2638_v13, %v6428_v57 }
 0xcb5   :  { %v6096_v51 = vpop.eup %6095  ;;  %v2676_v54 = vadd.f32 1e-06, %v2664_v53 }
 0xcb6   :  { %v2715_v49 = vmul.f32 %v6096_v51, %v2675_v63  ;;  %vm2721_vm10 = vweird.f32 %v6096_v51 }
 0xcb7   :  { %6097 = vrsqrt.f32 %v2676_v54  ;;  %vm2722_vm12 = vmor %vm2720_vm11, %vm2721_vm10  ;;  %vm2730_vm15 = vweird.f32 %v2676_v54 }
 0xcb8   :  { %v2716_v21 = vmul.f32 %v6096_v51, %v2715_v49 }
 0xcba   :  { %v2717_v24 = vmul.f32 0.5, %v2716_v21 }
 0xcbb   :  { %v2641_v9 = vpop.xlane.xlu2 %2640 }
 0xcbc   :  { %v2665_v42 = vmul.f32 %v2641_v9, %v6428_v57  ;;  %v2718_v0 = vsub.f32 1.5, %v2717_v24 }
 0xcbd   :  { %v6098_v8 = vpop.eup %6097 }
 0xcbe   :  { %v2677_v19 = vadd.f32 1e-06, %v2665_v42  ;;  %v2719_v45 = vmul.f32 %v6096_v51, %v2718_v0  ;;  %v2725_v31 = vmul.f32 %v6098_v8, %v2676_v54  ;;  %vm2731_vm14 = vweird.f32 %v6098_v8 }
 0xcbf   :  { %vm2732_vm2 = vmor %vm2730_vm15, %vm2731_vm14 }
 0xcc0   :  { %6099 = vrsqrt.f32 %v2677_v19  ;;  %v2723_v20 = vsel %vm2722_vm12, %v6096_v51, %v2719_v45  ;;  %v2726_v33 = vmul.f32 %v6098_v8, %v2725_v31  ;;  %vm2740_vm4 = vweird.f32 %v2677_v19 }
 0xcc1   :  { %v2807_v22 = vmul.f32 %v2723_v20, %v7779_v50 }
 0xcc2   :  { %v2727_v25 = vmul.f32 0.5, %v2726_v33 }
 0xcc3   :  { %v2644_v6 = vpop.xlane.xlu0 %2643  ;;  %v2820_v23 = vmul.f32 %v7792_v46, %v2807_v22 }
 0xcc4   :  { %v2666_v58 = vmul.f32 %v2644_v6, %v6428_v57  ;;  %v2728_v28 = vsub.f32 1.5, %v2727_v25 }
 0xcc5   :  { %v7888_v26 = vadd.f32 %v7799_v14, %v2820_v23 }
 0xcc6   :  { %v6100_v10 = vpop.eup %6099  ;;  %v2678_v47 = vadd.f32 1e-06, %v2666_v58  ;;  %v2729_v7 = vmul.f32 %v6098_v8, %v2728_v28 }
 0xcc7   :  { %v2735_v52 = vmul.f32 %v6100_v10, %v2677_v19  ;;  %v7890_v59 = vpop.f32.mrf.mxu2  ;;  %5668 = vmatmul.msk.f32.gmra.mxu1 %vm143_vm1, %v7888_v26  ;;  %5680 = vmatmul.msk.f32.gmra.mxu2 %vm143_vm1, %v7888_v26  ;;  %vm2741_vm3 = vweird.f32 %v6100_v10 }
 0xcc8   :  { %6101 = vrsqrt.f32 %v2678_v47  ;;  %v2733_v50 = vsel %vm2732_vm2, %v6098_v8, %v2729_v7  ;;  %5692 = vmatmul.msk.f32.gmra.mxu3 %vm143_vm1, %v7888_v26  ;;  %v7899_v11 = vpop.f32.mrf.mxu3  ;;  %vm2742_vm6 = vmor %vm2740_vm4, %vm2741_vm3  ;;  %vm2750_vm8 = vweird.f32 %v2678_v47 }
 0xcc9   :  { %v2736_v2 = vmul.f32 %v6100_v10, %v2735_v52  ;;  %v2808_v48 = vmul.f32 %v2733_v50, %v7787_v55 }
 0xccb   :  { %v2737_v39 = vmul.f32 0.5, %v2736_v2  ;;  %v2647_v37 = vpop.xlane.xlu1 %2646  ;;  %v2581_v17 = vpop.xlane.xlu0 %2580  ;;  %v2821_v60 = vmul.f32 %v7792_v46, %v2808_v48 }
 0xccc   :  { %v2667_v35 = vmul.f32 %v2647_v37, %v6428_v57  ;;  %v2597_v4 = vmul.f32 %v2581_v17, %v6428_v57  ;;  %v2901_v2 = vpop.f32.mrf.mxu1 }
 0xccd   :  { %v2738_v63 = vsub.f32 1.5, %v2737_v39  ;;  %v7905_v53 = vadd.f32 %v7799_v14, %v2821_v60 }
 0xcce   :  { %v6102_v13 = vpop.eup %6101  ;;  %v7907_v51 = vadd.f32 1e-06, %v2667_v35  ;;  %v7910_v55 = vsub.f32 %v7846_v36, %v2597_v4  ;;  %v7958_v35 = vld [vmem:[%s9283_s2 + $0x2d0] ss:$0 sm:$0xff] }
 0xccf   :  { %v2739_v54 = vmul.f32 %v6100_v10, %v2738_v63  ;;  %v2745_v49 = vmul.f32 %v6102_v13, %v2678_v47  ;;  %v2975_v21 = vpop.f32.mrf.mxu2  ;;  %5669 = vmatmul.msk.f32.gmra.mxu1 %vm143_vm1, %v7905_v53  ;;  %5681 = vmatmul.msk.f32.gmra.mxu2 %vm143_vm1, %v7905_v53  ;;  %vm2751_vm7 = vweird.f32 %v6102_v13 }
 0xcd0   :  { %6103 = vrsqrt.f32 %v7907_v51  ;;  %v2621_v24 = vmul.f32 %v7910_v55, %v7910_v55  ;;  %5693 = vmatmul.msk.f32.gmra.mxu3 %vm143_vm1, %v7905_v53  ;;  %v7924_v33 = vpop.f32.mrf.mxu3  ;;  %vm2752_vm9 = vmor %vm2750_vm8, %vm2751_vm7  ;;  %vm2760_vm11 = vweird.f32 %v7907_v51 }
 0xcd1   :  { %v2743_v9 = vsel %vm2742_vm6, %v6100_v10, %v2739_v54  ;;  %v2746_v42 = vmul.f32 %v6102_v13, %v2745_v49 }
 0xcd2   :  { %v2809_v0 = vmul.f32 %v2743_v9, %v7809_v62  ;;  %v2651_v8 = vsel %vm143_vm1, %v2621_v24, 0.0  ;;  %v7934_v62 = vld [vmem:[%s9283_s2 + $0x2d8] ss:$0 sm:$0xff] }
 0xcd3   :  { %v2747_v19 = vmul.f32 0.5, %v2746_v42  ;;  %v2650_v45 = vpop.xlane.xlu2 %2649  ;;  %v2584_v31 = vpop.xlane.xlu1 %2583  ;;  %2652 = vadd.xlane.f32.xlu0 %v2651_v8  ;;  %v2976_v54 = vadd.f32 %v7934_v62, %v2975_v21  ;;  %v2902_v8 = vadd.f32 %v7958_v35, %v2901_v2  ;;  %v7974_v21 = vld [vmem:[%s9283_s2 + $0x2e0] ss:$0 sm:$0xff] }
 0xcd4   :  { %v2822_v20 = vmul.f32 %v7792_v46, %v2809_v0  ;;  %v2668_v22 = vmul.f32 %v2650_v45, %v6428_v57  ;;  %v2598_v25 = vmul.f32 %v2584_v31, %v6428_v57  ;;  %v2973_v31 = vadd.f32 %v7934_v62, %v7890_v59 }
 0xcd5   :  { %v2748_v6 = vsub.f32 1.5, %v2747_v19 }
 0xcd6   :  { %v6104_v23 = vpop.eup %6103  ;;  %v7929_v58 = vadd.f32 %v7799_v14, %v2822_v20  ;;  %v7936_v28 = vadd.f32 1e-06, %v2668_v22  ;;  %v7939_v10 = vsub.f32 %v7865_v16, %v2598_v25 }
 0xcd7   :  { %v2749_v7 = vmul.f32 %v6102_v13, %v2748_v6  ;;  %v2755_v52 = vmul.f32 %v6104_v23, %v7907_v51  ;;  %v2978_v50 = vpop.f32.mrf.mxu2  ;;  %vm2761_vm10 = vweird.f32 %v6104_v23  ;;  %v2904_v51 = vpop.f32.mrf.mxu1 }
 0xcd8   :  { %6105 = vrsqrt.f32 %v7936_v28  ;;  %5670 = vmatmul.msk.f32.gmra.mxu1 %vm143_vm1, %v7929_v58  ;;  %v2979_v48 = vadd.f32 %v7934_v62, %v2978_v50  ;;  %5682 = vmatmul.msk.f32.gmra.mxu2 %vm143_vm1, %v7929_v58  ;;  %v2622_v39 = vmul.f32 %v7939_v10, %v7939_v10  ;;  %v3037_v42 = vpop.f32.mrf.mxu3  ;;  %vm2762_vm12 = vmor %vm2760_vm11, %vm2761_vm10  ;;  %vm2770_vm15 = vweird.f32 %v7936_v28 }
 0xcd9   :  { %v2753_v37 = vsel %vm2752_vm9, %v6102_v13, %v2749_v7  ;;  %v2756_v47 = vmul.f32 %v6104_v23, %v2755_v52  ;;  %5694 = vmatmul.msk.f32.gmra.mxu3 %vm143_vm1, %v7929_v58  ;;  %v3038_v6 = vadd.f32 %v7974_v21, %v3037_v42  ;;  %v2937_v52 = vmul.f32 0.25, %v2902_v8 }
 0xcda   :  { %v2810_v17 = vmul.f32 %v2753_v37, %v7827_v56  ;;  %v2654_v60 = vsel %vm143_vm1, %v2622_v39, 0.0  ;;  %5701 = vmatpush.xpose.msk.msrb.mxu0 %vm666_vm5, %v2979_v48  ;;  %v2905_v37 = vadd.f32 %v7958_v35, %v2904_v51 }
 0xcdb   :  { %v2757_v4 = vmul.f32 0.5, %v2756_v47  ;;  %2655 = vadd.xlane.f32.xlu1 %v2654_v60  ;;  %v2587_v63 = vpop.xlane.xlu2 %2586 }
 0xcdc   :  { %v2823_v13 = vmul.f32 %v7792_v46, %v2810_v17  ;;  %v2599_v49 = vmul.f32 %v2587_v63, %v6428_v57 }
 0xcdd   :  { %v2758_v24 = vsub.f32 1.5, %v2757_v4 }
 0xcde   :  { %v6106_v56 = vpop.eup %6105  ;;  %v7964_v9 = vadd.f32 %v7799_v14, %v2823_v13  ;;  %v7967_v0 = vsub.f32 %v7877_v61, %v2599_v49  ;;  %5702 = vmatpush.xpose.msk.msrb.mxu0 %vm666_vm5, %v2976_v54 }
 0xcdf   :  { %v2759_v19 = vmul.f32 %v6104_v23, %v2758_v24  ;;  %v2765_v45 = vmul.f32 %v6106_v56, %v7936_v28  ;;  %vm2771_vm14 = vweird.f32 %v6106_v56  ;;  %v2907_v60 = vpop.f32.mrf.mxu1 }
 0xce0   :  { %5671 = vmatmul.msk.f32.gmra.mxu1 %vm143_vm1, %v7964_v9  ;;  %5683 = vmatmul.msk.f32.gmra.mxu2 %vm143_vm1, %v7964_v9  ;;  %v2623_v20 = vmul.f32 %v7967_v0, %v7967_v0  ;;  %vm2772_vm2 = vmor %vm2770_vm15, %vm2771_vm14  ;;  %v2908_v63 = vadd.f32 %v7958_v35, %v2907_v60 }
 0xce1   :  { %v2763_v22 = vsel %vm2762_vm12, %v6104_v23, %v2759_v19  ;;  %v2766_v25 = vmul.f32 %v6106_v56, %v2765_v45  ;;  %5695 = vmatmul.msk.f32.gmra.mxu3 %vm143_vm1, %v7964_v9  ;;  %v3035_v23 = vadd.f32 %v7974_v21, %v7924_v33 }
 0xce2   :  { %v2811_v59 = vmul.f32 %v2763_v22, %v7849_v43  ;;  %v2657_v7 = vsel %vm143_vm1, %v2623_v20, 0.0  ;;  %5703 = vmatpush.xpose.msk.msrb.mxu0 %vm666_vm5, %v2973_v31  ;;  %v3032_v43 = vadd.f32 %v7974_v21, %v7899_v11  ;;  %v2938_v11 = vmul.f32 0.25, %v2905_v37 }
 0xce3   :  { %v2767_v50 = vmul.f32 0.5, %v2766_v25  ;;  %2658 = vadd.xlane.f32.xlu2 %v2657_v7 }
 0xce4   :  { %v2824_v2 = vmul.f32 %v7792_v46, %v2811_v59 }
 0xce5   :  { %v2768_v48 = vsub.f32 1.5, %v2767_v50  ;;  %5704 = vmatmul.msk.f32.vlgmr.msrb.gmra.mxu0 %vm666_vm5, %v2937_v52 }
 0xce6   :  { %3166 = vmatpush.msra.mxu0 %v3038_v6  ;;  %v7997_v39 = vadd.f32 %v7799_v14, %v2824_v2 }
 0xce7   :  { %v2769_v47 = vmul.f32 %v6106_v56, %v2768_v48 }
 0xce8   :  { %3167 = vmatpush.msra.mxu0 %v3035_v23  ;;  %5672 = vmatmul.msk.f32.gmra.mxu1 %vm143_vm1, %v7997_v39 }
 0xce9   :  { %5684 = vmatmul.msk.f32.gmra.mxu2 %vm143_vm1, %v7997_v39  ;;  %v2773_v33 = vsel %vm2772_vm2, %v6106_v56, %v2769_v47  ;;  %5696 = vmatmul.msk.f32.gmra.mxu3 %vm143_vm1, %v7997_v39 }
 0xcea   :  { %3168 = vmatpush.msra.mxu0 %v3032_v43  ;;  %v2812_v17 = vmul.f32 %v2773_v33, %v7868_v38  ;;  %v2939_v38 = vmul.f32 0.25, %v2908_v63 }
 0xcec   :  { %v2825_v4 = vmul.f32 %v7792_v46, %v2812_v17 }
 0xced   :  { %5705 = vmatmul.msk.f32.gmra.mxu0 %vm666_vm5, %v2938_v11 }
 0xcee   :  { %v8013_v28 = vadd.f32 %v7799_v14, %v2825_v4 }
 0xcf0   :  { %5673 = vmatmul.msk.f32.gmra.mxu1 %vm143_vm1, %v8013_v28 }
 0xcf1   :  { %5685 = vmatmul.msk.f32.gmra.mxu2 %vm143_vm1, %v8013_v28  ;;  %5697 = vmatmul.msk.f32.gmra.mxu3 %vm143_vm1, %v8013_v28 }
 0xcf5   :  { %5706 = vmatmul.msk.f32.gmra.mxu0 %vm666_vm5, %v2939_v38 }
 0xd44   :  { %v8029_v6 = vpop.f32.mrf.mxu1 }
 0xd46   :  { %v2653_v13 = vpop.xlane.xlu0 %2652 }
 0xd47   :  { %v2669_v54 = vmul.f32 %v2653_v13, %v6428_v57 }
 0xd49   :  { %v2681_v49 = vadd.f32 1e-06, %v2669_v54 }
 0xd4a   :  { %v2981_v24 = vpop.f32.mrf.mxu2 }
 0xd4b   :  { %6107 = vrsqrt.f32 %v2681_v49  ;;  %v8024_v56 = vpop.f32.mrf.mxu3  ;;  %vm2780_vm4 = vweird.f32 %v2681_v49 }
 0xd4c   :  { %v8038_v63 = vpop.f32.mrf.mxu1 }
 0xd4e   :  { %v2656_v42 = vpop.xlane.xlu1 %2655 }
 0xd4f   :  { %v2670_v8 = vmul.f32 %v2656_v42, %v6428_v57 }
 0xd51   :  { %v6108_v19 = vpop.eup %6107  ;;  %v2682_v45 = vadd.f32 1e-06, %v2670_v8 }
 0xd52   :  { %v2775_v31 = vmul.f32 %v6108_v19, %v2681_v49  ;;  %v2984_v20 = vpop.f32.mrf.mxu2  ;;  %vm2781_vm3 = vweird.f32 %v6108_v19 }
 0xd53   :  { %6109 = vrsqrt.f32 %v2682_v45  ;;  %v8027_v25 = vpop.f32.mrf.mxu3  ;;  %vm2782_vm6 = vmor %vm2780_vm4, %vm2781_vm3  ;;  %v2985_v13 = vadd.f32 %v7934_v62, %v2984_v20  ;;  %vm2790_vm8 = vweird.f32 %v2682_v45  ;;  %v2982_v20 = vadd.f32 %v7934_v62, %v2981_v24 }
 0xd54   :  { %v2776_v22 = vmul.f32 %v6108_v19, %v2775_v31 }
 0xd56   :  { %v2777_v51 = vmul.f32 0.5, %v2776_v22  ;;  %v2659_v59 = vpop.xlane.xlu2 %2658 }
 0xd57   :  { %v2671_v7 = vmul.f32 %v2659_v59, %v6428_v57 }
 0xd58   :  { %v2778_v52 = vsub.f32 1.5, %v2777_v51 }
 0xd59   :  { %v6110_v50 = vpop.eup %6109  ;;  %v2683_v2 = vadd.f32 1e-06, %v2671_v7 }
 0xd5a   :  { %v2779_v23 = vmul.f32 %v6108_v19, %v2778_v52  ;;  %v2785_v48 = vmul.f32 %v6110_v50, %v2682_v45  ;;  %vm2791_vm7 = vweird.f32 %v6110_v50 }
 0xd5b   :  { %6111 = vrsqrt.f32 %v2683_v2  ;;  %v2987_v43 = vpop.f32.mrf.mxu2  ;;  %vm2792_vm9 = vmor %vm2790_vm8, %vm2791_vm7  ;;  %vm2800_vm11 = vweird.f32 %v2683_v2 }
 0xd5c   :  { %v2783_v37 = vsel %vm2782_vm6, %v6108_v19, %v2779_v23  ;;  %v2786_v47 = vmul.f32 %v6110_v50, %v2785_v48  ;;  %v2988_v33 = vadd.f32 %v7934_v62, %v2987_v43  ;;  %v8033_v17 = vpop.f32.mrf.mxu3 }
 0xd5d   :  { %v2813_v11 = vmul.f32 %v2783_v37, %v7910_v55 }
 0xd5e   :  { %v2787_v60 = vmul.f32 0.5, %v2786_v47  ;;  %5710 = vmatpush.xpose.msk.msrb.mxu0 %vm666_vm5, %v2988_v33 }
 0xd5f   :  { %v2826_v4 = vmul.f32 %v7792_v46, %v2813_v11 }
 0xd60   :  { %v2788_v38 = vsub.f32 1.5, %v2787_v60 }
 0xd61   :  { %v6112_v54 = vpop.eup %6111  ;;  %v8042_v49 = vadd.f32 %v7799_v14, %v2826_v4 }
 0xd62   :  { %v2789_v42 = vmul.f32 %v6110_v50, %v2788_v38  ;;  %v2795_v8 = vmul.f32 %v6112_v54, %v2683_v2  ;;  %5711 = vmatpush.xpose.msk.msrb.mxu0 %vm666_vm5, %v2985_v13  ;;  %v3102_v55 = vpop.f32.mrf.mxu0  ;;  %vm2801_vm10 = vweird.f32 %v6112_v54 }
 0xd63   :  { %5674 = vmatmul.msk.f32.gmra.mxu1 %vm143_vm1, %v8042_v49  ;;  %v2990_v19 = vpop.f32.mrf.mxu2  ;;  %5686 = vmatmul.msk.f32.gmra.mxu2 %vm143_vm1, %v8042_v49  ;;  %v8050_v31 = vadd.f32 %v3102_v55, %v6867_v44  ;;  %vm2802_vm12 = vmor %vm2800_vm11, %vm2801_vm10 }
 0xd64   :  { %v2793_v22 = vsel %vm2792_vm9, %v6110_v50, %v2789_v42  ;;  %v2796_v51 = vmul.f32 %v6112_v54, %v2795_v8  ;;  %v3049_v45 = vpop.f32.mrf.mxu3  ;;  %5698 = vmatmul.msk.f32.gmra.mxu3 %vm143_vm1, %v8042_v49  ;;  %v8063_v50 = vpop.f32.mrf.mxu1 }
 0xd65   :  { %v2814_v59 = vmul.f32 %v2793_v22, %v7939_v10  ;;  %v3111_v7 = vsel %vm711_vm13, %v8050_v31, -inf }
 0xd66   :  { %v2797_v52 = vmul.f32 0.5, %v2796_v51  ;;  %5712 = vmatpush.xpose.msk.msrb.mxu0 %vm666_vm5, %v2982_v20  ;;  %3112 = vmax.xlane.f32.xlu0 %v3111_v7  ;;  %v3050_v51 = vadd.f32 %v7974_v21, %v3049_v45  ;;  %v2991_v7 = vadd.f32 %v7934_v62, %v2990_v19  ;;  %v3519_v45 = vld [vmem:[%s9283_s2 + $0x308] sm:$0xff] }
 0xd67   :  { %v2827_v23 = vmul.f32 %v7792_v46, %v2814_v59 }
 0xd68   :  { %v2798_v48 = vsub.f32 1.5, %v2797_v52  ;;  %v3520_v52 = vld [vmem:[%s9283_s2 + $0x310] sm:$0xff] }
 0xd69   :  { %v8061_v24 = vadd.f32 %v7799_v14, %v2827_v23 }
 0xd6a   :  { %v2799_v43 = vmul.f32 %v6112_v54, %v2798_v48  ;;  %v3105_v37 = vpop.f32.mrf.mxu0 }
 0xd6b   :  { %5675 = vmatmul.msk.f32.gmra.mxu1 %vm143_vm1, %v8061_v24  ;;  %5687 = vmatmul.msk.f32.gmra.mxu2 %vm143_vm1, %v8061_v24  ;;  %v8070_v47 = vadd.f32 %v3105_v37, %v6867_v44  ;;  %v3517_v37 = vld [vmem:[%s9283_s2 + $0x2f8] sm:$0xff] }
 0xd6c   :  { %v2993_v10 = vpop.f32.mrf.mxu2  ;;  %v2803_v33 = vsel %vm2802_vm12, %v6112_v54, %v2799_v43  ;;  %v3052_v11 = vpop.f32.mrf.mxu3  ;;  %5699 = vmatmul.msk.f32.gmra.mxu3 %vm143_vm1, %v8061_v24  ;;  %v3518_v43 = vld [vmem:[%s9283_s2 + $0x300] sm:$0xff] }
 0xd6d   :  { %v2815_v60 = vmul.f32 %v2803_v33, %v7967_v0  ;;  %v3114_v2 = vsel %vm711_vm13, %v8070_v47, -inf  ;;  %v2919_v0 = vpop.f32.mrf.mxu1  ;;  %v3053_v20 = vadd.f32 %v7974_v21, %v3052_v11  ;;  %v2994_v22 = vadd.f32 %v7934_v62, %v2993_v10 }
 0xd6e   :  { %3115 = vmax.xlane.f32.xlu1 %v3114_v2  ;;  %v2920_v59 = vadd.f32 %v7958_v35, %v2919_v0 }
 0xd6f   :  { %v2828_v4 = vmul.f32 %v7792_v46, %v2815_v60 }
 0xd70   :  { %v2943_v48 = vmul.f32 0.25, %v2920_v59 }
 0xd71   :  { %v8079_v38 = vadd.f32 %v7799_v14, %v2828_v4 }
 0xd72   :  { %v3108_v13 = vpop.f32.mrf.mxu0 }
 0xd73   :  { %5676 = vmatmul.msk.f32.gmra.mxu1 %vm143_vm1, %v8079_v38  ;;  %5688 = vmatmul.msk.f32.gmra.mxu2 %vm143_vm1, %v8079_v38  ;;  %v8086_v42 = vadd.f32 %v3108_v13, %v6867_v44 }
 0xd74   :  { %v2996_v54 = vpop.f32.mrf.mxu2  ;;  %v3055_v55 = vpop.f32.mrf.mxu3  ;;  %5700 = vmatmul.msk.f32.gmra.mxu3 %vm143_vm1, %v8079_v38 }
 0xd75   :  { %v2997_v8 = vadd.f32 %v7934_v62, %v2996_v54  ;;  %v3056_v46 = vadd.f32 %v7974_v21, %v3055_v55  ;;  %v3117_v14 = vsel %vm711_vm13, %v8086_v42, -inf  ;;  %v2922_v23 = vpop.f32.mrf.mxu1 }
 0xd76   :  { %3118 = vmax.xlane.f32.xlu2 %v3117_v14  ;;  %v2923_v19 = vadd.f32 %v7958_v35, %v2922_v23 }
 0xd77   :  { %5719 = vmatpush.xpose.msk.msrb.mxu1 %vm666_vm5, %v2997_v8  ;;  %3390 = vmatpush.msra.mxu2 %v3056_v46 }
 0xd78   :  { %v2944_v10 = vmul.f32 0.25, %v2923_v19 }
 0xd79   :  { %3391 = vmatpush.msra.mxu2 %v3053_v20 }
 0xd7b   :  { %5720 = vmatpush.xpose.msk.msrb.mxu1 %vm666_vm5, %v2994_v22  ;;  %3392 = vmatpush.msra.mxu2 %v3050_v51 }
 0xd7d   :  { %v2925_v33 = vpop.f32.mrf.mxu1 }
 0xd7e   :  { %v2926_v11 = vadd.f32 %v7958_v35, %v2925_v33 }
 0xd7f   :  { %5721 = vmatpush.xpose.msk.msrb.mxu1 %vm666_vm5, %v2991_v7 }
 0xd80   :  { %v2945_v60 = vmul.f32 0.25, %v2926_v11 }
 0xd82   :  { %5722 = vmatmul.msk.f32.vlgmr.msrb.gmra.mxu1 %vm666_vm5, %v2943_v48 }
 0xd83   :  { %3535 = vmatpush.msra.mxu1 %v3520_v52 }
 0xd85   :  { %3536 = vmatpush.msra.mxu1 %v3519_v45 }
 0xd87   :  { %3537 = vmatpush.msra.mxu1 %v3518_v43 }
 0xd89   :  { %3538 = vmatpush.msra.mxu1 %v3517_v37 }
 0xd8a   :  { %5723 = vmatmul.msk.f32.gmra.mxu1 %vm666_vm5, %v2944_v10 }
 0xd92   :  { %5724 = vmatmul.msk.f32.gmra.mxu1 %vm666_vm5, %v2945_v60  ;;  %v3650_v60 = vld [vmem:[%s9283_s2 + $0x350] sm:$0xff] }
 0xd9a   :  { %5737 = vmatmul.msk.f32.vlgmr.msra.gmra.mxu1 %vm143_vm1, %v7806_v30 }
 0xda2   :  { %5738 = vmatmul.msk.f32.gmra.mxu1 %vm143_vm1, %v7824_v15 }
 0xdaa   :  { %5739 = vmatmul.msk.f32.gmra.mxu1 %vm143_vm1, %v7843_v27 }
 0xdb2   :  { %5740 = vmatmul.msk.f32.gmra.mxu1 %vm143_vm1, %v7888_v26 }
 0xdba   :  { %5741 = vmatmul.msk.f32.gmra.mxu1 %vm143_vm1, %v7905_v53 }
 0xdc2   :  { %5742 = vmatmul.msk.f32.gmra.mxu1 %vm143_vm1, %v7929_v58 }
 0xdca   :  { %5743 = vmatmul.msk.f32.gmra.mxu1 %vm143_vm1, %v7964_v9 }
 0xdd2   :  { %5744 = vmatmul.msk.f32.gmra.mxu1 %vm143_vm1, %v7997_v39 }
 0xdd9   :  { %v3113_v2 = vpop.xlane.xlu0 %3112 }
 0xdda   :  { %5745 = vmatmul.msk.f32.gmra.mxu1 %vm143_vm1, %v8013_v28  ;;  %v3120_v4 = vsub.f32 %v8050_v31, %v3113_v2 }
 0xddc   :  { %v3123_v13 = vmul.f32 1.442695, %v3120_v4 }
 0xdde   :  { %6113 = vpow2.f32 %v3123_v13  ;;  %v3649_v13 = vld [vmem:[%s9283_s2 + $0x348] sm:$0xff] }
 0xde0   :  { %v2928_v0 = vpop.f32.mrf.mxu1 }
 0xde1   :  { %v3116_v54 = vpop.xlane.xlu1 %3115  ;;  %v2929_v37 = vadd.f32 %v7958_v35, %v2928_v0 }
 0xde2   :  { %5746 = vmatmul.msk.f32.gmra.mxu1 %vm143_vm1, %v8042_v49  ;;  %v3121_v8 = vsub.f32 %v8070_v47, %v3116_v54 }
 0xde3   :  { %v2946_v4 = vmul.f32 0.25, %v2929_v37  ;;  %v3044_v37 = vadd.f32 %v7974_v21, %v8027_v25 }
 0xde4   :  { %v8141_v55 = vpop.eup %6113  ;;  %v3125_v46 = vmul.f32 1.442695, %v3121_v8  ;;  %v3647_v8 = vld [vmem:[%s9283_s2 + $0x338] sm:$0xff] }
 0xde5   :  { %v3129_v14 = vsel %vm711_vm13, %v8141_v55, 0.0 }
 0xde6   :  { %6115 = vpow2.f32 %v3125_v46  ;;  %v2999_v20 = vpop.f32.mrf.mxu2  ;;  %3130 = vadd.xlane.f32.xlu0 %v3129_v14 }
 0xde7   :  { %v3000_v33 = vadd.f32 %v7934_v62, %v2999_v20 }
 0xde8   :  { %v2931_v59 = vpop.f32.mrf.mxu1 }
 0xde9   :  { %v3119_v31 = vpop.xlane.xlu2 %3118  ;;  %v2932_v54 = vadd.f32 %v7958_v35, %v2931_v59 }
 0xdea   :  { %5747 = vmatmul.msk.f32.gmra.mxu1 %vm143_vm1, %v8061_v24  ;;  %v3122_v22 = vsub.f32 %v8086_v42, %v3119_v31 }
 0xdeb   :  { %v2947_v20 = vmul.f32 0.25, %v2932_v54 }
 0xdec   :  { %v8148_v51 = vpop.eup %6115  ;;  %v3127_v7 = vmul.f32 1.442695, %v3122_v22 }
 0xded   :  { %v3132_v47 = vsel %vm711_vm13, %v8148_v51, 0.0 }
 0xdee   :  { %6117 = vpow2.f32 %v3127_v7  ;;  %v3002_v52 = vpop.f32.mrf.mxu2  ;;  %3133 = vadd.xlane.f32.xlu1 %v3132_v47 }
 0xdef   :  { %v3003_v19 = vadd.f32 %v7934_v62, %v3002_v52 }
 0xdf0   :  { %v2934_v45 = vpop.f32.mrf.mxu1 }
 0xdf1   :  { %v2935_v31 = vadd.f32 %v7958_v35, %v2934_v45 }
 0xdf2   :  { %5748 = vmatmul.msk.f32.gmra.mxu1 %vm143_vm1, %v8079_v38 }
 0xdf3   :  { %v2948_v47 = vmul.f32 0.25, %v2935_v31 }
 0xdf4   :  { %v8154_v23 = vpop.eup %6117 }
 0xdf5   :  { %v3135_v48 = vsel %vm711_vm13, %v8154_v23, 0.0 }
 0xdf6   :  { %v3005_v42 = vpop.f32.mrf.mxu2  ;;  %3136 = vadd.xlane.f32.xlu2 %v3135_v48 }
 0xdf7   :  { %v3006_v43 = vadd.f32 %v7934_v62, %v3005_v42  ;;  %v3648_v62 = vld [vmem:[%s9283_s2 + $0x340] sm:$0xff] }
 0xdf9   :  { %5728 = vmatpush.xpose.msk.msrb.mxu3 %vm666_vm5, %v3006_v43  ;;  %v3047_v43 = vadd.f32 %v7974_v21, %v8033_v17 }
 0xdfd   :  { %5729 = vmatpush.xpose.msk.msrb.mxu3 %vm666_vm5, %v3003_v19  ;;  %v3058_v19 = vpop.f32.mrf.mxu3 }
 0xdff   :  { %v3326_v10 = vpop.f32.mrf.mxu1 }
 0xe00   :  { %v8165_v11 = vadd.f32 %v3326_v10, %v6867_v44  ;;  %v3041_v10 = vadd.f32 %v7974_v21, %v8024_v56  ;;  %v2911_v56 = vadd.f32 %v7958_v35, %v8029_v6  ;;  %v3059_v6 = vadd.f32 %v7974_v21, %v3058_v19 }
 0xe01   :  { %5730 = vmatpush.xpose.msk.msrb.mxu3 %vm666_vm5, %v3000_v33 }
 0xe02   :  { %v3335_v2 = vsel %vm711_vm13, %v8165_v11, -inf  ;;  %v2940_v54 = vmul.f32 0.25, %v2911_v56  ;;  %v3588_v56 = vld [vmem:[%s9283_s2 + $0x318] sm:$0xff] }
 0xe03   :  { %3336 = vmax.xlane.f32.xlu0 %v3335_v2 }
 0xe04   :  { %5731 = vmatmul.msk.f32.vlgmr.msrb.gmra.mxu3 %vm666_vm5, %v2946_v4 }
 0xe05   :  { %3665 = vmatpush.msra.mxu3 %v3650_v60  ;;  %v3061_v25 = vpop.f32.mrf.mxu3 }
 0xe07   :  { %3666 = vmatpush.msra.mxu3 %v3649_v13  ;;  %v3329_v0 = vpop.f32.mrf.mxu1 }
 0xe08   :  { %v8185_v46 = vadd.f32 %v3329_v0, %v6867_v44 }
 0xe09   :  { %3667 = vmatpush.msra.mxu3 %v3648_v62 }
 0xe0a   :  { %v3338_v14 = vsel %vm711_vm13, %v8185_v46, -inf }
 0xe0b   :  { %3668 = vmatpush.msra.mxu3 %v3647_v8  ;;  %3339 = vmax.xlane.f32.xlu1 %v3338_v14  ;;  %v2914_v8 = vadd.f32 %v7958_v35, %v8038_v63 }
 0xe0c   :  { %5732 = vmatmul.msk.f32.gmra.mxu3 %vm666_vm5, %v2947_v20 }
 0xe0d   :  { %v3064_v13 = vpop.f32.mrf.mxu3 }
 0xe0e   :  { %v3065_v0 = vadd.f32 %v7974_v21, %v3064_v13 }
 0xe0f   :  { %v3332_v22 = vpop.f32.mrf.mxu1 }
 0xe10   :  { %v8192_v59 = vadd.f32 %v3332_v22, %v6867_v44  ;;  %v2941_v22 = vmul.f32 0.25, %v2914_v8 }
 0xe12   :  { %v3341_v7 = vsel %vm711_vm13, %v8192_v59, -inf }
 0xe13   :  { %3342 = vmax.xlane.f32.xlu2 %v3341_v7 }
 0xe14   :  { %5733 = vmatmul.msk.f32.gmra.mxu3 %vm666_vm5, %v2948_v47  ;;  %v2917_v47 = vadd.f32 %v7958_v35, %v8063_v50 }
 0xe1c   :  { %5761 = vmatmul.msk.f32.vlgmr.msra.gmra.mxu3 %vm143_vm1, %v7806_v30 }
 0xe24   :  { %5762 = vmatmul.msk.f32.gmra.mxu3 %vm143_vm1, %v7824_v15 }
 0xe2c   :  { %5763 = vmatmul.msk.f32.gmra.mxu3 %vm143_vm1, %v7843_v27 }
 0xe34   :  { %5764 = vmatmul.msk.f32.gmra.mxu3 %vm143_vm1, %v7888_v26 }
 0xe3c   :  { %5765 = vmatmul.msk.f32.gmra.mxu3 %vm143_vm1, %v7905_v53 }
 0xe44   :  { %5766 = vmatmul.msk.f32.gmra.mxu3 %vm143_vm1, %v7929_v58 }
 0xe4c   :  { %5767 = vmatmul.msk.f32.gmra.mxu3 %vm143_vm1, %v7964_v9 }
 0xe54   :  { %5768 = vmatmul.msk.f32.gmra.mxu3 %vm143_vm1, %v7997_v39 }
 0xe59   :  { %v3131_v52 = vpop.xlane.xlu0 %3130 }
 0xe5a   :  { %6119 = vrcp.f32 %v3131_v52 }
 0xe5c   :  { %5769 = vmatmul.msk.f32.gmra.mxu3 %vm143_vm1, %v8013_v28 }
 0xe60   :  { %v6120_v48 = vpop.eup %6119 }
 0xe61   :  { %v3141_v45 = vmul.f32 %v6120_v48, %v8141_v55  ;;  %v3134_v42 = vpop.xlane.xlu1 %3133 }
 0xe62   :  { %6121 = vrcp.f32 %v3134_v42 }
 0xe63   :  { %5707 = vmatmul.msk.f32.vlgmr.msra.gmra.mxu0 %vm711_vm13, %v3141_v45 }
 0xe64   :  { %3278 = vmatpush.msra.mxu0 %v3047_v43  ;;  %5770 = vmatmul.msk.f32.gmra.mxu3 %vm143_vm1, %v8042_v49 }
 0xe66   :  { %3279 = vmatpush.msra.mxu0 %v3044_v37 }
 0xe68   :  { %v6122_v55 = vpop.eup %6121  ;;  %3280 = vmatpush.msra.mxu0 %v3041_v10 }
 0xe69   :  { %v3137_v33 = vpop.xlane.xlu2 %3136  ;;  %v3142_v17 = vmul.f32 %v6122_v55, %v8148_v51 }
 0xe6a   :  { %6123 = vrcp.f32 %v3137_v33 }
 0xe6b   :  { %5708 = vmatmul.msk.f32.gmra.mxu0 %vm711_vm13, %v3142_v17  ;;  %v3591_v17 = vld [vmem:[%s9283_s2 + $0x330] sm:$0xff] }
 0xe6c   :  { %5771 = vmatmul.msk.f32.gmra.mxu3 %vm143_vm1, %v8061_v24  ;;  %3606 = vmatpush.msrb.mxu2 %v3591_v17 }
 0xe70   :  { %v6124_v60 = vpop.eup %6123 }
 0xe71   :  { %v3143_v2 = vmul.f32 %v6124_v60, %v8154_v23  ;;  %v3062_v23 = vadd.f32 %v7974_v21, %v3061_v25  ;;  %v3590_v25 = vld [vmem:[%s9283_s2 + $0x328] sm:$0xff]  ;;  %v3589_v60 = vld [vmem:[%s9283_s2 + $0x320] sm:$0xff] }
 0xe72   :  { %3607 = vmatpush.msrb.mxu2 %v3590_v25 }
 0xe73   :  { %5709 = vmatmul.msk.f32.gmra.mxu0 %vm711_vm13, %v3143_v2 }
 0xe74   :  { %5772 = vmatmul.msk.f32.gmra.mxu3 %vm143_vm1, %v8079_v38  ;;  %3608 = vmatpush.msrb.mxu2 %v3589_v60 }
 0xe76   :  { %v3337_v4 = vpop.xlane.xlu0 %3336  ;;  %3609 = vmatpush.msrb.mxu2 %v3588_v56 }
 0xe77   :  { %v3344_v51 = vsub.f32 %v8165_v11, %v3337_v4 }
 0xe79   :  { %v3347_v62 = vmul.f32 1.442695, %v3344_v51 }
 0xe7b   :  { %6125 = vpow2.f32 %v3347_v62  ;;  %5713 = vmatmul.msk.f32.vlgmr.msrb.gmra.mxu0 %vm666_vm5, %v2940_v54 }
 0xe7c   :  { %3502 = vmatpush.msrb.mxu0 %v3065_v0 }
 0xe7e   :  { %v3340_v14 = vpop.xlane.xlu1 %3339  ;;  %3503 = vmatpush.msrb.mxu0 %v3062_v23 }
 0xe7f   :  { %v3345_v20 = vsub.f32 %v8185_v46, %v3340_v14  ;;  %v2942_v46 = vmul.f32 0.25, %v2917_v47 }
 0xe80   :  { %3504 = vmatpush.msrb.mxu0 %v3059_v6 }
 0xe81   :  { %v6126_v11 = vpop.eup %6125  ;;  %v3349_v31 = vmul.f32 1.442695, %v3345_v20 }
 0xe82   :  { %v3353_v7 = vsel %vm711_vm13, %v6126_v11, 0.0 }
 0xe83   :  { %6127 = vpow2.f32 %v3349_v31  ;;  %3354 = vadd.xlane.f32.xlu0 %v3353_v7  ;;  %5714 = vmatmul.msk.f32.gmra.mxu0 %vm666_vm5, %v2941_v22  ;;  %v8289_v31 = vld [vmem:[%s9283_s2 + $0x368] ss:$0 sm:$0xff] }
 0xe86   :  { %v3343_v63 = vpop.xlane.xlu2 %3342 }
 0xe87   :  { %v3346_v52 = vsub.f32 %v8192_v59, %v3343_v63  ;;  %v3438_v42 = vpop.f32.mrf.mxu3 }
 0xe88   :  { %v3439_v63 = vadd.f32 %v3438_v42, %v6867_v44 }
 0xe89   :  { %v6128_v21 = vpop.eup %6127  ;;  %v3351_v48 = vmul.f32 1.442695, %v3346_v52 }
 0xe8a   :  { %v3356_v45 = vsel %vm711_vm13, %v6128_v21, 0.0  ;;  %v3447_v17 = vsel %vm711_vm13, %v3439_v63, -inf }
 0xe8b   :  { %6129 = vpow2.f32 %v3351_v48  ;;  %3357 = vadd.xlane.f32.xlu1 %v3356_v45  ;;  %5715 = vmatmul.msk.f32.gmra.mxu0 %vm666_vm5, %v2942_v46 }
 0xe8f   :  { %v3441_v35 = vpop.f32.mrf.mxu3 }
 0xe90   :  { %v3442_v42 = vadd.f32 %v3441_v35, %v6867_v44 }
 0xe91   :  { %v8250_v43 = vpop.eup %6129 }
 0xe92   :  { %v3359_v19 = vsel %vm711_vm13, %v8250_v43, 0.0 }
 0xe93   :  { %3360 = vadd.xlane.f32.xlu2 %v3359_v19 }
 0xe97   :  { %v3444_v50 = vpop.f32.mrf.mxu3 }
 0xe9f   :  { %v8254_v37 = vpop.f32.mrf.mxu3 }
 0xea7   :  { %v8256_v59 = vpop.f32.mrf.mxu3 }
 0xeaf   :  { %v8258_v10 = vpop.f32.mrf.mxu3 }
 0xeb7   :  { %v8260_v55 = vpop.f32.mrf.mxu3 }
 0xebf   :  { %v8262_v33 = vpop.f32.mrf.mxu3 }
 0xec7   :  { %v8273_v2 = vpop.f32.mrf.mxu3 }
 0xecf   :  { %v3688_v51 = vpop.f32.mrf.mxu3 }
 0xed0   :  { %v3689_v45 = vadd.f32 %v8289_v31, %v3688_v51 }
 0xed7   :  { %v3691_v54 = vpop.f32.mrf.mxu3 }
 0xed8   :  { %v3692_v52 = vadd.f32 %v8289_v31, %v3691_v54 }
 0xedf   :  { %v3694_v14 = vpop.f32.mrf.mxu3 }
 0xee0   :  { %v8278_v4 = vpop.f32.mrf.mxu0  ;;  %v3695_v47 = vadd.f32 %v8289_v31, %v3694_v14 }
 0xee8   :  { %v8280_v13 = vpop.f32.mrf.mxu0 }
 0xef0   :  { %v8282_v62 = vpop.f32.mrf.mxu0 }
 0xef6   :  { %v3355_v0 = vpop.xlane.xlu0 %3354 }
 0xef7   :  { %6131 = vrcp.f32 %v3355_v0  ;;  %v3450_v0 = vsel %vm711_vm13, %v3442_v42, -inf }
 0xef8   :  { %v3214_v23 = vpop.f32.mrf.mxu0 }
 0xef9   :  { %v3215_v8 = vadd.f32 %v3214_v23, %v6867_v44 }
 0xefb   :  { %v3223_v6 = vsel %vm711_vm13, %v3215_v8, -inf }
 0xefc   :  { %3224 = vmax.xlane.f32.xlu0 %v3223_v6  ;;  %v3445_v6 = vadd.f32 %v3444_v50, %v6867_v44 }
 0xefd   :  { %v6132_v20 = vpop.eup %6131 }
 0xefe   :  { %v3365_v22 = vmul.f32 %v6132_v20, %v6126_v11  ;;  %v3358_v7 = vpop.xlane.xlu1 %3357 }
 0xeff   :  { %6133 = vrcp.f32 %v3358_v7 }
 0xf00   :  { %5725 = vmatmul.msk.f32.vlgmr.msra.gmra.mxu2 %vm711_vm13, %v3365_v22  ;;  %v3217_v48 = vpop.f32.mrf.mxu0 }
 0xf01   :  { %4029 = vmatpush.msra.mxu2 %v3695_v47  ;;  %v3218_v46 = vadd.f32 %v3217_v48, %v6867_v44 }
 0xf03   :  { %4030 = vmatpush.msra.mxu2 %v3692_v52  ;;  %v3226_v19 = vsel %vm711_vm13, %v3218_v46, -inf }
 0xf04   :  { %3227 = vmax.xlane.f32.xlu1 %v3226_v19  ;;  %3448 = vmax.xlane.f32.xlu0 %v3447_v17 }
 0xf05   :  { %v6134_v11 = vpop.eup %6133  ;;  %4031 = vmatpush.msra.mxu2 %v3689_v45 }
 0xf06   :  { %v3361_v25 = vpop.xlane.xlu2 %3360  ;;  %v3366_v60 = vmul.f32 %v6134_v11, %v6128_v21  ;;  %v3453_v21 = vsel %vm711_vm13, %v3445_v6, -inf }
 0xf07   :  { %6135 = vrcp.f32 %v3361_v25 }
 0xf08   :  { %5726 = vmatmul.msk.f32.gmra.mxu2 %vm711_vm13, %v3366_v60  ;;  %v3220_v56 = vpop.f32.mrf.mxu0 }
 0xf09   :  { %v3221_v54 = vadd.f32 %v3220_v56, %v6867_v44 }
 0xf0b   :  { %v3229_v51 = vsel %vm711_vm13, %v3221_v54, -inf }
 0xf0c   :  { %3230 = vmax.xlane.f32.xlu2 %v3229_v51  ;;  %3451 = vmax.xlane.f32.xlu1 %v3450_v0  ;;  %v8362_v51 = vpop.f32.mrf.mxu1 }
 0xf0d   :  { %v6136_v23 = vpop.eup %6135 }
 0xf0e   :  { %v3367_v14 = vmul.f32 %v6136_v23, %v8250_v43 }
 0xf10   :  { %5727 = vmatmul.msk.f32.gmra.mxu2 %vm711_vm13, %v3367_v14 }
 0xf14   :  { %3454 = vmax.xlane.f32.xlu2 %v3453_v21  ;;  %v8364_v14 = vpop.f32.mrf.mxu1 }
 0xf18   :  { %5749 = vmatmul.msk.f32.vlgmr.msrb.gmra.mxu2 %vm143_vm1, %v7806_v30 }
 0xf1c   :  { %v8366_v21 = vpop.f32.mrf.mxu1 }
 0xf20   :  { %5750 = vmatmul.msk.f32.gmra.mxu2 %vm143_vm1, %v7824_v15 }
 0xf28   :  { %5751 = vmatmul.msk.f32.gmra.mxu2 %vm143_vm1, %v7843_v27 }
 0xf30   :  { %5752 = vmatmul.msk.f32.gmra.mxu2 %vm143_vm1, %v7888_v26 }
 0xf38   :  { %5753 = vmatmul.msk.f32.gmra.mxu2 %vm143_vm1, %v7905_v53 }
 0xf40   :  { %5754 = vmatmul.msk.f32.gmra.mxu2 %vm143_vm1, %v7929_v58 }
 0xf48   :  { %5755 = vmatmul.msk.f32.gmra.mxu2 %vm143_vm1, %v7964_v9 }
 0xf50   :  { %5756 = vmatmul.msk.f32.gmra.mxu2 %vm143_vm1, %v7997_v39 }
 0xf58   :  { %5757 = vmatmul.msk.f32.gmra.mxu2 %vm143_vm1, %v8013_v28 }
 0xf60   :  { %5758 = vmatmul.msk.f32.gmra.mxu2 %vm143_vm1, %v8042_v49 }
 0xf68   :  { %5759 = vmatmul.msk.f32.gmra.mxu2 %vm143_vm1, %v8061_v24 }
 0xf6f   :  { %v3225_v30 = vpop.xlane.xlu0 %3224 }
 0xf70   :  { %5760 = vmatmul.msk.f32.gmra.mxu2 %vm143_vm1, %v8079_v38  ;;  %v3232_v15 = vsub.f32 %v3215_v8, %v3225_v30 }
 0xf72   :  { %v3235_v27 = vmul.f32 1.442695, %v3232_v15  ;;  %v8370_v15 = vpop.f32.mrf.mxu1 }
 0xf74   :  { %6137 = vpow2.f32 %v3235_v27 }
 0xf77   :  { %v3228_v26 = vpop.xlane.xlu1 %3227  ;;  %v3449_v58 = vpop.xlane.xlu0 %3448 }
 0xf78   :  { %v3233_v53 = vsub.f32 %v3218_v46, %v3228_v26  ;;  %v3456_v9 = vsub.f32 %v3439_v63, %v3449_v58 }
 0xf7a   :  { %v8332_v39 = vpop.eup %6137  ;;  %v3237_v28 = vmul.f32 1.442695, %v3233_v53  ;;  %v3459_v43 = vmul.f32 1.442695, %v3456_v9  ;;  %v8374_v26 = vpop.f32.mrf.mxu1 }
 0xf7b   :  { %v3241_v49 = vsel %vm711_vm13, %v8332_v39, 0.0 }
 0xf7c   :  { %6139 = vpow2.f32 %v3237_v28  ;;  %3242 = vadd.xlane.f32.xlu0 %v3241_v49  ;;  %v8383_v49 = vld [vmem:[%s9283_s2 + $0x360] ss:$0 sm:$0xff] }
 0xf7d   :  { %6141 = vpow2.f32 %v3459_v43 }
 0xf7f   :  { %v3231_v24 = vpop.xlane.xlu2 %3230  ;;  %v3452_v38 = vpop.xlane.xlu1 %3451 }
 0xf80   :  { %v3234_v35 = vsub.f32 %v3221_v54, %v3231_v24  ;;  %v3457_v50 = vsub.f32 %v3442_v42, %v3452_v38 }
 0xf82   :  { %v8336_v8 = vpop.eup %6139  ;;  %v3239_v20 = vmul.f32 1.442695, %v3234_v35  ;;  %v3461_v22 = vmul.f32 1.442695, %v3457_v50  ;;  %v8378_v9 = vpop.f32.mrf.mxu1 }
 0xf83   :  { %v8338_v7 = vpop.f32.mrf.mxu2  ;;  %v8340_v47 = vpop.eup %6141  ;;  %v3244_v63 = vsel %vm711_vm13, %v8336_v8, 0.0 }
 0xf84   :  { %6143 = vpow2.f32 %v3239_v20  ;;  %3245 = vadd.xlane.f32.xlu1 %v3244_v63  ;;  %v3465_v52 = vsel %vm711_vm13, %v8340_v47, 0.0  ;;  %v8391_v20 = vld [vmem:[%s9283_s2 + $0x358] ss:$0 sm:$0xff] }
 0xf85   :  { %6145 = vpow2.f32 %v3461_v22  ;;  %3466 = vadd.xlane.f32.xlu0 %v3465_v52 }
 0xf87   :  { %v3455_v48 = vpop.xlane.xlu2 %3454 }
 0xf88   :  { %v3458_v46 = vsub.f32 %v3445_v6, %v3455_v48 }
 0xf8a   :  { %v8346_v45 = vpop.eup %6143  ;;  %v3463_v19 = vmul.f32 1.442695, %v3458_v46  ;;  %v3558_v43 = vpop.f32.mrf.mxu1 }
 0xf8b   :  { %v8348_v11 = vpop.f32.mrf.mxu2  ;;  %v8350_v17 = vpop.eup %6145  ;;  %v3247_v25 = vsel %vm711_vm13, %v8346_v45, 0.0  ;;  %v3559_v22 = vadd.f32 %v8391_v20, %v3558_v43 }
 0xf8c   :  { %6147 = vpow2.f32 %v3463_v19  ;;  %3248 = vadd.xlane.f32.xlu2 %v3247_v25  ;;  %v3468_v60 = vsel %vm711_vm13, %v8350_v17, 0.0 }
 0xf8d   :  { %3469 = vadd.xlane.f32.xlu1 %v3468_v60  ;;  %v3582_v48 = vmul.f32 0.25, %v3559_v22 }
 0xf92   :  { %v8356_v42 = vpop.eup %6147  ;;  %v3561_v35 = vpop.f32.mrf.mxu1 }
 0xf93   :  { %v8358_v56 = vpop.f32.mrf.mxu2  ;;  %v3471_v54 = vsel %vm711_vm13, %v8356_v42, 0.0  ;;  %v3562_v19 = vadd.f32 %v8391_v20, %v3561_v35 }
 0xf94   :  { %3472 = vadd.xlane.f32.xlu2 %v3471_v54 }
 0xf95   :  { %v3583_v60 = vmul.f32 0.25, %v3562_v19 }
 0xf9a   :  { %v3564_v46 = vpop.f32.mrf.mxu1 }
 0xf9b   :  { %v3611_v0 = vpop.f32.mrf.mxu2 }
 0xfa3   :  { %v3614_v23 = vpop.f32.mrf.mxu2 }
 0xfab   :  { %v3617_v6 = vpop.f32.mrf.mxu2 }
 0xfb3   :  { %v8368_v30 = vpop.f32.mrf.mxu2 }
 0xfbb   :  { %v8372_v27 = vpop.f32.mrf.mxu2 }
 0xfc3   :  { %v8376_v53 = vpop.f32.mrf.mxu2 }
 0xfcb   :  { %v3629_v58 = vpop.f32.mrf.mxu2 }
 0xfcc   :  { %v3630_v52 = vadd.f32 %v8383_v49, %v3629_v58 }
 0xfd3   :  { %v3632_v28 = vpop.f32.mrf.mxu2 }
 0xfd4   :  { %v3633_v50 = vadd.f32 %v8383_v49, %v3632_v28  ;;  %v3565_v28 = vadd.f32 %v8391_v20, %v3564_v46 }
 0xfdb   :  { %v3635_v24 = vpop.f32.mrf.mxu2 }
 0xfdc   :  { %v3636_v38 = vadd.f32 %v8383_v49, %v3635_v24  ;;  %v3567_v24 = vpop.f32.mrf.mxu1 }
 0xfdd   :  { %v3568_v46 = vadd.f32 %v8391_v20, %v3567_v24 }
 0xfde   :  { %5791 = vmatpush.xpose.msk.msrb.mxu1 %vm666_vm5, %v3636_v38 }
 0xfe2   :  { %5792 = vmatpush.xpose.msk.msrb.mxu1 %vm666_vm5, %v3633_v50  ;;  %v3584_v50 = vmul.f32 0.25, %v3565_v28 }
 0xfe3   :  { %v3638_v63 = vpop.f32.mrf.mxu2 }
 0xfe4   :  { %v3639_v19 = vadd.f32 %v8383_v49, %v3638_v63 }
 0xfe6   :  { %5793 = vmatpush.xpose.msk.msrb.mxu1 %vm666_vm5, %v3630_v52 }
 0xfe9   :  { %5794 = vmatmul.msk.f32.vlgmr.msrb.gmra.mxu1 %vm666_vm5, %v3582_v48  ;;  %v3618_v48 = vadd.f32 %v8383_v49, %v3617_v6  ;;  %v3585_v6 = vmul.f32 0.25, %v3568_v46 }
 0xfeb   :  { %v3641_v25 = vpop.f32.mrf.mxu2 }
 0xfec   :  { %v3642_v22 = vadd.f32 %v8383_v49, %v3641_v25  ;;  %v3615_v25 = vadd.f32 %v8383_v49, %v3614_v23 }
 0xfef   :  { %v3243_v54 = vpop.xlane.xlu0 %3242 }
 0xff0   :  { %6149 = vrcp.f32 %v3243_v54 }
 0xff1   :  { %5795 = vmatmul.msk.f32.gmra.mxu1 %vm666_vm5, %v3583_v60  ;;  %v3570_v60 = vpop.f32.mrf.mxu1 }
 0xff2   :  { %v3571_v63 = vadd.f32 %v8391_v20, %v3570_v60 }
 0xff3   :  { %v3644_v43 = vpop.f32.mrf.mxu2 }
 0xff4   :  { %v3645_v58 = vadd.f32 %v8383_v49, %v3644_v43  ;;  %v3612_v43 = vadd.f32 %v8383_v49, %v3611_v0 }
 0xff6   :  { %5800 = vmatpush.xpose.msk.msrb.mxu3 %vm666_vm5, %v3645_v58  ;;  %v6150_v38 = vpop.eup %6149  ;;  %v3586_v58 = vmul.f32 0.25, %v3571_v63 }
 0xff7   :  { %v3253_v35 = vmul.f32 %v6150_v38, %v8332_v39  ;;  %v3246_v52 = vpop.xlane.xlu1 %3245 }
 0xff8   :  { %6151 = vrcp.f32 %v3246_v52  ;;  %v3467_v23 = vpop.xlane.xlu0 %3466 }
 0xff9   :  { %5796 = vmatmul.msk.f32.gmra.mxu1 %vm666_vm5, %v3584_v50  ;;  %5716 = vmatmul.msk.f32.vlgmr.msra.gmra.mxu0 %vm711_vm13, %v3253_v35  ;;  %v3573_v38 = vpop.f32.mrf.mxu1 }
 0xffa   :  { %5801 = vmatpush.xpose.msk.msrb.mxu3 %vm666_vm5, %v3642_v22  ;;  %5773 = vmatpush.xpose.msk.msra.mxu0 %vm666_vm5, %v3618_v48  ;;  %v3677_v48 = vadd.f32 %v8289_v31, %v8258_v10 }
 0xffe   :  { %5802 = vmatpush.xpose.msk.msrb.mxu3 %vm666_vm5, %v3639_v19  ;;  %v6152_v39 = vpop.eup %6151  ;;  %5774 = vmatpush.xpose.msk.msra.mxu0 %vm666_vm5, %v3615_v25  ;;  %v3671_v25 = vadd.f32 %v8289_v31, %v8254_v37  ;;  %v3544_v37 = vadd.f32 %v8391_v20, %v8364_v14 }
 0xfff   :  { %v3249_v54 = vpop.xlane.xlu2 %3248  ;;  %v3254_v28 = vmul.f32 %v6152_v39, %v8336_v8  ;;  %v3574_v8 = vadd.f32 %v8391_v20, %v3573_v38 }
0x1000   :  { %6153 = vrcp.f32 %v3249_v54  ;;  %v3470_v0 = vpop.xlane.xlu1 %3469 }
0x1001   :  { %5803 = vmatmul.msk.f32.vlgmr.msrb.gmra.mxu3 %vm666_vm5, %v3585_v6  ;;  %5717 = vmatmul.msk.f32.gmra.mxu0 %vm711_vm13, %v3254_v28  ;;  %6155 = vrcp.f32 %v3467_v23  ;;  %v3587_v35 = vmul.f32 0.25, %v3574_v8  ;;  %v3627_v6 = vadd.f32 %v8383_v49, %v8376_v53  ;;  %v3547_v53 = vadd.f32 %v8391_v20, %v8366_v21 }
0x1002   :  { %5775 = vmatpush.xpose.msk.msra.mxu0 %vm666_vm5, %v3612_v43  ;;  %6157 = vrcp.f32 %v3470_v0 }
0x1003   :  { %v3578_v54 = vmul.f32 0.25, %v3547_v53 }
0x1006   :  { %v6154_v24 = vpop.eup %6153 }
0x1007   :  { %v3255_v50 = vmul.f32 %v6154_v24, %v8346_v45  ;;  %v6156_v22 = vpop.eup %6155  ;;  %v3674_v45 = vadd.f32 %v8289_v31, %v8256_v59  ;;  %v3473_v46 = vpop.xlane.xlu2 %3472  ;;  %v3541_v59 = vadd.f32 %v8391_v20, %v8362_v51  ;;  %v3621_v51 = vadd.f32 %v8383_v49, %v8368_v30 }
0x1008   :  { %v3477_v52 = vmul.f32 %v6156_v22, %v8340_v47  ;;  %v6158_v19 = vpop.eup %6157  ;;  %6159 = vrcp.f32 %v3473_v46 }
0x1009   :  { %5804 = vmatmul.msk.f32.gmra.mxu3 %vm666_vm5, %v3586_v58  ;;  %5718 = vmatmul.msk.f32.gmra.mxu0 %vm711_vm13, %v3255_v50  ;;  %v3478_v47 = vmul.f32 %v6158_v19, %v8350_v17  ;;  %v3576_v39 = vmul.f32 0.25, %v3541_v59  ;;  %v3624_v17 = vadd.f32 %v8383_v49, %v8372_v27 }
0x100e   :  { %v6160_v10 = vpop.eup %6159 }
0x100f   :  { %v3479_v60 = vmul.f32 %v6160_v10, %v8356_v42  ;;  %v3577_v42 = vmul.f32 0.25, %v3544_v37 }
0x1011   :  { %5805 = vmatmul.msk.f32.gmra.mxu3 %vm666_vm5, %v3587_v35  ;;  %5734 = vmatmul.msk.f32.vlgmr.msrb.gmra.mxu0 %vm711_vm13, %v3477_v52 }
0x1012   :  { %3805 = vmatpush.msrb.mxu0 %v3677_v48 }
0x1014   :  { %3806 = vmatpush.msrb.mxu0 %v3674_v45 }
0x1016   :  { %3807 = vmatpush.msrb.mxu0 %v3671_v25 }
0x1019   :  { %5735 = vmatmul.msk.f32.gmra.mxu0 %vm711_vm13, %v3478_v47 }
0x1021   :  { %5736 = vmatmul.msk.f32.gmra.mxu0 %vm711_vm13, %v3479_v60 }
0x1029   :  { %5776 = vmatmul.msk.f32.vlgmr.msra.gmra.mxu0 %vm666_vm5, %v3576_v39 }
0x102a   :  { %5782 = vmatpush.xpose.msk.msra.mxu0 %vm666_vm5, %v3627_v6 }
0x102e   :  { %5783 = vmatpush.xpose.msk.msra.mxu0 %vm666_vm5, %v3624_v17 }
0x1031   :  { %5777 = vmatmul.msk.f32.gmra.mxu0 %vm666_vm5, %v3577_v42 }
0x1032   :  { %5784 = vmatpush.xpose.msk.msra.mxu0 %vm666_vm5, %v3621_v51 }
0x1039   :  { %5778 = vmatmul.msk.f32.gmra.mxu0 %vm666_vm5, %v3578_v54  ;;  %v3686_v54 = vadd.f32 %v8289_v31, %v8273_v2  ;;  %v4155_v2 = vld [vmem:[%s9283_s2 + $0x378] sm:$0xff] }
0x103a   :  { %4206 = vmatpush.msra.mxu1 %v4155_v2 }
0x1076   :  { %v8456_v14 = vpop.f32.mrf.mxu0 }
0x107e   :  { %v8458_v28 = vpop.f32.mrf.mxu0 }
0x1086   :  { %v8460_v27 = vpop.f32.mrf.mxu0 }
0x108e   :  { %v8462_v43 = vpop.f32.mrf.mxu0 }
0x1096   :  { %v8464_v63 = vpop.f32.mrf.mxu0 }
0x109e   :  { %v8466_v30 = vpop.f32.mrf.mxu0 }
0x10a6   :  { %v3741_v49 = vpop.f32.mrf.mxu0 }
0x10a7   :  { %v3742_v23 = vadd.f32 %v3741_v49, %v6867_v44  ;;  %v3697_v49 = vpop.f32.mrf.mxu3 }
0x10a9   :  { %v3750_v21 = vsel %vm711_vm13, %v3742_v23, -inf }
0x10aa   :  { %3751 = vmax.xlane.f32.xlu0 %v3750_v21  ;;  %v3680_v21 = vadd.f32 %v8289_v31, %v8260_v55  ;;  %v3550_v55 = vadd.f32 %v8391_v20, %v8370_v15  ;;  %v3556_v15 = vadd.f32 %v8391_v20, %v8378_v9 }
0x10ae   :  { %v3744_v24 = vpop.f32.mrf.mxu0 }
0x10af   :  { %v3745_v58 = vadd.f32 %v3744_v24, %v6867_v44 }
0x10b1   :  { %v3753_v38 = vsel %vm711_vm13, %v3745_v58, -inf }
0x10b2   :  { %3754 = vmax.xlane.f32.xlu1 %v3753_v38 }
0x10b6   :  { %v3747_v50 = vpop.f32.mrf.mxu0 }
0x10b7   :  { %v3748_v8 = vadd.f32 %v3747_v50, %v6867_v44  ;;  %v3700_v50 = vpop.f32.mrf.mxu3 }
0x10b9   :  { %v3756_v0 = vsel %vm711_vm13, %v3748_v8, -inf }
0x10ba   :  { %3757 = vmax.xlane.f32.xlu2 %v3756_v0 }
0x10bf   :  { %v3703_v0 = vpop.f32.mrf.mxu3 }
0x111d   :  { %v3752_v22 = vpop.xlane.xlu0 %3751 }
0x111e   :  { %v3759_v35 = vsub.f32 %v3742_v23, %v3752_v22  ;;  %v3683_v23 = vadd.f32 %v8289_v31, %v8262_v33  ;;  %v3579_v22 = vmul.f32 0.25, %v3550_v55 }
0x1120   :  { %v3762_v52 = vmul.f32 1.442695, %v3759_v35  ;;  %v3704_v35 = vadd.f32 %v8289_v31, %v3703_v0 }
0x1122   :  { %6161 = vpow2.f32 %v3762_v52  ;;  %v3701_v52 = vadd.f32 %v8289_v31, %v3700_v50 }
0x1125   :  { %v3755_v48 = vpop.xlane.xlu1 %3754 }
0x1126   :  { %v3760_v45 = vsub.f32 %v3745_v58, %v3755_v48  ;;  %v3553_v48 = vadd.f32 %v8391_v20, %v8374_v26 }
0x1128   :  { %v6162_v46 = vpop.eup %6161  ;;  %v3764_v19 = vmul.f32 1.442695, %v3760_v45  ;;  %v3698_v45 = vadd.f32 %v8289_v31, %v3697_v49 }
0x1129   :  { %v3768_v25 = vsel %vm711_vm13, %v6162_v46, 0.0 }
0x112a   :  { %6163 = vpow2.f32 %v3764_v19  ;;  %3769 = vadd.xlane.f32.xlu0 %v3768_v25  ;;  %v3581_v19 = vmul.f32 0.25, %v3556_v15  ;;  %v4154_v25 = vld [vmem:[%s9283_s2 + $0x370] sm:$0xff] }
0x112b   :  { %4207 = vmatpush.msra.mxu1 %v4154_v25 }
0x112d   :  { %v3758_v47 = vpop.xlane.xlu2 %3757 }
0x112e   :  { %v3761_v10 = vsub.f32 %v3748_v8, %v3758_v47 }
0x1130   :  { %v6164_v60 = vpop.eup %6163  ;;  %v3766_v59 = vmul.f32 1.442695, %v3761_v10  ;;  %v3965_v10 = vpop.f32.mrf.mxu1 }
0x1131   :  { %v3771_v39 = vsel %vm711_vm13, %v6164_v60, 0.0 }
0x1132   :  { %6165 = vpow2.f32 %v3766_v59  ;;  %3772 = vadd.xlane.f32.xlu1 %v3771_v39  ;;  %v3966_v59 = vadd.f32 %v3965_v10, %v6867_v44 }
0x1138   :  { %v6166_v6 = vpop.eup %6165 }
0x1139   :  { %v3774_v37 = vsel %vm711_vm13, %v6166_v6, 0.0 }
0x113a   :  { %3775 = vadd.xlane.f32.xlu2 %v3774_v37  ;;  %v3968_v37 = vpop.f32.mrf.mxu1 }
0x119d   :  { %v3770_v17 = vpop.xlane.xlu0 %3769 }
0x119e   :  { %6167 = vrcp.f32 %v3770_v17 }
0x11a4   :  { %v6168_v42 = vpop.eup %6167 }
0x11a5   :  { %v3780_v51 = vmul.f32 %v6168_v42, %v6162_v46  ;;  %v3773_v53 = vpop.xlane.xlu1 %3772  ;;  %v3580_v46 = vmul.f32 0.25, %v3553_v48  ;;  %v3974_v42 = vsel %vm711_vm13, %v3966_v59, -inf }
0x11a6   :  { %6169 = vrcp.f32 %v3773_v53  ;;  %v3969_v53 = vadd.f32 %v3968_v37, %v6867_v44 }
0x11a7   :  { %5779 = vmatmul.msk.f32.vlgmr.msrb.gmra.mxu0 %vm711_vm13, %v3780_v51  ;;  %v4077_v51 = vpop.f32.mrf.mxu3 }
0x11a8   :  { %3917 = vmatpush.msrb.mxu0 %v3686_v54  ;;  %v4078_v54 = vadd.f32 %v4077_v51, %v6867_v44 }
0x11aa   :  { %3918 = vmatpush.msrb.mxu0 %v3683_v23 }
0x11ac   :  { %v6170_v24 = vpop.eup %6169  ;;  %3919 = vmatpush.msrb.mxu0 %v3680_v21 }
0x11ad   :  { %v3776_v58 = vpop.xlane.xlu2 %3775  ;;  %v3781_v38 = vmul.f32 %v6170_v24, %v6164_v60  ;;  %v3977_v24 = vsel %vm711_vm13, %v3969_v53, -inf }
0x11ae   :  { %6171 = vrcp.f32 %v3776_v58  ;;  %v3971_v58 = vpop.f32.mrf.mxu1 }
0x11af   :  { %5780 = vmatmul.msk.f32.gmra.mxu0 %vm711_vm13, %v3781_v38  ;;  %v4086_v38 = vsel %vm711_vm13, %v4078_v54, -inf  ;;  %v3972_v2 = vadd.f32 %v3971_v58, %v6867_v44 }
0x11b1   :  { %v3980_v50 = vsel %vm711_vm13, %v3972_v2, -inf }
0x11b4   :  { %v6172_v8 = vpop.eup %6171 }
0x11b5   :  { %v3782_v33 = vmul.f32 %v6172_v8, %v6166_v6 }
0x11b7   :  { %5781 = vmatmul.msk.f32.gmra.mxu0 %vm711_vm13, %v3782_v33 }
0x11bf   :  { %5785 = vmatmul.msk.f32.vlgmr.msra.gmra.mxu0 %vm666_vm5, %v3579_v22 }
0x11c0   :  { %4141 = vmatpush.msra.mxu0 %v3704_v35 }
0x11c2   :  { %4142 = vmatpush.msra.mxu0 %v3701_v52 }
0x11c4   :  { %4143 = vmatpush.msra.mxu0 %v3698_v45 }
0x11c7   :  { %5786 = vmatmul.msk.f32.gmra.mxu0 %vm666_vm5, %v3580_v46 }
0x11cf   :  { %5787 = vmatmul.msk.f32.gmra.mxu0 %vm666_vm5, %v3581_v19 }
0x1224   :  { %v3809_v47 = vpop.f32.mrf.mxu0 }
0x1225   :  { %5809 = vmatmul.msk.f32.vlgmr.msra.gmra.mxu1 %vm666_vm5, %v3809_v47 }
0x122c   :  { %v3812_v31 = vpop.f32.mrf.mxu0 }
0x122d   :  { %5810 = vmatmul.msk.f32.gmra.mxu1 %vm666_vm5, %v3812_v31 }
0x1234   :  { %v3815_v26 = vpop.f32.mrf.mxu0 }
0x1235   :  { %5811 = vmatmul.msk.f32.gmra.mxu1 %vm666_vm5, %v3815_v26 }
0x123c   :  { %v3853_v60 = vpop.f32.mrf.mxu0 }
0x123d   :  { %v3854_v9 = vadd.f32 %v3853_v60, %v6867_v44 }
0x123f   :  { %v3862_v20 = vsel %vm711_vm13, %v3854_v9, -inf }
0x1240   :  { %3863 = vmax.xlane.f32.xlu0 %v3862_v20 }
0x1244   :  { %v3856_v39 = vpop.f32.mrf.mxu0 }
0x1245   :  { %v3857_v6 = vadd.f32 %v3856_v39, %v6867_v44 }
0x1247   :  { %v3865_v17 = vsel %vm711_vm13, %v3857_v6, -inf }
0x1248   :  { %3866 = vmax.xlane.f32.xlu1 %v3865_v17  ;;  %3975 = vmax.xlane.f32.xlu0 %v3974_v42 }
0x124c   :  { %v3859_v49 = vpop.f32.mrf.mxu0 }
0x124d   :  { %v3860_v23 = vadd.f32 %v3859_v49, %v6867_v44 }
0x124f   :  { %v3868_v21 = vsel %vm711_vm13, %v3860_v23, -inf }
0x1250   :  { %3869 = vmax.xlane.f32.xlu2 %v3868_v21  ;;  %3978 = vmax.xlane.f32.xlu1 %v3977_v24 }
0x1251   :  { %4087 = vmax.xlane.f32.xlu0 %v4086_v38 }
0x1258   :  { %3981 = vmax.xlane.f32.xlu2 %v3980_v50 }
0x12b3   :  { %v3864_v8 = vpop.xlane.xlu0 %3863 }
0x12b4   :  { %v3871_v33 = vsub.f32 %v3854_v9, %v3864_v8  ;;  %v3515_v8 = vld [vmem:[%s9283_s2 + $0x2e8] sm:$0xff] }
0x12b6   :  { %v3874_v55 = vmul.f32 1.442695, %v3871_v33 }
0x12b8   :  { %6173 = vpow2.f32 %v3874_v55 }
0x12bb   :  { %v3867_v0 = vpop.xlane.xlu1 %3866  ;;  %v3976_v22 = vpop.xlane.xlu0 %3975 }
0x12bc   :  { %v3872_v35 = vsub.f32 %v3857_v6, %v3867_v0  ;;  %v3983_v52 = vsub.f32 %v3966_v59, %v3976_v22 }
0x12be   :  { %v6174_v48 = vpop.eup %6173  ;;  %v3876_v45 = vmul.f32 1.442695, %v3872_v35  ;;  %v3986_v46 = vmul.f32 1.442695, %v3983_v52 }
0x12bf   :  { %v3880_v15 = vsel %vm711_vm13, %v6174_v48, 0.0 }
0x12c0   :  { %6175 = vpow2.f32 %v3876_v45  ;;  %3881 = vadd.xlane.f32.xlu1 %v3880_v15 }
0x12c1   :  { %6177 = vpow2.f32 %v3986_v46 }
0x12c3   :  { %v3870_v19 = vpop.xlane.xlu2 %3869  ;;  %v3979_v25 = vpop.xlane.xlu1 %3978 }
0x12c4   :  { %v3873_v47 = vsub.f32 %v3860_v23, %v3870_v19  ;;  %v3984_v31 = vsub.f32 %v3969_v53, %v3979_v25  ;;  %v4088_v26 = vpop.xlane.xlu0 %4087 }
0x12c5   :  { %v4095_v10 = vsub.f32 %v4078_v54, %v4088_v26 }
0x12c6   :  { %v6176_v60 = vpop.eup %6175  ;;  %v3878_v9 = vmul.f32 1.442695, %v3873_v47  ;;  %v3988_v20 = vmul.f32 1.442695, %v3984_v31 }
0x12c7   :  { %v6178_v39 = vpop.eup %6177  ;;  %v4098_v6 = vmul.f32 1.442695, %v4095_v10  ;;  %v3883_v59 = vsel %vm711_vm13, %v6176_v60, 0.0 }
0x12c8   :  { %6179 = vpow2.f32 %v3878_v9  ;;  %3884 = vadd.xlane.f32.xlu2 %v3883_v59  ;;  %v3992_v37 = vsel %vm711_vm13, %v6178_v39, 0.0 }
0x12c9   :  { %6181 = vpow2.f32 %v3988_v20  ;;  %3993 = vadd.xlane.f32.xlu1 %v3992_v37 }
0x12ca   :  { %6183 = vpow2.f32 %v4098_v6 }
0x12cb   :  { %v3982_v17 = vpop.xlane.xlu2 %3981 }
0x12cc   :  { %v3985_v42 = vsub.f32 %v3972_v2, %v3982_v17  ;;  %v3516_v2 = vld [vmem:[%s9283_s2 + $0x2f0] sm:$0xff] }
0x12cd   :  { %4295 = vmatpush.msrb.mxu2 %v3516_v2 }
0x12ce   :  { %v6180_v51 = vpop.eup %6179  ;;  %v3990_v53 = vmul.f32 1.442695, %v3985_v42 }
0x12cf   :  { %v6182_v49 = vpop.eup %6181  ;;  %v3886_v54 = vsel %vm711_vm13, %v6180_v51, 0.0  ;;  %4296 = vmatpush.msrb.mxu2 %v3515_v8 }
0x12d0   :  { %v6184_v23 = vpop.eup %6183  ;;  %6185 = vpow2.f32 %v3990_v53  ;;  %v3995_v21 = vsel %vm711_vm13, %v6182_v49, 0.0  ;;  %3887 = vadd.xlane.f32.xlu0 %v3886_v54 }
0x12d1   :  { %3996 = vadd.xlane.f32.xlu2 %v3995_v21  ;;  %v4104_v24 = vsel %vm711_vm13, %v6184_v23, 0.0 }
0x12d2   :  { %4105 = vadd.xlane.f32.xlu1 %v4104_v24 }
0x12d6   :  { %v6186_v58 = vpop.eup %6185 }
0x12d7   :  { %v3998_v38 = vsel %vm711_vm13, %v6186_v58, 0.0 }
0x12d8   :  { %3999 = vadd.xlane.f32.xlu0 %v3998_v38 }
0x1333   :  { %v3882_v50 = vpop.xlane.xlu1 %3881 }
0x1334   :  { %6187 = vrcp.f32 %v3882_v50 }
0x133a   :  { %v6188_v33 = vpop.eup %6187 }
0x133b   :  { %v3892_v55 = vmul.f32 %v6188_v33, %v6174_v48  ;;  %v3885_v0 = vpop.xlane.xlu2 %3884 }
0x133c   :  { %6189 = vrcp.f32 %v3885_v0  ;;  %v3994_v22 = vpop.xlane.xlu1 %3993 }
0x133d   :  { %6191 = vrcp.f32 %v3994_v22  ;;  %5788 = vmatmul.msk.f32.vlgmr.msrb.gmra.mxu0 %vm711_vm13, %v3892_v55 }
0x1342   :  { %v6190_v35 = vpop.eup %6189 }
0x1343   :  { %v6192_v52 = vpop.eup %6191  ;;  %v3888_v45 = vpop.xlane.xlu0 %3887  ;;  %v3893_v46 = vmul.f32 %v6190_v35, %v6176_v60 }
0x1344   :  { %v4004_v15 = vmul.f32 %v6192_v52, %v6178_v39  ;;  %v3997_v19 = vpop.xlane.xlu2 %3996  ;;  %6193 = vrcp.f32 %v3888_v45 }
0x1345   :  { %6195 = vrcp.f32 %v3997_v19  ;;  %5789 = vmatmul.msk.f32.gmra.mxu0 %vm711_vm13, %v3893_v46  ;;  %v4106_v25 = vpop.xlane.xlu1 %4105 }
0x1346   :  { %5797 = vmatmul.msk.f32.vlgmr.msra.gmra.mxu2 %vm711_vm13, %v4004_v15  ;;  %6197 = vrcp.f32 %v4106_v25 }
0x134a   :  { %v6194_v48 = vpop.eup %6193 }
0x134b   :  { %v6196_v47 = vpop.eup %6195  ;;  %v4000_v31 = vpop.xlane.xlu0 %3999  ;;  %v3894_v26 = vmul.f32 %v6194_v48, %v6180_v51 }
0x134c   :  { %6199 = vrcp.f32 %v4000_v31  ;;  %v4005_v10 = vmul.f32 %v6196_v47, %v6182_v49  ;;  %v6198_v60 = vpop.eup %6197 }
0x134d   :  { %5790 = vmatmul.msk.f32.gmra.mxu0 %vm711_vm13, %v3894_v26  ;;  %v4116_v20 = vmul.f32 %v6198_v60, %v6184_v23 }
0x134e   :  { %5798 = vmatmul.msk.f32.gmra.mxu2 %vm711_vm13, %v4005_v10 }
0x1352   :  { %v6200_v9 = vpop.eup %6199 }
0x1353   :  { %v4006_v39 = vmul.f32 %v6200_v9, %v6186_v58 }
0x1355   :  { %5806 = vmatmul.msk.f32.vlgmr.msra.gmra.mxu0 %vm711_vm13, %v4116_v20 }
0x1356   :  { %5799 = vmatmul.msk.f32.gmra.mxu2 %vm711_vm13, %v4006_v39 }
0x135e   :  { %5821 = vmatmul.msk.f32.vlgmr.msrb.gmra.mxu2 %vm666_vm5, %v8278_v4 }
0x1366   :  { %5822 = vmatmul.msk.f32.gmra.mxu2 %vm666_vm5, %v8280_v13 }
0x136e   :  { %5823 = vmatmul.msk.f32.gmra.mxu2 %vm666_vm5, %v8282_v62 }
0x1376   :  { %5824 = vmatmul.msk.f32.gmra.mxu2 %vm666_vm5, %v8456_v14  ;;  %v4209_v14 = vpop.f32.mrf.mxu1 }
0x137e   :  { %5825 = vmatmul.msk.f32.gmra.mxu2 %vm666_vm5, %v8458_v28  ;;  %v4212_v6 = vpop.f32.mrf.mxu1 }
0x1386   :  { %5826 = vmatmul.msk.f32.gmra.mxu2 %vm666_vm5, %v8460_v27 }
0x138e   :  { %5827 = vmatmul.msk.f32.gmra.mxu2 %vm666_vm5, %v8338_v7 }
0x1396   :  { %5828 = vmatmul.msk.f32.gmra.mxu2 %vm666_vm5, %v8348_v11 }
0x139e   :  { %5829 = vmatmul.msk.f32.gmra.mxu2 %vm666_vm5, %v8358_v56 }
0x13a6   :  { %5830 = vmatmul.msk.f32.gmra.mxu2 %vm666_vm5, %v8462_v43  ;;  %v8573_v43 = vld [vmem:[%s9283_s2 + $0x380] ss:$0 sm:$0xff] }
0x13ae   :  { %5831 = vmatmul.msk.f32.gmra.mxu2 %vm666_vm5, %v8464_v63 }
0x13b6   :  { %5832 = vmatmul.msk.f32.gmra.mxu2 %vm666_vm5, %v8466_v30 }
0x13ba   :  { %v3921_v4 = vpop.f32.mrf.mxu0 }
0x13bb   :  { %5812 = vmatmul.msk.f32.gmra.mxu1 %vm666_vm5, %v3921_v4 }
0x13c2   :  { %v3924_v13 = vpop.f32.mrf.mxu0 }
0x13c3   :  { %5813 = vmatmul.msk.f32.gmra.mxu1 %vm666_vm5, %v3924_v13 }
0x13c9   :  { %v4033_v62 = vpop.f32.mrf.mxu2 }
0x13ca   :  { %v3927_v7 = vpop.f32.mrf.mxu0 }
0x13cb   :  { %5814 = vmatmul.msk.f32.gmra.mxu1 %vm666_vm5, %v3927_v7 }
0x13d1   :  { %v4036_v11 = vpop.f32.mrf.mxu2 }
0x13d2   :  { %v4145_v17 = vpop.f32.mrf.mxu0 }
0x13d3   :  { %5815 = vmatmul.msk.f32.gmra.mxu1 %vm666_vm5, %v4033_v62 }
0x13d9   :  { %v4039_v56 = vpop.f32.mrf.mxu2 }
0x13db   :  { %5816 = vmatmul.msk.f32.gmra.mxu1 %vm666_vm5, %v4036_v11 }
0x13e1   :  { %v4298_v28 = vpop.f32.mrf.mxu2 }
0x13e2   :  { %v4299_v27 = vadd.f32 %v4298_v28, %v4209_v14 }
0x13e3   :  { %5817 = vmatmul.msk.f32.gmra.mxu1 %vm666_vm5, %v4039_v56 }
0x13e4   :  { %v4334_v63 = vadd.f32 %v4299_v27, %v7659_v32  ;;  %v4215_v32 = vpop.f32.mrf.mxu1 }
0x13e6   :  { %v8578_v30 = vadd.f32 %v8573_v43, %v4334_v63 }
0x13e8   :  { %v4362_v59 = vsel %vm143_vm1, %v8578_v30, 0.0 }
0x13e9   :  { %v4301_v37 = vpop.f32.mrf.mxu2  ;;  %4363 = vadd.xlane.f32.xlu2 %v4362_v59 }
0x13ea   :  { %v4302_v42 = vadd.f32 %v4301_v37, %v4212_v6 }
0x13eb   :  { %5818 = vmatmul.msk.f32.gmra.mxu1 %vm666_vm5, %v4145_v17 }
0x13ec   :  { %v4335_v51 = vadd.f32 %v4302_v42, %v7667_v41 }
0x13ee   :  { %v4349_v53 = vadd.f32 %v8573_v43, %v4335_v51 }
0x13f0   :  { %v4365_v49 = vsel %vm143_vm1, %v4349_v53, 0.0 }
0x13f1   :  { %v4304_v54 = vpop.f32.mrf.mxu2  ;;  %4366 = vadd.xlane.f32.xlu0 %v4365_v49 }
0x13f2   :  { %v4305_v23 = vadd.f32 %v4304_v54, %v4215_v32 }
0x13f4   :  { %v4336_v21 = vadd.f32 %v4305_v23, %v7674_v12 }
0x13f6   :  { %v4350_v24 = vadd.f32 %v8573_v43, %v4336_v21 }
0x13f8   :  { %v4368_v58 = vsel %vm143_vm1, %v4350_v24, 0.0 }
0x13f9   :  { %4369 = vadd.xlane.f32.xlu1 %v4368_v58  ;;  %v4307_v38 = vpop.f32.mrf.mxu2 }
0x1401   :  { %v4310_v8 = vpop.f32.mrf.mxu2 }
0x1409   :  { %v4313_v52 = vpop.f32.mrf.mxu2 }
0x1411   :  { %v4316_v48 = vpop.f32.mrf.mxu2 }
0x1438   :  { %v4218_v50 = vpop.f32.mrf.mxu1 }
0x1439   :  { %v4308_v2 = vadd.f32 %v4307_v38, %v4218_v50 }
0x143b   :  { %v4337_v41 = vadd.f32 %v4308_v2, %v7696_v34 }
0x143d   :  { %v8591_v33 = vadd.f32 %v8573_v43, %v4337_v41 }
0x143f   :  { %v4371_v55 = vsel %vm143_vm1, %v8591_v33, 0.0 }
0x1440   :  { %v4221_v0 = vpop.f32.mrf.mxu1  ;;  %4372 = vadd.xlane.f32.xlu2 %v4371_v55 }
0x1441   :  { %v4311_v12 = vadd.f32 %v4310_v8, %v4221_v0  ;;  %v4080_v8 = vpop.f32.mrf.mxu3 }
0x1443   :  { %v4338_v22 = vadd.f32 %v4311_v12, %v7710_v18  ;;  %v8659_v12 = vadd.f32 %v4080_v8, %v6867_v44  ;;  %v8717_v8 = vld [vmem:[%s9283_s2 + $0x388] ss:$0 sm:$0xff] }
0x1445   :  { %v8597_v35 = vadd.f32 %v8573_v43, %v4338_v22 }
0x1447   :  { %v4374_v45 = vsel %vm143_vm1, %v8597_v35, 0.0 }
0x1448   :  { %v4224_v34 = vpop.f32.mrf.mxu1  ;;  %4375 = vadd.xlane.f32.xlu0 %v4374_v45  ;;  %v4089_v45 = vsel %vm711_vm13, %v8659_v12, -inf }
0x1449   :  { %v4314_v46 = vadd.f32 %v4313_v52, %v4224_v34 }
0x144b   :  { %v4339_v15 = vadd.f32 %v4314_v46, %v7717_v3  ;;  %v4319_v3 = vpop.f32.mrf.mxu2  ;;  %v4083_v46 = vpop.f32.mrf.mxu3 }
0x144d   :  { %v8603_v19 = vadd.f32 %v8573_v43, %v4339_v15 }
0x144f   :  { %v4377_v25 = vsel %vm143_vm1, %v8603_v19, 0.0 }
0x1450   :  { %v4227_v18 = vpop.f32.mrf.mxu1  ;;  %4378 = vadd.xlane.f32.xlu1 %v4377_v25 }
0x1451   :  { %v4317_v47 = vadd.f32 %v4316_v48, %v4227_v18  ;;  %v8671_v48 = vadd.f32 %v4083_v46, %v6867_v44  ;;  %v4655_v44 = vld [vmem:[%s9285_s3 + $0x80] sm:$0xff] }
0x1452   :  { %4705 = vmatpush.msra.mxu3 %v4655_v44 }
0x1453   :  { %v4340_v31 = vadd.f32 %v4317_v47, %v7723_v1  ;;  %v4322_v11 = vpop.f32.mrf.mxu2  ;;  %v4092_v47 = vsel %vm711_vm13, %v8671_v48, -inf }
0x1455   :  { %v8609_v26 = vadd.f32 %v8573_v43, %v4340_v31 }
0x1457   :  { %v4380_v10 = vsel %vm143_vm1, %v8609_v26, 0.0 }
0x1458   :  { %v4230_v60 = vpop.f32.mrf.mxu1  ;;  %4381 = vadd.xlane.f32.xlu0 %v4380_v10 }
0x1459   :  { %v4320_v39 = vadd.f32 %v4319_v3, %v4230_v60  ;;  %v4654_v3 = vld [vmem:[%s9285_s3 + $0x70] sm:$0xff] }
0x145a   :  { %4706 = vmatpush.msra.mxu3 %v4654_v3 }
0x145b   :  { %v4341_v62 = vadd.f32 %v4320_v39, %v7729_v40 }
0x145c   :  { %v4364_v9 = vpop.xlane.xlu2 %4363 }
0x145d   :  { %v4398_v20 = vmul.f32 %v4364_v9, %v6428_v57  ;;  %v8625_v63 = vadd.f32 %v8573_v43, %v4341_v62 }
0x145f   :  { %v8615_v4 = vsub.f32 %v8578_v30, %v4398_v20  ;;  %v4383_v37 = vsel %vm143_vm1, %v8625_v63, 0.0  ;;  %v4653_v20 = vld [vmem:[%s9285_s3 + $0x60] sm:$0xff] }
0x1460   :  { %v4233_v1 = vpop.f32.mrf.mxu1  ;;  %4707 = vmatpush.msra.mxu3 %v4653_v20 }
0x1461   :  { %v4422_v13 = vmul.f32 %v8615_v4, %v8615_v4  ;;  %v4323_v28 = vadd.f32 %v4322_v11, %v4233_v1 }
0x1463   :  { %v4434_v7 = vsel %vm143_vm1, %v4422_v13, 0.0  ;;  %v4342_v59 = vadd.f32 %v4323_v28, %v7735_v29  ;;  %v4652_v13 = vld [vmem:[%s9285_s3 + $0x50] sm:$0xff] }
0x1464   :  { %v4367_v56 = vpop.xlane.xlu0 %4366  ;;  %4435 = vadd.xlane.f32.xlu2 %v4434_v7  ;;  %4708 = vmatpush.msra.mxu3 %v4652_v13 }
0x1465   :  { %v4399_v14 = vmul.f32 %v4367_v56, %v6428_v57  ;;  %v8637_v54 = vadd.f32 %v8573_v43, %v4342_v59 }
0x1467   :  { %v8622_v27 = vsub.f32 %v4349_v53, %v4399_v14  ;;  %v4325_v53 = vpop.f32.mrf.mxu2  ;;  %v4386_v58 = vsel %vm143_vm1, %v8637_v54, 0.0 }
0x1468   :  { %v4236_v17 = vpop.f32.mrf.mxu1 }
0x1469   :  { %v4423_v6 = vmul.f32 %v8622_v27, %v8622_v27  ;;  %v4326_v49 = vadd.f32 %v4325_v53, %v4236_v17 }
0x146b   :  { %v4437_v40 = vsel %vm143_vm1, %v4423_v6, 0.0  ;;  %v4343_v23 = vadd.f32 %v4326_v49, %v7846_v36 }
0x146c   :  { %v4370_v42 = vpop.xlane.xlu1 %4369  ;;  %4438 = vadd.xlane.f32.xlu1 %v4437_v40  ;;  %4384 = vadd.xlane.f32.xlu2 %v4383_v37 }
0x146d   :  { %v4400_v51 = vmul.f32 %v4370_v42, %v6428_v57  ;;  %v8646_v38 = vadd.f32 %v8573_v43, %v4343_v23 }
0x146f   :  { %v8634_v32 = vsub.f32 %v4350_v24, %v4400_v51  ;;  %v4389_v24 = vsel %vm143_vm1, %v8646_v38, 0.0 }
0x1471   :  { %v4424_v29 = vmul.f32 %v8634_v32, %v8634_v32 }
0x1473   :  { %v4440_v21 = vsel %vm143_vm1, %v4424_v29, 0.0 }
0x1474   :  { %4441 = vadd.xlane.f32.xlu0 %v4440_v21  ;;  %4387 = vadd.xlane.f32.xlu1 %v4386_v58 }
0x147c   :  { %4390 = vadd.xlane.f32.xlu0 %v4389_v24 }
0x14b3   :  { %v4373_v50 = vpop.xlane.xlu2 %4372 }
0x14b4   :  { %v4401_v2 = vmul.f32 %v4373_v50, %v6428_v57 }
0x14b6   :  { %v8652_v41 = vsub.f32 %v8591_v33, %v4401_v2 }
0x14b8   :  { %v4425_v36 = vmul.f32 %v8652_v41, %v8652_v41 }
0x14ba   :  { %v4443_v55 = vsel %vm143_vm1, %v4425_v36, 0.0 }
0x14bb   :  { %v4376_v0 = vpop.xlane.xlu0 %4375  ;;  %4444 = vadd.xlane.f32.xlu2 %v4443_v55 }
0x14bc   :  { %v4402_v43 = vmul.f32 %v4376_v0, %v6428_v57 }
0x14be   :  { %v8662_v22 = vsub.f32 %v8597_v35, %v4402_v43 }
0x14c0   :  { %v4426_v52 = vmul.f32 %v8662_v22, %v8662_v22 }
0x14c2   :  { %v4446_v34 = vsel %vm143_vm1, %v4426_v52, 0.0 }
0x14c3   :  { %v4379_v15 = vpop.xlane.xlu1 %4378  ;;  %4090 = vmax.xlane.f32.xlu2 %v4089_v45  ;;  %4447 = vadd.xlane.f32.xlu1 %v4446_v34 }
0x14c4   :  { %v4403_v25 = vmul.f32 %v4379_v15, %v6428_v57 }
0x14c6   :  { %v8674_v35 = vsub.f32 %v8603_v19, %v4403_v25 }
0x14c8   :  { %v4427_v18 = vmul.f32 %v8674_v35, %v8674_v35 }
0x14ca   :  { %v4449_v31 = vsel %vm143_vm1, %v4427_v18, 0.0 }
0x14cb   :  { %v4382_v10 = vpop.xlane.xlu0 %4381  ;;  %4093 = vmax.xlane.f32.xlu1 %v4092_v47  ;;  %4450 = vadd.xlane.f32.xlu0 %v4449_v31 }
0x14cc   :  { %v4404_v60 = vmul.f32 %v4382_v10, %v6428_v57 }
0x14ce   :  { %v8686_v19 = vsub.f32 %v8609_v26, %v4404_v60 }
0x14d0   :  { %v4428_v9 = vmul.f32 %v8686_v19, %v8686_v19 }
0x14d2   :  { %v4452_v39 = vsel %vm143_vm1, %v4428_v9, 0.0 }
0x14d3   :  { %4453 = vadd.xlane.f32.xlu2 %v4452_v39 }
0x14d7   :  { %v4436_v1 = vpop.xlane.xlu2 %4435 }
0x14d8   :  { %v4470_v62 = vmul.f32 %v4436_v1, %v6428_v57 }
0x14da   :  { %v4482_v7 = vadd.f32 1e-06, %v4470_v62 }
0x14dc   :  { %6201 = vrsqrt.f32 %v4482_v7  ;;  %vm4500_vm15 = vweird.f32 %v4482_v7 }
0x14df   :  { %v4439_v11 = vpop.xlane.xlu1 %4438  ;;  %v4385_v56 = vpop.xlane.xlu2 %4384 }
0x14e0   :  { %v4471_v14 = vmul.f32 %v4439_v11, %v6428_v57  ;;  %v4405_v28 = vmul.f32 %v4385_v56, %v6428_v57 }
0x14e2   :  { %v6202_v6 = vpop.eup %6201  ;;  %v4483_v59 = vadd.f32 1e-06, %v4471_v14  ;;  %v8704_v40 = vsub.f32 %v8625_v63, %v4405_v28 }
0x14e3   :  { %v4495_v37 = vmul.f32 %v6202_v6, %v4482_v7  ;;  %vm4501_vm14 = vweird.f32 %v6202_v6 }
0x14e4   :  { %6203 = vrsqrt.f32 %v4483_v59  ;;  %v4429_v17 = vmul.f32 %v8704_v40, %v8704_v40  ;;  %vm4502_vm2 = vmor %vm4500_vm15, %vm4501_vm14  ;;  %vm4510_vm4 = vweird.f32 %v4483_v59 }
0x14e5   :  { %v4496_v42 = vmul.f32 %v6202_v6, %v4495_v37 }
0x14e6   :  { %v4455_v51 = vsel %vm143_vm1, %v4429_v17, 0.0 }
0x14e7   :  { %v4497_v53 = vmul.f32 0.5, %v4496_v42  ;;  %v4442_v49 = vpop.xlane.xlu0 %4441  ;;  %v4388_v29 = vpop.xlane.xlu1 %4387  ;;  %4456 = vadd.xlane.f32.xlu0 %v4455_v51 }
0x14e8   :  { %v4472_v23 = vmul.f32 %v4442_v49, %v6428_v57  ;;  %v4406_v21 = vmul.f32 %v4388_v29, %v6428_v57 }
0x14e9   :  { %v4498_v58 = vsub.f32 1.5, %v4497_v53 }
0x14ea   :  { %v6204_v63 = vpop.eup %6203  ;;  %v4484_v24 = vadd.f32 1e-06, %v4472_v23  ;;  %v8712_v50 = vsub.f32 %v8637_v54, %v4406_v21  ;;  %v8724_v54 = vld [vmem:[%s9283_s2 + $0x390] ss:$0 sm:$0xff] }
0x14eb   :  { %v4499_v2 = vmul.f32 %v6202_v6, %v4498_v58  ;;  %v4505_v36 = vmul.f32 %v6204_v63, %v4483_v59  ;;  %vm4511_vm3 = vweird.f32 %v6204_v63 }
0x14ec   :  { %6205 = vrsqrt.f32 %v4484_v24  ;;  %v4430_v55 = vmul.f32 %v8712_v50, %v8712_v50  ;;  %vm4512_vm6 = vmor %vm4510_vm4, %vm4511_vm3  ;;  %vm4520_vm8 = vweird.f32 %v4484_v24 }
0x14ed   :  { %v4503_v0 = vsel %vm4502_vm2, %v6202_v6, %v4499_v2  ;;  %v4506_v43 = vmul.f32 %v6204_v63, %v4505_v36 }
0x14ee   :  { %v4614_v52 = vmul.f32 %v4503_v0, %v8615_v4  ;;  %v4458_v45 = vsel %vm143_vm1, %v4430_v55, 0.0 }
0x14ef   :  { %v4507_v34 = vmul.f32 0.5, %v4506_v43  ;;  %4459 = vadd.xlane.f32.xlu1 %v4458_v45  ;;  %v4391_v46 = vpop.xlane.xlu0 %4390 }
0x14f0   :  { %v4627_v15 = vmul.f32 %v8717_v8, %v4614_v52  ;;  %v4407_v25 = vmul.f32 %v4391_v46, %v6428_v57 }
0x14f1   :  { %v4508_v18 = vsub.f32 1.5, %v4507_v34 }
0x14f2   :  { %v6206_v47 = vpop.eup %6205  ;;  %v4640_v31 = vadd.f32 %v8724_v54, %v4627_v15  ;;  %v8732_v10 = vsub.f32 %v8646_v38, %v4407_v25 }
0x14f3   :  { %v4509_v60 = vmul.f32 %v6204_v63, %v4508_v18  ;;  %v4515_v4 = vmul.f32 %v6206_v47, %v4484_v24  ;;  %vm4521_vm7 = vweird.f32 %v6206_v47 }
0x14f4   :  { %5833 = vmatmul.msk.f32.vlgmr.msra.gmra.mxu3 %vm143_vm1, %v4640_v31  ;;  %v4431_v44 = vmul.f32 %v8732_v10, %v8732_v10  ;;  %vm4522_vm9 = vmor %vm4520_vm8, %vm4521_vm7 }
0x14f5   :  { %v4513_v3 = vsel %vm4512_vm6, %v6204_v63, %v4509_v60  ;;  %v4516_v9 = vmul.f32 %v6206_v47, %v4515_v4 }
0x14f6   :  { %v4615_v20 = vmul.f32 %v4513_v3, %v8622_v27  ;;  %v4461_v39 = vsel %vm143_vm1, %v4431_v44, 0.0 }
0x14f7   :  { %v4517_v13 = vmul.f32 0.5, %v4516_v9  ;;  %4462 = vadd.xlane.f32.xlu2 %v4461_v39 }
0x14f8   :  { %v4628_v1 = vmul.f32 %v8717_v8, %v4615_v20 }
0x14f9   :  { %v4518_v62 = vsub.f32 1.5, %v4517_v13 }
0x14fa   :  { %v4641_v7 = vadd.f32 %v8724_v54, %v4628_v1 }
0x14fb   :  { %v4519_v11 = vmul.f32 %v6206_v47, %v4518_v62 }
0x14fc   :  { %5834 = vmatmul.msk.f32.gmra.mxu3 %vm143_vm1, %v4641_v7 }
0x14fd   :  { %v4523_v56 = vsel %vm4522_vm9, %v6206_v47, %v4519_v11 }
0x14fe   :  { %v4616_v14 = vmul.f32 %v4523_v56, %v8634_v32 }
0x1500   :  { %v4629_v27 = vmul.f32 %v8717_v8, %v4616_v14 }
0x1502   :  { %v4642_v28 = vadd.f32 %v8724_v54, %v4629_v27 }
0x1504   :  { %5835 = vmatmul.msk.f32.gmra.mxu3 %vm143_vm1, %v4642_v28 }
0x152e   :  { %v4445_v6 = vpop.xlane.xlu2 %4444 }
0x152f   :  { %v4473_v59 = vmul.f32 %v4445_v6, %v6428_v57 }
0x1531   :  { %v4485_v37 = vadd.f32 1e-06, %v4473_v59 }
0x1533   :  { %6207 = vrsqrt.f32 %v4485_v37  ;;  %vm4530_vm11 = vweird.f32 %v4485_v37 }
0x1536   :  { %v4091_v17 = vpop.xlane.xlu2 %4090  ;;  %v4448_v42 = vpop.xlane.xlu1 %4447 }
0x1537   :  { %v4096_v51 = vsub.f32 %v8659_v12, %v4091_v17  ;;  %v4474_v53 = vmul.f32 %v4448_v42, %v6428_v57 }
0x1539   :  { %v6208_v49 = vpop.eup %6207  ;;  %v4100_v29 = vmul.f32 1.442695, %v4096_v51  ;;  %v4486_v32 = vadd.f32 1e-06, %v4474_v53 }
0x153a   :  { %v4525_v23 = vmul.f32 %v6208_v49, %v4485_v37  ;;  %vm4531_vm10 = vweird.f32 %v6208_v49 }
0x153b   :  { %6209 = vpow2.f32 %v4100_v29  ;;  %vm4532_vm12 = vmor %vm4530_vm11, %vm4531_vm10  ;;  %vm4540_vm15 = vweird.f32 %v4486_v32 }
0x153c   :  { %v4526_v21 = vmul.f32 %v6208_v49, %v4525_v23  ;;  %6211 = vrsqrt.f32 %v4486_v32 }
0x153e   :  { %v4527_v58 = vmul.f32 0.5, %v4526_v21  ;;  %v4094_v63 = vpop.xlane.xlu1 %4093  ;;  %v4451_v24 = vpop.xlane.xlu0 %4450 }
0x153f   :  { %v4097_v2 = vsub.f32 %v8671_v48, %v4094_v63  ;;  %v4475_v36 = vmul.f32 %v4451_v24, %v6428_v57 }
0x1540   :  { %v4528_v55 = vsub.f32 1.5, %v4527_v58 }
0x1541   :  { %v8751_v0 = vpop.eup %6209  ;;  %v4102_v12 = vmul.f32 1.442695, %v4097_v2  ;;  %v4487_v43 = vadd.f32 1e-06, %v4475_v36 }
0x1542   :  { %v6212_v52 = vpop.eup %6211  ;;  %v4529_v45 = vmul.f32 %v6208_v49, %v4528_v55  ;;  %v4107_v34 = vsel %vm711_vm13, %v8751_v0, 0.0 }
0x1543   :  { %v4535_v46 = vmul.f32 %v6212_v52, %v4486_v32  ;;  %6213 = vpow2.f32 %v4102_v12  ;;  %4108 = vadd.xlane.f32.xlu0 %v4107_v34  ;;  %vm4541_vm14 = vweird.f32 %v6212_v52  ;;  %vm4550_vm4 = vweird.f32 %v4487_v43 }
0x1544   :  { %v4533_v15 = vsel %vm4532_vm12, %v6208_v49, %v4529_v45  ;;  %6215 = vrsqrt.f32 %v4487_v43  ;;  %vm4542_vm2 = vmor %vm4540_vm15, %vm4541_vm14 }
0x1545   :  { %v4617_v48 = vmul.f32 %v4533_v15, %v8652_v41  ;;  %v4536_v25 = vmul.f32 %v6212_v52, %v4535_v46 }
0x1546   :  { %v4454_v18 = vpop.xlane.xlu2 %4453 }
0x1547   :  { %v4537_v47 = vmul.f32 0.5, %v4536_v25  ;;  %v4476_v31 = vmul.f32 %v4454_v18, %v6428_v57  ;;  %v4630_v60 = vmul.f32 %v8717_v8, %v4617_v48 }
0x1549   :  { %v8758_v4 = vpop.eup %6213  ;;  %v4538_v44 = vsub.f32 1.5, %v4537_v47  ;;  %v4488_v3 = vadd.f32 1e-06, %v4476_v31  ;;  %v4643_v9 = vadd.f32 %v8724_v54, %v4630_v60  ;;  %v4869_v60 = vld [vmem:[%s9283_s2 + $0x410] sm:$0xff] }
0x154a   :  { %v6216_v20 = vpop.eup %6215  ;;  %v4110_v39 = vsel %vm711_vm13, %v8758_v4, 0.0  ;;  %4870 = vmatpush.msrb.mxu0 %v4869_v60 }
0x154b   :  { %v4539_v13 = vmul.f32 %v6212_v52, %v4538_v44  ;;  %v4545_v41 = vmul.f32 %v6216_v20, %v4487_v43  ;;  %6217 = vrsqrt.f32 %v4488_v3  ;;  %5836 = vmatmul.msk.f32.gmra.mxu3 %vm143_vm1, %v4643_v9  ;;  %4111 = vadd.xlane.f32.xlu1 %v4110_v39  ;;  %vm4551_vm3 = vweird.f32 %v6216_v20  ;;  %v4868_v44 = vld [vmem:[%s9283_s2 + $0x408] sm:$0xff] }
0x154c   :  { %vm4552_vm6 = vmor %vm4550_vm4, %vm4551_vm3  ;;  %vm4560_vm8 = vweird.f32 %v4488_v3  ;;  %4871 = vmatpush.msrb.mxu0 %v4868_v44 }
0x154d   :  { %v4543_v1 = vsel %vm4542_vm2, %v6212_v52, %v4539_v13  ;;  %v4546_v62 = vmul.f32 %v6216_v20, %v4545_v41 }
0x154e   :  { %v4618_v7 = vmul.f32 %v4543_v1, %v8662_v22 }
0x154f   :  { %v4547_v11 = vmul.f32 0.5, %v4546_v62 }
0x1550   :  { %v4631_v56 = vmul.f32 %v8717_v8, %v4618_v7 }
0x1551   :  { %v6218_v14 = vpop.eup %6217  ;;  %v4548_v27 = vsub.f32 1.5, %v4547_v11 }
0x1552   :  { %v4555_v28 = vmul.f32 %v6218_v14, %v4488_v3  ;;  %v4644_v6 = vadd.f32 %v8724_v54, %v4631_v56  ;;  %vm4561_vm7 = vweird.f32 %v6218_v14 }
0x1553   :  { %v4549_v59 = vmul.f32 %v6216_v20, %v4548_v27  ;;  %vm4562_vm9 = vmor %vm4560_vm8, %vm4561_vm7 }
0x1554   :  { %v4556_v37 = vmul.f32 %v6218_v14, %v4555_v28  ;;  %5837 = vmatmul.msk.f32.gmra.mxu3 %vm143_vm1, %v4644_v6 }
0x1555   :  { %v4553_v17 = vsel %vm4552_vm6, %v6216_v20, %v4549_v59  ;;  %v4867_v20 = vld [vmem:[%s9283_s2 + $0x400] sm:$0xff] }
0x1556   :  { %v4619_v42 = vmul.f32 %v4553_v17, %v8674_v35  ;;  %v4557_v51 = vmul.f32 0.5, %v4556_v37  ;;  %4872 = vmatpush.msrb.mxu0 %v4867_v20 }
0x1558   :  { %v4558_v22 = vsub.f32 1.5, %v4557_v51  ;;  %v4632_v53 = vmul.f32 %v8717_v8, %v4619_v42 }
0x155a   :  { %v4559_v49 = vmul.f32 %v6218_v14, %v4558_v22  ;;  %v4457_v29 = vpop.xlane.xlu0 %4456  ;;  %v4645_v32 = vadd.f32 %v8724_v54, %v4632_v53  ;;  %v4865_v22 = vld [vmem:[%s9283_s2 + $0x3f0] sm:$0xff]  ;;  %v4864_v53 = vld [vmem:[%s9283_s2 + $0x3e8] sm:$0xff] }
0x155b   :  { %v4477_v23 = vmul.f32 %v4457_v29, %v6428_v57  ;;  %v4860_v29 = vld [vmem:[%s9283_s2 + $0x3c8] sm:$0xff] }
0x155c   :  { %v4563_v21 = vsel %vm4562_vm9, %v6218_v14, %v4559_v49  ;;  %5838 = vmatmul.msk.f32.gmra.mxu3 %vm143_vm1, %v4645_v32  ;;  %v4861_v49 = vld [vmem:[%s9283_s2 + $0x3d0] sm:$0xff] }
0x155d   :  { %v4620_v58 = vmul.f32 %v4563_v21, %v8686_v19  ;;  %v4489_v63 = vadd.f32 1e-06, %v4477_v23  ;;  %v8824_v32 = vld [vmem:[%s9285_s3 + $0x90] ss:$0 sm:$0xff]  ;;  %v4859_v23 = vld [vmem:[%s9283_s2 + $0x3c0] sm:$0xff] }
0x155f   :  { %6219 = vrsqrt.f32 %v4489_v63  ;;  %v4633_v35 = vmul.f32 %v8717_v8, %v4620_v58  ;;  %vm4570_vm11 = vweird.f32 %v4489_v63  ;;  %v4858_v58 = vld [vmem:[%s9283_s2 + $0x3b8] sm:$0xff] }
0x1561   :  { %v4646_v24 = vadd.f32 %v8724_v54, %v4633_v35  ;;  %v4857_v35 = vld [vmem:[%s9283_s2 + $0x3b0] sm:$0xff] }
0x1562   :  { %v4460_v2 = vpop.xlane.xlu1 %4459 }
0x1563   :  { %v4478_v36 = vmul.f32 %v4460_v2, %v6428_v57  ;;  %v4856_v2 = vld [vmem:[%s9283_s2 + $0x3a8] sm:$0xff] }
0x1564   :  { %5839 = vmatmul.msk.f32.gmra.mxu3 %vm143_vm1, %v4646_v24 }
0x1565   :  { %v6220_v55 = vpop.eup %6219  ;;  %v4490_v12 = vadd.f32 1e-06, %v4478_v36  ;;  %v4855_v36 = vld [vmem:[%s9283_s2 + $0x3a0] sm:$0xff] }
0x1566   :  { %v4565_v43 = vmul.f32 %v6220_v55, %v4489_v63  ;;  %vm4571_vm10 = vweird.f32 %v6220_v55 }
0x1567   :  { %6221 = vrsqrt.f32 %v4490_v12  ;;  %vm4572_vm12 = vmor %vm4570_vm11, %vm4571_vm10  ;;  %vm4580_vm15 = vweird.f32 %v4490_v12 }
0x1568   :  { %v4566_v52 = vmul.f32 %v6220_v55, %v4565_v43  ;;  %v4854_v43 = vld [vmem:[%s9283_s2 + $0x398] sm:$0xff] }
0x156a   :  { %v4567_v45 = vmul.f32 0.5, %v4566_v52  ;;  %v4463_v34 = vpop.xlane.xlu2 %4462 }
0x156b   :  { %v4479_v19 = vmul.f32 %v4463_v34, %v6428_v57 }
0x156c   :  { %v4568_v46 = vsub.f32 1.5, %v4567_v45 }
0x156d   :  { %v6222_v15 = vpop.eup %6221  ;;  %v4491_v48 = vadd.f32 1e-06, %v4479_v19 }
0x156e   :  { %v4569_v25 = vmul.f32 %v6220_v55, %v4568_v46  ;;  %v4575_v18 = vmul.f32 %v6222_v15, %v4490_v12  ;;  %vm4581_vm14 = vweird.f32 %v6222_v15 }
0x156f   :  { %6223 = vrsqrt.f32 %v4491_v48  ;;  %vm4582_vm2 = vmor %vm4580_vm15, %vm4581_vm14  ;;  %vm4590_vm4 = vweird.f32 %v4491_v48 }
0x1570   :  { %v4573_v47 = vsel %vm4572_vm12, %v6220_v55, %v4569_v25  ;;  %v4576_v31 = vmul.f32 %v6222_v15, %v4575_v18 }
0x1571   :  { %v4621_v3 = vmul.f32 %v4573_v47, %v8704_v40 }
0x1572   :  { %v4577_v9 = vmul.f32 0.5, %v4576_v31 }
0x1573   :  { %v4634_v39 = vmul.f32 %v8717_v8, %v4621_v3 }
0x1574   :  { %v4578_v13 = vsub.f32 1.5, %v4577_v9 }
0x1575   :  { %v6224_v41 = vpop.eup %6223  ;;  %v4647_v1 = vadd.f32 %v8724_v54, %v4634_v39 }
0x1576   :  { %v4579_v62 = vmul.f32 %v6222_v15, %v4578_v13  ;;  %v4585_v7 = vmul.f32 %v6224_v41, %v4491_v48  ;;  %vm4591_vm3 = vweird.f32 %v6224_v41 }
0x1577   :  { %5840 = vmatmul.msk.f32.gmra.mxu3 %vm143_vm1, %v4647_v1  ;;  %vm4592_vm6 = vmor %vm4590_vm4, %vm4591_vm3 }
0x1578   :  { %v4583_v40 = vsel %vm4582_vm2, %v6222_v15, %v4579_v62  ;;  %v4586_v11 = vmul.f32 %v6224_v41, %v4585_v7 }
0x1579   :  { %v4622_v56 = vmul.f32 %v4583_v40, %v8712_v50  ;;  %v4866_v50 = vld [vmem:[%s9283_s2 + $0x3f8] sm:$0xff] }
0x157a   :  { %v4587_v14 = vmul.f32 0.5, %v4586_v11  ;;  %4873 = vmatpush.msrb.mxu0 %v4866_v50 }
0x157b   :  { %v4635_v27 = vmul.f32 %v8717_v8, %v4622_v56 }
0x157c   :  { %v4588_v28 = vsub.f32 1.5, %v4587_v14  ;;  %4874 = vmatpush.msrb.mxu0 %v4865_v22 }
0x157d   :  { %v4648_v6 = vadd.f32 %v8724_v54, %v4635_v27 }
0x157e   :  { %v4589_v59 = vmul.f32 %v6224_v41, %v4588_v28  ;;  %4875 = vmatpush.msrb.mxu0 %v4864_v53 }
0x157f   :  { %5841 = vmatmul.msk.f32.gmra.mxu3 %vm143_vm1, %v4648_v6 }
0x1580   :  { %v4593_v37 = vsel %vm4592_vm6, %v6224_v41, %v4589_v59 }
0x1581   :  { %v4623_v17 = vmul.f32 %v4593_v37, %v8732_v10  ;;  %v4862_v10 = vld [vmem:[%s9283_s2 + $0x3d8] sm:$0xff] }
0x1583   :  { %v4636_v42 = vmul.f32 %v8717_v8, %v4623_v17  ;;  %v4863_v8 = vld [vmem:[%s9283_s2 + $0x3e0] sm:$0xff] }
0x1584   :  { %4876 = vmatpush.msrb.mxu0 %v4863_v8 }
0x1585   :  { %v4649_v51 = vadd.f32 %v8724_v54, %v4636_v42  ;;  %v4710_v54 = vpop.f32.mrf.mxu3 }
0x1586   :  { %4877 = vmatpush.msrb.mxu0 %v4862_v10  ;;  %v4711_v21 = vadd.f32 %v4710_v54, %v8824_v32 }
0x1587   :  { %5842 = vmatmul.msk.f32.gmra.mxu3 %vm143_vm1, %v4649_v51 }
0x1588   :  { %4878 = vmatpush.msrb.mxu0 %v4861_v49  ;;  %v4746_v24 = vmul.f32 %v4711_v21, %v4711_v21 }
0x158a   :  { %4879 = vmatpush.msrb.mxu0 %v4860_v29  ;;  %v4758_v55 = vmul.f32 %v4746_v24, %v4711_v21 }
0x158c   :  { %4880 = vmatpush.msrb.mxu0 %v4859_v23  ;;  %v4770_v52 = vmul.f32 0.044715, %v4758_v55 }
0x158d   :  { %v4713_v63 = vpop.f32.mrf.mxu3 }
0x158e   :  { %4881 = vmatpush.msrb.mxu0 %v4858_v58  ;;  %v4714_v12 = vadd.f32 %v4713_v63, %v8824_v32  ;;  %v4782_v19 = vadd.f32 %v4770_v52, %v4711_v21 }
0x1590   :  { %4882 = vmatpush.msrb.mxu0 %v4857_v35  ;;  %v4747_v45 = vmul.f32 %v4714_v12, %v4714_v12  ;;  %v4794_v25 = vmul.f32 0.7978846, %v4782_v19 }
0x1592   :  { %4883 = vmatpush.msrb.mxu0 %v4856_v2  ;;  %v4759_v46 = vmul.f32 %v4747_v45, %v4714_v12 }
0x1594   :  { %4884 = vmatpush.msrb.mxu0 %v4855_v36  ;;  %v4771_v18 = vmul.f32 0.044715, %v4759_v46 }
0x1595   :  { %v4716_v34 = vpop.f32.mrf.mxu3 }
0x1596   :  { %4885 = vmatpush.msrb.mxu0 %v4854_v43  ;;  %v4717_v15 = vadd.f32 %v4716_v34, %v8824_v32  ;;  %v4783_v60 = vadd.f32 %v4771_v18, %v4714_v12 }
0x1598   :  { %v4748_v47 = vmul.f32 %v4717_v15, %v4717_v15  ;;  %v4795_v39 = vmul.f32 0.7978846, %v4783_v60 }
0x159a   :  { %v4760_v44 = vmul.f32 %v4748_v47, %v4717_v15 }
0x159c   :  { %v4772_v20 = vmul.f32 0.044715, %v4760_v44 }
0x159e   :  { %v4784_v1 = vadd.f32 %v4772_v20, %v4717_v15 }
0x15a0   :  { %v4796_v40 = vmul.f32 0.7978846, %v4784_v1 }
0x15b6   :  { %v4109_v48 = vpop.xlane.xlu0 %4108 }
0x15b7   :  { %6225 = vrcp.f32 %v4109_v48 }
0x15b8   :  { %6227 = vtanh.f32 %v4794_v25 }
0x15bd   :  { %v6226_v31 = vpop.eup %6225 }
0x15be   :  { %v4112_v3 = vpop.xlane.xlu1 %4111  ;;  %v4117_v9 = vmul.f32 %v6226_v31, %v8751_v0  ;;  %v6228_v13 = vpop.eup %6227 }
0x15bf   :  { %6229 = vrcp.f32 %v4112_v3  ;;  %v4818_v62 = vadd.f32 1.0, %v6228_v13 }
0x15c0   :  { %5807 = vmatmul.msk.f32.gmra.mxu0 %vm711_vm13, %v4117_v9  ;;  %6231 = vtanh.f32 %v4795_v39 }
0x15c1   :  { %v4830_v11 = vmul.f32 0.5, %v4818_v62  ;;  %6233 = vtanh.f32 %v4796_v40 }
0x15c3   :  { %v4842_v14 = vmul.f32 %v4830_v11, %v4711_v21 }
0x15c5   :  { %v6230_v41 = vpop.eup %6229 }
0x15c6   :  { %v4118_v7 = vmul.f32 %v6230_v41, %v8758_v4  ;;  %v6232_v56 = vpop.eup %6231 }
0x15c7   :  { %v4819_v27 = vadd.f32 1.0, %v6232_v56  ;;  %v6234_v37 = vpop.eup %6233 }
0x15c8   :  { %5808 = vmatmul.msk.f32.gmra.mxu0 %vm711_vm13, %v4118_v7  ;;  %v4820_v50 = vadd.f32 1.0, %v6234_v37  ;;  %vm4932_vm13 = vcmask 254976  }
0x15c9   :  { %v4831_v59 = vmul.f32 0.5, %v4819_v27 }
0x15ca   :  { %v4832_v10 = vmul.f32 0.5, %v4820_v50 }
0x15cb   :  { %v4843_v51 = vmul.f32 %v4831_v59, %v4714_v12 }
0x15cc   :  { %v4844_v23 = vmul.f32 %v4832_v10, %v4717_v15 }
0x15ce   :  { %v4719_v0 = vpop.f32.mrf.mxu3 }
0x15cf   :  { %v4720_v28 = vadd.f32 %v4719_v0, %v8824_v32 }
0x15d0   :  { %4886 = vmatmul.f32.vlgmr.msrb.gmra.mxu0 %v4842_v14 }
0x15d1   :  { %v4749_v6 = vmul.f32 %v4720_v28, %v4720_v28 }
0x15d3   :  { %v4761_v17 = vmul.f32 %v4749_v6, %v4720_v28 }
0x15d5   :  { %v4773_v42 = vmul.f32 0.044715, %v4761_v17 }
0x15d7   :  { %v4785_v4 = vadd.f32 %v4773_v42, %v4720_v28  ;;  %v4722_v22 = vpop.f32.mrf.mxu3 }
0x15d8   :  { %v4723_v53 = vadd.f32 %v4722_v22, %v8824_v32  ;;  %4889 = vmatmul.f32.gmra.mxu0 %v4843_v51 }
0x15d9   :  { %v4797_v8 = vmul.f32 0.7978846, %v4785_v4 }
0x15da   :  { %v4750_v54 = vmul.f32 %v4723_v53, %v4723_v53 }
0x15db   :  { %6235 = vtanh.f32 %v4797_v8 }
0x15dc   :  { %v4762_v49 = vmul.f32 %v4750_v54, %v4723_v53 }
0x15de   :  { %v4774_v29 = vmul.f32 0.044715, %v4762_v49 }
0x15df   :  { %v4725_v21 = vpop.f32.mrf.mxu3 }
0x15e0   :  { %v4786_v58 = vadd.f32 %v4774_v29, %v4723_v53  ;;  %v4726_v63 = vadd.f32 %v4725_v21, %v8824_v32  ;;  %4891 = vmatmul.f32.gmra.mxu0 %v4844_v23 }
0x15e1   :  { %v6236_v35 = vpop.eup %6235 }
0x15e2   :  { %v4751_v24 = vmul.f32 %v4726_v63, %v4726_v63  ;;  %v4821_v2 = vadd.f32 1.0, %v6236_v35  ;;  %v4798_v36 = vmul.f32 0.7978846, %v4786_v58 }
0x15e4   :  { %v4763_v55 = vmul.f32 %v4751_v24, %v4726_v63  ;;  %v4833_v12 = vmul.f32 0.5, %v4821_v2  ;;  %6237 = vtanh.f32 %v4798_v36 }
0x15e6   :  { %v4775_v43 = vmul.f32 0.044715, %v4763_v55  ;;  %v4845_v52 = vmul.f32 %v4833_v12, %v4720_v28 }
0x15e7   :  { %v4728_v45 = vpop.f32.mrf.mxu3 }
0x15e8   :  { %v4787_v34 = vadd.f32 %v4775_v43, %v4726_v63  ;;  %v4729_v19 = vadd.f32 %v4728_v45, %v8824_v32  ;;  %4893 = vmatmul.f32.gmra.mxu0 %v4845_v52 }
0x15ea   :  { %v6238_v46 = vpop.eup %6237  ;;  %v4752_v15 = vmul.f32 %v4729_v19, %v4729_v19  ;;  %v4799_v48 = vmul.f32 0.7978846, %v4787_v34 }
0x15eb   :  { %v4822_v25 = vadd.f32 1.0, %v6238_v46 }
0x15ec   :  { %v4764_v18 = vmul.f32 %v4752_v15, %v4729_v19  ;;  %6239 = vtanh.f32 %v4799_v48  ;;  %v8863_v15 = vld [vmem:[%s9286_s1] sm:$0x3]  ;;  %v6270_v48 = vmov 0   ;;  %s6278_s1 = smov 125  }
0x15ed   :  { %v4834_v47 = vmul.f32 0.5, %v4822_v25  ;;  %5877 = vset.pattern.permute.xlu2 %v6270_v48 }
0x15ee   :  { %v4776_v31 = vmul.f32 0.044715, %v4764_v18  ;;  %4992 = vperm.xlu2 %5877, %v8863_v15  }
0x15ef   :  { %v4846_v60 = vmul.f32 %v4834_v47, %v4723_v53  ;;  %v5908_v47 = vld [vmem:[%s9283_s2 + $0x418] ss:$0 sm:$0xff] }
0x15f0   :  { %v4788_v44 = vadd.f32 %v4776_v31, %v4729_v19 }
0x15f1   :  { %4896 = vmatmul.f32.gmra.mxu0 %v4846_v60 }
0x15f2   :  { %v6240_v3 = vpop.eup %6239  ;;  %v4800_v9 = vmul.f32 0.7978846, %v4788_v44 }
0x15f3   :  { %v4823_v20 = vadd.f32 1.0, %v6240_v3 }
0x15f4   :  { %6241 = vtanh.f32 %v4800_v9 }
0x15f5   :  { %v4835_v39 = vmul.f32 0.5, %v4823_v20 }
0x15f7   :  { %v4847_v13 = vmul.f32 %v4835_v39, %v4726_v63 }
0x15f9   :  { %4898 = vmatmul.f32.gmra.mxu0 %v4847_v13 }
0x15fa   :  { %v6242_v41 = vpop.eup %6241  ;;  %v4731_v1 = vpop.f32.mrf.mxu3 }
0x15fb   :  { %v4732_v62 = vadd.f32 %v4731_v1, %v8824_v32  ;;  %v4824_v7 = vadd.f32 1.0, %v6242_v41 }
0x15fd   :  { %v4753_v40 = vmul.f32 %v4732_v62, %v4732_v62  ;;  %v4836_v11 = vmul.f32 0.5, %v4824_v7  ;;  %v5001_v7 = vld [vmem:[%s9283_s2 + $0x430] sm:$0xff] }
0x15ff   :  { %v4765_v56 = vmul.f32 %v4753_v40, %v4732_v62  ;;  %v4848_v14 = vmul.f32 %v4836_v11, %v4729_v19  ;;  %v4328_v40 = vpop.f32.mrf.mxu2  ;;  %v5909_v11 = vld [vmem:[%s9283_s2 + $0x420] ss:$0 sm:$0xff] }
0x1601   :  { %v4777_v0 = vmul.f32 0.044715, %v4765_v56  ;;  %4900 = vmatmul.f32.gmra.mxu0 %v4848_v14 }
0x1602   :  { %v4734_v27 = vpop.f32.mrf.mxu3 }
0x1603   :  { %v4789_v28 = vadd.f32 %v4777_v0, %v4732_v62  ;;  %v4735_v6 = vadd.f32 %v4734_v27, %v8824_v32  ;;  %v5910_v0 = vld [vmem:[%s9283_s2 + $0x428] ss:$0 sm:$0xff] }
0x1605   :  { %v4754_v59 = vmul.f32 %v4735_v6, %v4735_v6  ;;  %v4801_v37 = vmul.f32 0.7978846, %v4789_v28 }
0x1607   :  { %v4766_v17 = vmul.f32 %v4754_v59, %v4735_v6  ;;  %6243 = vtanh.f32 %v4801_v37  ;;  %v6265_v37 = vld [vmem:[%s9283_s2 + $0x380] ss:$0 sm:$0xff] }
0x1609   :  { %v4778_v42 = vmul.f32 0.044715, %v4766_v17 }
0x160a   :  { %v4737_v51 = vpop.f32.mrf.mxu3 }
0x160b   :  { %v4790_v50 = vadd.f32 %v4778_v42, %v4735_v6  ;;  %v4738_v4 = vadd.f32 %v4737_v51, %v8824_v32 }
0x160d   :  { %v6244_v22 = vpop.eup %6243  ;;  %v4755_v53 = vmul.f32 %v4738_v4, %v4738_v4  ;;  %v4802_v8 = vmul.f32 0.7978846, %v4790_v50 }
0x160e   :  { %v4825_v54 = vadd.f32 1.0, %v6244_v22 }
0x160f   :  { %v4767_v10 = vmul.f32 %v4755_v53, %v4738_v4  ;;  %6245 = vtanh.f32 %v4802_v8 }
0x1610   :  { %v4837_v49 = vmul.f32 0.5, %v4825_v54 }
0x1611   :  { %v4779_v29 = vmul.f32 0.044715, %v4767_v10 }
0x1612   :  { %v4849_v23 = vmul.f32 %v4837_v49, %v4732_v62  ;;  %v5002_v62 = vld [vmem:[%s9283_s2 + $0x438] sm:$0xff] }
0x1613   :  { %v4791_v21 = vadd.f32 %v4779_v29, %v4738_v4 }
0x1614   :  { %4903 = vmatmul.f32.gmra.mxu0 %v4849_v23 }
0x1615   :  { %v6246_v58 = vpop.eup %6245  ;;  %v4803_v63 = vmul.f32 0.7978846, %v4791_v21 }
0x1616   :  { %v4826_v35 = vadd.f32 1.0, %v6246_v58 }
0x1617   :  { %6247 = vtanh.f32 %v4803_v63 }
0x1618   :  { %v4838_v24 = vmul.f32 0.5, %v4826_v35 }
0x161a   :  { %v4850_v2 = vmul.f32 %v4838_v24, %v4735_v6 }
0x161c   :  { %4905 = vmatmul.f32.gmra.mxu0 %v4850_v2 }
0x161d   :  { %v6248_v36 = vpop.eup %6247 }
0x161e   :  { %v4827_v55 = vadd.f32 1.0, %v6248_v36 }
0x1620   :  { %v4839_v12 = vmul.f32 0.5, %v4827_v55 }
0x1622   :  { %v4851_v43 = vmul.f32 %v4839_v12, %v4738_v4  ;;  %v4331_v4 = vpop.f32.mrf.mxu2 }
0x1624   :  { %4907 = vmatmul.f32.gmra.mxu0 %v4851_v43 }
0x163d   :  { %v4148_v52 = vpop.f32.mrf.mxu0 }
0x163e   :  { %5819 = vmatmul.msk.f32.gmra.mxu1 %vm666_vm5, %v4148_v52 }
0x1645   :  { %v4151_v45 = vpop.f32.mrf.mxu0 }
0x1646   :  { %5820 = vmatmul.msk.f32.gmra.mxu1 %vm666_vm5, %v4151_v45  ;;  %vm4928_vm5 = vcmask 1040384  }
0x1648   :  { %v4993_v27 = vpop.permute.xlu2 %4992 }
0x1649   :  { %v4996_v6 = vmul.f32 %v5909_v11, %v4993_v27  ;;  %v5041_v11 = vld [vmem:[%s9285_s3 + $0xd0] sm:$0xff]  ;;  %v5039_v27 = vld [vmem:[%s9285_s3 + $0xc0] sm:$0xff] }
0x164b   :  { %v4999_v42 = vadd.f32 %v5910_v0, %v4996_v6 }
0x164d   :  { %v4887_v34 = vpop.f32.mrf.mxu0  ;;  %v5000_v50 = vmax.f32 %v4999_v42, 0.0  ;;  %v5037_v42 = vld [vmem:[%s9285_s3 + $0xb0] sm:$0xff] }
0x164e   :  { %v4915_v18 = vadd.f32 %v4887_v34, %v8578_v30  ;;  %v5004_v30 = vld [vmem:[%s9283_s2 + $0x448] sm:$0xff] }
0x164f   :  { %5022 = vmatpush.msrb.mxu1 %v5004_v30  ;;  %v5046_v30 = vld [vmem:[%s9285_s3 + $0xf8] sm:$0xff] }
0x1650   :  { %v4921_v44 = vadd.f32 %v5908_v47, %v4915_v18  ;;  %5087 = vmatpush.msrb.mxu3 %v5046_v30 }
0x1655   :  { %v4890_v19 = vpop.f32.mrf.mxu0 }
0x165d   :  { %v4892_v46 = vpop.f32.mrf.mxu0 }
0x1665   :  { %v4894_v25 = vpop.f32.mrf.mxu0 }
0x1666   :  { %v4916_v31 = vadd.f32 %v4894_v25, %v8591_v33  ;;  %v5003_v33 = vld [vmem:[%s9283_s2 + $0x440] sm:$0xff] }
0x1667   :  { %5023 = vmatpush.msrb.mxu1 %v5003_v33  ;;  %v5043_v33 = vld [vmem:[%s9285_s3 + $0xe0] sm:$0xff] }
0x1668   :  { %v4922_v60 = vadd.f32 %v5908_v47, %v4916_v31 }
0x1669   :  { %5024 = vmatpush.msrb.mxu1 %v5002_v62  ;;  %v5044_v62 = vld [vmem:[%s9285_s3 + $0xe8] sm:$0xff] }
0x166a   :  { %v4926_v3 = vrot.slane %v4922_v60, 7  ;;  %5088 = vmatpush.msrb.mxu3 %v5044_v62 }
0x166b   :  { %5025 = vmatpush.msrb.mxu1 %v5001_v7 }
0x166c   :  { %v4929_v9 = vsel %vm4928_vm5, %v4921_v44, %v4926_v3  ;;  %5845 = vmatmul.msk.f32.vlgmr.msrb.gmra.mxu1 %vm143_vm1, %v5000_v50  ;;  %v5911_v3 = vld [vmem:[%s9283_s2 + $0x450] ss:$0 sm:$0xff] }
0x166d   :  { %v4933_v29 = vsel %vm4932_vm13, %v4929_v9, 0.0 }
0x166e   :  { %v4897_v20 = vpop.f32.mrf.mxu0 }
0x1676   :  { %v4899_v39 = vpop.f32.mrf.mxu0 }
0x167e   :  { %v4901_v13 = vpop.f32.mrf.mxu0 }
0x167f   :  { %v4917_v49 = vadd.f32 %v4901_v13, %v8609_v26 }
0x1691   :  { %v4904_v41 = vpop.f32.mrf.mxu0 }
0x1699   :  { %v4906_v1 = vpop.f32.mrf.mxu0 }
0x169a   :  { %v5045_v1 = vld [vmem:[%s9285_s3 + $0xf0] sm:$0xff] }
0x169b   :  { %5067 = vmatpush.msra.mxu2 %v5045_v1 }
0x169d   :  { %5068 = vmatpush.msra.mxu2 %v5043_v33  ;;  %v5912_v33 = vld [vmem:[%s9283_s2 + $0x90] ss:$0 sm:$0xff] }
0x169f   :  { %5069 = vmatpush.msra.mxu2 %v5041_v11 }
0x16a1   :  { %v4908_v59 = vpop.f32.mrf.mxu0  ;;  %5070 = vmatpush.msra.mxu2 %v5039_v27 }
0x16a2   :  { %v4918_v22 = vadd.f32 %v4908_v59, %v8646_v38  ;;  %v4923_v38 = vadd.f32 %v5908_v47, %v4917_v49 }
0x16a3   :  { %5071 = vmatpush.msra.mxu2 %v5037_v42  ;;  %v5129_v42 = vld [vmem:[%s9285_s3 + $0x200] sm:$0xff] }
0x16a4   :  { %v4924_v54 = vadd.f32 %v5908_v47, %v4918_v22  ;;  %v5036_v22 = vld [vmem:[%s9285_s3 + $0xa8] sm:$0xff]  ;;  %5158 = vmatpush.msra.mxu0 %v5129_v42  ;;  %v5393_v42 = vld [vmem:[%s9283_s2 + $0x458] sm:$0xff] }
0x16a6   :  { %v4960_v21 = vrot.slane %v4924_v54, 7 }
0x16a8   :  { %v4962_v58 = vsel %vm4928_vm5, %v4923_v38, %v4960_v21  ;;  %v5126_v21 = vld [vmem:[%s9285_s3 + $0x1e8] sm:$0xff]  ;;  %vm5154_vm5 = vcmask 523264  }
0x16a9   :  { %v4963_v63 = vsel %vm4932_vm13, %v4962_v58, 0.0 }
0x16bb   :  { %v4239_v56 = vpop.f32.mrf.mxu1 }
0x16bc   :  { %v4329_v14 = vadd.f32 %v4328_v40, %v4239_v56  ;;  %v5042_v56 = vld [vmem:[%s9285_s3 + $0xd8] sm:$0xff] }
0x16bd   :  { %5089 = vmatpush.msrb.mxu3 %v5042_v56  ;;  %v5913_v56 = vld [vmem:[%s9283_s2 + $0x98] ss:$0 sm:$0xff] }
0x16be   :  { %v4344_v28 = vadd.f32 %v4329_v14, %v7865_v16 }
0x16c0   :  { %v4358_v17 = vadd.f32 %v6265_v37, %v4344_v28  ;;  %v5040_v28 = vld [vmem:[%s9285_s3 + $0xc8] sm:$0xff] }
0x16c1   :  { %5090 = vmatpush.msrb.mxu3 %v5040_v28 }
0x16c2   :  { %v4392_v51 = vsel %vm143_vm1, %v4358_v17, 0.0 }
0x16c3   :  { %4393 = vadd.xlane.f32.xlu0 %v4392_v51  ;;  %v4242_v53 = vpop.f32.mrf.mxu1  ;;  %v5038_v51 = vld [vmem:[%s9285_s3 + $0xb8] sm:$0xff] }
0x16c4   :  { %v4332_v8 = vadd.f32 %v4331_v4, %v4242_v53  ;;  %5091 = vmatpush.msrb.mxu3 %v5038_v51  ;;  %v5035_v4 = vld [vmem:[%s9285_s3 + $0xa0] sm:$0xff] }
0x16c5   :  { %5072 = vmatpush.msra.mxu2 %v5035_v4  ;;  %v5145_v51 = vld [vmem:[%s9285_s3 + $0x280] sm:$0xff]  ;;  %v5146_v4 = vld [vmem:[%s9285_s3 + $0x288] sm:$0xff] }
0x16c6   :  { %v4345_v16 = vadd.f32 %v4332_v8, %v7877_v61  ;;  %5092 = vmatpush.msrb.mxu3 %v5036_v22  ;;  %5186 = vmatpush.msra.mxu1 %v5145_v51  ;;  %v5127_v22 = vld [vmem:[%s9285_s3 + $0x1f0] sm:$0xff] }
0x16c7   :  { %5159 = vmatpush.msra.mxu0 %v5127_v22 }
0x16c8   :  { %v4359_v10 = vadd.f32 %v6265_v37, %v4345_v16  ;;  %v5130_v16 = vld [vmem:[%s9285_s3 + $0x208] sm:$0xff]  ;;  %5226 = vmatpush.msra.mxu3 %v5146_v4 }
0x16c9   :  { %5198 = vmatpush.msrb.mxu2 %v5130_v16  ;;  %v5144_v16 = vld [vmem:[%s9285_s3 + $0x278] sm:$0xff] }
0x16ca   :  { %v4395_v23 = vsel %vm143_vm1, %v4359_v10, 0.0  ;;  %5227 = vmatpush.msra.mxu3 %v5144_v16 }
0x16cb   :  { %4934 = vadd.xlane.f32.xlu0 %v4933_v29  ;;  %4396 = vadd.xlane.f32.xlu1 %v4395_v23 }
0x16d3   :  { %4964 = vadd.xlane.f32.xlu1 %v4963_v63 }
0x1736   :  { %v4394_v35 = vpop.xlane.xlu0 %4393 }
0x1737   :  { %v4408_v61 = vmul.f32 %v4394_v35, %v6428_v57  ;;  %v5124_v35 = vld [vmem:[%s9285_s3 + $0x1d8] sm:$0xff] }
0x1739   :  { %v8905_v24 = vsub.f32 %v4358_v17, %v4408_v61 }
0x173b   :  { %v4432_v26 = vmul.f32 %v8905_v24, %v8905_v24 }
0x173d   :  { %v4464_v2 = vsel %vm143_vm1, %v4432_v26, 0.0 }
0x173e   :  { %4465 = vadd.xlane.f32.xlu0 %v4464_v2  ;;  %v4935_v36 = vpop.xlane.xlu0 %4934  ;;  %v4397_v55 = vpop.xlane.xlu1 %4396 }
0x173f   :  { %v4936_v12 = vmul.f32 %v4935_v36, %v6428_v57  ;;  %v4409_v43 = vmul.f32 %v4397_v55, %v6428_v57 }
0x1741   :  { %v8912_v52 = vsub.f32 %v4929_v9, %v4936_v12  ;;  %v8914_v45 = vsub.f32 %v4359_v10, %v4409_v43  ;;  %v5027_v9 = vpop.f32.mrf.mxu1  ;;  %v5128_v10 = vld [vmem:[%s9285_s3 + $0x1f8] sm:$0xff]  ;;  %v6266_v43 = vld [vmem:[%s9283_s2 + $0x388] ss:$0 sm:$0xff] }
0x1742   :  { %v5028_v20 = vadd.f32 %v5911_v3, %v5027_v9  ;;  %5199 = vmatpush.msrb.mxu2 %v5128_v10  ;;  %v5141_v10 = vld [vmem:[%s9285_s3 + $0x260] sm:$0xff] }
0x1743   :  { %v4938_v34 = vmul.f32 %v8912_v52, %v8912_v52  ;;  %v4433_v19 = vmul.f32 %v8914_v45, %v8914_v45 }
0x1744   :  { %5200 = vmatpush.msrb.mxu2 %v5126_v21  ;;  %v5139_v21 = vld [vmem:[%s9285_s3 + $0x250] sm:$0xff] }
0x1745   :  { %v4939_v46 = vsel %vm4932_vm13, %v4938_v34, 0.0  ;;  %v4467_v25 = vsel %vm143_vm1, %v4433_v19, 0.0 }
0x1746   :  { %4940 = vadd.xlane.f32.xlu2 %v4939_v46  ;;  %4468 = vadd.xlane.f32.xlu1 %v4467_v25  ;;  %v4965_v18 = vpop.xlane.xlu1 %4964 }
0x1747   :  { %v4966_v47 = vmul.f32 %v4965_v18, %v6428_v57  ;;  %5201 = vmatpush.msrb.mxu2 %v5124_v35  ;;  %v6267_v18 = vld [vmem:[%s9283_s2 + $0x390] ss:$0 sm:$0xff]  ;;  %v5106_v35 = vld [vmem:[%s9285_s3 + $0x148] sm:$0xff] }
0x1749   :  { %v8923_v31 = vsub.f32 %v4962_v58, %v4966_v47 }
0x174b   :  { %v4968_v60 = vmul.f32 %v8923_v31, %v8923_v31 }
0x174d   :  { %v4969_v44 = vsel %vm4932_vm13, %v4968_v60, 0.0 }
0x174e   :  { %4970 = vadd.xlane.f32.xlu0 %v4969_v44 }
0x175f   :  { %5031 = vrot.lane.b32.xlu1 %v5028_v20, %s6271_s13 }
0x17b1   :  { %v4466_v39 = vpop.xlane.xlu0 %4465 }
0x17b2   :  { %v4480_v13 = vmul.f32 %v4466_v39, %v6428_v57 }
0x17b4   :  { %v4492_v41 = vadd.f32 1e-06, %v4480_v13 }
0x17b6   :  { %6249 = vrsqrt.f32 %v4492_v41  ;;  %vm4600_vm8 = vweird.f32 %v4492_v41 }
0x17b9   :  { %v4941_v7 = vpop.xlane.xlu2 %4940  ;;  %v4469_v40 = vpop.xlane.xlu1 %4468 }
0x17ba   :  { %v4942_v14 = vmul.f32 %v4941_v7, %v6428_v57  ;;  %v4481_v0 = vmul.f32 %v4469_v40, %v6428_v57 }
0x17bc   :  { %v6250_v6 = vpop.eup %6249  ;;  %v8958_v59 = vadd.f32 1e-06, %v4942_v14  ;;  %v4493_v37 = vadd.f32 1e-06, %v4481_v0 }
0x17bd   :  { %v4595_v17 = vmul.f32 %v6250_v6, %v4492_v41  ;;  %vm4601_vm7 = vweird.f32 %v6250_v6 }
0x17be   :  { %6251 = vrsqrt.f32 %v8958_v59  ;;  %vm4602_vm9 = vmor %vm4600_vm8, %vm4601_vm7  ;;  %vm4610_vm12 = vweird.f32 %v4493_v37  ;;  %vm4950_vm14 = vweird.f32 %v8958_v59 }
0x17bf   :  { %v4596_v50 = vmul.f32 %v6250_v6, %v4595_v17  ;;  %6253 = vrsqrt.f32 %v4493_v37  ;;  %v5116_v17 = vld [vmem:[%s9285_s3 + $0x198] sm:$0xff] }
0x17c1   :  { %v4597_v53 = vmul.f32 0.5, %v4596_v50  ;;  %v4971_v8 = vpop.xlane.xlu0 %4970  ;;  %v5114_v50 = vld [vmem:[%s9285_s3 + $0x188] sm:$0xff] }
0x17c2   :  { %v4972_v54 = vmul.f32 %v4971_v8, %v6428_v57  ;;  %v5112_v8 = vld [vmem:[%s9285_s3 + $0x178] sm:$0xff] }
0x17c3   :  { %v4598_v49 = vsub.f32 1.5, %v4597_v53  ;;  %v5143_v53 = vld [vmem:[%s9285_s3 + $0x270] sm:$0xff] }
0x17c4   :  { %v6252_v29 = vpop.eup %6251  ;;  %v4973_v23 = vadd.f32 1e-06, %v4972_v54  ;;  %5187 = vmatpush.msra.mxu1 %v5143_v53  ;;  %v5125_v54 = vld [vmem:[%s9285_s3 + $0x1e0] sm:$0xff] }
0x17c5   :  { %v6254_v38 = vpop.eup %6253  ;;  %v4599_v58 = vmul.f32 %v6250_v6, %v4598_v49  ;;  %v4945_v57 = vmul.f32 %v6252_v29, %v8958_v59  ;;  %vm4951_vm11 = vweird.f32 %v6252_v29  ;;  %v5120_v59 = vld [vmem:[%s9285_s3 + $0x1b8] sm:$0xff]  ;;  %5160 = vmatpush.msra.mxu0 %v5125_v54  ;;  %v5110_v49 = vld [vmem:[%s9285_s3 + $0x168] sm:$0xff]  ;;  %v5255_v53 = vld [vmem:[%s9283_s2 + $0x540] sm:$0xff] }
0x17c6   :  { %v4605_v63 = vmul.f32 %v6254_v38, %v4493_v37  ;;  %6255 = vrsqrt.f32 %v4973_v23  ;;  %vm4611_vm10 = vweird.f32 %v6254_v38  ;;  %vm4952_vm2 = vmor %vm4950_vm14, %vm4951_vm11  ;;  %vm4980_vm4 = vweird.f32 %v4973_v23  ;;  %v5118_v37 = vld [vmem:[%s9285_s3 + $0x1a8] sm:$0xff]  ;;  %5188 = vmatpush.msra.mxu1 %v5141_v10 }
0x17c7   :  { %v4603_v61 = vsel %vm4602_vm9, %v6250_v6, %v4599_v58  ;;  %v4946_v26 = vmul.f32 %v6252_v29, %v4945_v57  ;;  %vm4612_vm15 = vmor %vm4610_vm12, %vm4611_vm10  ;;  %v5140_v58 = vld [vmem:[%s9285_s3 + $0x258] sm:$0xff]  ;;  %v5121_v57 = vld [vmem:[%s9285_s3 + $0x1c0] sm:$0xff]  ;;  %vm5467_vm10 = vcmask 25600  }
0x17c8   :  { %v4624_v2 = vmul.f32 %v4603_v61, %v8905_v24  ;;  %v4606_v36 = vmul.f32 %v6254_v38, %v4605_v63  ;;  %5189 = vmatpush.msra.mxu1 %v5139_v21  ;;  %v5137_v63 = vld [vmem:[%s9285_s3 + $0x240] sm:$0xff]  ;;  %v5138_v61 = vld [vmem:[%s9285_s3 + $0x248] sm:$0xff] }
0x17c9   :  { %v4947_v55 = vmul.f32 0.5, %v4946_v26  ;;  %v5119_v26 = vld [vmem:[%s9285_s3 + $0x1b0] sm:$0xff] }
0x17ca   :  { %v4607_v12 = vmul.f32 0.5, %v4606_v36  ;;  %v4637_v34 = vmul.f32 %v6266_v43, %v4624_v2  ;;  %5190 = vmatpush.msra.mxu1 %v5137_v63  ;;  %v5135_v2 = vld [vmem:[%s9285_s3 + $0x230] sm:$0xff]  ;;  %v5104_v36 = vld [vmem:[%s9285_s3 + $0x138] sm:$0xff] }
0x17cb   :  { %v4948_v19 = vsub.f32 1.5, %v4947_v55  ;;  %v5136_v55 = vld [vmem:[%s9285_s3 + $0x238] sm:$0xff] }
0x17cc   :  { %v6256_v46 = vpop.eup %6255  ;;  %v4608_v25 = vsub.f32 1.5, %v4607_v12  ;;  %v4650_v47 = vadd.f32 %v6267_v18, %v4637_v34  ;;  %5191 = vmatpush.msra.mxu1 %v5135_v2  ;;  %v5117_v12 = vld [vmem:[%s9285_s3 + $0x1a0] sm:$0xff]  ;;  %v5102_v34 = vld [vmem:[%s9285_s3 + $0x128] sm:$0xff] }
0x17cd   :  { %v4949_v60 = vmul.f32 %v6252_v29, %v4948_v19  ;;  %v4975_v24 = vmul.f32 %v6256_v46, %v4973_v23  ;;  %vm4981_vm3 = vweird.f32 %v6256_v46  ;;  %v5123_v23 = vld [vmem:[%s9285_s3 + $0x1d0] sm:$0xff]  ;;  %v5134_v19 = vld [vmem:[%s9285_s3 + $0x228] sm:$0xff] }
0x17ce   :  { %v4609_v44 = vmul.f32 %v6254_v38, %v4608_v25  ;;  %5843 = vmatmul.msk.f32.gmra.mxu3 %vm143_vm1, %v4650_v47  ;;  %vm4982_vm6 = vmor %vm4980_vm4, %vm4981_vm3  ;;  %5161 = vmatpush.msra.mxu0 %v5123_v23  ;;  %v5131_v25 = vld [vmem:[%s9285_s3 + $0x210] sm:$0xff]  ;;  %v5132_v47 = vld [vmem:[%s9285_s3 + $0x218] sm:$0xff] }
0x17cf   :  { %v4976_v3 = vmul.f32 %v6256_v46, %v4975_v24  ;;  %v4953_v20 = vsel %vm4952_vm2, %v6252_v29, %v4949_v60  ;;  %v5142_v29 = vld [vmem:[%s9285_s3 + $0x268] sm:$0xff]  ;;  %v5113_v60 = vld [vmem:[%s9285_s3 + $0x180] sm:$0xff]  ;;  %v5111_v24 = vld [vmem:[%s9285_s3 + $0x170] sm:$0xff] }
0x17d0   :  { %v4613_v9 = vsel %vm4612_vm15, %v6254_v38, %v4609_v44  ;;  %v4954_v30 = vmul.f32 %v4953_v20, %v8912_v52  ;;  %5228 = vmatpush.msra.mxu3 %v5142_v29  ;;  %v5108_v38 = vld [vmem:[%s9285_s3 + $0x158] sm:$0xff]  ;;  %5162 = vmatpush.msra.mxu0 %v5121_v57  ;;  %v5109_v44 = vld [vmem:[%s9285_s3 + $0x160] sm:$0xff]  ;;  %v6272_v29 = vmov 1   ;;  %v5253_v57 = vld [vmem:[%s9283_s2 + $0x530] sm:$0xff] }
0x17d1   :  { %v4625_v39 = vmul.f32 %v4613_v9, %v8914_v45  ;;  %v4977_v13 = vmul.f32 0.5, %v4976_v3  ;;  %v5032_v27 = vpop.permute.xlu1 %5031  ;;  %v5107_v3 = vld [vmem:[%s9285_s3 + $0x150] sm:$0xff]  ;;  %v5105_v9 = vld [vmem:[%s9285_s3 + $0x140] sm:$0xff]  ;;  %5878 = vset.pattern.permute.xlu0 %v6272_v29  ;;  %5879 = vset.pattern.permute.xlu1 %v6272_v29  ;;  %v5252_v2 = vld [vmem:[%s9283_s2 + $0x528] sm:$0xff] }
0x17d2   :  { %v4956_v45 = vmul.f32 %v5912_v33, %v4954_v30  ;;  %5229 = vmatpush.msra.mxu3 %v5140_v58  ;;  %5163 = vmatpush.msra.mxu0 %v5119_v26  ;;  %v5263_v23 = vld [vmem:[%s9283_s2 + $0x580] sm:$0xff] }
0x17d3   :  { %v4978_v41 = vsub.f32 1.5, %v4977_v13  ;;  %v4638_v1 = vmul.f32 %v6266_v43, %v4625_v39  ;;  %v5133_v43 = vld [vmem:[%s9285_s3 + $0x220] sm:$0xff]  ;;  %5331 = vperm.xlu0 %5878, %v8863_v15  }
0x17d4   :  { %v4958_v52 = vadd.f32 %v5913_v56, %v4956_v45  ;;  %5230 = vmatpush.msra.mxu3 %v5138_v61  ;;  %5164 = vmatpush.msra.mxu0 %v5117_v12  ;;  %v5261_v12 = vld [vmem:[%s9283_s2 + $0x570] sm:$0xff] }
0x17d5   :  { %v4979_v62 = vmul.f32 %v6256_v46, %v4978_v41  ;;  %v4651_v7 = vadd.f32 %v6267_v18, %v4638_v1  ;;  %5192 = vmatpush.msra.mxu1 %v5133_v43  ;;  %v5100_v18 = vld [vmem:[%s9285_s3 + $0x118] sm:$0xff]  ;;  %v5103_v41 = vld [vmem:[%s9285_s3 + $0x130] sm:$0xff]  ;;  %v5101_v1 = vld [vmem:[%s9285_s3 + $0x120] sm:$0xff] }
0x17d6   :  { %5231 = vmatpush.msra.mxu3 %v5136_v55  ;;  %v5251_v55 = vld [vmem:[%s9283_s2 + $0x520] sm:$0xff]  ;;  %v5260_v43 = vld [vmem:[%s9283_s2 + $0x568] sm:$0xff] }
0x17d7   :  { %v4983_v40 = vsel %vm4982_vm6, %v6256_v46, %v4979_v62  ;;  %5844 = vmatmul.msk.f32.gmra.mxu3 %vm143_vm1, %v4651_v7  ;;  %v5115_v46 = vld [vmem:[%s9285_s3 + $0x190] sm:$0xff]  ;;  %5193 = vmatpush.msra.mxu1 %v5131_v25  ;;  %v5398_v62 = vld [vmem:[%s9283_s2 + $0x480] sm:$0xff]  ;;  %v5258_v25 = vld [vmem:[%s9283_s2 + $0x558] sm:$0xff] }
0x17d8   :  { %v4984_v11 = vmul.f32 %v4983_v40, %v8923_v31  ;;  %v5122_v31 = vld [vmem:[%s9285_s3 + $0x1c8] sm:$0xff]  ;;  %5232 = vmatpush.msra.mxu3 %v5134_v19  ;;  %5165 = vmatpush.msra.mxu0 %v5115_v46  ;;  %v5397_v40 = vld [vmem:[%s9283_s2 + $0x478] sm:$0xff]  ;;  %v5259_v19 = vld [vmem:[%s9283_s2 + $0x560] sm:$0xff] }
0x17d9   :  { %5202 = vmatpush.msrb.mxu2 %v5122_v31  ;;  %5269 = vmatpush.msrb.mxu1 %v5255_v53  ;;  %v5248_v46 = vld [vmem:[%s9283_s2 + $0x508] sm:$0xff]  ;;  %v6277_v53 = vmov 4  }
0x17da   :  { %v4985_v14 = vmul.f32 %v5912_v33, %v4984_v11  ;;  %5233 = vmatpush.msra.mxu3 %v5132_v47  ;;  %5166 = vmatpush.msra.mxu0 %v5113_v60  ;;  %v5099_v33 = vld [vmem:[%s9285_s3 + $0x110] sm:$0xff]  ;;  %v5246_v60 = vld [vmem:[%s9283_s2 + $0x4f8] sm:$0xff] }
0x17db   :  { %5203 = vmatpush.msrb.mxu2 %v5120_v59  ;;  %v5257_v47 = vld [vmem:[%s9283_s2 + $0x550] sm:$0xff] }
0x17dc   :  { %v4986_v0 = vadd.f32 %v5913_v56, %v4985_v14  ;;  %5167 = vmatpush.msra.mxu0 %v5111_v24  ;;  %v5256_v24 = vld [vmem:[%s9283_s2 + $0x548] sm:$0xff] }
0x17dd   :  { %5204 = vmatpush.msrb.mxu2 %v5118_v37 }
0x17de   :  { %v4987_v28 = vadd.f32 %v4986_v0, %v4958_v52  ;;  %5168 = vmatpush.msra.mxu0 %v5109_v44  ;;  %v5396_v52 = vld [vmem:[%s9283_s2 + $0x470] sm:$0xff] }
0x17df   :  { %5205 = vmatpush.msrb.mxu2 %v5116_v17  ;;  %v5245_v44 = vld [vmem:[%s9283_s2 + $0x4f0] sm:$0xff] }
0x17e0   :  { %v9007_v6 = vsel %vm143_vm1, %v4987_v28, %v5032_v27  ;;  %5169 = vmatpush.msra.mxu0 %v5107_v3  ;;  %v5395_v27 = vld [vmem:[%s9283_s2 + $0x468] sm:$0xff] }
0x17e1   :  { %5847 = vmatmul.msk.f32.vlgmr.msra.gmra.mxu2 %vm47_vm0, %v9007_v6  ;;  %5848 = vmatmul.msk.f32.vlgmr.msrb.gmra.mxu3 %vm47_vm0, %v9007_v6  ;;  %v5846_v28 = vld [vmem:[%s9285_s3 + $0x100] ss:$8 sm:$0x3] }
0x17e2   :  { %5206 = vmatpush.msrb.mxu2 %v5114_v50  ;;  %5170 = vmatpush.msra.mxu0 %v5105_v9  ;;  %v5050_v37 = vperm.slane %v5846_v28, 0  ;;  %v5051_v17 = vperm.slane %v5846_v28, 1  ;;  %v5244_v3 = vld [vmem:[%s9283_s2 + $0x4e8] sm:$0xff]  ;;  %v5243_v9 = vld [vmem:[%s9283_s2 + $0x4e0] sm:$0xff] }
0x17e3   :  { %5297 = vmatpush.msrb.mxu3 %v5263_v23 }
0x17e4   :  { %5207 = vmatpush.msrb.mxu2 %v5112_v8  ;;  %5171 = vmatpush.msra.mxu0 %v5103_v41  ;;  %v5254_v8 = vld [vmem:[%s9283_s2 + $0x538] sm:$0xff]  ;;  %v5425_v41 = vld [vmem:[%s9283_s2 + $0x4a8] sm:$0xff] }
0x17e5   :  { %5270 = vmatpush.msrb.mxu1 %v5254_v8 }
0x17e6   :  { %5208 = vmatpush.msrb.mxu2 %v5110_v49  ;;  %5172 = vmatpush.msra.mxu0 %v5101_v1  ;;  %v5424_v1 = vld [vmem:[%s9283_s2 + $0x4a0] sm:$0xff] }
0x17e7   :  { %5271 = vmatpush.msrb.mxu1 %v5253_v57 }
0x17e8   :  { %5209 = vmatpush.msrb.mxu2 %v5108_v38  ;;  %5173 = vmatpush.msra.mxu0 %v5099_v33  ;;  %v5422_v33 = vld [vmem:[%s9283_s2 + $0x490] sm:$0xff] }
0x17e9   :  { %5272 = vmatpush.msrb.mxu1 %v5252_v2 }
0x17ea   :  { %5210 = vmatpush.msrb.mxu2 %v5106_v35  ;;  %5411 = vmatpush.msrb.mxu0 %v5398_v62  ;;  %v5849_v62 = vld [vmem:[%s9285_s3 + $0x290] ss:$8 sm:$0x3] }
0x17eb   :  { %5273 = vmatpush.msrb.mxu1 %v5251_v55 }
0x17ec   :  { %5211 = vmatpush.msrb.mxu2 %v5104_v36  ;;  %5412 = vmatpush.msrb.mxu0 %v5397_v40  ;;  %v5262_v36 = vld [vmem:[%s9283_s2 + $0x578] sm:$0xff] }
0x17ed   :  { %5298 = vmatpush.msrb.mxu3 %v5262_v36 }
0x17ee   :  { %5212 = vmatpush.msrb.mxu2 %v5102_v34  ;;  %5413 = vmatpush.msrb.mxu0 %v5396_v52  ;;  %v5249_v34 = vld [vmem:[%s9283_s2 + $0x510] sm:$0xff]  ;;  %v5151_v52 = vperm.slane %v5849_v62, 1 }
0x17ef   :  { %5299 = vmatpush.msrb.mxu3 %v5261_v12 }
0x17f0   :  { %5213 = vmatpush.msrb.mxu2 %v5100_v18  ;;  %5414 = vmatpush.msrb.mxu0 %v5395_v27  ;;  %v5247_v18 = vld [vmem:[%s9283_s2 + $0x500] sm:$0xff] }
0x17f1   :  { %5300 = vmatpush.msrb.mxu3 %v5260_v43 }
0x17f3   :  { %5301 = vmatpush.msrb.mxu3 %v5259_v19 }
0x17f5   :  { %5302 = vmatpush.msrb.mxu3 %v5258_v25 }
0x17f7   :  { %5303 = vmatpush.msrb.mxu3 %v5257_v47 }
0x17f9   :  { %5304 = vmatpush.msrb.mxu3 %v5256_v24 }
0x1845   :  { %v5332_v40 = vpop.permute.xlu0 %5331 }
0x1851   :  { %v4740_v20 = vpop.f32.mrf.mxu3 }
0x1852   :  { %v4741_v39 = vadd.f32 %v4740_v20, %v8824_v32  ;;  %v5242_v20 = vld [vmem:[%s9283_s2 + $0x4d8] sm:$0xff] }
0x1854   :  { %v4756_v13 = vmul.f32 %v4741_v39, %v4741_v39 }
0x1856   :  { %v4768_v30 = vmul.f32 %v4756_v13, %v4741_v39  ;;  %v5240_v13 = vld [vmem:[%s9283_s2 + $0x4c8] sm:$0xff] }
0x1858   :  { %v4780_v7 = vmul.f32 0.044715, %v4768_v30  ;;  %v5423_v30 = vld [vmem:[%s9283_s2 + $0x498] sm:$0xff] }
0x185a   :  { %v4792_v11 = vadd.f32 %v4780_v7, %v4741_v39  ;;  %v4743_v45 = vpop.f32.mrf.mxu3  ;;  %v5328_v7 = vadd.s32 1, %v6862_v5 }
0x185b   :  { %v4744_v56 = vadd.f32 %v4743_v45, %v8824_v32  ;;  %v5394_v32 = vld [vmem:[%s9283_s2 + $0x460] sm:$0xff] }
0x185c   :  { %v4804_v14 = vmul.f32 0.7978846, %v4792_v11  ;;  %5415 = vmatpush.msrb.mxu0 %v5394_v32  ;;  %v6273_v11 = vmov 5  }
0x185d   :  { %v4757_v0 = vmul.f32 %v4744_v56, %v4744_v56  ;;  %5883 = vset.pattern.permute.xlu0 %v6273_v11 }
0x185e   :  { %6257 = vtanh.f32 %v4804_v14  ;;  %5416 = vmatpush.msrb.mxu0 %v5393_v42  ;;  %v6274_v14 = vmov 3   ;;  %v5150_v42 = vperm.slane %v5849_v62, 0 }
0x185f   :  { %v4769_v31 = vmul.f32 %v4757_v0, %v4744_v56  ;;  %5881 = vset.pattern.permute.xlu2 %v6274_v14  ;;  %v6275_v0 = vmov 0.0  }
0x1861   :  { %v4781_v59 = vmul.f32 0.044715, %v4769_v31 }
0x1863   :  { %v4793_v51 = vadd.f32 %v4781_v59, %v4744_v56 }
0x1864   :  { %v6258_v50 = vpop.eup %6257  ;;  %v5074_v4 = vpop.f32.mrf.mxu2 }
0x1865   :  { %v5094_v22 = vpop.f32.mrf.mxu3  ;;  %v5075_v16 = vadd.f32 %v5074_v4, %v5050_v37  ;;  %v4828_v10 = vadd.f32 1.0, %v6258_v50  ;;  %v4805_v49 = vmul.f32 0.7978846, %v4793_v51 }
0x1866   :  { %v5095_v54 = vadd.f32 %v5094_v22, %v5051_v17  ;;  %v6276_v17 = vmov 2  }
0x1867   :  { %v5097_v21 = vmax.f32 %v5075_v16, 0.0  ;;  %v4840_v58 = vmul.f32 0.5, %v4828_v10  ;;  %6259 = vtanh.f32 %v4805_v49  ;;  %v5914_v16 = vld [vmem:[%s9283_s2 + $0x488] ss:$0 sm:$0xff] }
0x1868   :  { %v5098_v38 = vmax.f32 %v5095_v54, 0.0 }
0x1869   :  { %5214 = vmatmul.f32.vlgmr.msrb.gmra.mxu2 %v5097_v21  ;;  %v4852_v63 = vmul.f32 %v4840_v58, %v4741_v39  ;;  %v5241_v39 = vld [vmem:[%s9283_s2 + $0x4d0] sm:$0xff] }
0x186a   :  { %5850 = vmatmul.msk.f32.vlgmr.msra.gmra.mxu1 %vm5154_vm5, %v5098_v38  ;;  %5851 = vmatmul.msk.f32.vlgmr.msra.gmra.mxu3 %vm5154_vm5, %v5098_v38  ;;  %v5916_v58 = vld [vmem:[%s9283_s2 + $0x4b0] ss:$0 sm:$0xff] }
0x186b   :  { %4910 = vmatmul.f32.gmra.mxu0 %v4852_v63 }
0x186d   :  { %v6260_v15 = vpop.eup %6259 }
0x186e   :  { %v4829_v35 = vadd.f32 1.0, %v6260_v15 }
0x1870   :  { %v4841_v61 = vmul.f32 0.5, %v4829_v35  ;;  %v5917_v35 = vld [vmem:[%s9283_s2 + $0x4b8] ss:$0 sm:$0xff] }
0x1872   :  { %v4853_v26 = vmul.f32 %v4841_v61, %v4744_v56  ;;  %v5329_v56 = vcvt.s32.f32 %v5328_v7 }
0x1874   :  { %4912 = vmatmul.f32.gmra.mxu0 %v4853_v26 }
0x187c   :  { %5174 = vmatmul.f32.vlgmr.msra.gmra.mxu0 %v5097_v21 }
0x187d   :  { %5443 = vmatpush.msra.mxu0 %v5425_v41 }
0x187f   :  { %5444 = vmatpush.msra.mxu0 %v5424_v1 }
0x1881   :  { %5445 = vmatpush.msra.mxu0 %v5423_v30 }
0x1883   :  { %5446 = vmatpush.msra.mxu0 %v5422_v33  ;;  %v5918_v33 = vld [vmem:[%s9283_s2 + $0x4c0] ss:$0 sm:$0xff] }
0x1884   :  { %5855 = vmatmul.msk.f32.vlgmr.msrb.gmra.mxu0 %vm47_vm0, %v9007_v6  ;;  %v5250_v6 = vld [vmem:[%s9283_s2 + $0x518] sm:$0xff]  ;;  %vm5334_vm0 = vcmp.eq.f32.partialorder %v5332_v40, %v5329_v56 }
0x1885   :  { %5274 = vmatpush.msrb.mxu1 %v5250_v6  ;;  %v5854_v27 = vsel %vm5334_vm0, 1.0, %v6275_v0 }
0x1886   :  { %5344 = vperm.xlu1 %5879, %v5854_v27   ;;  %5384 = vperm.xlu0 %5883, %v5854_v27  }
0x1887   :  { %5275 = vmatpush.msrb.mxu1 %v5249_v34  ;;  %5364 = vperm.xlu2 %5881, %v5854_v27  }
0x1889   :  { %5276 = vmatpush.msrb.mxu1 %v5248_v46 }
0x188b   :  { %5277 = vmatpush.msrb.mxu1 %v5247_v18 }
0x188d   :  { %5278 = vmatpush.msrb.mxu1 %v5246_v60 }
0x188e   :  { %5880 = vset.pattern.permute.xlu1 %v6276_v17 }
0x188f   :  { %5279 = vmatpush.msrb.mxu1 %v5245_v44  ;;  %5354 = vperm.xlu1 %5880, %v5854_v27  }
0x1890   :  { %5884 = vset.pattern.permute.xlu2 %v6270_v48  ;;  %v5915_v48 = vld [vmem:[%s9283_s2 + $0x588] ss:$0 sm:$0xff] }
0x1891   :  { %5280 = vmatpush.msrb.mxu1 %v5244_v3  ;;  %5339 = vperm.xlu2 %5884, %v5854_v27  }
0x1893   :  { %5281 = vmatpush.msrb.mxu1 %v5243_v9 }
0x1895   :  { %5282 = vmatpush.msrb.mxu1 %v5242_v20 }
0x1897   :  { %5283 = vmatpush.msrb.mxu1 %v5241_v39  ;;  %5882 = vset.pattern.permute.xlu1 %v6277_v53 }
0x1898   :  { %5374 = vperm.xlu1 %5882, %v5854_v27  }
0x1899   :  { %5284 = vmatpush.msrb.mxu1 %v5240_v13 }
0x18e1   :  { %v5365_v39 = vpop.permute.xlu2 %5364 }
0x18e7   :  { %v5195_v4 = vpop.f32.mrf.mxu1 }
0x18e8   :  { %v4911_v45 = vpop.f32.mrf.mxu0 }
0x18eb   :  { %v5340_v40 = vpop.permute.xlu2 %5339 }
0x18ec   :  { %v5215_v28 = vpop.f32.mrf.mxu2 }
0x18ed   :  { %v5216_v31 = vadd.f32 %v5215_v28, %v5151_v52  ;;  %v5235_v32 = vpop.f32.mrf.mxu3 }
0x18ef   :  { %v5236_v59 = vadd.f32 %v5235_v32, %v5216_v31 }
0x18f1   :  { %v5239_v37 = vmax.f32 %v5236_v59, 0.0  ;;  %v4913_v5 = vpop.f32.mrf.mxu0 }
0x18f3   :  { %5852 = vmatmul.msk.f32.vlgmr.msrb.gmra.mxu3 %vm5154_vm5, %v5239_v37 }
0x18f8   :  { %v5345_v12 = vpop.permute.xlu1 %5344  ;;  %v5385_v1 = vpop.permute.xlu0 %5384 }
0x18f9   :  { %v5175_v51 = vpop.f32.mrf.mxu0 }
0x18fa   :  { %v5176_v50 = vadd.f32 %v5175_v51, %v5150_v42 }
0x18fc   :  { %v5196_v22 = vadd.f32 %v5195_v4, %v5176_v50 }
0x18fe   :  { %v5238_v8 = vmax.f32 %v5196_v22, 0.0 }
0x1900   :  { %5285 = vmatmul.f32.vlgmr.msrb.gmra.mxu1 %v5238_v8 }
0x1901   :  { %v5418_v54 = vpop.f32.mrf.mxu0  ;;  %v5355_v18 = vpop.permute.xlu1 %5354 }
0x1902   :  { %v5419_v10 = vadd.f32 %v5914_v16, %v5418_v54 }
0x1904   :  { %v5421_v49 = vmax.f32 %v5419_v10, 0.0 }
0x1906   :  { %5856 = vmatmul.msk.f32.vlgmr.msra.gmra.mxu0 %vm143_vm1, %v5421_v49 }
0x190a   :  { %v5375_v20 = vpop.permute.xlu1 %5374 }
0x1976   :  { %v5306_v21 = vpop.f32.mrf.mxu3 }
0x197d   :  { %v5286_v29 = vpop.f32.mrf.mxu1 }
0x197e   :  { %v5287_v23 = vadd.f32 %v5915_v48, %v5286_v29 }
0x1980   :  { %v5307_v38 = vadd.f32 %v5306_v21, %v5287_v23 }
0x1982   :  { %v5853_v57 = vmul.f32 -1.442695, %v5307_v38 }
0x1983   :  { %v5448_v63 = vpop.f32.mrf.mxu0 }
0x1984   :  { %6261 = vpow2.f32 %v5853_v57  ;;  %v5449_v15 = vadd.f32 %v5916_v58, %v5448_v63 }
0x1986   :  { %v5451_v61 = vmax.f32 %v5449_v15, 0.0 }
0x1988   :  { %v5454_v26 = vmul.f32 %v5917_v35, %v5451_v61 }
0x198a   :  { %v6262_v2 = vpop.eup %6261  ;;  %v5455_v36 = vsel %vm4932_vm13, %v5454_v26, 0.0  ;;  %vm5465_vm13 = vcmask 23552  }
0x198b   :  { %v5312_v55 = vadd.f32 1.0, %v6262_v2  ;;  %5456 = vadd.xlane.f32.xlu1 %v5455_v36 }
0x198d   :  { %6263 = vrcp.f32 %v5312_v55  ;;  %v5324_v19 = vand.u32 2147483648, %v5312_v55  ;;  %v5322_v25 = vand.u32 2147483647, %v5312_v55  ;;  %vm5318_vm7 = vweird.f32 %v5312_v55 }
0x198f   :  { %v5325_v60 = vor.u32 1.1754944e-38, %v5324_v19  ;;  %vm5323_vm9 = vcmp.eq.f32.partialorder %v5322_v25, 8.507059e+37 }
0x1993   :  { %v6264_v6 = vpop.eup %6263 }
0x1994   :  { %v5314_v43 = vmul.f32 %v6264_v6, %v5312_v55  ;;  %vm5319_vm1 = vweird.f32 %v6264_v6 }
0x1995   :  { %vm5320_vm8 = vmor %vm5318_vm7, %vm5319_vm1 }
0x1996   :  { %v5315_v34 = vsub.f32 1.0, %v5314_v43 }
0x1998   :  { %v5316_v46 = vmul.f32 %v6264_v6, %v5315_v34 }
0x199a   :  { %v5317_v47 = vadd.f32 %v6264_v6, %v5316_v46 }
0x199c   :  { %v5321_v24 = vsel %vm5320_vm8, %v6264_v6, %v5317_v47 }
0x199d   :  { %v5326_v44 = vsel %vm5323_vm9, %v5325_v60, %v5321_v24 }
0x199e   :  { %v5347_v3 = vmul.f32 %v5345_v12, %v5326_v44  ;;  %v5357_v9 = vmul.f32 %v5355_v18, %v5326_v44  ;;  %v5367_v13 = vmul.f32 %v5365_v39, %v5326_v44  ;;  %v5377_v41 = vmul.f32 %v5375_v20, %v5326_v44 }
0x199f   :  { %v5387_v30 = vmul.f32 %v5385_v1, %v5326_v44  ;;  %v5342_v56 = vmul.f32 %v5340_v40, %v5326_v44 }
0x19a0   :  { %5349 = vrot.lane.b32.xlu0 %v5347_v3, %s6278_s1  ;;  %5359 = vrot.lane.b32.xlu2 %v5357_v9, %s6279_s25 }
0x19a8   :  { %5369 = vrot.lane.b32.xlu0 %v5367_v13, %s6280_s26  ;;  %5379 = vrot.lane.b32.xlu2 %v5377_v41, %s6281_s27 }
0x19b0   :  { %5389 = vrot.lane.b32.xlu0 %v5387_v30, %s6282_s28 }
0x19fa   :  { %v5360_v45 = vpop.permute.xlu2 %5359 }
0x19fe   :  { %v5457_v62 = vpop.xlane.xlu1 %5456 }
0x19ff   :  { %v5460_v7 = vadd.f32 %v5918_v33, %v5457_v62 }
0x1a01   :  { %5462 = vrot.lane.b32.xlu2 %v5460_v7, %s6283_s30 }
0x1a02   :  { %v5380_v27 = vpop.permute.xlu2 %5379 }
0x1a12   :  { %v5350_v11 = vpop.permute.xlu0 %5349 }
0x1a13   :  { %v5352_v52 = vadd.f32 %v5350_v11, %v5342_v56 }
0x1a15   :  { %v5362_v0 = vadd.f32 %v5360_v45, %v5352_v52 }
0x1a1a   :  { %v5370_v14 = vpop.permute.xlu0 %5369 }
0x1a1b   :  { %v5372_v28 = vadd.f32 %v5370_v14, %v5362_v0 }
0x1a1d   :  { %v5382_v32 = vadd.f32 %v5380_v27, %v5372_v28 }
0x1a22   :  { %v5390_v31 = vpop.permute.xlu0 %5389 }
0x1a23   :  { %v5392_v59 = vadd.f32 %v5390_v31, %v5382_v32 }
0x1a5b   :  { %v5463_v37 = vpop.permute.xlu2 %5462 }
0x1a5c   :  { %v5466_v5 = vsel %vm5465_vm13, %v5392_v59, %v5463_v37 }
0x1a5d   :  { %5468 = vst.msk [vmem:[%s9287_s4] sm:$0x3] %vm5467_vm10, %v5466_v5 }

</bundles_post_ra>
